<compile_context>
chip_gen: v7x
topology: tpu7x:2x2x1
jax: 0.10.0
libtpu: 0.0.40
codegen_flags: <defaults>
</compile_context>

<pallas_src>
import functools

import jax
import jax.numpy as jnp
from jax.experimental import pallas as pl
from jax.experimental.pallas import tpu as pltpu


def _round_up(x, m):
    return (x + m - 1) // m * m


def _pick_tn(op):
    # op is always a multiple of 128; tn must divide op (review bug-fix).
    return 256 if op % 256 == 0 else 128


# ----------------------------------------------------------------------------
# Fused 3x3 conv (stride 1, pad 1) + bias + masked BN-statistics kernel.
#   a_ref : (1, MA, CP) bf16   zero-padded image, flattened, L1 layout at +lead
#   w_ref : (9, CP, tn) bf16   [dh*3+dw, cin_pad, cout_tile]
#   b_ref : (1, tn)     f32
#   m_ref : (mo, 1)     f32    1.0 on valid output rows, 0.0 on border rows
#   c_ref : (1, mo, tn) f32    conv output on the padded-grid (L0) layout
#   sum_ref/ssq_ref : (1, 1, tn) f32  masked per-channel sum / sum-of-squares
# ----------------------------------------------------------------------------
def _conv3x3_kernel(a_ref, w_ref, b_ref, m_ref, c_ref, sum_ref, ssq_ref,
                    *, wp, mo, lead):
    acc = jnp.dot(a_ref[0, lead:lead + mo, :], w_ref[0],
                  preferred_element_type=jnp.float32)
    for t in range(1, 9):
        off = lead + (t // 3) * wp + (t % 3)
        acc = acc + jnp.dot(a_ref[0, off:off + mo, :], w_ref[t],
                            preferred_element_type=jnp.float32)
    y = acc + b_ref[...]                       # bias fused; single store below
    c_ref[0] = y
    ym = y * m_ref[...]                        # mask out padded-grid rows
    sum_ref[0] = jnp.sum(ym, axis=0, keepdims=True)
    ssq_ref[0] = jnp.sum(ym * y, axis=0, keepdims=True)


def conv3x3_bn_stats(a, w9, b2d, mask, *, wp, mo, lead):
    """a: (N, MA, CP) bf16 conv input (L1 layout at +lead).  Returns
    (conv (N, mo, OP) f32, sums (N, 1, OP) f32, sumsq (N, 1, OP) f32)."""
    n, ma, cp = a.shape
    op = w9.shape[-1]
    tn = _pick_tn(op)

    kernel = functools.partial(_conv3x3_kernel, wp=wp, mo=mo, lead=lead)
    flops = 2 * n * mo * 9 * cp * op
    bytes_accessed = (a.size * 2 + w9.size * 2 + b2d.size * 4
                      + n * mo * op * 4 + 2 * n * op * 4)

    return pl.pallas_call(
        kernel,
        out_shape=(jax.ShapeDtypeStruct((n, mo, op), jnp.float32),
                   jax.ShapeDtypeStruct((n, 1, op), jnp.float32),
                   jax.ShapeDtypeStruct((n, 1, op), jnp.float32)),
        grid_spec=pltpu.PrefetchScalarGridSpec(
            num_scalar_prefetch=0,
            grid=(n, op // tn),
            in_specs=[
                pl.BlockSpec((1, ma, cp), lambda i, j: (i, 0, 0)),
                pl.BlockSpec((9, cp, tn), lambda i, j: (0, 0, j)),
                pl.BlockSpec((1, tn), lambda i, j: (0, j)),
                pl.BlockSpec((mo, 1), lambda i, j: (0, 0)),
            ],
            out_specs=(pl.BlockSpec((1, mo, tn), lambda i, j: (i, 0, j)),
                       pl.BlockSpec((1, 1, tn), lambda i, j: (i, 0, j)),
                       pl.BlockSpec((1, 1, tn), lambda i, j: (i, 0, j))),
        ),
        compiler_params=pltpu.CompilerParams(
            dimension_semantics=("parallel", "parallel")),
        cost_estimate=pl.CostEstimate(flops=flops, transcendentals=0,
                                      bytes_accessed=bytes_accessed),
    )(a, w9, b2d, mask)


def _bn_scale_shift(sums, ssq, gamma_pad, beta_pad, count, eps=1e-5):
    """Finish training-mode BN from fused partial stats (tiny jnp reduction)."""
    s = jnp.sum(sums, axis=0)                     # (1, OP)
    q = jnp.sum(ssq, axis=0)                      # (1, OP)
    mean = s / count
    var = jnp.maximum(q / count - mean * mean, 0.0)
    scale = gamma_pad * jax.lax.rsqrt(var + eps)
    shift = beta_pad - mean * scale
    return scale.astype(jnp.float32), shift.astype(jnp.float32)


# ----------------------------------------------------------------------------
# Fused BN(scale/shift) + LeakyReLU, writing bf16 directly into the next
# conv's zero-padded flattened input layout (valid rows at [lead+wp+1, ...)).
# ----------------------------------------------------------------------------
def _bn_act_to_conv_in_kernel(x_ref, s_ref, t_ref, m_ref, o_ref, *, wp, mo, lead):
    ma, tn = o_ref.shape[1], o_ref.shape[2]
    head = lead + wp + 1                      # multiple of 8 (aligned bf16 store)
    y = x_ref[0] * s_ref[...] + t_ref[...]
    y = jnp.where(y >= 0, y, 0.01 * y)
    y = jnp.where(m_ref[...] > 0, y, 0.0).astype(o_ref.dtype)   # zero borders
    o_ref[0, 0:head, :] = jnp.zeros((head, tn), o_ref.dtype)
    o_ref[0, head:head + mo, :] = y
    o_ref[0, head + mo:ma, :] = jnp.zeros((ma - head - mo, tn), o_ref.dtype)


def bn_act_to_conv_input(c1, scale, shift, mask, *, ma, wp, mo, lead):
    n, _, op = c1.shape
    tn = _pick_tn(op)
    kernel = functools.partial(_bn_act_to_conv_in_kernel, wp=wp, mo=mo, lead=lead)
    return pl.pallas_call(
        kernel,
        out_shape=jax.ShapeDtypeStruct((n, ma, op), jnp.bfloat16),
        grid_spec=pltpu.PrefetchScalarGridSpec(
            num_scalar_prefetch=0,
            grid=(n, op // tn),
            in_specs=[pl.BlockSpec((1, mo, tn), lambda i, j: (i, 0, j)),
                      pl.BlockSpec((1, tn), lambda i, j: (0, j)),
                      pl.BlockSpec((1, tn), lambda i, j: (0, j)),
                      pl.BlockSpec((mo, 1), lambda i, j: (0, 0))],
            out_specs=pl.BlockSpec((1, ma, tn), lambda i, j: (i, 0, j)),
        ),
        compiler_params=pltpu.CompilerParams(
            dimension_semantics=("parallel", "parallel")),
    )(c1, scale, shift, mask)


# ----------------------------------------------------------------------------
# Fused BN(scale/shift) + residual add + LeakyReLU (final stage).
# Residual is read from the bf16 conv1-input array (L1 layout) with the
# matching row shift, so no separate residual tensor is materialized.
# ----------------------------------------------------------------------------
def _bn_add_act_kernel(x_ref, r_ref, s_ref, t_ref, o_ref, *, wp, mo, lead):
    head = lead + wp + 1
    y = x_ref[0] * s_ref[...] + t_ref[...]
    y = y + r_ref[0, head:head + mo, :].astype(jnp.float32)
    o_ref[0] = jnp.where(y >= 0, y, 0.01 * y)


def bn_add_act(c2, residual_a, scale, shift, *, wp, mo, lead):
    n, _, op = c2.shape
    ma = residual_a.shape[1]
    tn = _pick_tn(op)
    kernel = functools.partial(_bn_add_act_kernel, wp=wp, mo=mo, lead=lead)
    return pl.pallas_call(
        kernel,
        out_shape=jax.ShapeDtypeStruct((n, mo, op), jnp.float32),
        grid_spec=pltpu.PrefetchScalarGridSpec(
            num_scalar_prefetch=0,
            grid=(n, op // tn),
            in_specs=[pl.BlockSpec((1, mo, tn), lambda i, j: (i, 0, j)),
                      pl.BlockSpec((1, ma, tn), lambda i, j: (i, 0, j)),
                      pl.BlockSpec((1, tn), lambda i, j: (0, j)),
                      pl.BlockSpec((1, tn), lambda i, j: (0, j))],
            out_specs=pl.BlockSpec((1, mo, tn), lambda i, j: (i, 0, j)),
        ),
        compiler_params=pltpu.CompilerParams(
            dimension_semantics=("parallel", "parallel")),
    )(c2, residual_a, scale, shift)


# ----------------------------------------------------------------------------
# Glue (layout-only ops kept in plain JAX)
# ----------------------------------------------------------------------------
def pixel_shuffle(x, r=2):
    # NHWC equivalent of torch.nn.PixelShuffle(r) on NCHW.
    n, h, w, c = x.shape
    co = c // (r * r)
    x = x.reshape(n, h, w, co, r, r)
    x = jnp.transpose(x, (0, 1, 4, 2, 5, 3))
    return x.reshape(n, h * r, w * r, co)


# ----------------------------------------------------------------------------
# UpsampleResBlock forward
# ----------------------------------------------------------------------------
def upsample_res_block_forward(prepped, x_nhwc, y_nhwc):
    up = pixel_shuffle(x_nhwc, 2)
    identity = jnp.concatenate([up, y_nhwc], axis=-1)          # (N, H, W, C)
    n, h, w, c = identity.shape
    hp, wp = h + 2, w + 2
    mo = hp * wp
    lead = (-(wp + 1)) % 8                 # aligns the L1 interior to 8 rows
    ma = _round_up(lead + mo + 2 * wp + 2, 8)
    op = prepped['conv1']['w9'].shape[-1]  # channel-padded width (mult of 128)
    count = n * h * w

    rows = jnp.arange(mo, dtype=jnp.int32)
    mask = (((rows // wp) < h) & ((rows % wp) < w)).astype(jnp.float32)[:, None]

    # conv1 input / residual: zero-padded spatially + channels, flattened, bf16.
    xp = jnp.pad(identity, ((0, 0), (1, 1), (1, 1), (0, op - c)))
    a_id = jnp.pad(xp.reshape(n, mo, op),
                   ((0, 0), (lead, ma - lead - mo), (0, 0))).astype(jnp.bfloat16)

    # conv1 + bias + fused BN stats
    c1, s1, q1 = conv3x3_bn_stats(a_id, prepped['conv1']['w9'],
                                  prepped['conv1']['b2d'], mask,
                                  wp=wp, mo=mo, lead=lead)
    sc1, sh1 = _bn_scale_shift(s1, q1, prepped['bn1']['gamma'],
                               prepped['bn1']['beta'], count)
    # bn1 + act1, written straight into conv2's padded bf16 input layout
    a2 = bn_act_to_conv_input(c1, sc1, sh1, mask, ma=ma, wp=wp, mo=mo, lead=lead)

    # conv2 + bias + fused BN stats
    c2, s2, q2 = conv3x3_bn_stats(a2, prepped['conv2']['w9'],
                                  prepped['conv2']['b2d'], mask,
                                  wp=wp, mo=mo, lead=lead)
    sc2, sh2 = _bn_scale_shift(s2, q2, prepped['bn2']['gamma'],
                               prepped['bn2']['beta'], count)
    # bn2 + residual add + act2
    out = bn_add_act(c2, a_id, sc2, sh2, wp=wp, mo=mo, lead=lead)

    # single crop at the very end (lane-dense op=128 kept until here)
    return out.reshape(n, hp, wp, op)[:, :h, :w, :c]


# ----------------------------------------------------------------------------
# Parameter init (PyTorch layout) + one-time prep into the kernel layout
# ----------------------------------------------------------------------------
def _init_conv(key, o, i, kh, kw):
    k1, k2 = jax.random.split(key)
    fan_in = i * kh * kw
    w = jax.random.normal(k1, (o, i, kh, kw), jnp.float32) / jnp.sqrt(float(fan_in))
    b = 0.01 * jax.random.normal(k2, (o,), jnp.float32)
    return {'w': w, 'b': b}


def _init_bn(c):
    return {'gamma': jnp.ones((c,), jnp.float32),
            'beta': jnp.zeros((c,), jnp.float32)}


def init_params(key, out_channels):
    k1, k2 = jax.random.split(key)
    return {'conv1': _init_conv(k1, out_channels, out_channels, 3, 3),
            'bn1': _init_bn(out_channels),
            'conv2': _init_conv(k2, out_channels, out_channels, 3, 3),
            'bn2': _init_bn(out_channels)}


def _prep_conv(p, cp, op):
    o, i, kh, kw = p['w'].shape
    w9 = jnp.transpose(p['w'], (2, 3, 1, 0)).reshape(kh * kw, i, o)
    w9 = jnp.pad(w9, ((0, 0), (0, cp - i), (0, op - o))).astype(jnp.bfloat16)
    b2d = jnp.pad(p['b'], (0, op - o)).reshape(1, op).astype(jnp.float32)
    return {'w9': w9, 'b2d': b2d}


def _prep_bn(p, op):
    c = p['gamma'].shape[0]
    return {'gamma': jnp.pad(p['gamma'], (0, op - c)).reshape(1, op),
            'beta': jnp.pad(p['beta'], (0, op - c)).reshape(1, op)}


def prep_params(params):
    c = params['bn1']['gamma'].shape[0]
    op = _round_up(c, 128)                       # lane-dense padded channels
    return {'conv1': _prep_conv(params['conv1'], op, op),
            'conv2': _prep_conv(params['conv2'], op, op),
            'bn1': _prep_bn(params['bn1'], op),
            'bn2': _prep_bn(params['bn2'], op)}


# ----------------------------------------------------------------------------
# Plain-XLA f32 reference (loose numerical sanity check; kernel is bf16-MXU)
# ----------------------------------------------------------------------------
def _reference_forward(params, x_nhwc, y_nhwc):
    def conv(x, w, b):
        return jax.lax.conv_general_dilated(
            x, jnp.transpose(w, (2, 3, 1, 0)), (1, 1), 'SAME',
            dimension_numbers=('NHWC', 'HWIO', 'NHWC'),
            precision=jax.lax.Precision.HIGHEST) + b

    def bn(x, gamma, beta, eps=1e-5):
        mean = jnp.mean(x, axis=(0, 1, 2), keepdims=True)
        var = jnp.mean((x - mean) ** 2, axis=(0, 1, 2), keepdims=True)
        return (x - mean) * jax.lax.rsqrt(var + eps) * gamma + beta

    def leaky(x):
        return jnp.where(x >= 0, x, 0.01 * x)

    up = pixel_shuffle(x_nhwc, 2)
    identity = jnp.concatenate([up, y_nhwc], axis=-1)
    out = leaky(bn(conv(identity, params['conv1']['w'], params['conv1']['b']),
                   params['bn1']['gamma'], params['bn1']['beta']))
    out = bn(conv(out, params['conv2']['w'], params['conv2']['b']),
             params['bn2']['gamma'], params['bn2']['beta'])
    return leaky(out + identity)


# ----------------------------------------------------------------------------
if __name__ == "__main__":
    key = jax.random.PRNGKey(0)
    kp, kx, ky = jax.random.split(key, 3)

    out_channels = 64
    n, h, w = 2, 8, 8          # x: (N, 2*C, h, w), y: (N, C//2, 2h, 2w)

    params = init_params(kp, out_channels)
    prepped = prep_params(params)

    x_nchw = jax.random.normal(kx, (n, 2 * out_channels, h, w), jnp.float32)
    y_nchw = jax.random.normal(ky, (n, out_channels // 2, 2 * h, 2 * w), jnp.float32)
    x_nhwc = jnp.transpose(x_nchw, (0, 2, 3, 1))
    y_nhwc = jnp.transpose(y_nchw, (0, 2, 3, 1))

    fwd = jax.jit(upsample_res_block_forward)
    out_nhwc = fwd(prepped, x_nhwc, y_nhwc)
    out_nchw = jnp.transpose(out_nhwc, (0, 3, 1, 2))   # back to PyTorch NCHW
    jax.block_until_ready(out_nchw)

    assert out_nchw.shape == (n, out_channels, 2 * h, 2 * w), out_nchw.shape
    assert bool(jnp.all(jnp.isfinite(out_nchw)))

    # Loose-tolerance check vs. an f32 XLA reference (bf16 MXU inputs/residual).
    ref_nhwc = jax.jit(_reference_forward)(params, x_nhwc, y_nhwc)
    max_err = float(jnp.max(jnp.abs(out_nhwc - ref_nhwc)))
    assert max_err < 0.15, max_err

    print("KERNEL_OK")
</pallas_src>

<mosaic_0001>
module attributes {stable_mosaic.version = 11 : i64} {
  func.func @_conv3x3_kernel(%arg0: i32, %arg1: i32, %arg2: memref<1x368x128xbf16, #tpu.memory_space<vmem>>, %arg3: memref<9x128x128xbf16, #tpu.memory_space<vmem>>, %arg4: memref<1x128xf32, #tpu.memory_space<vmem>>, %arg5: memref<324x1xf32, #tpu.memory_space<vmem>>, %arg6: memref<1x324x128xf32, #tpu.memory_space<vmem>>, %arg7: memref<1x1x128xf32, #tpu.memory_space<vmem>>, %arg8: memref<1x1x128xf32, #tpu.memory_space<vmem>>) attributes {dimension_semantics = [#tpu.dimension_semantics<parallel>, #tpu.dimension_semantics<parallel>], iteration_bounds = array<i64: 2, 1>, scalar_prefetch = 0 : i64, scratch_operands = 0 : i64, tpu.core_type = #tpu.core_type<tc>, window_params = [{transform_indices = @transform_0, window_bounds = array<i64: 1, 368, 128>}, {transform_indices = @transform_1, window_bounds = array<i64: 9, 128, 128>}, {transform_indices = @transform_2, window_bounds = array<i64: 1, 128>}, {pipeline_mode = #tpu.pipeline_mode<synchronous>, transform_indices = @transform_3, window_bounds = array<i64: 324, 1>}, {transform_indices = @transform_4, window_bounds = array<i64: 1, 324, 128>}, {transform_indices = @transform_5, window_bounds = array<i64: 1, 1, 128>}, {transform_indices = @transform_6, window_bounds = array<i64: 1, 1, 128>}]} {
    %c0 = arith.constant 0 : index
    %c5 = arith.constant 5 : index
    %c0_0 = arith.constant 0 : index
    %0 = vector.load %arg2[%c0, %c5, %c0_0] : memref<1x368x128xbf16, #tpu.memory_space<vmem>>, vector<1x324x128xbf16>
    %1 = vector.shape_cast %0 : vector<1x324x128xbf16> to vector<324x128xbf16>
    %c0_1 = arith.constant 0 : index
    %c0_2 = arith.constant 0 : index
    %c0_3 = arith.constant 0 : index
    %2 = vector.load %arg3[%c0_1, %c0_2, %c0_3] : memref<9x128x128xbf16, #tpu.memory_space<vmem>>, vector<1x128x128xbf16>
    %3 = vector.shape_cast %2 : vector<1x128x128xbf16> to vector<128x128xbf16>
    %cst = arith.constant dense<0.000000e+00> : vector<324x128xf32>
    %4 = tpu.matmul %1, %3, %cst {dimension_numbers = #tpu.dot_dimension_numbers<[1], [0], [0], [1], [0, 0, 1, 1], [], []>} : vector<324x128xbf16>, vector<128x128xbf16>, vector<324x128xf32> -> vector<324x128xf32>
    %c0_4 = arith.constant 0 : index
    %c6 = arith.constant 6 : index
    %c0_5 = arith.constant 0 : index
    %5 = vector.load %arg2[%c0_4, %c6, %c0_5] : memref<1x368x128xbf16, #tpu.memory_space<vmem>>, vector<1x324x128xbf16>
    %6 = vector.shape_cast %5 : vector<1x324x128xbf16> to vector<324x128xbf16>
    %c1 = arith.constant 1 : index
    %c0_6 = arith.constant 0 : index
    %c0_7 = arith.constant 0 : index
    %7 = vector.load %arg3[%c1, %c0_6, %c0_7] : memref<9x128x128xbf16, #tpu.memory_space<vmem>>, vector<1x128x128xbf16>
    %8 = vector.shape_cast %7 : vector<1x128x128xbf16> to vector<128x128xbf16>
    %cst_8 = arith.constant dense<0.000000e+00> : vector<324x128xf32>
    %9 = tpu.matmul %6, %8, %cst_8 {dimension_numbers = #tpu.dot_dimension_numbers<[1], [0], [0], [1], [0, 0, 1, 1], [], []>} : vector<324x128xbf16>, vector<128x128xbf16>, vector<324x128xf32> -> vector<324x128xf32>
    %10 = arith.addf %4, %9 : vector<324x128xf32>
    %c0_9 = arith.constant 0 : index
    %c7 = arith.constant 7 : index
    %c0_10 = arith.constant 0 : index
    %11 = vector.load %arg2[%c0_9, %c7, %c0_10] : memref<1x368x128xbf16, #tpu.memory_space<vmem>>, vector<1x324x128xbf16>
    %12 = vector.shape_cast %11 : vector<1x324x128xbf16> to vector<324x128xbf16>
    %c2 = arith.constant 2 : index
    %c0_11 = arith.constant 0 : index
    %c0_12 = arith.constant 0 : index
    %13 = vector.load %arg3[%c2, %c0_11, %c0_12] : memref<9x128x128xbf16, #tpu.memory_space<vmem>>, vector<1x128x128xbf16>
    %14 = vector.shape_cast %13 : vector<1x128x128xbf16> to vector<128x128xbf16>
    %cst_13 = arith.constant dense<0.000000e+00> : vector<324x128xf32>
    %15 = tpu.matmul %12, %14, %cst_13 {dimension_numbers = #tpu.dot_dimension_numbers<[1], [0], [0], [1], [0, 0, 1, 1], [], []>} : vector<324x128xbf16>, vector<128x128xbf16>, vector<324x128xf32> -> vector<324x128xf32>
    %16 = arith.addf %10, %15 : vector<324x128xf32>
    %c0_14 = arith.constant 0 : index
    %c23 = arith.constant 23 : index
    %c0_15 = arith.constant 0 : index
    %17 = vector.load %arg2[%c0_14, %c23, %c0_15] : memref<1x368x128xbf16, #tpu.memory_space<vmem>>, vector<1x324x128xbf16>
    %18 = vector.shape_cast %17 : vector<1x324x128xbf16> to vector<324x128xbf16>
    %c3 = arith.constant 3 : index
    %c0_16 = arith.constant 0 : index
    %c0_17 = arith.constant 0 : index
    %19 = vector.load %arg3[%c3, %c0_16, %c0_17] : memref<9x128x128xbf16, #tpu.memory_space<vmem>>, vector<1x128x128xbf16>
    %20 = vector.shape_cast %19 : vector<1x128x128xbf16> to vector<128x128xbf16>
    %cst_18 = arith.constant dense<0.000000e+00> : vector<324x128xf32>
    %21 = tpu.matmul %18, %20, %cst_18 {dimension_numbers = #tpu.dot_dimension_numbers<[1], [0], [0], [1], [0, 0, 1, 1], [], []>} : vector<324x128xbf16>, vector<128x128xbf16>, vector<324x128xf32> -> vector<324x128xf32>
    %22 = arith.addf %16, %21 : vector<324x128xf32>
    %c0_19 = arith.constant 0 : index
    %c24 = arith.constant 24 : index
    %c0_20 = arith.constant 0 : index
    %23 = vector.load %arg2[%c0_19, %c24, %c0_20] : memref<1x368x128xbf16, #tpu.memory_space<vmem>>, vector<1x324x128xbf16>
    %24 = vector.shape_cast %23 : vector<1x324x128xbf16> to vector<324x128xbf16>
    %c4 = arith.constant 4 : index
    %c0_21 = arith.constant 0 : index
    %c0_22 = arith.constant 0 : index
    %25 = vector.load %arg3[%c4, %c0_21, %c0_22] : memref<9x128x128xbf16, #tpu.memory_space<vmem>>, vector<1x128x128xbf16>
    %26 = vector.shape_cast %25 : vector<1x128x128xbf16> to vector<128x128xbf16>
    %cst_23 = arith.constant dense<0.000000e+00> : vector<324x128xf32>
    %27 = tpu.matmul %24, %26, %cst_23 {dimension_numbers = #tpu.dot_dimension_numbers<[1], [0], [0], [1], [0, 0, 1, 1], [], []>} : vector<324x128xbf16>, vector<128x128xbf16>, vector<324x128xf32> -> vector<324x128xf32>
    %28 = arith.addf %22, %27 : vector<324x128xf32>
    %c0_24 = arith.constant 0 : index
    %c25 = arith.constant 25 : index
    %c0_25 = arith.constant 0 : index
    %29 = vector.load %arg2[%c0_24, %c25, %c0_25] : memref<1x368x128xbf16, #tpu.memory_space<vmem>>, vector<1x324x128xbf16>
    %30 = vector.shape_cast %29 : vector<1x324x128xbf16> to vector<324x128xbf16>
    %c5_26 = arith.constant 5 : index
    %c0_27 = arith.constant 0 : index
    %c0_28 = arith.constant 0 : index
    %31 = vector.load %arg3[%c5_26, %c0_27, %c0_28] : memref<9x128x128xbf16, #tpu.memory_space<vmem>>, vector<1x128x128xbf16>
    %32 = vector.shape_cast %31 : vector<1x128x128xbf16> to vector<128x128xbf16>
    %cst_29 = arith.constant dense<0.000000e+00> : vector<324x128xf32>
    %33 = tpu.matmul %30, %32, %cst_29 {dimension_numbers = #tpu.dot_dimension_numbers<[1], [0], [0], [1], [0, 0, 1, 1], [], []>} : vector<324x128xbf16>, vector<128x128xbf16>, vector<324x128xf32> -> vector<324x128xf32>
    %34 = arith.addf %28, %33 : vector<324x128xf32>
    %c0_30 = arith.constant 0 : index
    %c41 = arith.constant 41 : index
    %c0_31 = arith.constant 0 : index
    %35 = vector.load %arg2[%c0_30, %c41, %c0_31] : memref<1x368x128xbf16, #tpu.memory_space<vmem>>, vector<1x324x128xbf16>
    %36 = vector.shape_cast %35 : vector<1x324x128xbf16> to vector<324x128xbf16>
    %c6_32 = arith.constant 6 : index
    %c0_33 = arith.constant 0 : index
    %c0_34 = arith.constant 0 : index
    %37 = vector.load %arg3[%c6_32, %c0_33, %c0_34] : memref<9x128x128xbf16, #tpu.memory_space<vmem>>, vector<1x128x128xbf16>
    %38 = vector.shape_cast %37 : vector<1x128x128xbf16> to vector<128x128xbf16>
    %cst_35 = arith.constant dense<0.000000e+00> : vector<324x128xf32>
    %39 = tpu.matmul %36, %38, %cst_35 {dimension_numbers = #tpu.dot_dimension_numbers<[1], [0], [0], [1], [0, 0, 1, 1], [], []>} : vector<324x128xbf16>, vector<128x128xbf16>, vector<324x128xf32> -> vector<324x128xf32>
    %40 = arith.addf %34, %39 : vector<324x128xf32>
    %c0_36 = arith.constant 0 : index
    %c42 = arith.constant 42 : index
    %c0_37 = arith.constant 0 : index
    %41 = vector.load %arg2[%c0_36, %c42, %c0_37] : memref<1x368x128xbf16, #tpu.memory_space<vmem>>, vector<1x324x128xbf16>
    %42 = vector.shape_cast %41 : vector<1x324x128xbf16> to vector<324x128xbf16>
    %c7_38 = arith.constant 7 : index
    %c0_39 = arith.constant 0 : index
    %c0_40 = arith.constant 0 : index
    %43 = vector.load %arg3[%c7_38, %c0_39, %c0_40] : memref<9x128x128xbf16, #tpu.memory_space<vmem>>, vector<1x128x128xbf16>
    %44 = vector.shape_cast %43 : vector<1x128x128xbf16> to vector<128x128xbf16>
    %cst_41 = arith.constant dense<0.000000e+00> : vector<324x128xf32>
    %45 = tpu.matmul %42, %44, %cst_41 {dimension_numbers = #tpu.dot_dimension_numbers<[1], [0], [0], [1], [0, 0, 1, 1], [], []>} : vector<324x128xbf16>, vector<128x128xbf16>, vector<324x128xf32> -> vector<324x128xf32>
    %46 = arith.addf %40, %45 : vector<324x128xf32>
    %c0_42 = arith.constant 0 : index
    %c43 = arith.constant 43 : index
    %c0_43 = arith.constant 0 : index
    %47 = vector.load %arg2[%c0_42, %c43, %c0_43] : memref<1x368x128xbf16, #tpu.memory_space<vmem>>, vector<1x324x128xbf16>
    %48 = vector.shape_cast %47 : vector<1x324x128xbf16> to vector<324x128xbf16>
    %c8 = arith.constant 8 : index
    %c0_44 = arith.constant 0 : index
    %c0_45 = arith.constant 0 : index
    %49 = vector.load %arg3[%c8, %c0_44, %c0_45] : memref<9x128x128xbf16, #tpu.memory_space<vmem>>, vector<1x128x128xbf16>
    %50 = vector.shape_cast %49 : vector<1x128x128xbf16> to vector<128x128xbf16>
    %cst_46 = arith.constant dense<0.000000e+00> : vector<324x128xf32>
    %51 = tpu.matmul %48, %50, %cst_46 {dimension_numbers = #tpu.dot_dimension_numbers<[1], [0], [0], [1], [0, 0, 1, 1], [], []>} : vector<324x128xbf16>, vector<128x128xbf16>, vector<324x128xf32> -> vector<324x128xf32>
    %52 = arith.addf %46, %51 : vector<324x128xf32>
    %c0_47 = arith.constant 0 : index
    %c0_48 = arith.constant 0 : index
    %53 = vector.load %arg4[%c0_47, %c0_48] : memref<1x128xf32, #tpu.memory_space<vmem>>, vector<1x128xf32>
    %54 = vector.broadcast %53 : vector<1x128xf32> to vector<324x128xf32>
    %55 = arith.addf %52, %54 : vector<324x128xf32>
    %c0_49 = arith.constant 0 : index
    %c0_50 = arith.constant 0 : index
    %c0_51 = arith.constant 0 : index
    %56 = vector.load %arg6[%c0_49, %c0_50, %c0_51] : memref<1x324x128xf32, #tpu.memory_space<vmem>>, vector<1x324x128xf32>
    %57 = vector.shape_cast %56 : vector<1x324x128xf32> to vector<324x128xf32>
    %58 = vector.shape_cast %55 : vector<324x128xf32> to vector<1x324x128xf32>
    tpu.vector_store %arg6[%c0_49, %c0_50, %c0_51], %58 {strides = array<i32>} : memref<1x324x128xf32, #tpu.memory_space<vmem>>, vector<1x324x128xf32>,
    %c0_52 = arith.constant 0 : index
    %c0_53 = arith.constant 0 : index
    %59 = vector.load %arg5[%c0_52, %c0_53] : memref<324x1xf32, #tpu.memory_space<vmem>>, vector<324x1xf32>
    %60 = vector.broadcast %59 : vector<324x1xf32> to vector<324x128xf32>
    %61 = arith.mulf %55, %60 : vector<324x128xf32>
    %cst_54 = arith.constant dense<0.000000e+00> : vector<128xf32>
    %62 = vector.multi_reduction <add>, %61, %cst_54 [0] : vector<324x128xf32> to vector<128xf32>
    %63 = vector.shape_cast %62 : vector<128xf32> to vector<1x128xf32>
    %c0_55 = arith.constant 0 : index
    %c0_56 = arith.constant 0 : index
    %c0_57 = arith.constant 0 : index
    %64 = vector.load %arg7[%c0_55, %c0_56, %c0_57] : memref<1x1x128xf32, #tpu.memory_space<vmem>>, vector<1x1x128xf32>
    %65 = vector.shape_cast %64 : vector<1x1x128xf32> to vector<1x128xf32>
    %66 = vector.shape_cast %63 : vector<1x128xf32> to vector<1x1x128xf32>
    tpu.vector_store %arg7[%c0_55, %c0_56, %c0_57], %66 {strides = array<i32>} : memref<1x1x128xf32, #tpu.memory_space<vmem>>, vector<1x1x128xf32>,
    %67 = arith.mulf %61, %55 : vector<324x128xf32>
    %cst_58 = arith.constant dense<0.000000e+00> : vector<128xf32>
    %68 = vector.multi_reduction <add>, %67, %cst_58 [0] : vector<324x128xf32> to vector<128xf32>
    %69 = vector.shape_cast %68 : vector<128xf32> to vector<1x128xf32>
    %c0_59 = arith.constant 0 : index
    %c0_60 = arith.constant 0 : index
    %c0_61 = arith.constant 0 : index
    %70 = vector.load %arg8[%c0_59, %c0_60, %c0_61] : memref<1x1x128xf32, #tpu.memory_space<vmem>>, vector<1x1x128xf32>
    %71 = vector.shape_cast %70 : vector<1x1x128xf32> to vector<1x128xf32>
    %72 = vector.shape_cast %69 : vector<1x128xf32> to vector<1x1x128xf32>
    tpu.vector_store %arg8[%c0_59, %c0_60, %c0_61], %72 {strides = array<i32>} : memref<1x1x128xf32, #tpu.memory_space<vmem>>, vector<1x1x128xf32>,
    return
  }
  func.func @transform_0(%arg0: i32, %arg1: i32) -> (i32, i32, i32) {
    %c0_i32 = arith.constant 0 : i32
    %c0_i32_0 = arith.constant 0 : i32
    %c0_i32_1 = arith.constant 0 : i32
    return %arg0, %c0_i32, %c0_i32_0 : i32, i32, i32
  }
  func.func @transform_1(%arg0: i32, %arg1: i32) -> (i32, i32, i32) {
    %c0_i32 = arith.constant 0 : i32
    %c0_i32_0 = arith.constant 0 : i32
    %c0_i32_1 = arith.constant 0 : i32
    return %c0_i32, %c0_i32_0, %arg1 : i32, i32, i32
  }
  func.func @transform_2(%arg0: i32, %arg1: i32) -> (i32, i32) {
    %c0_i32 = arith.constant 0 : i32
    %c0_i32_0 = arith.constant 0 : i32
    return %c0_i32, %arg1 : i32, i32
  }
  func.func @transform_3(%arg0: i32, %arg1: i32) -> (i32, i32) {
    %c0_i32 = arith.constant 0 : i32
    %c0_i32_0 = arith.constant 0 : i32
    %c0_i32_1 = arith.constant 0 : i32
    return %c0_i32, %c0_i32_0 : i32, i32
  }
  func.func @transform_4(%arg0: i32, %arg1: i32) -> (i32, i32, i32) {
    %c0_i32 = arith.constant 0 : i32
    %c0_i32_0 = arith.constant 0 : i32
    return %arg0, %c0_i32, %arg1 : i32, i32, i32
  }
  func.func @transform_5(%arg0: i32, %arg1: i32) -> (i32, i32, i32) {
    %c0_i32 = arith.constant 0 : i32
    %c0_i32_0 = arith.constant 0 : i32
    return %arg0, %c0_i32, %arg1 : i32, i32, i32
  }
  func.func @transform_6(%arg0: i32, %arg1: i32) -> (i32, i32, i32) {
    %c0_i32 = arith.constant 0 : i32
    %c0_i32_0 = arith.constant 0 : i32
    return %arg0, %c0_i32, %arg1 : i32, i32, i32
  }
}

module attributes {stable_mosaic.version = 11 : i64} {
  func.func @_bn_add_act_kernel(%arg0: i32, %arg1: i32, %arg2: memref<1x324x128xf32, #tpu.memory_space<vmem>>, %arg3: memref<1x368x128xbf16, #tpu.memory_space<vmem>>, %arg4: memref<1x128xf32, #tpu.memory_space<vmem>>, %arg5: memref<1x128xf32, #tpu.memory_space<vmem>>, %arg6: memref<1x324x128xf32, #tpu.memory_space<vmem>>) attributes {dimension_semantics = [#tpu.dimension_semantics<parallel>, #tpu.dimension_semantics<parallel>], iteration_bounds = array<i64: 2, 1>, scalar_prefetch = 0 : i64, scratch_operands = 0 : i64, tpu.core_type = #tpu.core_type<tc>, window_params = [{transform_indices = @transform_0, window_bounds = array<i64: 1, 324, 128>}, {transform_indices = @transform_1, window_bounds = array<i64: 1, 368, 128>}, {transform_indices = @transform_2, window_bounds = array<i64: 1, 128>}, {transform_indices = @transform_3, window_bounds = array<i64: 1, 128>}, {transform_indices = @transform_4, window_bounds = array<i64: 1, 324, 128>}]} {
    %c0 = arith.constant 0 : index
    %c0_0 = arith.constant 0 : index
    %c0_1 = arith.constant 0 : index
    %0 = vector.load %arg2[%c0, %c0_0, %c0_1] : memref<1x324x128xf32, #tpu.memory_space<vmem>>, vector<1x324x128xf32>
    %1 = vector.shape_cast %0 : vector<1x324x128xf32> to vector<324x128xf32>
    %c0_2 = arith.constant 0 : index
    %c0_3 = arith.constant 0 : index
    %2 = vector.load %arg4[%c0_2, %c0_3] : memref<1x128xf32, #tpu.memory_space<vmem>>, vector<1x128xf32>
    %3 = vector.broadcast %2 : vector<1x128xf32> to vector<324x128xf32>
    %4 = arith.mulf %1, %3 : vector<324x128xf32>
    %c0_4 = arith.constant 0 : index
    %c0_5 = arith.constant 0 : index
    %5 = vector.load %arg5[%c0_4, %c0_5] : memref<1x128xf32, #tpu.memory_space<vmem>>, vector<1x128xf32>
    %6 = vector.broadcast %5 : vector<1x128xf32> to vector<324x128xf32>
    %7 = arith.addf %4, %6 : vector<324x128xf32>
    %c0_6 = arith.constant 0 : index
    %c24 = arith.constant 24 : index
    %c0_7 = arith.constant 0 : index
    %8 = vector.load %arg3[%c0_6, %c24, %c0_7] : memref<1x368x128xbf16, #tpu.memory_space<vmem>>, vector<1x324x128xbf16>
    %9 = vector.shape_cast %8 : vector<1x324x128xbf16> to vector<324x128xbf16>
    %10 = arith.extf %9 : vector<324x128xbf16> to vector<324x128xf32>
    %11 = arith.addf %7, %10 : vector<324x128xf32>
    %cst = arith.constant 0.000000e+00 : f32
    %12 = vector.broadcast %cst : f32 to vector<324x128xf32>
    %13 = arith.cmpf oge, %11, %12 : vector<324x128xf32>
    %cst_8 = arith.constant 0.00999999977 : f32
    %14 = vector.broadcast %cst_8 : f32 to vector<324x128xf32>
    %15 = arith.mulf %14, %11 : vector<324x128xf32>
    %16 = arith.select %13, %11, %15 : vector<324x128xi1>, vector<324x128xf32>
    %c0_9 = arith.constant 0 : index
    %c0_10 = arith.constant 0 : index
    %c0_11 = arith.constant 0 : index
    %17 = vector.load %arg6[%c0_9, %c0_10, %c0_11] : memref<1x324x128xf32, #tpu.memory_space<vmem>>, vector<1x324x128xf32>
    %18 = vector.shape_cast %17 : vector<1x324x128xf32> to vector<324x128xf32>
    %19 = vector.shape_cast %16 : vector<324x128xf32> to vector<1x324x128xf32>
    tpu.vector_store %arg6[%c0_9, %c0_10, %c0_11], %19 {strides = array<i32>} : memref<1x324x128xf32, #tpu.memory_space<vmem>>, vector<1x324x128xf32>,
    return
  }
  func.func @transform_0(%arg0: i32, %arg1: i32) -> (i32, i32, i32) {
    %c0_i32 = arith.constant 0 : i32
    %c0_i32_0 = arith.constant 0 : i32
    return %arg0, %c0_i32, %arg1 : i32, i32, i32
  }
  func.func @transform_1(%arg0: i32, %arg1: i32) -> (i32, i32, i32) {
    %c0_i32 = arith.constant 0 : i32
    %c0_i32_0 = arith.constant 0 : i32
    return %arg0, %c0_i32, %arg1 : i32, i32, i32
  }
  func.func @transform_2(%arg0: i32, %arg1: i32) -> (i32, i32) {
    %c0_i32 = arith.constant 0 : i32
    %c0_i32_0 = arith.constant 0 : i32
    return %c0_i32, %arg1 : i32, i32
  }
  func.func @transform_3(%arg0: i32, %arg1: i32) -> (i32, i32) {
    %c0_i32 = arith.constant 0 : i32
    %c0_i32_0 = arith.constant 0 : i32
    return %c0_i32, %arg1 : i32, i32
  }
  func.func @transform_4(%arg0: i32, %arg1: i32) -> (i32, i32, i32) {
    %c0_i32 = arith.constant 0 : i32
    %c0_i32_0 = arith.constant 0 : i32
    return %arg0, %c0_i32, %arg1 : i32, i32, i32
  }
}

module attributes {stable_mosaic.version = 11 : i64} {
  func.func @_bn_act_to_conv_in_kernel(%arg0: i32, %arg1: i32, %arg2: memref<1x324x128xf32, #tpu.memory_space<vmem>>, %arg3: memref<1x128xf32, #tpu.memory_space<vmem>>, %arg4: memref<1x128xf32, #tpu.memory_space<vmem>>, %arg5: memref<324x1xf32, #tpu.memory_space<vmem>>, %arg6: memref<1x368x128xbf16, #tpu.memory_space<vmem>>) attributes {dimension_semantics = [#tpu.dimension_semantics<parallel>, #tpu.dimension_semantics<parallel>], iteration_bounds = array<i64: 2, 1>, scalar_prefetch = 0 : i64, scratch_operands = 0 : i64, tpu.core_type = #tpu.core_type<tc>, window_params = [{transform_indices = @transform_0, window_bounds = array<i64: 1, 324, 128>}, {transform_indices = @transform_1, window_bounds = array<i64: 1, 128>}, {transform_indices = @transform_2, window_bounds = array<i64: 1, 128>}, {pipeline_mode = #tpu.pipeline_mode<synchronous>, transform_indices = @transform_3, window_bounds = array<i64: 324, 1>}, {transform_indices = @transform_4, window_bounds = array<i64: 1, 368, 128>}]} {
    %c0 = arith.constant 0 : index
    %c0_0 = arith.constant 0 : index
    %c0_1 = arith.constant 0 : index
    %0 = vector.load %arg2[%c0, %c0_0, %c0_1] : memref<1x324x128xf32, #tpu.memory_space<vmem>>, vector<1x324x128xf32>
    %1 = vector.shape_cast %0 : vector<1x324x128xf32> to vector<324x128xf32>
    %c0_2 = arith.constant 0 : index
    %c0_3 = arith.constant 0 : index
    %2 = vector.load %arg3[%c0_2, %c0_3] : memref<1x128xf32, #tpu.memory_space<vmem>>, vector<1x128xf32>
    %3 = vector.broadcast %2 : vector<1x128xf32> to vector<324x128xf32>
    %4 = arith.mulf %1, %3 : vector<324x128xf32>
    %c0_4 = arith.constant 0 : index
    %c0_5 = arith.constant 0 : index
    %5 = vector.load %arg4[%c0_4, %c0_5] : memref<1x128xf32, #tpu.memory_space<vmem>>, vector<1x128xf32>
    %6 = vector.broadcast %5 : vector<1x128xf32> to vector<324x128xf32>
    %7 = arith.addf %4, %6 : vector<324x128xf32>
    %cst = arith.constant 0.000000e+00 : f32
    %8 = vector.broadcast %cst : f32 to vector<324x128xf32>
    %9 = arith.cmpf oge, %7, %8 : vector<324x128xf32>
    %cst_6 = arith.constant 0.00999999977 : f32
    %10 = vector.broadcast %cst_6 : f32 to vector<324x128xf32>
    %11 = arith.mulf %10, %7 : vector<324x128xf32>
    %12 = arith.select %9, %7, %11 : vector<324x128xi1>, vector<324x128xf32>
    %c0_7 = arith.constant 0 : index
    %c0_8 = arith.constant 0 : index
    %13 = vector.load %arg5[%c0_7, %c0_8] : memref<324x1xf32, #tpu.memory_space<vmem>>, vector<324x1xf32>
    %cst_9 = arith.constant 0.000000e+00 : f32
    %14 = vector.broadcast %cst_9 : f32 to vector<324x1xf32>
    %15 = arith.cmpf ogt, %13, %14 : vector<324x1xf32>
    %cst_10 = arith.constant 0.000000e+00 : f32
    %16 = vector.shape_cast %15 : vector<324x1xi1> to vector<324x1xi1>
    %17 = vector.broadcast %16 : vector<324x1xi1> to vector<324x128xi1>
    %18 = vector.broadcast %cst_10 : f32 to vector<324x128xf32>
    %19 = arith.select %17, %12, %18 : vector<324x128xi1>, vector<324x128xf32>
    %20 = arith.truncf %19 : vector<324x128xf32> to vector<324x128xbf16>
    %cst_11 = arith.constant 0.000000e+00 : bf16
    %21 = vector.broadcast %cst_11 : bf16 to vector<24x128xbf16>
    %c0_12 = arith.constant 0 : index
    %c0_13 = arith.constant 0 : index
    %c0_14 = arith.constant 0 : index
    %22 = vector.load %arg6[%c0_12, %c0_13, %c0_14] : memref<1x368x128xbf16, #tpu.memory_space<vmem>>, vector<1x24x128xbf16>
    %23 = vector.shape_cast %22 : vector<1x24x128xbf16> to vector<24x128xbf16>
    %24 = vector.shape_cast %21 : vector<24x128xbf16> to vector<1x24x128xbf16>
    tpu.vector_store %arg6[%c0_12, %c0_13, %c0_14], %24 {strides = array<i32>} : memref<1x368x128xbf16, #tpu.memory_space<vmem>>, vector<1x24x128xbf16>,
    %c0_15 = arith.constant 0 : index
    %c24 = arith.constant 24 : index
    %c0_16 = arith.constant 0 : index
    %25 = vector.load %arg6[%c0_15, %c24, %c0_16] : memref<1x368x128xbf16, #tpu.memory_space<vmem>>, vector<1x324x128xbf16>
    %26 = vector.shape_cast %25 : vector<1x324x128xbf16> to vector<324x128xbf16>
    %27 = vector.shape_cast %20 : vector<324x128xbf16> to vector<1x324x128xbf16>
    tpu.vector_store %arg6[%c0_15, %c24, %c0_16], %27 {strides = array<i32>} : memref<1x368x128xbf16, #tpu.memory_space<vmem>>, vector<1x324x128xbf16>,
    %cst_17 = arith.constant 0.000000e+00 : bf16
    %28 = vector.broadcast %cst_17 : bf16 to vector<20x128xbf16>
    %c0_18 = arith.constant 0 : index
    %c348 = arith.constant 348 : index
    %c0_19 = arith.constant 0 : index
    %29 = vector.load %arg6[%c0_18, %c348, %c0_19] : memref<1x368x128xbf16, #tpu.memory_space<vmem>>, vector<1x20x128xbf16>
    %30 = vector.shape_cast %29 : vector<1x20x128xbf16> to vector<20x128xbf16>
    %31 = vector.shape_cast %28 : vector<20x128xbf16> to vector<1x20x128xbf16>
    tpu.vector_store %arg6[%c0_18, %c348, %c0_19], %31 {strides = array<i32>} : memref<1x368x128xbf16, #tpu.memory_space<vmem>>, vector<1x20x128xbf16>,
    return
  }
  func.func @transform_0(%arg0: i32, %arg1: i32) -> (i32, i32, i32) {
    %c0_i32 = arith.constant 0 : i32
    %c0_i32_0 = arith.constant 0 : i32
    return %arg0, %c0_i32, %arg1 : i32, i32, i32
  }
  func.func @transform_1(%arg0: i32, %arg1: i32) -> (i32, i32) {
    %c0_i32 = arith.constant 0 : i32
    %c0_i32_0 = arith.constant 0 : i32
    return %c0_i32, %arg1 : i32, i32
  }
  func.func @transform_2(%arg0: i32, %arg1: i32) -> (i32, i32) {
    %c0_i32 = arith.constant 0 : i32
    %c0_i32_0 = arith.constant 0 : i32
    return %c0_i32, %arg1 : i32, i32
  }
  func.func @transform_3(%arg0: i32, %arg1: i32) -> (i32, i32) {
    %c0_i32 = arith.constant 0 : i32
    %c0_i32_0 = arith.constant 0 : i32
    %c0_i32_1 = arith.constant 0 : i32
    return %c0_i32, %c0_i32_0 : i32, i32
  }
  func.func @transform_4(%arg0: i32, %arg1: i32) -> (i32, i32, i32) {
    %c0_i32 = arith.constant 0 : i32
    %c0_i32_0 = arith.constant 0 : i32
    return %arg0, %c0_i32, %arg1 : i32, i32, i32
  }
}

</mosaic_0001>

<bundles_post_ra>
// kernel: upsample_res_block_forward.7
= control target key start
LH: loop header
LB: loop body
LE: loop exit
PB: predicated region body
PF: predicated region fallthrough
CT: control target
= control target key end

     0   :  { %s1022_s15 = smov 0   ;;  %s1024_s16 = smov 0   ;;  %s1268_s0 = inlined_call_operand.vmem [shape: f32[2,324,128], index: 0, kind: input, shape index: {}]   ;;  %s1269_s1 = inlined_call_operand.vmem [shape: bf16[2,368,128], index: 1, kind: input, shape index: {}]   ;;  %s1270_s2 = inlined_call_operand.vmem [shape: f32[1,128], index: 2, kind: input, shape index: {}]   ;;  %s1271_s3 = inlined_call_operand.vmem [shape: f32[1,128], index: 3, kind: input, shape index: {}]   ;;  %s1272_s4 = inlined_call_operand.vmem [shape: f32[2,324,128], index: 4, kind: output, shape index: {}]  }
   0x1   :  { %s1026_s17 = smov 0  }
   0x2 LB: > { %s26_s18 = sadd.s32 1, %s991_s16  ;;  %p844_p0 = scmp.ge.s32.totalorder %s995_s17, 1  ;;  %s995_s17 = sphi %s1026_s17, %s14_s17   ;;  %s991_s16 = sphi %s1024_s16, %s1274_s16   ;;  %s987_s15 = sphi %s1022_s15, %s1273_s15  }
   0x3   : > { %p28_p1 = scmp.ge.s32.totalorder %s26_s18, 2  ;;  %p212_p2 = scmp.lt.s32.totalorder %s995_s17, 3 }
   0x5   : > { %s1276_s18 = smov (%p28_p1, %s26_s18), 0  ;;  %p213_p3 = pnand %p844_p0, %p212_p2 }
   0x6   : > { %p258_p4 = scmp.lt.s32.totalorder (!%p213_p3), %s987_s15, 1  ;;  %v1047_v0 = vld [vmem:[%s1270_s2] ss:$0 sm:$0xff] (!%p213_p3) }
   0x7   : > { %216 = sbr.rel (%p213_p3) target bundleno = 95 (0x5f), region = 36  ;;  %v1059_v1 = vld [vmem:[%s1271_s3] ss:$0 sm:$0xff] (!%p213_p3) }
   0xe   : > { %s1278_s15 = smov (!%p258_p4, %s987_s15), 1 }
   0xf   : > { %s947_s19 = smul.u32 328, %s1278_s15 }
  0x10   : > { %s948_s20 = smul.u32 184, %s1278_s15 }
  0x11   : > { %s1054_s25 = scalar_lea.vmem %s1268_s0, %s947_s19  ;;  %s1095_s7 = scalar_lea.vmem %s1272_s4, %s947_s19 }
  0x12   : > { %s1064_s30 = scalar_lea.vmem %s1269_s1, %s948_s20  ;;  %v288_v2 = vld [vmem:[%s1054_s25] sm:$0xff]  ;;  %v289_v3 = vld [vmem:[%s1054_s25 + $0x8] sm:$0xff]  ;;  %v290_v4 = vld [vmem:[%s1054_s25 + $0x10] sm:$0xff] }
  0x13   : > { %v336_v5 = vmul.f32 %v1047_v0, %v288_v2  ;;  %v425_v6 = vld [vmem:[%s1064_s30 + $0xc] sm:$0xf]  ;;  %v337_v7 = vmul.f32 %v1047_v0, %v289_v3  ;;  %v928_v8 = vld [vmem:[%s1064_s30 + $0x10] sm:$0xff]   ;;  %v338_v9 = vmul.f32 %v1047_v0, %v290_v4  ;;  %v291_v10 = vld [vmem:[%s1054_s25 + $0x18] sm:$0xff] }
  0x14   : > { %v466_v11 = vunpack.c.l.bf16 %v425_v6  ;;  %v854_v12 = vunpack.c.l.bf16 %v928_v8  ;;  %v855_v13 = vunpack.c.h.bf16 %v928_v8  ;;  %v339_v14 = vmul.f32 %v1047_v0, %v291_v10  ;;  %v929_v15 = vld [vmem:[%s1064_s30 + $0x18] sm:$0xff]   ;;  %v292_v16 = vld [vmem:[%s1054_s25 + $0x20] sm:$0xff]  ;;  %v293_v17 = vld [vmem:[%s1054_s25 + $0x28] sm:$0xff] }
  0x15   : > { %v384_v18 = vadd.f32 %v1059_v1, %v336_v5  ;;  %v385_v19 = vadd.f32 %v1059_v1, %v337_v7  ;;  %v386_v20 = vadd.f32 %v1059_v1, %v338_v9  ;;  %v858_v21 = vunpack.c.l.bf16 %v929_v15  ;;  %v930_v22 = vld [vmem:[%s1064_s30 + $0x20] sm:$0xff]   ;;  %v294_v23 = vld [vmem:[%s1054_s25 + $0x30] sm:$0xff]  ;;  %v295_v44 = vld [vmem:[%s1054_s25 + $0x38] sm:$0xff] }
  0x16   : > { %v387_v24 = vadd.f32 %v1059_v1, %v339_v14  ;;  %v340_v25 = vmul.f32 %v1047_v0, %v292_v16  ;;  %v859_v26 = vunpack.c.h.bf16 %v929_v15  ;;  %v341_v27 = vmul.f32 %v1047_v0, %v293_v17  ;;  %v931_v45 = vld [vmem:[%s1064_s30 + $0x28] sm:$0xff]   ;;  %v296_v46 = vld [vmem:[%s1054_s25 + $0x40] sm:$0xff]  ;;  %v932_v58 = vld [vmem:[%s1064_s30 + $0x30] sm:$0xff]  }
  0x17   : > { %v507_v28 = vadd.f32 %v466_v11, %v384_v18  ;;  %v508_v29 = vadd.f32 %v854_v12, %v385_v19  ;;  %v509_v30 = vadd.f32 %v855_v13, %v386_v20  ;;  %v862_v31 = vunpack.c.l.bf16 %v930_v22  ;;  %v297_v51 = vld [vmem:[%s1054_s25 + $0x48] sm:$0xff]  ;;  %v298_v59 = vld [vmem:[%s1054_s25 + $0x50] sm:$0xff]  ;;  %v299_v2 = vld [vmem:[%s1054_s25 + $0x58] sm:$0xff] }
  0x18   : > { %v510_v32 = vadd.f32 %v858_v21, %v387_v24  ;;  %v388_v33 = vadd.f32 %v1059_v1, %v340_v25  ;;  %v389_v34 = vadd.f32 %v1059_v1, %v341_v27  ;;  %v342_v35 = vmul.f32 %v1047_v0, %v294_v23  ;;  %v933_v6 = vld [vmem:[%s1064_s30 + $0x38] sm:$0xff]   ;;  %v300_v7 = vld [vmem:[%s1054_s25 + $0x60] sm:$0xff]  ;;  %v301_v25 = vld [vmem:[%s1054_s25 + $0x68] sm:$0xff] }
  0x19   : > { %vm548_vm0 = vcmp.ge.f32.partialorder %v507_v28, 0.0  ;;  %v589_v36 = vmul.f32 0.01, %v507_v28  ;;  %vm549_vm1 = vcmp.ge.f32.partialorder %v508_v29, 0.0  ;;  %v590_v37 = vmul.f32 0.01, %v508_v29 }
  0x1a   : > { %vm550_vm2 = vcmp.ge.f32.partialorder %v509_v30, 0.0  ;;  %v591_v38 = vmul.f32 0.01, %v509_v30  ;;  %vm551_vm3 = vcmp.ge.f32.partialorder %v510_v32, 0.0  ;;  %v592_v39 = vmul.f32 0.01, %v510_v32 }
  0x1b   : > { %v630_v40 = vsel %vm548_vm0, %v507_v28, %v589_v36  ;;  %v631_v41 = vsel %vm549_vm1, %v508_v29, %v590_v37  ;;  %v511_v42 = vadd.f32 %v859_v26, %v388_v33  ;;  %v512_v43 = vadd.f32 %v862_v31, %v389_v34  ;;  %v934_v26 = vld [vmem:[%s1064_s30 + $0x40] sm:$0xff]   ;;  %v302_v27 = vld [vmem:[%s1054_s25 + $0x70] sm:$0xff] }
  0x1c   : > { %671 = vst [vmem:[%s1095_s7] sm:$0xff] %v630_v40  ;;  %672 = vst [vmem:[%s1095_s7 + $0x8] sm:$0xff] %v631_v41  ;;  %v632_v47 = vsel %vm550_vm2, %v509_v30, %v591_v38  ;;  %v633_v48 = vsel %vm551_vm3, %v510_v32, %v592_v39  ;;  %v390_v49 = vadd.f32 %v1059_v1, %v342_v35  ;;  %v863_v50 = vunpack.c.h.bf16 %v930_v22  ;;  %v303_v39 = vld [vmem:[%s1054_s25 + $0x78] sm:$0xff]  ;;  %v935_v40 = vld [vmem:[%s1064_s30 + $0x48] sm:$0xff]  }
  0x1d   : > { %673 = vst [vmem:[%s1095_s7 + $0x10] sm:$0xff] %v632_v47  ;;  %674 = vst [vmem:[%s1095_s7 + $0x18] sm:$0xff] %v633_v48  ;;  %vm552_vm4 = vcmp.ge.f32.partialorder %v511_v42, 0.0  ;;  %v593_v52 = vmul.f32 0.01, %v511_v42  ;;  %vm553_vm5 = vcmp.ge.f32.partialorder %v512_v43, 0.0  ;;  %v343_v55 = vmul.f32 %v1047_v0, %v295_v44 }
  0x1e   : > { %v594_v53 = vmul.f32 0.01, %v512_v43  ;;  %v513_v54 = vadd.f32 %v863_v50, %v390_v49  ;;  %v866_v56 = vunpack.c.l.bf16 %v931_v45  ;;  %v344_v57 = vmul.f32 %v1047_v0, %v296_v46  ;;  %v304_v41 = vld [vmem:[%s1054_s25 + $0x80] sm:$0xff]  ;;  %v305_v48 = vld [vmem:[%s1054_s25 + $0x88] sm:$0xff]  ;;  %v936_v49 = vld [vmem:[%s1064_s30 + $0x50] sm:$0xff]  }
  0x1f   : > { %v634_v60 = vsel %vm552_vm4, %v511_v42, %v593_v52  ;;  %v867_v62 = vunpack.c.h.bf16 %v931_v45  ;;  %v345_v63 = vmul.f32 %v1047_v0, %v297_v51  ;;  %v391_v4 = vadd.f32 %v1059_v1, %v343_v55 }
  0x20   : > { %v635_v61 = vsel %vm553_vm5, %v512_v43, %v594_v53  ;;  %675 = vst [vmem:[%s1095_s7 + $0x20] sm:$0xff] %v634_v60  ;;  %vm554_vm6 = vcmp.ge.f32.partialorder %v513_v54, 0.0  ;;  %v595_v3 = vmul.f32 0.01, %v513_v54  ;;  %v392_v5 = vadd.f32 %v1059_v1, %v344_v57 }
  0x21   : > { %676 = vst [vmem:[%s1095_s7 + $0x28] sm:$0xff] %v635_v61  ;;  %v393_v8 = vadd.f32 %v1059_v1, %v345_v63  ;;  %v870_v9 = vunpack.c.l.bf16 %v932_v58  ;;  %v346_v10 = vmul.f32 %v1047_v0, %v298_v59  ;;  %v871_v11 = vunpack.c.h.bf16 %v932_v58  ;;  %v306_v58 = vld [vmem:[%s1054_s25 + $0x90] sm:$0xff]  ;;  %v307_v63 = vld [vmem:[%s1054_s25 + $0x98] sm:$0xff] }
  0x22   : > { %v636_v12 = vsel %vm554_vm6, %v513_v54, %v595_v3  ;;  %v514_v13 = vadd.f32 %v866_v56, %v391_v4  ;;  %v515_v14 = vadd.f32 %v867_v62, %v392_v5  ;;  %v347_v15 = vmul.f32 %v1047_v0, %v299_v2 }
  0x23   : > { %677 = vst [vmem:[%s1095_s7 + $0x30] sm:$0xff] %v636_v12  ;;  %v516_v16 = vadd.f32 %v870_v9, %v393_v8  ;;  %v394_v17 = vadd.f32 %v1059_v1, %v346_v10  ;;  %v874_v18 = vunpack.c.l.bf16 %v933_v6  ;;  %v348_v19 = vmul.f32 %v1047_v0, %v300_v7  ;;  %v937_v8 = vld [vmem:[%s1064_s30 + $0x58] sm:$0xff]  }
  0x24   : > { %vm555_vm7 = vcmp.ge.f32.partialorder %v514_v13, 0.0  ;;  %v596_v20 = vmul.f32 0.01, %v514_v13  ;;  %vm556_vm8 = vcmp.ge.f32.partialorder %v515_v14, 0.0  ;;  %v597_v21 = vmul.f32 0.01, %v515_v14 }
  0x25   : > { %vm557_vm9 = vcmp.ge.f32.partialorder %v516_v16, 0.0  ;;  %v598_v22 = vmul.f32 0.01, %v516_v16  ;;  %v517_v23 = vadd.f32 %v871_v11, %v394_v17  ;;  %v395_v24 = vadd.f32 %v1059_v1, %v347_v15 }
  0x26   : > { %v637_v28 = vsel %vm555_vm7, %v514_v13, %v596_v20  ;;  %v638_v29 = vsel %vm556_vm8, %v515_v14, %v597_v21  ;;  %v396_v30 = vadd.f32 %v1059_v1, %v348_v19  ;;  %v875_v31 = vunpack.c.h.bf16 %v933_v6  ;;  %v308_v13 = vld [vmem:[%s1054_s25 + $0xa0] sm:$0xff]  ;;  %v309_v20 = vld [vmem:[%s1054_s25 + $0xa8] sm:$0xff] }
  0x27   : > { %678 = vst [vmem:[%s1095_s7 + $0x38] sm:$0xff] %v637_v28  ;;  %679 = vst [vmem:[%s1095_s7 + $0x40] sm:$0xff] %v638_v29  ;;  %v639_v32 = vsel %vm557_vm9, %v516_v16, %v598_v22  ;;  %vm558_vm10 = vcmp.ge.f32.partialorder %v517_v23, 0.0  ;;  %v599_v33 = vmul.f32 0.01, %v517_v23  ;;  %v518_v34 = vadd.f32 %v874_v18, %v395_v24  ;;  %v938_v21 = vld [vmem:[%s1064_s30 + $0x60] sm:$0xff]  }
  0x28   : > { %680 = vst [vmem:[%s1095_s7 + $0x48] sm:$0xff] %v639_v32  ;;  %v519_v35 = vadd.f32 %v875_v31, %v396_v30  ;;  %v349_v36 = vmul.f32 %v1047_v0, %v301_v25  ;;  %v878_v37 = vunpack.c.l.bf16 %v934_v26  ;;  %v350_v38 = vmul.f32 %v1047_v0, %v302_v27  ;;  %v310_v22 = vld [vmem:[%s1054_s25 + $0xb0] sm:$0xff] }
  0x29   : > { %v640_v42 = vsel %vm558_vm10, %v517_v23, %v599_v33  ;;  %vm559_vm11 = vcmp.ge.f32.partialorder %v518_v34, 0.0  ;;  %v600_v43 = vmul.f32 0.01, %v518_v34  ;;  %v879_v44 = vunpack.c.h.bf16 %v934_v26 }
  0x2a   : > { %681 = vst [vmem:[%s1095_s7 + $0x50] sm:$0xff] %v640_v42  ;;  %vm560_vm12 = vcmp.ge.f32.partialorder %v519_v35, 0.0  ;;  %v601_v45 = vmul.f32 0.01, %v519_v35  ;;  %v397_v46 = vadd.f32 %v1059_v1, %v349_v36  ;;  %v398_v47 = vadd.f32 %v1059_v1, %v350_v38  ;;  %v312_v42 = vld [vmem:[%s1054_s25 + $0xc0] sm:$0xff] }
  0x2b   : > { %v641_v50 = vsel %vm559_vm11, %v518_v34, %v600_v43  ;;  %v351_v51 = vmul.f32 %v1047_v0, %v303_v39  ;;  %v882_v52 = vunpack.c.l.bf16 %v935_v40  ;;  %v352_v53 = vmul.f32 %v1047_v0, %v304_v41  ;;  %v311_v34 = vld [vmem:[%s1054_s25 + $0xb8] sm:$0xff] }
  0x2c   : > { %682 = vst [vmem:[%s1095_s7 + $0x58] sm:$0xff] %v641_v50  ;;  %v642_v54 = vsel %vm560_vm12, %v519_v35, %v601_v45  ;;  %v520_v55 = vadd.f32 %v878_v37, %v397_v46  ;;  %v521_v56 = vadd.f32 %v879_v44, %v398_v47  ;;  %v883_v57 = vunpack.c.h.bf16 %v935_v40  ;;  %v939_v35 = vld [vmem:[%s1064_s30 + $0x68] sm:$0xff]  }
  0x2d   : > { %683 = vst [vmem:[%s1095_s7 + $0x60] sm:$0xff] %v642_v54  ;;  %v399_v59 = vadd.f32 %v1059_v1, %v351_v51  ;;  %v400_v60 = vadd.f32 %v1059_v1, %v352_v53  ;;  %v353_v61 = vmul.f32 %v1047_v0, %v305_v48  ;;  %v886_v62 = vunpack.c.l.bf16 %v936_v49  ;;  %v313_v47 = vld [vmem:[%s1054_s25 + $0xc8] sm:$0xff] }
  0x2e   : > { %vm561_vm13 = vcmp.ge.f32.partialorder %v520_v55, 0.0  ;;  %v602_v2 = vmul.f32 0.01, %v520_v55  ;;  %vm562_vm14 = vcmp.ge.f32.partialorder %v521_v56, 0.0  ;;  %v603_v3 = vmul.f32 0.01, %v521_v56 }
  0x2f   : > { %v522_v4 = vadd.f32 %v882_v52, %v399_v59  ;;  %v523_v5 = vadd.f32 %v883_v57, %v400_v60  ;;  %v401_v6 = vadd.f32 %v1059_v1, %v353_v61  ;;  %v354_v7 = vmul.f32 %v1047_v0, %v306_v58 }
  0x30   : > { %v643_v9 = vsel %vm561_vm13, %v520_v55, %v602_v2  ;;  %v644_v10 = vsel %vm562_vm14, %v521_v56, %v603_v3  ;;  %v887_v11 = vunpack.c.h.bf16 %v936_v49  ;;  %v355_v12 = vmul.f32 %v1047_v0, %v307_v63  ;;  %v940_v55 = vld [vmem:[%s1064_s30 + $0x70] sm:$0xff]   ;;  %v315_v63 = vld [vmem:[%s1054_s25 + $0xd8] sm:$0xff] }
  0x31   : > { %684 = vst [vmem:[%s1095_s7 + $0x68] sm:$0xff] %v643_v9  ;;  %685 = vst [vmem:[%s1095_s7 + $0x70] sm:$0xff] %v644_v10  ;;  %vm563_vm15 = vcmp.ge.f32.partialorder %v522_v4, 0.0  ;;  %v604_v14 = vmul.f32 0.01, %v522_v4  ;;  %vm564_vm0 = vcmp.ge.f32.partialorder %v523_v5, 0.0  ;;  %v524_v16 = vadd.f32 %v886_v62, %v401_v6 }
  0x32   : > { %v605_v15 = vmul.f32 0.01, %v523_v5  ;;  %v402_v17 = vadd.f32 %v1059_v1, %v354_v7  ;;  %v403_v18 = vadd.f32 %v1059_v1, %v355_v12  ;;  %v890_v19 = vunpack.c.l.bf16 %v937_v8  ;;  %v314_v56 = vld [vmem:[%s1054_s25 + $0xd0] sm:$0xff]  ;;  %v941_v6 = vld [vmem:[%s1064_s30 + $0x78] sm:$0xff]  }
  0x33   : > { %v645_v23 = vsel %vm563_vm15, %v522_v4, %v604_v14  ;;  %v356_v25 = vmul.f32 %v1047_v0, %v308_v13  ;;  %v891_v26 = vunpack.c.h.bf16 %v937_v8  ;;  %vm565_vm1 = vcmp.ge.f32.partialorder %v524_v16, 0.0  ;;  %v316_v14 = vld [vmem:[%s1054_s25 + $0xe0] sm:$0xff] }
  0x34   : > { %v646_v24 = vsel %vm564_vm0, %v523_v5, %v605_v15  ;;  %686 = vst [vmem:[%s1095_s7 + $0x78] sm:$0xff] %v645_v23  ;;  %v606_v27 = vmul.f32 0.01, %v524_v16  ;;  %v525_v28 = vadd.f32 %v887_v11, %v402_v17  ;;  %v526_v29 = vadd.f32 %v890_v19, %v403_v18  ;;  %v317_v15 = vld [vmem:[%s1054_s25 + $0xe8] sm:$0xff]  ;;  %v318_v23 = vld [vmem:[%s1054_s25 + $0xf0] sm:$0xff] }
  0x35   : > { %687 = vst [vmem:[%s1095_s7 + $0x80] sm:$0xff] %v646_v24  ;;  %v404_v30 = vadd.f32 %v1059_v1, %v356_v25  ;;  %v357_v31 = vmul.f32 %v1047_v0, %v309_v20  ;;  %v894_v32 = vunpack.c.l.bf16 %v938_v21  ;;  %v358_v33 = vmul.f32 %v1047_v0, %v310_v22  ;;  %v942_v22 = vld [vmem:[%s1064_s30 + $0x80] sm:$0xff]  }
  0x36   : > { %v647_v36 = vsel %vm565_vm1, %v524_v16, %v606_v27  ;;  %vm566_vm2 = vcmp.ge.f32.partialorder %v525_v28, 0.0  ;;  %v607_v37 = vmul.f32 0.01, %v525_v28  ;;  %vm567_vm3 = vcmp.ge.f32.partialorder %v526_v29, 0.0 }
  0x37   : > { %688 = vst [vmem:[%s1095_s7 + $0x88] sm:$0xff] %v647_v36  ;;  %v608_v38 = vmul.f32 0.01, %v526_v29  ;;  %v527_v39 = vadd.f32 %v891_v26, %v404_v30  ;;  %v405_v40 = vadd.f32 %v1059_v1, %v357_v31  ;;  %v406_v41 = vadd.f32 %v1059_v1, %v358_v33  ;;  %v319_v31 = vld [vmem:[%s1054_s25 + $0xf8] sm:$0xff]  ;;  %v943_v36 = vld [vmem:[%s1064_s30 + $0x88] sm:$0xff]  }
  0x38   : > { %v648_v43 = vsel %vm566_vm2, %v525_v28, %v607_v37  ;;  %v895_v44 = vunpack.c.h.bf16 %v938_v21  ;;  %v359_v45 = vmul.f32 %v1047_v0, %v311_v34  ;;  %v898_v46 = vunpack.c.l.bf16 %v939_v35  ;;  %v320_v37 = vld [vmem:[%s1054_s25 + $0x100] sm:$0xff] }
  0x39   : > { %689 = vst [vmem:[%s1095_s7 + $0x90] sm:$0xff] %v648_v43  ;;  %v649_v48 = vsel %vm567_vm3, %v526_v29, %v608_v38  ;;  %vm568_vm4 = vcmp.ge.f32.partialorder %v527_v39, 0.0  ;;  %v609_v49 = vmul.f32 0.01, %v527_v39  ;;  %v528_v50 = vadd.f32 %v894_v32, %v405_v40 }
  0x3a   : > { %690 = vst [vmem:[%s1095_s7 + $0x98] sm:$0xff] %v649_v48  ;;  %v529_v51 = vadd.f32 %v895_v44, %v406_v41  ;;  %v407_v52 = vadd.f32 %v1059_v1, %v359_v45  ;;  %v360_v53 = vmul.f32 %v1047_v0, %v312_v42  ;;  %v899_v54 = vunpack.c.h.bf16 %v939_v35  ;;  %v321_v45 = vld [vmem:[%s1054_s25 + $0x108] sm:$0xff] }
  0x3b   : > { %v650_v57 = vsel %vm568_vm4, %v527_v39, %v609_v49  ;;  %vm569_vm5 = vcmp.ge.f32.partialorder %v528_v50, 0.0  ;;  %v610_v58 = vmul.f32 0.01, %v528_v50  ;;  %v361_v59 = vmul.f32 %v1047_v0, %v313_v47 }
  0x3c   : > { %691 = vst [vmem:[%s1095_s7 + $0xa0] sm:$0xff] %v650_v57  ;;  %vm570_vm6 = vcmp.ge.f32.partialorder %v529_v51, 0.0  ;;  %v611_v60 = vmul.f32 0.01, %v529_v51  ;;  %v530_v61 = vadd.f32 %v898_v46, %v407_v52  ;;  %v408_v62 = vadd.f32 %v1059_v1, %v360_v53 }
  0x3d   : > { %v651_v2 = vsel %vm569_vm5, %v528_v50, %v610_v58  ;;  %v409_v3 = vadd.f32 %v1059_v1, %v361_v59  ;;  %v902_v4 = vunpack.c.l.bf16 %v940_v55  ;;  %v362_v5 = vmul.f32 %v1047_v0, %v314_v56  ;;  %v944_v50 = vld [vmem:[%s1064_s30 + $0x90] sm:$0xff]   ;;  %v323_v58 = vld [vmem:[%s1054_s25 + $0x118] sm:$0xff] }
  0x3e   : > { %692 = vst [vmem:[%s1095_s7 + $0xa8] sm:$0xff] %v651_v2  ;;  %v652_v7 = vsel %vm570_vm6, %v529_v51, %v611_v60  ;;  %vm571_vm7 = vcmp.ge.f32.partialorder %v530_v61, 0.0  ;;  %v612_v8 = vmul.f32 0.01, %v530_v61  ;;  %v531_v9 = vadd.f32 %v899_v54, %v408_v62  ;;  %v322_v51 = vld [vmem:[%s1054_s25 + $0x110] sm:$0xff] }
  0x3f   : > { %693 = vst [vmem:[%s1095_s7 + $0xb0] sm:$0xff] %v652_v7  ;;  %v532_v10 = vadd.f32 %v902_v4, %v409_v3  ;;  %v410_v11 = vadd.f32 %v1059_v1, %v362_v5  ;;  %v903_v12 = vunpack.c.h.bf16 %v940_v55  ;;  %v363_v13 = vmul.f32 %v1047_v0, %v315_v63 }
  0x40   : > { %v653_v16 = vsel %vm571_vm7, %v530_v61, %v612_v8  ;;  %vm572_vm8 = vcmp.ge.f32.partialorder %v531_v9, 0.0  ;;  %v613_v17 = vmul.f32 0.01, %v531_v9  ;;  %v906_v18 = vunpack.c.l.bf16 %v941_v6  ;;  %v945_v8 = vld [vmem:[%s1064_s30 + $0x98] sm:$0xff]  }
  0x41   : > { %694 = vst [vmem:[%s1095_s7 + $0xb8] sm:$0xff] %v653_v16  ;;  %vm573_vm9 = vcmp.ge.f32.partialorder %v532_v10, 0.0  ;;  %v614_v19 = vmul.f32 0.01, %v532_v10  ;;  %v533_v20 = vadd.f32 %v903_v12, %v410_v11  ;;  %v411_v21 = vadd.f32 %v1059_v1, %v363_v13  ;;  %v325_v16 = vld [vmem:[%s1054_s25 + $0x128] sm:$0xff] }
  0x42   : > { %v654_v24 = vsel %vm572_vm8, %v531_v9, %v613_v17  ;;  %v364_v25 = vmul.f32 %v1047_v0, %v316_v14  ;;  %v907_v26 = vunpack.c.h.bf16 %v941_v6  ;;  %v365_v27 = vmul.f32 %v1047_v0, %v317_v15  ;;  %v324_v9 = vld [vmem:[%s1054_s25 + $0x120] sm:$0xff] }
  0x43   : > { %695 = vst [vmem:[%s1095_s7 + $0xc0] sm:$0xff] %v654_v24  ;;  %v655_v28 = vsel %vm573_vm9, %v532_v10, %v614_v19  ;;  %vm574_vm10 = vcmp.ge.f32.partialorder %v533_v20, 0.0  ;;  %v615_v29 = vmul.f32 0.01, %v533_v20  ;;  %v534_v30 = vadd.f32 %v906_v18, %v411_v21  ;;  %v946_v21 = vld [vmem:[%s1064_s30 + $0xa0] sm:$0xff]  }
  0x44   : > { %696 = vst [vmem:[%s1095_s7 + $0xc8] sm:$0xff] %v655_v28  ;;  %v412_v32 = vadd.f32 %v1059_v1, %v364_v25  ;;  %v413_v33 = vadd.f32 %v1059_v1, %v365_v27  ;;  %v910_v34 = vunpack.c.l.bf16 %v942_v22  ;;  %v366_v35 = vmul.f32 %v1047_v0, %v318_v23 }
  0x45   : > { %v656_v38 = vsel %vm574_vm10, %v533_v20, %v615_v29  ;;  %vm575_vm11 = vcmp.ge.f32.partialorder %v534_v30, 0.0  ;;  %v616_v39 = vmul.f32 0.01, %v534_v30  ;;  %v911_v40 = vunpack.c.h.bf16 %v942_v22  ;;  %v326_v22 = vld [vmem:[%s1054_s25 + $0x130] sm:$0xff]  ;;  %v327_v29 = vld [vmem:[%s1054_s25 + $0x138] sm:$0xff] }
  0x46   : > { %697 = vst [vmem:[%s1095_s7 + $0xd0] sm:$0xff] %v656_v38  ;;  %v535_v41 = vadd.f32 %v907_v26, %v412_v32  ;;  %v536_v42 = vadd.f32 %v910_v34, %v413_v33  ;;  %v414_v43 = vadd.f32 %v1059_v1, %v366_v35  ;;  %v367_v44 = vmul.f32 %v1047_v0, %v319_v31  ;;  %v328_v35 = vld [vmem:[%s1054_s25 + $0x140] sm:$0xf] }
  0x47   : > { %v657_v46 = vsel %vm575_vm11, %v534_v30, %v616_v39  ;;  %v914_v47 = vunpack.c.l.bf16 %v943_v36  ;;  %v368_v48 = vmul.f32 %v1047_v0, %v320_v37  ;;  %v915_v49 = vunpack.c.h.bf16 %v943_v36  ;;  %v464_v30 = vld [vmem:[%s1064_s30 + $0xa8] sm:$0xf]  ;;  %v465_v39 = vld [vmem:[%s1064_s30 + $0xac] sm:$0x3] }
  0x48   : > { %698 = vst [vmem:[%s1095_s7 + $0xd8] sm:$0xff] %v657_v46  ;;  %vm576_vm12 = vcmp.ge.f32.partialorder %v535_v41, 0.0  ;;  %v617_v52 = vmul.f32 0.01, %v535_v41  ;;  %vm577_vm13 = vcmp.ge.f32.partialorder %v536_v42, 0.0  ;;  %v537_v54 = vadd.f32 %v911_v40, %v414_v43 }
  0x49   : > { %v618_v53 = vmul.f32 0.01, %v536_v42  ;;  %v415_v55 = vadd.f32 %v1059_v1, %v367_v44  ;;  %v416_v56 = vadd.f32 %v1059_v1, %v368_v48  ;;  %v369_v57 = vmul.f32 %v1047_v0, %v321_v45 }
  0x4a   : > { %v658_v59 = vsel %vm576_vm12, %v535_v41, %v617_v52  ;;  %v918_v61 = vunpack.c.l.bf16 %v944_v50  ;;  %v370_v62 = vmul.f32 %v1047_v0, %v322_v51  ;;  %vm578_vm14 = vcmp.ge.f32.partialorder %v537_v54, 0.0 }
  0x4b   : > { %v659_v60 = vsel %vm577_vm13, %v536_v42, %v618_v53  ;;  %699 = vst [vmem:[%s1095_s7 + $0xe0] sm:$0xff] %v658_v59  ;;  %v619_v63 = vmul.f32 0.01, %v537_v54  ;;  %v538_v2 = vadd.f32 %v914_v47, %v415_v55  ;;  %v539_v3 = vadd.f32 %v915_v49, %v416_v56 }
  0x4c   : > { %700 = vst [vmem:[%s1095_s7 + $0xe8] sm:$0xff] %v659_v60  ;;  %v417_v4 = vadd.f32 %v1059_v1, %v369_v57  ;;  %v418_v5 = vadd.f32 %v1059_v1, %v370_v62  ;;  %v919_v6 = vunpack.c.h.bf16 %v944_v50  ;;  %v371_v7 = vmul.f32 %v1047_v0, %v323_v58 }
  0x4d   : > { %v660_v10 = vsel %vm578_vm14, %v537_v54, %v619_v63  ;;  %vm579_vm15 = vcmp.ge.f32.partialorder %v538_v2, 0.0  ;;  %v620_v11 = vmul.f32 0.01, %v538_v2  ;;  %vm580_vm0 = vcmp.ge.f32.partialorder %v539_v3, 0.0 }
  0x4e   : > { %701 = vst [vmem:[%s1095_s7 + $0xf0] sm:$0xff] %v660_v10  ;;  %v621_v12 = vmul.f32 0.01, %v539_v3  ;;  %v540_v13 = vadd.f32 %v918_v61, %v417_v4  ;;  %v541_v14 = vadd.f32 %v919_v6, %v418_v5  ;;  %v419_v15 = vadd.f32 %v1059_v1, %v371_v7 }
  0x4f   : > { %v661_v17 = vsel %vm579_vm15, %v538_v2, %v620_v11  ;;  %v922_v18 = vunpack.c.l.bf16 %v945_v8  ;;  %v372_v19 = vmul.f32 %v1047_v0, %v324_v9  ;;  %v923_v20 = vunpack.c.h.bf16 %v945_v8 }
  0x50   : > { %702 = vst [vmem:[%s1095_s7 + $0xf8] sm:$0xff] %v661_v17  ;;  %v662_v23 = vsel %vm580_vm0, %v539_v3, %v621_v12  ;;  %vm581_vm1 = vcmp.ge.f32.partialorder %v540_v13, 0.0  ;;  %v622_v24 = vmul.f32 0.01, %v540_v13  ;;  %vm582_vm2 = vcmp.ge.f32.partialorder %v541_v14, 0.0 }
  0x51   : > { %703 = vst [vmem:[%s1095_s7 + $0x100] sm:$0xff] %v662_v23  ;;  %v623_v25 = vmul.f32 0.01, %v541_v14  ;;  %v542_v26 = vadd.f32 %v922_v18, %v419_v15  ;;  %v420_v27 = vadd.f32 %v1059_v1, %v372_v19  ;;  %v373_v28 = vmul.f32 %v1047_v0, %v325_v16 }
  0x52   : > { %v663_v31 = vsel %vm581_vm1, %v540_v13, %v622_v24  ;;  %v926_v32 = vunpack.c.l.bf16 %v946_v21  ;;  %v374_v33 = vmul.f32 %v1047_v0, %v326_v22  ;;  %v927_v34 = vunpack.c.h.bf16 %v946_v21 }
  0x53   : > { %704 = vst [vmem:[%s1095_s7 + $0x108] sm:$0xff] %v663_v31  ;;  %v664_v36 = vsel %vm582_vm2, %v541_v14, %v623_v25  ;;  %vm583_vm3 = vcmp.ge.f32.partialorder %v542_v26, 0.0  ;;  %v624_v37 = vmul.f32 0.01, %v542_v26  ;;  %v543_v38 = vadd.f32 %v923_v20, %v420_v27 }
  0x54   : > { %705 = vst [vmem:[%s1095_s7 + $0x110] sm:$0xff] %v664_v36  ;;  %v421_v40 = vadd.f32 %v1059_v1, %v373_v28  ;;  %v422_v41 = vadd.f32 %v1059_v1, %v374_v33  ;;  %v375_v42 = vmul.f32 %v1047_v0, %v327_v29  ;;  %v505_v43 = vunpack.c.l.bf16 %v464_v30 }
  0x55   : > { %v665_v44 = vsel %vm583_vm3, %v542_v26, %v624_v37  ;;  %vm584_vm4 = vcmp.ge.f32.partialorder %v543_v38, 0.0  ;;  %v625_v45 = vmul.f32 0.01, %v543_v38  ;;  %v376_v46 = vmul.f32 %v1047_v0, %v328_v35 }
  0x56   : > { %706 = vst [vmem:[%s1095_s7 + $0x118] sm:$0xff] %v665_v44  ;;  %v544_v47 = vadd.f32 %v926_v32, %v421_v40  ;;  %v545_v48 = vadd.f32 %v927_v34, %v422_v41  ;;  %v423_v49 = vadd.f32 %v1059_v1, %v375_v42  ;;  %v506_v50 = vunpack.c.l.bf16 %v465_v39 }
  0x57   : > { %v666_v51 = vsel %vm584_vm4, %v543_v38, %v625_v45  ;;  %v424_v52 = vadd.f32 %v1059_v1, %v376_v46 }
  0x58   : > { %707 = vst [vmem:[%s1095_s7 + $0x120] sm:$0xff] %v666_v51  ;;  %vm585_vm5 = vcmp.ge.f32.partialorder %v544_v47, 0.0  ;;  %v626_v53 = vmul.f32 0.01, %v544_v47  ;;  %vm586_vm6 = vcmp.ge.f32.partialorder %v545_v48, 0.0  ;;  %v546_v55 = vadd.f32 %v505_v43, %v423_v49 }
  0x59   : > { %v627_v54 = vmul.f32 0.01, %v545_v48  ;;  %v547_v0 = vadd.f32 %v506_v50, %v424_v52 }
  0x5a   : > { %v667_v56 = vsel %vm585_vm5, %v544_v47, %v626_v53  ;;  %vm587_vm7 = vcmp.ge.f32.partialorder %v546_v55, 0.0  ;;  %v628_v58 = vmul.f32 0.01, %v546_v55 }
  0x5b   : > { %v668_v57 = vsel %vm586_vm6, %v545_v48, %v627_v54  ;;  %708 = vst [vmem:[%s1095_s7 + $0x128] sm:$0xff] %v667_v56  ;;  %vm588_vm8 = vcmp.ge.f32.partialorder %v547_v0, 0.0  ;;  %v629_v59 = vmul.f32 0.01, %v547_v0 }
  0x5c   : > { %709 = vst [vmem:[%s1095_s7 + $0x130] sm:$0xff] %v668_v57  ;;  %v669_v60 = vsel %vm587_vm7, %v546_v55, %v628_v58 }
  0x5d   : > { %v670_v61 = vsel %vm588_vm8, %v547_v0, %v629_v59  ;;  %710 = vst [vmem:[%s1095_s7 + $0x138] sm:$0xff] %v669_v60 }
  0x5e   : > { %711 = vst [vmem:[%s1095_s7 + $0x140] sm:$0xf] %v670_v61 }
  0x5f PF: > { %s14_s17 = sadd.s32 1, %s995_s17   ;;  %s1273_s15 = smov %s991_s16 }
  0x60   : > { %p11_p5 = scmp.ge.s32.totalorder %s14_s17, 4   ;;  %s1274_s16 = smov %s1276_s18 }
  0x62   :  { %13 = sbr.rel (!%p11_p5) target bundleno = 2 (0x2), region = 75 }

// kernel: upsample_res_block_forward.5
= control target key start
LH: loop header
LB: loop body
LE: loop exit
PB: predicated region body
PF: predicated region fallthrough
CT: control target
= control target key end

     0   :  { %s1454_s15 = smov 0   ;;  %s1456_s16 = smov 0   ;;  %s1901_s0 = inlined_call_operand.vmem [shape: f32[2,324,128], index: 0, kind: input, shape index: {}]   ;;  %s1902_s1 = inlined_call_operand.vmem [shape: f32[1,128], index: 1, kind: input, shape index: {}]   ;;  %s1903_s2 = inlined_call_operand.vmem [shape: f32[1,128], index: 2, kind: input, shape index: {}]   ;;  %s1904_s3 = inlined_call_operand.vmem [shape: f32[324,1], index: 3, kind: input, shape index: {}]   ;;  %s1905_s4 = inlined_call_operand.vmem [shape: bf16[2,368,128], index: 4, kind: output, shape index: {}]  }
   0x1   :  { %s1458_s17 = smov 0  }
   0x2 LB: > { %s26_s18 = sadd.s32 1, %s1422_s16  ;;  %p1172_p0 = scmp.ge.s32.totalorder %s1426_s17, 1  ;;  %s1426_s17 = sphi %s1458_s17, %s14_s17   ;;  %s1422_s16 = sphi %s1456_s16, %s1907_s16   ;;  %s1418_s15 = sphi %s1454_s15, %s1906_s15  }
   0x3   : > { %p28_p1 = scmp.ge.s32.totalorder %s26_s18, 2  ;;  %p197_p2 = scmp.lt.s32.totalorder %s1426_s17, 3 }
   0x5   : > { %s1909_s18 = smov (%p28_p1, %s26_s18), 0  ;;  %p198_p3 = pnand %p1172_p0, %p197_p2 }
   0x6   : > { %v520_v0 = vld [vmem:[%s1904_s3 + $0x10] sm:$0xff] (!%p198_p3)  ;;  %v518_v1 = vld [vmem:[%s1904_s3] sm:$0xff] (!%p198_p3)  ;;  %v521_v2 = vld [vmem:[%s1904_s3 + $0x18] sm:$0xff] (!%p198_p3)  ;;  %v1428_v3 = vmov (!%p198_p3), 0   ;;  %p235_p4 = scmp.lt.s32.totalorder (!%p198_p3), %s1418_s15, 1 }
   0x7   : > { %201 = sbr.rel (%p198_p3) target bundleno = 222 (0xde), region = 36  ;;  %1403 = vset.pattern.permute.xlu1 (!%p198_p3), %v1428_v3  ;;  %1402 = vset.pattern.permute.xlu0 (!%p198_p3), %v1428_v3  ;;  %vm561_vm0 = vcmp.gt.f32.partialorder (!%p198_p3), %v520_v0, 0.0  ;;  %vm559_vm1 = vcmp.gt.f32.partialorder (!%p198_p3), %v518_v1, 0.0  ;;  %vm562_vm2 = vcmp.gt.f32.partialorder (!%p198_p3), %v521_v2, 0.0  ;;  %v519_v4 = vld [vmem:[%s1904_s3 + $0x8] sm:$0xff] (!%p198_p3)  ;;  %v522_v8 = vld [vmem:[%s1904_s3 + $0x20] sm:$0xff] (!%p198_p3) }
   0x8   : > { %v602_v5 = vsel (!%p198_p3), %vm561_vm0, 1, %v1428_v3  ;;  %v600_v6 = vsel (!%p198_p3), %vm559_vm1, 1, %v1428_v3  ;;  %vm560_vm3 = vcmp.gt.f32.partialorder (!%p198_p3), %v519_v4, 0.0  ;;  %v523_v7 = vld [vmem:[%s1904_s3 + $0x28] sm:$0xff] (!%p198_p3)  ;;  %v603_v9 = vsel (!%p198_p3), %vm562_vm2, 1, %v1428_v3  ;;  %v525_v11 = vld [vmem:[%s1904_s3 + $0x38] sm:$0xff] (!%p198_p3) }
   0x9   : > { %648 = vperm.xlu1 (!%p198_p3), %1403, %v602_v5   ;;  %642 = vperm.xlu0 (!%p198_p3), %1402, %v600_v6   ;;  %v601_v10 = vsel (!%p198_p3), %vm560_vm3, 1, %v1428_v3  ;;  %vm564_vm4 = vcmp.gt.f32.partialorder (!%p198_p3), %v523_v7, 0.0  ;;  %vm563_vm5 = vcmp.gt.f32.partialorder (!%p198_p3), %v522_v8, 0.0  ;;  %v524_v12 = vld [vmem:[%s1904_s3 + $0x30] sm:$0xff] (!%p198_p3)  ;;  %vm566_vm6 = vcmp.gt.f32.partialorder (!%p198_p3), %v525_v11, 0.0  ;;  %v527_v15 = vld [vmem:[%s1904_s3 + $0x48] sm:$0xff] (!%p198_p3) }
   0xa   : > { %v605_v13 = vsel (!%p198_p3), %vm564_vm4, 1, %v1428_v3  ;;  %v604_v14 = vsel (!%p198_p3), %vm563_vm5, 1, %v1428_v3  ;;  %vm565_vm7 = vcmp.gt.f32.partialorder (!%p198_p3), %v524_v12, 0.0  ;;  %v526_v16 = vld [vmem:[%s1904_s3 + $0x40] sm:$0xff] (!%p198_p3)  ;;  %v607_v17 = vsel (!%p198_p3), %vm566_vm6, 1, %v1428_v3  ;;  %v529_v19 = vld [vmem:[%s1904_s3 + $0x58] sm:$0xff] (!%p198_p3) }
   0xb   : > { %v606_v18 = vsel (!%p198_p3), %vm565_vm7, 1, %v1428_v3  ;;  %vm568_vm8 = vcmp.gt.f32.partialorder (!%p198_p3), %v527_v15, 0.0  ;;  %vm567_vm9 = vcmp.gt.f32.partialorder (!%p198_p3), %v526_v16, 0.0  ;;  %v528_v20 = vld [vmem:[%s1904_s3 + $0x50] sm:$0xff] (!%p198_p3)  ;;  %vm570_vm10 = vcmp.gt.f32.partialorder (!%p198_p3), %v529_v19, 0.0  ;;  %v531_v23 = vld [vmem:[%s1904_s3 + $0x68] sm:$0xff] (!%p198_p3) }
   0xc   : > { %v609_v21 = vsel (!%p198_p3), %vm568_vm8, 1, %v1428_v3  ;;  %v608_v22 = vsel (!%p198_p3), %vm567_vm9, 1, %v1428_v3  ;;  %vm569_vm11 = vcmp.gt.f32.partialorder (!%p198_p3), %v528_v20, 0.0  ;;  %v530_v24 = vld [vmem:[%s1904_s3 + $0x60] sm:$0xff] (!%p198_p3)  ;;  %v611_v25 = vsel (!%p198_p3), %vm570_vm10, 1, %v1428_v3  ;;  %v533_v27 = vld [vmem:[%s1904_s3 + $0x78] sm:$0xff] (!%p198_p3) }
   0xd   : > { %651 = vperm.xlu1 (!%p198_p3), %1403, %v603_v9   ;;  %645 = vperm.xlu0 (!%p198_p3), %1402, %v601_v10   ;;  %v610_v26 = vsel (!%p198_p3), %vm569_vm11, 1, %v1428_v3  ;;  %vm572_vm12 = vcmp.gt.f32.partialorder (!%p198_p3), %v531_v23, 0.0  ;;  %vm571_vm13 = vcmp.gt.f32.partialorder (!%p198_p3), %v530_v24, 0.0  ;;  %v532_v28 = vld [vmem:[%s1904_s3 + $0x70] sm:$0xff] (!%p198_p3)  ;;  %vm574_vm14 = vcmp.gt.f32.partialorder (!%p198_p3), %v533_v27, 0.0  ;;  %v535_v31 = vld [vmem:[%s1904_s3 + $0x88] sm:$0xff] (!%p198_p3) }
   0xe   : > { %s1911_s15 = smov (!%p235_p4, %s1418_s15), 1  ;;  %v613_v29 = vsel %vm572_vm12, 1, %v1428_v3  ;;  %v612_v30 = vsel %vm571_vm13, 1, %v1428_v3  ;;  %vm573_vm15 = vcmp.gt.f32.partialorder %v532_v28, 0.0  ;;  %v534_v32 = vld [vmem:[%s1904_s3 + $0x80] sm:$0xff]  ;;  %v615_v33 = vsel %vm574_vm14, 1, %v1428_v3 }
   0xf   : > { %s1376_s29 = smul.u32 184, %s1911_s15  ;;  %v614_v34 = vsel %vm573_vm15, 1, %v1428_v3  ;;  %vm576_vm0 = vcmp.gt.f32.partialorder %v535_v31, 0.0  ;;  %vm575_vm1 = vcmp.gt.f32.partialorder %v534_v32, 0.0  ;;  %v537_v35 = vld [vmem:[%s1904_s3 + $0x98] sm:$0xff]  ;;  %v536_v36 = vld [vmem:[%s1904_s3 + $0x90] sm:$0xff] }
  0x10   : > { %v617_v37 = vsel %vm576_vm0, 1, %v1428_v3  ;;  %v616_v38 = vsel %vm575_vm1, 1, %v1428_v3  ;;  %vm578_vm2 = vcmp.gt.f32.partialorder %v537_v35, 0.0  ;;  %vm577_vm3 = vcmp.gt.f32.partialorder %v536_v36, 0.0  ;;  %v539_v39 = vld [vmem:[%s1904_s3 + $0xa8] sm:$0xff]  ;;  %v538_v40 = vld [vmem:[%s1904_s3 + $0xa0] sm:$0xff] }
  0x11   : > { %657 = vperm.xlu1 %1403, %v605_v13   ;;  %654 = vperm.xlu0 %1402, %v604_v14   ;;  %s1546_s6 = scalar_lea.vmem %s1905_s4, %s1376_s29  ;;  %v619_v41 = vsel %vm578_vm2, 1, %v1428_v3  ;;  %v618_v42 = vsel %vm577_vm3, 1, %v1428_v3  ;;  %vm580_vm4 = vcmp.gt.f32.partialorder %v539_v39, 0.0  ;;  %vm579_vm5 = vcmp.gt.f32.partialorder %v538_v40, 0.0  ;;  %v541_v43 = vld [vmem:[%s1904_s3 + $0xb8] sm:$0xff]  ;;  %v540_v44 = vld [vmem:[%s1904_s3 + $0xb0] sm:$0xff] }
  0x12   : > { %867 = vst [vmem:[%s1546_s6] sm:$0xf] %v1428_v3  ;;  %868 = vst [vmem:[%s1546_s6 + $0x4] sm:$0xf] %v1428_v3  ;;  %v621_v45 = vsel %vm580_vm4, 1, %v1428_v3  ;;  %v620_v46 = vsel %vm579_vm5, 1, %v1428_v3  ;;  %vm582_vm6 = vcmp.gt.f32.partialorder %v541_v43, 0.0 }
  0x13   : > { %869 = vst [vmem:[%s1546_s6 + $0x8] sm:$0xf] %v1428_v3  ;;  %1055 = vst [vmem:[%s1546_s6 + $0xac] sm:$0xc] %v1428_v3  ;;  %vm581_vm7 = vcmp.gt.f32.partialorder %v540_v44, 0.0  ;;  %v543_v47 = vld [vmem:[%s1904_s3 + $0xc8] sm:$0xff] }
  0x14   : > { %1056 = vst [vmem:[%s1546_s6 + $0xb0] sm:$0xf] %v1428_v3  ;;  %1057 = vst [vmem:[%s1546_s6 + $0xb4] sm:$0xf] %v1428_v3  ;;  %v542_v48 = vld [vmem:[%s1904_s3 + $0xc0] sm:$0xff]  ;;  %v623_v49 = vsel %vm582_vm6, 1, %v1428_v3 }
  0x15   : > { %663 = vperm.xlu1 %1403, %v607_v17   ;;  %660 = vperm.xlu0 %1402, %v606_v18   ;;  %v622_v50 = vsel %vm581_vm7, 1, %v1428_v3  ;;  %vm584_vm8 = vcmp.gt.f32.partialorder %v543_v47, 0.0  ;;  %vm583_vm9 = vcmp.gt.f32.partialorder %v542_v48, 0.0  ;;  %v545_v51 = vld [vmem:[%s1904_s3 + $0xd8] sm:$0xff]  ;;  %v544_v52 = vld [vmem:[%s1904_s3 + $0xd0] sm:$0xff]  ;;  %v547_v55 = vld [vmem:[%s1904_s3 + $0xe8] sm:$0xff] }
  0x16   : > { %v625_v53 = vsel %vm584_vm8, 1, %v1428_v3  ;;  %v624_v54 = vsel %vm583_vm9, 1, %v1428_v3  ;;  %vm586_vm10 = vcmp.gt.f32.partialorder %v545_v51, 0.0  ;;  %vm585_vm11 = vcmp.gt.f32.partialorder %v544_v52, 0.0  ;;  %v546_v56 = vld [vmem:[%s1904_s3 + $0xe0] sm:$0xff]  ;;  %v549_v59 = vld [vmem:[%s1904_s3 + $0xf8] sm:$0xff] }
  0x17   : > { %v627_v57 = vsel %vm586_vm10, 1, %v1428_v3  ;;  %v626_v58 = vsel %vm585_vm11, 1, %v1428_v3  ;;  %vm588_vm12 = vcmp.gt.f32.partialorder %v547_v55, 0.0  ;;  %vm587_vm13 = vcmp.gt.f32.partialorder %v546_v56, 0.0  ;;  %v548_v60 = vld [vmem:[%s1904_s3 + $0xf0] sm:$0xff]  ;;  %s1375_s22 = smul.u32 328, %s1911_s15 }
  0x18   : > { %v629_v61 = vsel %vm588_vm12, 1, %v1428_v3  ;;  %v628_v62 = vsel %vm587_vm13, 1, %v1428_v3  ;;  %vm590_vm14 = vcmp.gt.f32.partialorder %v549_v59, 0.0  ;;  %vm589_vm15 = vcmp.gt.f32.partialorder %v548_v60, 0.0  ;;  %v551_v63 = vld [vmem:[%s1904_s3 + $0x108] sm:$0xff]  ;;  %v550_v0 = vld [vmem:[%s1904_s3 + $0x100] sm:$0xff] }
  0x19   : > { %669 = vperm.xlu1 %1403, %v609_v21   ;;  %666 = vperm.xlu0 %1402, %v608_v22   ;;  %s1634_s15 = scalar_lea.vmem %s1901_s0, %s1375_s22  ;;  %v631_v2 = vsel %vm590_vm14, 1, %v1428_v3  ;;  %v630_v4 = vsel %vm589_vm15, 1, %v1428_v3  ;;  %vm592_vm0 = vcmp.gt.f32.partialorder %v551_v63, 0.0  ;;  %vm591_vm1 = vcmp.gt.f32.partialorder %v550_v0, 0.0  ;;  %v1642_v5 = vld [vmem:[%s1902_s1] ss:$0 sm:$0xff] }
  0x1a   : > { %v289_v1 = vld [vmem:[%s1634_s15 + $0xf8] sm:$0xff]  ;;  %v291_v6 = vld [vmem:[%s1634_s15 + $0x108] sm:$0xff]  ;;  %v552_v8 = vld [vmem:[%s1904_s3 + $0x110] sm:$0xff]  ;;  %v633_v12 = vsel %vm592_vm0, 1, %v1428_v3  ;;  %v632_v13 = vsel %vm591_vm1, 1, %v1428_v3 }
  0x1b   : > { %v553_v7 = vld [vmem:[%s1904_s3 + $0x118] sm:$0xff]  ;;  %v337_v9 = vmul.f32 %v1642_v5, %v289_v1  ;;  %v290_v10 = vld [vmem:[%s1634_s15 + $0x100] sm:$0xff]  ;;  %v339_v15 = vmul.f32 %v1642_v5, %v291_v6  ;;  %vm593_vm3 = vcmp.gt.f32.partialorder %v552_v8, 0.0  ;;  %v555_v19 = vld [vmem:[%s1904_s3 + $0x128] sm:$0xff] }
  0x1c   : > { %v1656_v11 = vld [vmem:[%s1903_s2] ss:$0 sm:$0xff]  ;;  %v293_v16 = vld [vmem:[%s1634_s15 + $0x118] sm:$0xff]  ;;  %vm594_vm2 = vcmp.gt.f32.partialorder %v553_v7, 0.0  ;;  %v338_v17 = vmul.f32 %v1642_v5, %v290_v10  ;;  %v292_v21 = vld [vmem:[%s1634_s15 + $0x110] sm:$0xff]  ;;  %v634_v24 = vsel %vm593_vm3, 1, %v1428_v3 }
  0x1d   : > { %675 = vperm.xlu1 %1403, %v611_v25   ;;  %672 = vperm.xlu0 %1402, %v610_v26   ;;  %v1661_v14 = vadd.f32 %v1656_v11, %v337_v9  ;;  %v341_v18 = vmul.f32 %v1642_v5, %v293_v16  ;;  %v554_v20 = vld [vmem:[%s1904_s3 + $0x120] sm:$0xff]  ;;  %v1675_v22 = vadd.f32 %v1656_v11, %v339_v15  ;;  %v635_v23 = vsel %vm594_vm2, 1, %v1428_v3  ;;  %v295_v27 = vld [vmem:[%s1634_s15 + $0x128] sm:$0xff]  ;;  %v556_v31 = vld [vmem:[%s1904_s3 + $0x130] sm:$0xff] }
  0x1e   : > { %v1680_v25 = vadd.f32 %v1656_v11, %v338_v17  ;;  %vm596_vm4 = vcmp.gt.f32.partialorder %v555_v19, 0.0  ;;  %vm595_vm5 = vcmp.gt.f32.partialorder %v554_v20, 0.0  ;;  %v340_v28 = vmul.f32 %v1642_v5, %v292_v21  ;;  %v298_v48 = vld [vmem:[%s1634_s15 + $0x140] sm:$0xf]  ;;  %v259_v55 = vld [vmem:[%s1634_s15 + $0x8] sm:$0xff]  ;;  %v264_v63 = vld [vmem:[%s1634_s15 + $0x30] sm:$0xff] }
  0x1f   : > { %v1683_v26 = vadd.f32 %v1656_v11, %v341_v18  ;;  %v636_v35 = vsel %vm595_vm5, 1, %v1428_v3  ;;  %vm597_vm7 = vcmp.gt.f32.partialorder %v556_v31, 0.0  ;;  %v258_v52 = vld [vmem:[%s1634_s15] sm:$0xff]  ;;  %v307_v59 = vmul.f32 %v1642_v5, %v259_v55  ;;  %v265_v7 = vld [vmem:[%s1634_s15 + $0x38] sm:$0xff] }
  0x20   : > { %v1695_v32 = vadd.f32 %v1656_v11, %v340_v28  ;;  %v262_v60 = vld [vmem:[%s1634_s15 + $0x20] sm:$0xff]  ;;  %v312_v8 = vmul.f32 %v1642_v5, %v264_v63  ;;  %v313_v19 = vmul.f32 %v1642_v5, %v265_v7 }
  0x21   : > { %681 = vperm.xlu1 %1403, %v613_v29   ;;  %678 = vperm.xlu0 %1402, %v612_v30   ;;  %v294_v29 = vld [vmem:[%s1634_s15 + $0x120] sm:$0xff]  ;;  %v557_v30 = vld [vmem:[%s1904_s3 + $0x138] sm:$0xff]  ;;  %v355_v1 = vadd.f32 %v1656_v11, %v307_v59 }
  0x22   : > { %v342_v36 = vmul.f32 %v1642_v5, %v294_v29  ;;  %vm598_vm6 = vcmp.gt.f32.partialorder %v557_v30, 0.0  ;;  %v266_v15 = vld [vmem:[%s1634_s15 + $0x40] sm:$0xff]  ;;  %v360_v21 = vadd.f32 %v1656_v11, %v312_v8 }
  0x23   : > { %vm396_vm11 = vcmp.ge.f32.partialorder %v355_v1, 0.0  ;;  %v314_v28 = vmul.f32 %v1642_v5, %v266_v15 }
  0x24   : > { %vm401_vm2 = vcmp.ge.f32.partialorder %v360_v21, 0.0 }
  0x25   : > { %687 = vperm.xlu1 %1403, %v615_v33   ;;  %684 = vperm.xlu0 %1402, %v614_v34   ;;  %v343_v33 = vmul.f32 %v1642_v5, %v295_v27  ;;  %v637_v34 = vsel %vm596_vm4, 1, %v1428_v3  ;;  %v267_v27 = vld [vmem:[%s1634_s15 + $0x48] sm:$0xff] }
  0x27   : > { %v1704_v39 = vadd.f32 %v1656_v11, %v343_v33 }
  0x29   : > { %693 = vperm.xlu1 %1403, %v617_v37   ;;  %690 = vperm.xlu0 %1402, %v616_v38   ;;  %v297_v37 = vld [vmem:[%s1634_s15 + $0x138] sm:$0xff]  ;;  %v296_v38 = vld [vmem:[%s1634_s15 + $0x130] sm:$0xff] }
  0x2a   : > { %v345_v40 = vmul.f32 %v1642_v5, %v297_v37  ;;  %v344_v43 = vmul.f32 %v1642_v5, %v296_v38  ;;  %v361_v37 = vadd.f32 %v1656_v11, %v313_v19  ;;  %v268_v38 = vld [vmem:[%s1634_s15 + $0x50] sm:$0xff]  ;;  %v274_v19 = vld [vmem:[%s1634_s15 + $0x80] sm:$0xff] }
  0x2c   : > { %v1715_v44 = vadd.f32 %v1656_v11, %v345_v40  ;;  %v1720_v47 = vadd.f32 %v1656_v11, %v344_v43  ;;  %v442_v40 = vmul.f32 0.01, %v360_v21  ;;  %v269_v43 = vld [vmem:[%s1634_s15 + $0x58] sm:$0xff]  ;;  %vm402_vm4 = vcmp.ge.f32.partialorder %v361_v37, 0.0 }
  0x2d   : > { %699 = vperm.xlu1 %1403, %v619_v41   ;;  %696 = vperm.xlu0 %1402, %v618_v42   ;;  %v558_v41 = vld [vmem:[%s1904_s3 + $0x140] sm:$0xf]  ;;  %v1711_v42 = vadd.f32 %v1656_v11, %v342_v36 }
  0x2e   : > { %vm599_vm8 = vcmp.gt.f32.partialorder %v558_v41, 0.0  ;;  %v315_v41 = vmul.f32 %v1642_v5, %v267_v27  ;;  %v483_v59 = vsel %vm401_vm2, %v360_v21, %v442_v40 }
  0x2f   : > { %v640_v51 = vsel %vm599_vm8, 1, %v1428_v3 }
  0x31   : > { %705 = vperm.xlu1 %1403, %v621_v45   ;;  %702 = vperm.xlu0 %1402, %v620_v46   ;;  %v639_v45 = vsel %vm598_vm6, 1, %v1428_v3  ;;  %v638_v46 = vsel %vm597_vm7, 1, %v1428_v3 }
  0x35   : > { %711 = vperm.xlu1 %1403, %v623_v49   ;;  %708 = vperm.xlu0 %1402, %v622_v50   ;;  %v346_v49 = vmul.f32 %v1642_v5, %v298_v48  ;;  %v362_v48 = vadd.f32 %v1656_v11, %v314_v28 }
  0x37   : > { %v1725_v50 = vadd.f32 %v1656_v11, %v346_v49  ;;  %v444_v63 = vmul.f32 0.01, %v362_v48  ;;  %vm403_vm7 = vcmp.ge.f32.partialorder %v362_v48, 0.0 }
  0x39   : > { %717 = vperm.xlu1 %1403, %v625_v53   ;;  %714 = vperm.xlu0 %1402, %v624_v54   ;;  %v260_v53 = vld [vmem:[%s1634_s15 + $0x10] sm:$0xff]  ;;  %v306_v54 = vmul.f32 %v1642_v5, %v258_v52  ;;  %v316_v52 = vmul.f32 %v1642_v5, %v268_v38 }
  0x3a   : > { %v308_v56 = vmul.f32 %v1642_v5, %v260_v53  ;;  %v270_v53 = vld [vmem:[%s1634_s15 + $0x60] sm:$0xff] }
  0x3d   : > { %723 = vperm.xlu1 %1403, %v627_v57   ;;  %720 = vperm.xlu0 %1402, %v626_v58   ;;  %v354_v57 = vadd.f32 %v1656_v11, %v306_v54  ;;  %v261_v58 = vld [vmem:[%s1634_s15 + $0x18] sm:$0xff] }
  0x3e   : > { %v309_v3 = vmul.f32 %v1642_v5, %v261_v58  ;;  %v443_v58 = vmul.f32 0.01, %v361_v37 }
  0x3f   : > { %v436_v0 = vmul.f32 0.01, %v354_v57  ;;  %vm395_vm9 = vcmp.ge.f32.partialorder %v354_v57, 0.0 }
  0x40   : > { %v357_v9 = vadd.f32 %v1656_v11, %v309_v3 }
  0x41   : > { %729 = vperm.xlu1 %1403, %v629_v61   ;;  %726 = vperm.xlu0 %1402, %v628_v62   ;;  %v356_v61 = vadd.f32 %v1656_v11, %v308_v56  ;;  %v263_v62 = vld [vmem:[%s1634_s15 + $0x28] sm:$0xff]  ;;  %v477_v10 = vsel %vm395_vm9, %v354_v57, %v436_v0  ;;  %v317_v57 = vmul.f32 %v1642_v5, %v269_v43  ;;  %v276_v43 = vld [vmem:[%s1634_s15 + $0x90] sm:$0xff] }
  0x42   : > { %vm398_vm14 = vcmp.ge.f32.partialorder %v357_v9, 0.0  ;;  %v318_v0 = vmul.f32 %v1642_v5, %v270_v53 }
  0x43   : > { %v438_v6 = vmul.f32 0.01, %v356_v61  ;;  %vm397_vm10 = vcmp.ge.f32.partialorder %v356_v61, 0.0  ;;  %v365_v7 = vadd.f32 %v1656_v11, %v317_v57  ;;  %v324_v57 = vmul.f32 %v1642_v5, %v276_v43  ;;  %v283_v43 = vld [vmem:[%s1634_s15 + $0xc8] sm:$0xff] }
  0x45   : > { %735 = vperm.xlu1 %1403, %v631_v2   ;;  %732 = vperm.xlu0 %1402, %v630_v4   ;;  %v310_v2 = vmul.f32 %v1642_v5, %v262_v60  ;;  %v311_v4 = vmul.f32 %v1642_v5, %v263_v62  ;;  %v479_v20 = vsel %vm397_vm10, %v356_v61, %v438_v6  ;;  %v271_v61 = vld [vmem:[%s1634_s15 + $0x68] sm:$0xff] }
  0x46   : > { %v363_v60 = vadd.f32 %v1656_v11, %v315_v41  ;;  %v319_v8 = vmul.f32 %v1642_v5, %v271_v61 }
  0x47   : > { %v359_v18 = vadd.f32 %v1656_v11, %v311_v4 }
  0x48   : > { %vm404_vm9 = vcmp.ge.f32.partialorder %v363_v60, 0.0  ;;  %v367_v28 = vadd.f32 %v1656_v11, %v319_v8 }
  0x49   : > { %741 = vperm.xlu1 %1403, %v633_v12   ;;  %738 = vperm.xlu0 %1402, %v632_v13   ;;  %v437_v12 = vmul.f32 0.01, %v355_v1  ;;  %v358_v13 = vadd.f32 %v1656_v11, %v310_v2  ;;  %v441_v36 = vmul.f32 0.01, %v359_v18  ;;  %vm400_vm1 = vcmp.ge.f32.partialorder %v359_v18, 0.0 }
  0x4a   : > { %v364_v2 = vadd.f32 %v1656_v11, %v316_v52 }
  0x4b   : > { %v478_v30 = vsel %vm396_vm11, %v355_v1, %v437_v12  ;;  %v440_v31 = vmul.f32 0.01, %v358_v13  ;;  %vm399_vm15 = vcmp.ge.f32.partialorder %v358_v13, 0.0  ;;  %v482_v55 = vsel %vm400_vm1, %v359_v18, %v441_v36 }
  0x4c   : > { %v445_v12 = vmul.f32 0.01, %v363_v60  ;;  %v366_v18 = vadd.f32 %v1656_v11, %v318_v0  ;;  %v446_v21 = vmul.f32 0.01, %v364_v2  ;;  %vm405_vm11 = vcmp.ge.f32.partialorder %v364_v2, 0.0  ;;  %v278_v0 = vld [vmem:[%s1634_s15 + $0xa0] sm:$0xff] }
  0x4d   : > { %747 = vperm.xlu1 %1403, %v635_v23   ;;  %744 = vperm.xlu0 %1402, %v634_v24   ;;  %v439_v24 = vmul.f32 0.01, %v357_v9  ;;  %vm408_vm1 = vcmp.ge.f32.partialorder %v367_v28, 0.0 }
  0x4e   : > { %v487_v40 = vsel %vm405_vm11, %v364_v2, %v446_v21 }
  0x51   : > { %753 = vperm.xlu1 %1403, %v637_v34   ;;  %750 = vperm.xlu0 %1402, %v636_v35  }
  0x55   : > { %759 = vperm.xlu1 %1403, %v639_v45   ;;  %756 = vperm.xlu0 %1402, %v638_v46   ;;  %v480_v45 = vsel %vm398_vm14, %v357_v9, %v439_v24  ;;  %v272_v9 = vld [vmem:[%s1634_s15 + $0x70] sm:$0xff] }
  0x59   : > { %762 = vperm.xlu0 %1402, %v640_v51   ;;  %v481_v51 = vsel %vm399_vm15, %v358_v13, %v440_v31  ;;  %v273_v13 = vld [vmem:[%s1634_s15 + $0x78] sm:$0xff]  ;;  %v275_v31 = vld [vmem:[%s1634_s15 + $0x88] sm:$0xff]  ;;  %vm407_vm15 = vcmp.ge.f32.partialorder %v366_v18, 0.0 }
  0x88   : > { %v649_v16 = vpop.permute.xlu1 %648  ;;  %v643_v17 = vpop.permute.xlu0 %642 }
  0x89   : > { %vm766_vm12 = vcmp.eq.s32.totalorder %v649_v16, 1  ;;  %vm764_vm13 = vcmp.eq.s32.totalorder %v643_v17, 1  ;;  %v485_v17 = vsel %vm403_vm7, %v362_v48, %v444_v63  ;;  %v449_v48 = vmul.f32 0.01, %v367_v28 }
  0x8a   : > { %v805_v23 = vsel %vm764_vm13, %v477_v10, 0.0  ;;  %v807_v33 = vsel %vm766_vm12, %v479_v20, 0.0  ;;  %v484_v10 = vsel %vm402_vm4, %v361_v37, %v443_v58  ;;  %vm406_vm13 = vcmp.ge.f32.partialorder %v365_v7, 0.0 }
  0x8b   : > { %v1220_v29 = vpack.c.bf16 %v805_v23, %v805_v23  ;;  %v320_v23 = vmul.f32 %v1642_v5, %v272_v9  ;;  %v448_v37 = vmul.f32 0.01, %v366_v18  ;;  %v372_v9 = vadd.f32 %v1656_v11, %v324_v57 }
  0x8c   : > { %v652_v34 = vpop.permute.xlu1 %651  ;;  %v646_v35 = vpop.permute.xlu0 %645 }
  0x8d   : > { %1014 = vst [vmem:[%s1546_s6 + $0xc] sm:$0xf] %v1220_v29  ;;  %vm765_vm0 = vcmp.eq.s32.totalorder %v646_v35, 1  ;;  %vm767_vm3 = vcmp.eq.s32.totalorder %v652_v34, 1  ;;  %v321_v29 = vmul.f32 %v1642_v5, %v273_v13  ;;  %v486_v35 = vsel %vm404_vm9, %v363_v60, %v445_v12 }
  0x8e   : > { %v806_v46 = vsel %vm765_vm0, %v478_v30, 0.0  ;;  %v808_v62 = vsel %vm767_vm3, %v480_v45, 0.0  ;;  %v447_v30 = vmul.f32 0.01, %v365_v7  ;;  %v368_v41 = vadd.f32 %v1656_v11, %v320_v23 }
  0x8f   : > { %v1264_v49 = vpack.c.bf16 %v807_v33, %v806_v46  ;;  %v322_v33 = vmul.f32 %v1642_v5, %v274_v19  ;;  %v326_v13 = vmul.f32 %v1642_v5, %v278_v0  ;;  %vm413_vm11 = vcmp.ge.f32.partialorder %v372_v9, 0.0 }
  0x90   : > { %v658_v54 = vpop.permute.xlu1 %657  ;;  %v655_v56 = vpop.permute.xlu0 %654  ;;  %v450_v60 = vmul.f32 0.01, %v368_v41  ;;  %vm409_vm4 = vcmp.ge.f32.partialorder %v368_v41, 0.0 }
  0x91   : > { %1356 = vst [vmem:[%s1546_s6 + $0x10] sm:$0xff] %v1264_v49   ;;  %vm768_vm5 = vcmp.eq.s32.totalorder %v655_v56, 1  ;;  %vm769_vm6 = vcmp.eq.s32.totalorder %v658_v54, 1  ;;  %v369_v49 = vadd.f32 %v1656_v11, %v321_v29  ;;  %v370_v52 = vadd.f32 %v1656_v11, %v322_v33  ;;  %v277_v56 = vld [vmem:[%s1634_s15 + $0x98] sm:$0xff] }
  0x92   : > { %v809_v3 = vsel %vm768_vm5, %v481_v51, 0.0  ;;  %v810_v15 = vsel %vm769_vm6, %v482_v55, 0.0  ;;  %v323_v51 = vmul.f32 %v1642_v5, %v275_v31  ;;  %v488_v54 = vsel %vm406_vm13, %v365_v7, %v447_v30 }
  0x93   : > { %v1269_v1 = vpack.c.bf16 %v809_v3, %v808_v62  ;;  %v490_v62 = vsel %vm408_vm1, %v367_v28, %v449_v48  ;;  %vm410_vm3 = vcmp.ge.f32.partialorder %v369_v49, 0.0  ;;  %vm411_vm6 = vcmp.ge.f32.partialorder %v370_v52, 0.0  ;;  %v281_v28 = vld [vmem:[%s1634_s15 + $0xb8] sm:$0xff] }
  0x94   : > { %v664_v4 = vpop.permute.xlu1 %663  ;;  %v661_v6 = vpop.permute.xlu0 %660  ;;  %v371_v63 = vadd.f32 %v1656_v11, %v323_v51  ;;  %v325_v2 = vmul.f32 %v1642_v5, %v277_v56  ;;  %v452_v8 = vmul.f32 0.01, %v370_v52  ;;  %v491_v12 = vsel %vm409_vm4, %v368_v41, %v450_v60  ;;  %v284_v51 = vld [vmem:[%s1634_s15 + $0xd0] sm:$0xff] }
  0x95   : > { %1357 = vst [vmem:[%s1546_s6 + $0x18] sm:$0xff] %v1269_v1   ;;  %vm770_vm8 = vcmp.eq.s32.totalorder %v661_v6, 1  ;;  %vm771_vm10 = vcmp.eq.s32.totalorder %v664_v4, 1  ;;  %v451_v1 = vmul.f32 0.01, %v369_v49  ;;  %v279_v4 = vld [vmem:[%s1634_s15 + $0xa8] sm:$0xff]  ;;  %v374_v33 = vadd.f32 %v1656_v11, %v326_v13 }
  0x96   : > { %v811_v16 = vsel %vm770_vm8, %v483_v59, 0.0  ;;  %v812_v34 = vsel %vm771_vm10, %v484_v10, 0.0  ;;  %v489_v59 = vsel %vm407_vm15, %v366_v18, %v448_v37  ;;  %v453_v18 = vmul.f32 0.01, %v371_v63 }
  0x97   : > { %v1274_v20 = vpack.c.bf16 %v811_v16, %v810_v15  ;;  %v280_v15 = vld [vmem:[%s1634_s15 + $0xb0] sm:$0xff]  ;;  %v327_v19 = vmul.f32 %v1642_v5, %v279_v4  ;;  %vm412_vm9 = vcmp.ge.f32.partialorder %v371_v63, 0.0  ;;  %v373_v21 = vadd.f32 %v1656_v11, %v325_v2 }
  0x98   : > { %v670_v24 = vpop.permute.xlu1 %669  ;;  %v667_v27 = vpop.permute.xlu0 %666  ;;  %v328_v29 = vmul.f32 %v1642_v5, %v280_v15  ;;  %v454_v31 = vmul.f32 0.01, %v372_v9  ;;  %v329_v41 = vmul.f32 %v1642_v5, %v281_v28 }
  0x99   : > { %1358 = vst [vmem:[%s1546_s6 + $0x20] sm:$0xff] %v1274_v20   ;;  %vm772_vm12 = vcmp.eq.s32.totalorder %v667_v27, 1  ;;  %vm773_vm14 = vcmp.eq.s32.totalorder %v670_v24, 1  ;;  %v492_v20 = vsel %vm410_vm3, %v369_v49, %v451_v1  ;;  %v493_v27 = vsel %vm411_vm6, %v370_v52, %v452_v8 }
  0x9a   : > { %v813_v36 = vsel %vm772_vm12, %v485_v17, 0.0  ;;  %v814_v53 = vsel %vm773_vm14, %v486_v35, 0.0  ;;  %vm414_vm13 = vcmp.ge.f32.partialorder %v373_v21, 0.0  ;;  %v376_v48 = vadd.f32 %v1656_v11, %v328_v29 }
  0x9b   : > { %v1279_v38 = vpack.c.bf16 %v813_v36, %v812_v34  ;;  %v282_v34 = vld [vmem:[%s1634_s15 + $0xc0] sm:$0xff]  ;;  %v494_v36 = vsel %vm412_vm9, %v371_v63, %v453_v18  ;;  %v377_v60 = vadd.f32 %v1656_v11, %v329_v41 }
  0x9c   : > { %v676_v45 = vpop.permute.xlu1 %675  ;;  %v673_v46 = vpop.permute.xlu0 %672  ;;  %v330_v49 = vmul.f32 %v1642_v5, %v282_v34  ;;  %v458_v0 = vmul.f32 0.01, %v376_v48  ;;  %vm417_vm3 = vcmp.ge.f32.partialorder %v376_v48, 0.0 }
  0x9d   : > { %1359 = vst [vmem:[%s1546_s6 + $0x28] sm:$0xff] %v1279_v38   ;;  %vm774_vm0 = vcmp.eq.s32.totalorder %v673_v46, 1  ;;  %vm775_vm2 = vcmp.eq.s32.totalorder %v676_v45, 1  ;;  %v375_v38 = vadd.f32 %v1656_v11, %v327_v19  ;;  %v459_v13 = vmul.f32 0.01, %v377_v60 }
  0x9e   : > { %v815_v55 = vsel %vm774_vm0, %v487_v40, 0.0  ;;  %v816_v6 = vsel %vm775_vm2, %v488_v54, 0.0  ;;  %v455_v40 = vmul.f32 0.01, %v373_v21  ;;  %v456_v54 = vmul.f32 0.01, %v374_v33 }
  0x9f   : > { %v1284_v58 = vpack.c.bf16 %v815_v55, %v814_v53  ;;  %v495_v53 = vsel %vm413_vm11, %v372_v9, %v454_v31  ;;  %vm416_vm15 = vcmp.ge.f32.partialorder %v375_v38, 0.0  ;;  %v457_v57 = vmul.f32 0.01, %v375_v38 }
  0xa0   : > { %v682_v61 = vpop.permute.xlu1 %681  ;;  %v679_v3 = vpop.permute.xlu0 %678  ;;  %vm415_vm0 = vcmp.ge.f32.partialorder %v374_v33, 0.0  ;;  %v378_v1 = vadd.f32 %v1656_v11, %v330_v49  ;;  %v499_v18 = vsel %vm417_vm3, %v376_v48, %v458_v0 }
  0xa1   : > { %1360 = vst [vmem:[%s1546_s6 + $0x30] sm:$0xff] %v1284_v58   ;;  %vm776_vm5 = vcmp.eq.s32.totalorder %v679_v3, 1  ;;  %vm777_vm7 = vcmp.eq.s32.totalorder %v682_v61, 1  ;;  %v331_v58 = vmul.f32 %v1642_v5, %v283_v43  ;;  %v285_v61 = vld [vmem:[%s1634_s15 + $0xd8] sm:$0xff]  ;;  %v497_v4 = vsel %vm415_vm0, %v374_v33, %v456_v54 }
  0xa2   : > { %v817_v7 = vsel %vm776_vm5, %v489_v59, 0.0  ;;  %v818_v23 = vsel %vm777_vm7, %v490_v62, 0.0  ;;  %v496_v59 = vsel %vm414_vm13, %v373_v21, %v455_v40  ;;  %v332_v62 = vmul.f32 %v1642_v5, %v284_v51  ;;  %v287_v21 = vld [vmem:[%s1634_s15 + $0xe8] sm:$0xff] }
  0xa3   : > { %v1289_v10 = vpack.c.bf16 %v817_v7, %v816_v6  ;;  %v498_v7 = vsel %vm416_vm15, %v375_v38, %v457_v57  ;;  %v379_v9 = vadd.f32 %v1656_v11, %v331_v58  ;;  %vm418_vm5 = vcmp.ge.f32.partialorder %v377_v60, 0.0 }
  0xa4   : > { %v688_v16 = vpop.permute.xlu1 %687  ;;  %v685_v17 = vpop.permute.xlu0 %684  ;;  %v380_v15 = vadd.f32 %v1656_v11, %v332_v62  ;;  %v460_v19 = vmul.f32 0.01, %v378_v1  ;;  %vm419_vm7 = vcmp.ge.f32.partialorder %v378_v1, 0.0  ;;  %v500_v31 = vsel %vm418_vm5, %v377_v60, %v459_v13 }
  0xa5   : > { %1361 = vst [vmem:[%s1546_s6 + $0x38] sm:$0xff] %v1289_v10   ;;  %vm778_vm8 = vcmp.eq.s32.totalorder %v685_v17, 1  ;;  %vm779_vm10 = vcmp.eq.s32.totalorder %v688_v16, 1  ;;  %v333_v10 = vmul.f32 %v1642_v5, %v285_v61  ;;  %v461_v28 = vmul.f32 0.01, %v379_v9 }
  0xa6   : > { %v819_v24 = vsel %vm778_vm8, %v491_v12, 0.0  ;;  %v820_v45 = vsel %vm779_vm10, %v492_v20, 0.0  ;;  %v286_v12 = vld [vmem:[%s1634_s15 + $0xe0] sm:$0xff]  ;;  %vm420_vm8 = vcmp.ge.f32.partialorder %v379_v9, 0.0  ;;  %vm421_vm10 = vcmp.ge.f32.partialorder %v380_v15, 0.0 }
  0xa7   : > { %v1294_v30 = vpack.c.bf16 %v819_v24, %v818_v23  ;;  %v334_v23 = vmul.f32 %v1642_v5, %v286_v12  ;;  %v381_v29 = vadd.f32 %v1656_v11, %v333_v10  ;;  %v462_v33 = vmul.f32 0.01, %v380_v15 }
  0xa8   : > { %v694_v35 = vpop.permute.xlu1 %693  ;;  %v691_v37 = vpop.permute.xlu0 %690  ;;  %vm426_vm5 = vcmp.ge.f32.partialorder %v1661_v14, 0.0 }
  0xa9   : > { %1362 = vst [vmem:[%s1546_s6 + $0x40] sm:$0xff] %v1294_v30   ;;  %vm780_vm12 = vcmp.eq.s32.totalorder %v691_v37, 1  ;;  %vm781_vm14 = vcmp.eq.s32.totalorder %v694_v35, 1  ;;  %v288_v30 = vld [vmem:[%s1634_s15 + $0xf0] sm:$0xff]  ;;  %v335_v37 = vmul.f32 %v1642_v5, %v287_v21  ;;  %v382_v40 = vadd.f32 %v1656_v11, %v334_v23 }
  0xaa   : > { %v821_v46 = vsel %vm780_vm12, %v493_v27, 0.0  ;;  %v822_v3 = vsel %vm781_vm14, %v494_v36, 0.0  ;;  %v501_v36 = vsel %vm419_vm7, %v378_v1, %v460_v19  ;;  %v336_v41 = vmul.f32 %v1642_v5, %v288_v30 }
  0xab   : > { %v1299_v52 = vpack.c.bf16 %v821_v46, %v820_v45  ;;  %v502_v46 = vsel %vm420_vm8, %v379_v9, %v461_v28  ;;  %vm422_vm13 = vcmp.ge.f32.partialorder %v381_v29, 0.0  ;;  %v463_v48 = vmul.f32 0.01, %v381_v29 }
  0xac   : > { %v700_v55 = vpop.permute.xlu1 %699  ;;  %v697_v56 = vpop.permute.xlu0 %696  ;;  %v384_v5 = vadd.f32 %v1656_v11, %v336_v41  ;;  %vm423_vm15 = vcmp.ge.f32.partialorder %v382_v40, 0.0  ;;  %v468_v9 = vmul.f32 0.01, %v1680_v25  ;;  %vm427_vm7 = vcmp.ge.f32.partialorder %v1680_v25, 0.0 }
  0xad   : > { %1363 = vst [vmem:[%s1546_s6 + $0x48] sm:$0xff] %v1299_v52   ;;  %vm782_vm1 = vcmp.eq.s32.totalorder %v697_v56, 1  ;;  %vm783_vm2 = vcmp.eq.s32.totalorder %v700_v55, 1  ;;  %v503_v52 = vsel %vm421_vm10, %v380_v15, %v462_v33  ;;  %v464_v55 = vmul.f32 0.01, %v382_v40 }
  0xae   : > { %v823_v63 = vsel %vm782_vm1, %v495_v53, 0.0  ;;  %v824_v16 = vsel %vm783_vm2, %v496_v59, 0.0  ;;  %v383_v53 = vadd.f32 %v1656_v11, %v335_v37  ;;  %v504_v58 = vsel %vm422_vm13, %v381_v29, %v463_v48 }
  0xaf   : > { %v1304_v2 = vpack.c.bf16 %v823_v63, %v822_v3  ;;  %v505_v3 = vsel %vm423_vm15, %v382_v40, %v464_v55  ;;  %v466_v63 = vmul.f32 0.01, %v384_v5  ;;  %vm425_vm3 = vcmp.ge.f32.partialorder %v384_v5, 0.0 }
  0xb0   : > { %v706_v6 = vpop.permute.xlu1 %705  ;;  %v703_v8 = vpop.permute.xlu0 %702  ;;  %vm424_vm1 = vcmp.ge.f32.partialorder %v383_v53, 0.0  ;;  %v465_v61 = vmul.f32 0.01, %v383_v53  ;;  %v467_v11 = vmul.f32 0.01, %v1661_v14  ;;  %v509_v19 = vsel %vm427_vm7, %v1680_v25, %v468_v9 }
  0xb1   : > { %1364 = vst [vmem:[%s1546_s6 + $0x50] sm:$0xff] %v1304_v2   ;;  %vm784_vm4 = vcmp.eq.s32.totalorder %v703_v8, 1  ;;  %vm785_vm6 = vcmp.eq.s32.totalorder %v706_v6, 1  ;;  %v507_v8 = vsel %vm425_vm3, %v384_v5, %v466_v63  ;;  %vm430_vm13 = vcmp.ge.f32.partialorder %v1683_v26, 0.0 }
  0xb2   : > { %v825_v17 = vsel %vm784_vm4, %v497_v4, 0.0  ;;  %v826_v34 = vsel %vm785_vm6, %v498_v7, 0.0  ;;  %v506_v4 = vsel %vm424_vm1, %v383_v53, %v465_v61  ;;  %v508_v13 = vsel %vm426_vm5, %v1661_v14, %v467_v11 }
  0xb3   : > { %v1309_v20 = vpack.c.bf16 %v825_v17, %v824_v16  ;;  %v469_v17 = vmul.f32 0.01, %v1675_v22  ;;  %v471_v14 = vmul.f32 0.01, %v1683_v26  ;;  %v472_v29 = vmul.f32 0.01, %v1711_v42 }
  0xb4   : > { %v712_v24 = vpop.permute.xlu1 %711  ;;  %v709_v27 = vpop.permute.xlu0 %708  ;;  %vm431_vm15 = vcmp.ge.f32.partialorder %v1711_v42, 0.0  ;;  %vm432_vm1 = vcmp.ge.f32.partialorder %v1704_v39, 0.0  ;;  %vm434_vm3 = vcmp.ge.f32.partialorder %v1715_v44, 0.0  ;;  %v474_v40 = vmul.f32 0.01, %v1720_v47 }
  0xb5   : > { %1365 = vst [vmem:[%s1546_s6 + $0x58] sm:$0xff] %v1309_v20   ;;  %vm786_vm9 = vcmp.eq.s32.totalorder %v709_v27, 1  ;;  %vm787_vm11 = vcmp.eq.s32.totalorder %v712_v24, 1  ;;  %v470_v20 = vmul.f32 0.01, %v1695_v32  ;;  %v513_v37 = vsel %vm431_vm15, %v1711_v42, %v472_v29 }
  0xb6   : > { %v827_v35 = vsel %vm786_vm9, %v499_v18, 0.0  ;;  %v828_v49 = vsel %vm787_vm11, %v500_v31, 0.0  ;;  %vm428_vm9 = vcmp.ge.f32.partialorder %v1675_v22, 0.0  ;;  %vm429_vm11 = vcmp.ge.f32.partialorder %v1695_v32, 0.0 }
  0xb7   : > { %v1314_v38 = vpack.c.bf16 %v827_v35, %v826_v34  ;;  %v510_v27 = vsel %vm428_vm9, %v1675_v22, %v469_v17  ;;  %v511_v30 = vsel %vm429_vm11, %v1695_v32, %v470_v20  ;;  %v512_v34 = vsel %vm430_vm13, %v1683_v26, %v471_v14 }
  0xb8   : > { %v718_v43 = vpop.permute.xlu1 %717  ;;  %v715_v45 = vpop.permute.xlu0 %714  ;;  %v473_v22 = vmul.f32 0.01, %v1704_v39  ;;  %vm435_vm7 = vcmp.ge.f32.partialorder %v1725_v50, 0.0 }
  0xb9   : > { %1366 = vst [vmem:[%s1546_s6 + $0x60] sm:$0xff] %v1314_v38   ;;  %vm788_vm12 = vcmp.eq.s32.totalorder %v715_v45, 1  ;;  %vm789_vm14 = vcmp.eq.s32.totalorder %v718_v43, 1  ;;  %v475_v38 = vmul.f32 0.01, %v1715_v44 }
  0xba   : > { %v829_v51 = vsel %vm788_vm12, %v501_v36, 0.0  ;;  %v830_v59 = vsel %vm789_vm14, %v502_v46, 0.0  ;;  %v514_v42 = vsel %vm432_vm1, %v1704_v39, %v473_v22 }
  0xbb   : > { %v1319_v54 = vpack.c.bf16 %v829_v51, %v828_v49  ;;  %v516_v46 = vsel %vm434_vm3, %v1715_v44, %v475_v38  ;;  %v476_v51 = vmul.f32 0.01, %v1725_v50 }
  0xbc   : > { %v724_v56 = vpop.permute.xlu1 %723  ;;  %v721_v57 = vpop.permute.xlu0 %720 }
  0xbd   : > { %1367 = vst [vmem:[%s1546_s6 + $0x68] sm:$0xff] %v1319_v54   ;;  %vm790_vm0 = vcmp.eq.s32.totalorder %v721_v57, 1  ;;  %vm791_vm2 = vcmp.eq.s32.totalorder %v724_v56, 1  ;;  %v517_v56 = vsel %vm435_vm7, %v1725_v50, %v476_v51 }
  0xbe   : > { %v831_v60 = vsel %vm790_vm0, %v503_v52, 0.0  ;;  %v832_v2 = vsel %vm791_vm2, %v504_v58, 0.0 }
  0xbf   : > { %v1324_v62 = vpack.c.bf16 %v831_v60, %v830_v59 }
  0xc0   : > { %v730_v0 = vpop.permute.xlu1 %729  ;;  %v727_v1 = vpop.permute.xlu0 %726 }
  0xc1   : > { %1368 = vst [vmem:[%s1546_s6 + $0x70] sm:$0xff] %v1324_v62   ;;  %vm792_vm4 = vcmp.eq.s32.totalorder %v727_v1, 1  ;;  %vm793_vm6 = vcmp.eq.s32.totalorder %v730_v0, 1 }
  0xc2   : > { %v833_v6 = vsel %vm792_vm4, %v505_v3, 0.0  ;;  %v834_v15 = vsel %vm793_vm6, %v506_v4, 0.0  ;;  %vm433_vm4 = vcmp.ge.f32.partialorder %v1720_v47, 0.0 }
  0xc3   : > { %v1329_v7 = vpack.c.bf16 %v833_v6, %v832_v2  ;;  %v515_v49 = vsel %vm433_vm4, %v1720_v47, %v474_v40 }
  0xc4   : > { %v736_v10 = vpop.permute.xlu1 %735  ;;  %v733_v12 = vpop.permute.xlu0 %732 }
  0xc5   : > { %1369 = vst [vmem:[%s1546_s6 + $0x78] sm:$0xff] %v1329_v7   ;;  %vm794_vm8 = vcmp.eq.s32.totalorder %v733_v12, 1  ;;  %vm795_vm10 = vcmp.eq.s32.totalorder %v736_v10, 1 }
  0xc6   : > { %v835_v16 = vsel %vm794_vm8, %v507_v8, 0.0  ;;  %v836_v24 = vsel %vm795_vm10, %v508_v13, 0.0 }
  0xc7   : > { %v1334_v18 = vpack.c.bf16 %v835_v16, %v834_v15 }
  0xc8   : > { %v742_v21 = vpop.permute.xlu1 %741  ;;  %v739_v23 = vpop.permute.xlu0 %738 }
  0xc9   : > { %1370 = vst [vmem:[%s1546_s6 + $0x80] sm:$0xff] %v1334_v18   ;;  %vm796_vm12 = vcmp.eq.s32.totalorder %v739_v23, 1  ;;  %vm797_vm14 = vcmp.eq.s32.totalorder %v742_v21, 1 }
  0xca   : > { %v837_v28 = vsel %vm796_vm12, %v509_v19, 0.0  ;;  %v838_v35 = vsel %vm797_vm14, %v510_v27, 0.0 }
  0xcb   : > { %v1339_v25 = vpack.c.bf16 %v837_v28, %v836_v24 }
  0xcc   : > { %v748_v31 = vpop.permute.xlu1 %747  ;;  %v745_v33 = vpop.permute.xlu0 %744 }
  0xcd   : > { %1371 = vst [vmem:[%s1546_s6 + $0x88] sm:$0xff] %v1339_v25   ;;  %vm798_vm0 = vcmp.eq.s32.totalorder %v745_v33, 1  ;;  %vm799_vm2 = vcmp.eq.s32.totalorder %v748_v31, 1 }
  0xce   : > { %v839_v36 = vsel %vm798_vm0, %v511_v30, 0.0  ;;  %v840_v43 = vsel %vm799_vm2, %v512_v34, 0.0 }
  0xcf   : > { %v1344_v32 = vpack.c.bf16 %v839_v36, %v838_v35 }
  0xd0   : > { %v754_v41 = vpop.permute.xlu1 %753  ;;  %v751_v26 = vpop.permute.xlu0 %750 }
  0xd1   : > { %1372 = vst [vmem:[%s1546_s6 + $0x90] sm:$0xff] %v1344_v32   ;;  %vm800_vm5 = vcmp.eq.s32.totalorder %v751_v26, 1  ;;  %vm801_vm6 = vcmp.eq.s32.totalorder %v754_v41, 1 }
  0xd2   : > { %v841_v45 = vsel %vm800_vm5, %v513_v37, 0.0  ;;  %v842_v39 = vsel %vm801_vm6, %v514_v42, 0.0 }
  0xd3   : > { %v1349_v48 = vpack.c.bf16 %v841_v45, %v840_v43 }
  0xd4   : > { %v760_v52 = vpop.permute.xlu1 %759  ;;  %v757_v53 = vpop.permute.xlu0 %756 }
  0xd5   : > { %1373 = vst [vmem:[%s1546_s6 + $0x98] sm:$0xff] %v1349_v48   ;;  %vm803_vm8 = vcmp.eq.s32.totalorder %v760_v52, 1  ;;  %vm802_vm9 = vcmp.eq.s32.totalorder %v757_v53, 1 }
  0xd6   : > { %v844_v54 = vsel %vm803_vm8, %v516_v46, 0.0  ;;  %v843_v55 = vsel %vm802_vm9, %v515_v49, 0.0 }
  0xd7   : > { %v1259_v44 = vpack.c.bf16 %v844_v54, %v844_v54  ;;  %v1354_v5 = vpack.c.bf16 %v843_v55, %v842_v39 }
  0xd8   : > { %v763_v57 = vpop.permute.xlu0 %762 }
  0xd9   : > { %1053 = vst [vmem:[%s1546_s6 + $0xa8] sm:$0xf] %v1259_v44  ;;  %1374 = vst [vmem:[%s1546_s6 + $0xa0] sm:$0xff] %v1354_v5   ;;  %vm804_vm10 = vcmp.eq.s32.totalorder %v763_v57, 1 }
  0xda   : > { %v845_v47 = vsel %vm804_vm10, %v517_v56, 0.0 }
  0xdb   : > { %v1260_v58 = vpack.c.bf16 %v845_v47, %v845_v47 }
  0xdd   : > { %1054 = vst [vmem:[%s1546_s6 + $0xac] sm:$0x3] %v1260_v58 }
  0xde PF: > { %s14_s17 = sadd.s32 1, %s1426_s17   ;;  %s1906_s15 = smov %s1422_s16 }
  0xdf   : > { %p11_p5 = scmp.ge.s32.totalorder %s14_s17, 4   ;;  %s1907_s16 = smov %s1909_s18 }
  0xe1   :  { %13 = sbr.rel (!%p11_p5) target bundleno = 2 (0x2), region = 72 }

// kernel: upsample_res_block_forward.4
= control target key start
LH: loop header
LB: loop body
LE: loop exit
PB: predicated region body
PF: predicated region fallthrough
CT: control target
= control target key end

     0   :  { %s7103_s21 = smov 0   ;;  %s7105_s22 = smov 0   ;;  %s9700_s0 = inlined_call_operand.vmem [shape: bf16[2,368,128], index: 0, kind: input, shape index: {}]   ;;  %s9701_s1 = inlined_call_operand.vmem [shape: bf16[9,128,128], index: 1, kind: input, shape index: {}]   ;;  %s9702_s2 = inlined_call_operand.vmem [shape: f32[1,128], index: 2, kind: input, shape index: {}]   ;;  %s9703_s3 = inlined_call_operand.vmem [shape: f32[324,1], index: 3, kind: input, shape index: {}]   ;;  %s9704_s4 = inlined_call_operand.vmem [shape: f32[2,324,128], index: 4, kind: output, shape index: {0}]   ;;  %s9705_s5 = inlined_call_operand.vmem [shape: f32[2,1,128], index: 5, kind: output, shape index: {1}]   ;;  %s9706_s6 = inlined_call_operand.vmem [shape: f32[2,1,128], index: 6, kind: output, shape index: {2}]  }
   0x1   :  { %s7107_s23 = smov 0  }
   0x2 LB: > { %s29_s24 = sadd.s32 1, %s7059_s22  ;;  %p5355_p0 = scmp.ge.s32.totalorder %s7063_s23, 1  ;;  %s7063_s23 = sphi %s7107_s23, %s17_s23   ;;  %s7059_s22 = sphi %s7105_s22, %s9960_s22   ;;  %s7055_s21 = sphi %s7103_s21, %s9959_s21  }
   0x3   : > { %p31_p1 = scmp.ge.s32.totalorder %s29_s24, 2  ;;  %p252_p2 = scmp.lt.s32.totalorder %s7063_s23, 3 }
   0x5   : > { %s9962_s24 = smov (%p31_p1, %s29_s24), 0  ;;  %p253_p3 = pnand %p5355_p0, %p252_p2 }
   0x7   : > { %256 = sbr.rel (%p253_p3) target bundleno = 1035 (0x40b), region = 36 }
   0xe   : > { %v6858_v0 = vld [vmem:[%s9701_s1 + $0x40] sm:$0xff]   ;;  %v9707_v1 = vmov 0.0   ;;  %v6859_v2 = vld [vmem:[%s9701_s1 + $0x48] sm:$0xff]   ;;  %p304_p4 = scmp.lt.s32.totalorder %s7055_s21, 1  ;;  %vm7066_vm0 = vmmov 0   ;;  %v6860_v3 = vld [vmem:[%s9701_s1 + $0x50] sm:$0xff]  }
   0xf   : > { %5911 = vmatprep.subr.bf16.mxu0 %v9707_v1  ;;  %6811 = vmatprep.subr.bf16.mxu1 %v9707_v1  ;;  %v6861_v4 = vld [vmem:[%s9701_s1 + $0x58] sm:$0xff]   ;;  %v6862_v5 = vld [vmem:[%s9701_s1 + $0x60] sm:$0xff]   ;;  %v6863_v9 = vld [vmem:[%s9701_s1 + $0x68] sm:$0xff]   ;;  %vm518_vm1 = vcmask 1044480   ;;  %vm832_vm2 = vsmask.f32 5376 }
  0x10   : > { %5912 = vmatpush3.bf16.msra.mxu0 %v6858_v0  ;;  %6819 = vmatpush3.bf16.msra.mxu1 %v6858_v0  ;;  %s9964_s21 = smov (!%p304_p4, %s7055_s21), 1  ;;  %v6864_v11 = vld [vmem:[%s9701_s1 + $0x70] sm:$0xff]   ;;  %v6865_v17 = vld [vmem:[%s9701_s1 + $0x78] sm:$0xff]   ;;  %v6871_v25 = vld [vmem:[%s9701_s1 + $0x80] sm:$0xff]   ;;  %vm1311_vm3 = vsmask.f32 4352 }
  0x11   : > { %5913 = vmatprep.subr.bf16.mxu0 %v9707_v1  ;;  %6812 = vmatprep.subr.bf16.mxu1 %v9707_v1  ;;  %s6827_s7 = smul.u32 184, %s9964_s21  ;;  %v6872_v27 = vld [vmem:[%s9701_s1] sm:$0xff]   ;;  %v6875_v35 = vld [vmem:[%s9701_s1 + $0x88] sm:$0xff]   ;;  %v6879_v48 = vld [vmem:[%s9701_s1 + $0x90] sm:$0xff]   ;;  %vm2746_vm4 = vsmask.f32 7424  ;;  %s329_s12 = scalar_lea.vmem %s9705_s5, %s9964_s21 }
  0x12   : > { %5927 = vmatprep.mubr.msk.bf16.mxu0 %vm7066_vm0, %v9707_v1  ;;  %5971 = vmatprep.mubr.msk.bf16.mxu1 %vm7066_vm0, %v9707_v1  ;;  %v6878_v38 = vld [vmem:[%s9701_s1 + $0x8] sm:$0xff]   ;;  %v6882_v57 = vld [vmem:[%s9701_s1 + $0x10] sm:$0xff]   ;;  %v6885_v63 = vld [vmem:[%s9701_s1 + $0x98] sm:$0xff]   ;;  %vm4256_vm5 = vsmask.f32 6400  ;;  %vm3883_vm6 = vcmask 1046528   ;;  %s335_s15 = scalar_lea.vmem %s9706_s6, %s9964_s21 }
  0x13   : > { %s7146_s10 = scalar_lea.vmem %s9700_s0, %s6827_s7  ;;  %vm5075_vm7 = vcmask 1043456  }
  0x14   : > { %5914 = vmatpush3.bf16.msra.mxu0 %v6859_v2  ;;  %6820 = vmatpush3.bf16.msra.mxu1 %v6859_v2  ;;  %v337_v6 = vld [vmem:[%s7146_s10] sm:$0xc]  ;;  %v338_v7 = vld [vmem:[%s7146_s10 + $0x4] sm:$0xf]  ;;  %v7167_v10 = vld [vmem:[%s7146_s10 + $0x8] sm:$0xff]  }
  0x15   : > { %5915 = vmatprep.subr.bf16.mxu0 %v9707_v1  ;;  %6813 = vmatprep.subr.bf16.mxu1 %v9707_v1  ;;  %v395_v8 = vld [vmem:[%s7146_s10] sm:$0x8]  ;;  %v5403_v13 = vcombine.low %v337_v6, %v338_v7  ;;  %v7175_v14 = vld [vmem:[%s7146_s10 + $0x58] sm:$0xff]   ;;  %v520_v16 = vrot.slane %v7167_v10, 3  ;;  %v7189_v21 = vld [vmem:[%s7146_s10 + $0x10] sm:$0xff]   ;;  %v842_v37 = vshrl.u32 %v7167_v10, 16 }
  0x16   : > { %v7172_v12 = vcombine.low %v395_v8, %v338_v7  ;;  %v7178_v15 = vld [vmem:[%s7146_s10 + $0x60] sm:$0xff]   ;;  %v540_v20 = vrot.slane %v7175_v14, 3  ;;  %v7193_v23 = vld [vmem:[%s7146_s10 + $0x68] sm:$0xff]   ;;  %v7201_v26 = vld [vmem:[%s7146_s10 + $0x18] sm:$0xff]   ;;  %v522_v31 = vrot.slane %v7189_v21, 3  ;;  %v845_v41 = vshll.u32 %v7167_v10, 16 }
  0x17   : > { %v834_v19 = vshrl.u32 %v5403_v13, 16  ;;  %v542_v22 = vrot.slane %v7178_v15, 3  ;;  %v837_v24 = vshll.u32 %v5403_v13, 16  ;;  %v544_v32 = vrot.slane %v7193_v23, 3  ;;  %v7217_v33 = vld [vmem:[%s7146_s10 + $0x70] sm:$0xff]   ;;  %v7230_v39 = vld [vmem:[%s7146_s10 + $0x20] sm:$0xff]  }
  0x18   : > { %5916 = vmatpush3.bf16.msra.mxu0 %v6860_v3  ;;  %6821 = vmatpush3.bf16.msra.mxu1 %v6860_v3  ;;  %v519_v18 = vrot.slane %v7172_v12, 3  ;;  %v524_v36 = vrot.slane %v7201_v26, 3  ;;  %v6881_v40 = vld [vmem:[%s7146_s10 + $0x78] sm:$0xff]   ;;  %v7237_v42 = vld [vmem:[%s7146_s10 + $0x28] sm:$0xff]   ;;  %v851_v43 = vshrl.u32 %v7189_v21, 16  ;;  %v6884_v44 = vld [vmem:[%s7146_s10 + $0x80] sm:$0xff]   ;;  %v523_v51 = vsel %vm518_vm1, %v520_v16, %v522_v31 }
  0x19   : > { %5917 = vmatprep.subr.bf16.mxu0 %v9707_v1  ;;  %6814 = vmatprep.subr.bf16.mxu1 %v9707_v1  ;;  %v7206_v28 = vrot.slane %v834_v19, 2  ;;  %v543_v30 = vsel %vm518_vm1, %v540_v20, %v542_v22  ;;  %v7219_v34 = vrot.slane %v837_v24, 3  ;;  %v854_v45 = vshll.u32 %v7189_v21, 16  ;;  %v7248_v47 = vld [vmem:[%s7146_s10 + $0x30] sm:$0xff]   ;;  %v7254_v49 = vld [vmem:[%s7146_s10 + $0x88] sm:$0xff]   ;;  %v7271_v59 = vld [vmem:[%s7146_s10 + $0x38] sm:$0xff]  }
  0x1a   : > { %v521_v29 = vsel %vm518_vm1, %v519_v18, %v520_v16  ;;  %v546_v46 = vrot.slane %v7217_v33, 3  ;;  %v844_v50 = vrot.slane %v842_v37, 2  ;;  %v545_v52 = vsel %vm518_vm1, %v542_v22, %v544_v32  ;;  %v7277_v62 = vld [vmem:[%s7146_s10 + $0x90] sm:$0xff]   ;;  %v6886_v13 = vld [vmem:[%s9701_s1 + $0x18] sm:$0xff]  }
  0x1b   : > { %v847_v53 = vrot.slane %v845_v41, 3  ;;  %v853_v54 = vrot.slane %v851_v43, 2  ;;  %v526_v55 = vrot.slane %v7230_v39, 3  ;;  %v548_v56 = vrot.slane %v6881_v40, 3  ;;  %v7289_v3 = vld [vmem:[%s7146_s10 + $0x50] sm:$0xff]  }
  0x1c   : > { %5918 = vmatpush3.bf16.msra.mxu0 %v6861_v4  ;;  %6822 = vmatpush3.bf16.msra.mxu1 %v6861_v4  ;;  %v528_v58 = vrot.slane %v7237_v42, 3  ;;  %v856_v60 = vrot.slane %v854_v45, 3  ;;  %v550_v61 = vrot.slane %v6884_v44, 3  ;;  %v530_v0 = vrot.slane %v7248_v47, 3 }
  0x1d   : > { %5919 = vmatprep.subr.bf16.mxu0 %v9707_v1  ;;  %6815 = vmatprep.subr.bf16.mxu1 %v9707_v1  ;;  %v552_v2 = vrot.slane %v7254_v49, 3  ;;  %v840_v4 = vor.u32 %v7219_v34, %v7206_v28  ;;  %v1313_v7 = vshrl.u32 %v7172_v12, 16  ;;  %v525_v8 = vsel %vm518_vm1, %v522_v31, %v524_v36  ;;  %v6889_v28 = vld [vmem:[%s9701_s1 + $0xa0] sm:$0xff]  }
  0x1e   : > { %v7293_v6 = vor.u32 %v856_v60, %v853_v54  ;;  %v532_v16 = vrot.slane %v7271_v59, 3  ;;  %v7309_v18 = vsel %vm518_vm1, %v526_v55, %v528_v58  ;;  %v554_v19 = vrot.slane %v7277_v62, 3  ;;  %v6890_v34 = vld [vmem:[%s9701_s1 + $0x20] sm:$0xff]  }
  0x1f   : > { %v538_v22 = vrot.slane %v7289_v3, 3  ;;  %v7316_v24 = vsel %vm518_vm1, %v548_v56, %v550_v61  ;;  %v863_v40 = vshll.u32 %v7201_v26, 16  ;;  %v1324_v44 = vrot.slane %v851_v43, 3 }
  0x20   : > { %5920 = vmatpush3.bf16.msra.mxu0 %v6862_v5  ;;  %6823 = vmatpush3.bf16.msra.mxu1 %v6862_v5  ;;  %v848_v5 = vor.u32 %v847_v53, %v844_v50  ;;  %v869_v10 = vshrl.u32 %v7230_v39, 16  ;;  %v959_v49 = vshrl.u32 %v7217_v33, 16 }
  0x21   : > { %5921 = vmatprep.subr.bf16.mxu0 %v9707_v1  ;;  %6816 = vmatprep.subr.bf16.mxu1 %v9707_v1  ;;  %v865_v43 = vrot.slane %v863_v40, 3  ;;  %v1329_v53 = vrot.slane %v863_v40, 4 }
  0x22   : > { %v7343_v31 = vsel %vm832_vm2, %v848_v5, %v7293_v6 }
  0x24   : > { %5922 = vmatpush3.bf16.msra.mxu0 %v6863_v9  ;;  %6824 = vmatpush3.bf16.msra.mxu1 %v6863_v9  ;;  %v547_v9 = vsel %vm518_vm1, %v544_v32, %v546_v46  ;;  %v1315_v32 = vrot.slane %v1313_v7, 3 }
  0x25   : > { %5923 = vmatprep.subr.bf16.mxu0 %v9707_v1  ;;  %6817 = vmatprep.subr.bf16.mxu1 %v9707_v1 }
  0x28   : > { %5924 = vmatpush3.bf16.msra.mxu0 %v6864_v11  ;;  %6825 = vmatpush3.bf16.msra.mxu1 %v6864_v11  ;;  %v7299_v11 = vsel %vm518_vm1, %v524_v36, %v526_v55  ;;  %v1321_v36 = vrot.slane %v845_v41, 4  ;;  %v872_v41 = vshll.u32 %v7230_v39, 16  ;;  %v6896_v39 = vld [vmem:[%s9701_s1 + $0x28] sm:$0xff]  }
  0x29   : > { %5925 = vmatprep.subr.bf16.mxu0 %v9707_v1  ;;  %6818 = vmatprep.subr.bf16.mxu1 %v9707_v1 }
  0x2c   : > { %5926 = vmatpush3.bf16.msra.mxu0 %v6865_v17  ;;  %6826 = vmatpush3.bf16.msra.mxu1 %v6865_v17  ;;  %v7306_v17 = vsel %vm518_vm1, %v546_v46, %v548_v56  ;;  %v878_v56 = vshrl.u32 %v7237_v42, 16 }
  0x2d   : > { %6111 = vmatprep.subr.bf16.mxu0 %v9707_v1  ;;  %6011 = vmatprep.subr.bf16.mxu1 %v9707_v1 }
  0x2f   : > { %5928 = vmatmul.mubr.bf16.vlgmr.msra.gmra.mrb[0].mxu0 %v521_v29  ;;  %5972 = vmatmul.mubr.bf16.vlgmr.msra.gmra.mrb[0].mxu1 %v543_v30  ;;  %v7336_v29 = vsel %vm518_vm1, %v538_v22, %v540_v20  ;;  %v7339_v30 = vsel %vm832_vm2, %v840_v4, %v848_v5  ;;  %v1320_v20 = vrot.slane %v842_v37, 3  ;;  %v1332_v4 = vrot.slane %v869_v10, 3  ;;  %v6900_v5 = vld [vmem:[%s9701_s1 + $0xb0] sm:$0xff]  }
  0x30   : > { %6112 = vmatpush3.bf16.msra.mxu0 %v6871_v25  ;;  %5931 = vmatprep.mubr.msk.bf16.mxu0 %vm7066_vm0, %v9707_v1  ;;  %v7321_v25 = vsel %vm518_vm1, %v528_v58, %v530_v0  ;;  %v6899_v58 = vld [vmem:[%s9701_s1 + $0x30] sm:$0xff]  }
  0x31   : > { %5975 = vmatprep.mubr.msk.bf16.mxu1 %vm7066_vm0, %v9707_v1  ;;  %6012 = vmatpush3.bf16.msra.mxu1 %v6872_v27  ;;  %v7326_v27 = vsel %vm518_vm1, %v550_v61, %v552_v2  ;;  %v1322_v46 = vor.u32 %v1321_v36, %v1320_v20  ;;  %v1336_v20 = vrot.slane %v878_v56, 3 }
  0x32   : > { %6113 = vmatprep.subr.bf16.mxu0 %v9707_v1  ;;  %6013 = vmatprep.subr.bf16.mxu1 %v9707_v1 }
  0x34   : > { %6114 = vmatpush3.bf16.msra.mxu0 %v6875_v35  ;;  %v1316_v35 = vshll.u32 %v7172_v12, 16  ;;  %v1325_v12 = vrot.slane %v854_v45, 4 }
  0x35   : > { %6014 = vmatpush3.bf16.msra.mxu1 %v6878_v38  ;;  %6115 = vmatprep.subr.bf16.mxu0 %v9707_v1  ;;  %v860_v38 = vshrl.u32 %v7201_v26, 16  ;;  %v6895_v26 = vld [vmem:[%s9701_s1 + $0xa8] sm:$0xff]  }
  0x36   : > { %6015 = vmatprep.subr.bf16.mxu1 %v9707_v1  ;;  %v1318_v37 = vrot.slane %v1316_v35, 4  ;;  %v1326_v45 = vor.u32 %v1325_v12, %v1324_v44  ;;  %v896_v12 = vshrl.u32 %v7271_v59, 16 }
  0x37   : > { %5932 = vmatmul.mubr.bf16.gmra.mrb[4].mxu0 %v523_v51  ;;  %5976 = vmatmul.mubr.bf16.gmra.mrb[4].mxu1 %v545_v52  ;;  %v862_v21 = vrot.slane %v860_v38, 2  ;;  %v871_v51 = vrot.slane %v869_v10, 2  ;;  %v874_v52 = vrot.slane %v872_v41, 3 }
  0x38   : > { %5935 = vmatprep.mubr.msk.bf16.mxu0 %vm7066_vm0, %v9707_v1  ;;  %5979 = vmatprep.mubr.msk.bf16.mxu1 %vm7066_vm0, %v9707_v1  ;;  %v1319_v50 = vor.u32 %v1318_v37, %v1315_v32  ;;  %v7376_v55 = vsel %vm1311_vm3, %v1322_v46, %v1326_v45  ;;  %v887_v32 = vshrl.u32 %v7248_v47, 16  ;;  %v899_v37 = vshll.u32 %v7271_v59, 16 }
  0x39   : > { %6116 = vmatpush3.bf16.msra.mxu0 %v6879_v48  ;;  %6016 = vmatpush3.bf16.msra.mxu1 %v6882_v57  ;;  %v1328_v48 = vrot.slane %v860_v38, 3  ;;  %v866_v54 = vor.u32 %v865_v43, %v862_v21  ;;  %v881_v57 = vshll.u32 %v7237_v42, 16  ;;  %v875_v61 = vor.u32 %v874_v52, %v871_v51  ;;  %v7406_v38 = vld [vmem:[%s7146_s10 + $0x40] sm:$0xff]  }
  0x3a   : > { %6117 = vmatprep.subr.bf16.mxu0 %v9707_v1  ;;  %6017 = vmatprep.subr.bf16.mxu1 %v9707_v1  ;;  %v7384_v60 = vsel %vm1311_vm3, %v1319_v50, %v1322_v46  ;;  %v889_v40 = vrot.slane %v887_v32, 2  ;;  %v898_v43 = vrot.slane %v896_v12, 2  ;;  %v905_v51 = vshrl.u32 %v7406_v38, 16 }
  0x3b   : > { %v7391_v7 = vsel %vm832_vm2, %v7293_v6, %v866_v54  ;;  %v883_v42 = vrot.slane %v881_v57, 3  ;;  %v1337_v36 = vrot.slane %v881_v57, 4  ;;  %v908_v52 = vshll.u32 %v7406_v38, 16 }
  0x3d   : > { %6118 = vmatpush3.bf16.msra.mxu0 %v6885_v63  ;;  %6018 = vmatpush3.bf16.msra.mxu1 %v6886_v13  ;;  %v1330_v63 = vor.u32 %v1329_v53, %v1328_v48  ;;  %v7394_v13 = vsel %vm832_vm2, %v866_v54, %v875_v61  ;;  %v1338_v10 = vor.u32 %v1337_v36, %v1336_v20  ;;  %v1344_v53 = vrot.slane %v896_v12, 3 }
  0x3e   : > { %6119 = vmatprep.subr.bf16.mxu0 %v9707_v1  ;;  %6019 = vmatprep.subr.bf16.mxu1 %v9707_v1  ;;  %v1349_v20 = vrot.slane %v908_v52, 4 }
  0x3f   : > { %5936 = vmatmul.mubr.bf16.gmra.mrb[8].mxu0 %v525_v8  ;;  %5980 = vmatmul.mubr.bf16.gmra.mrb[8].mxu1 %v547_v9  ;;  %v880_v8 = vrot.slane %v878_v56, 2  ;;  %v1333_v9 = vrot.slane %v872_v41, 4  ;;  %v1340_v41 = vrot.slane %v887_v32, 3  ;;  %v1348_v32 = vrot.slane %v905_v51, 3 }
  0x40   : > { %5939 = vmatprep.mubr.msk.bf16.mxu0 %vm7066_vm0, %v9707_v1  ;;  %5983 = vmatprep.mubr.msk.bf16.mxu1 %vm7066_vm0, %v9707_v1 }
  0x41   : > { %6120 = vmatpush3.bf16.msra.mxu0 %v6889_v28  ;;  %6020 = vmatpush3.bf16.msra.mxu1 %v6890_v34  ;;  %v7397_v28 = vsel %vm1311_vm3, %v1326_v45, %v1330_v63  ;;  %v890_v34 = vshll.u32 %v7248_v47, 16  ;;  %v884_v6 = vor.u32 %v883_v42, %v880_v8  ;;  %v1334_v35 = vor.u32 %v1333_v9, %v1332_v4 }
  0x42   : > { %6121 = vmatprep.subr.bf16.mxu0 %v9707_v1  ;;  %6021 = vmatprep.subr.bf16.mxu1 %v9707_v1  ;;  %v901_v45 = vrot.slane %v899_v37, 3 }
  0x43   : > { %v892_v44 = vrot.slane %v890_v34, 3  ;;  %v7421_v46 = vsel %vm1311_vm3, %v1330_v63, %v1334_v35  ;;  %v1341_v48 = vrot.slane %v890_v34, 4  ;;  %v7432_v50 = vsel %vm1311_vm3, %v1334_v35, %v1338_v10 }
  0x44   : > { %v902_v56 = vor.u32 %v901_v45, %v898_v43  ;;  %v910_v63 = vrot.slane %v908_v52, 3 }
  0x45   : > { %6122 = vmatpush3.bf16.msra.mxu0 %v6895_v26  ;;  %6022 = vmatpush3.bf16.msra.mxu1 %v6896_v39  ;;  %v6903_v26 = vld [vmem:[%s9701_s1 + $0xb8] sm:$0xff]   ;;  %v893_v21 = vor.u32 %v892_v44, %v889_v40  ;;  %v7427_v39 = vld [vmem:[%s7146_s10 + $0x48] sm:$0xff]   ;;  %v1342_v57 = vor.u32 %v1341_v48, %v1340_v41  ;;  %v923_v40 = vshrl.u32 %v7289_v3, 16  ;;  %v926_v44 = vshll.u32 %v7289_v3, 16 }
  0x46   : > { %6023 = vmatprep.subr.bf16.mxu1 %v9707_v1  ;;  %6123 = vmatprep.subr.bf16.mxu0 %v9707_v1  ;;  %v914_v4 = vshrl.u32 %v7427_v39, 16  ;;  %v536_v59 = vrot.slane %v7427_v39, 3  ;;  %v6906_v3 = vld [vmem:[%s9701_s1 + $0xc8] sm:$0xff]  }
  0x47   : > { %5940 = vmatmul.mubr.bf16.gmra.mrb[12].mxu0 %v7299_v11  ;;  %5984 = vmatmul.mubr.bf16.gmra.mrb[12].mxu1 %v7306_v17  ;;  %v6902_v11 = vld [vmem:[%s9701_s1 + $0x38] sm:$0xff]   ;;  %v7418_v17 = vsel %vm832_vm2, %v875_v61, %v884_v6  ;;  %v7437_v54 = vsel %vm832_vm2, %v884_v6, %v893_v21  ;;  %v907_v61 = vrot.slane %v905_v51, 2  ;;  %v7442_v8 = vsel %vm832_vm2, %v893_v21, %v902_v56 }
  0x48   : > { %5943 = vmatprep.mubr.msk.bf16.mxu0 %vm7066_vm0, %v9707_v1  ;;  %5987 = vmatprep.mubr.msk.bf16.mxu1 %vm7066_vm0, %v9707_v1  ;;  %v7445_v42 = vsel %vm1311_vm3, %v1338_v10, %v1342_v57  ;;  %v916_v6 = vrot.slane %v914_v4, 2  ;;  %v1352_v12 = vrot.slane %v914_v4, 3  ;;  %v925_v10 = vrot.slane %v923_v40, 2 }
  0x49   : > { %6024 = vmatpush3.bf16.msra.mxu1 %v6899_v58  ;;  %6124 = vmatpush3.bf16.msra.mxu0 %v6900_v5  ;;  %v1345_v58 = vrot.slane %v899_v37, 4  ;;  %v917_v5 = vshll.u32 %v7427_v39, 16  ;;  %v911_v34 = vor.u32 %v910_v63, %v907_v61  ;;  %v928_v41 = vrot.slane %v926_v44, 3 }
  0x4a   : > { %6025 = vmatprep.subr.bf16.mxu1 %v9707_v1  ;;  %6125 = vmatprep.subr.bf16.mxu0 %v9707_v1  ;;  %v935_v21 = vshll.u32 %v7175_v14, 16  ;;  %v1356_v51 = vrot.slane %v923_v40, 3  ;;  %v941_v61 = vshrl.u32 %v7178_v15, 16  ;;  %v539_v39 = vsel %vm518_vm1, %v536_v59, %v538_v22  ;;  %v6905_v22 = vld [vmem:[%s9701_s1 + $0x100] sm:$0xff]  }
  0x4b   : > { %v1346_v9 = vor.u32 %v1345_v58, %v1344_v53  ;;  %v919_v35 = vrot.slane %v917_v5, 3  ;;  %v7461_v37 = vsel %vm832_vm2, %v902_v56, %v911_v34  ;;  %v929_v52 = vor.u32 %v928_v41, %v925_v10 }
  0x4c   : > { %v937_v56 = vrot.slane %v935_v21, 3  ;;  %v1364_v10 = vrot.slane %v941_v61, 3 }
  0x4d   : > { %6026 = vmatpush3.bf16.msra.mxu1 %v6902_v11  ;;  %6126 = vmatpush3.bf16.msra.mxu0 %v6903_v26  ;;  %v7452_v36 = vsel %vm1311_vm3, %v1342_v57, %v1346_v9  ;;  %v1350_v11 = vor.u32 %v1349_v20, %v1348_v32  ;;  %v932_v26 = vshrl.u32 %v7175_v14, 16  ;;  %v1357_v57 = vrot.slane %v926_v44, 4  ;;  %v7483_v20 = vld [vmem:[%s7146_s10 + $0x98] sm:$0xff]  }
  0x4e   : > { %6211 = vmatprep.subr.bf16.mxu1 %v9707_v1  ;;  %6311 = vmatprep.subr.bf16.mxu0 %v9707_v1  ;;  %v944_v14 = vshll.u32 %v7178_v15, 16  ;;  %v1361_v32 = vrot.slane %v935_v21, 4  ;;  %v556_v41 = vrot.slane %v7483_v20, 3  ;;  %v533_v21 = vsel %vm518_vm1, %v530_v0, %v532_v16 }
  0x4f   : > { %5944 = vmatmul.mubr.bf16.gmra.mrb[16].mxu0 %v7309_v18  ;;  %5988 = vmatmul.mubr.bf16.gmra.mrb[16].mxu1 %v7316_v24  ;;  %v920_v18 = vor.u32 %v919_v35, %v916_v6  ;;  %v1353_v24 = vrot.slane %v917_v5, 4  ;;  %v7469_v45 = vsel %vm1311_vm3, %v1346_v9, %v1350_v11  ;;  %v934_v53 = vrot.slane %v932_v26, 2 }
  0x50   : > { %5947 = vmatprep.mubr.msk.bf16.mxu0 %vm7066_vm0, %v9707_v1  ;;  %5991 = vmatprep.mubr.msk.bf16.mxu1 %vm7066_vm0, %v9707_v1  ;;  %v1360_v63 = vrot.slane %v932_v26, 3  ;;  %v1358_v9 = vor.u32 %v1357_v57, %v1356_v51  ;;  %v946_v6 = vrot.slane %v944_v14, 3  ;;  %v534_v35 = vrot.slane %v7406_v38, 3 }
  0x51   : > { %v7466_v43 = vsel %vm832_vm2, %v911_v34, %v920_v18  ;;  %v1354_v48 = vor.u32 %v1353_v24, %v1352_v12  ;;  %v7477_v4 = vsel %vm832_vm2, %v920_v18, %v929_v52  ;;  %v938_v5 = vor.u32 %v937_v56, %v934_v53  ;;  %v7518_v53 = vld [vmem:[%s7146_s10 + $0xa0] sm:$0xf]  ;;  %v378_v56 = vld [vmem:[%s7146_s10 + $0xa4] sm:$0x1] }
  0x52   : > { %v943_v34 = vrot.slane %v941_v61, 2  ;;  %v1362_v44 = vor.u32 %v1361_v32, %v1360_v63  ;;  %v953_v38 = vshll.u32 %v7193_v23, 16  ;;  %v1365_v26 = vrot.slane %v944_v14, 4 }
  0x53   : > { %v7472_v58 = vsel %vm1311_vm3, %v1350_v11, %v1354_v48  ;;  %v7486_v40 = vsel %vm832_vm2, %v929_v52, %v938_v5  ;;  %v7489_v15 = vsel %vm1311_vm3, %v1354_v48, %v1358_v9  ;;  %v962_v0 = vshll.u32 %v7217_v33, 16 }
  0x54   : > { %v7498_v12 = vsel %vm1311_vm3, %v1358_v9, %v1362_v44  ;;  %v955_v24 = vrot.slane %v953_v38, 3  ;;  %v1366_v51 = vor.u32 %v1365_v26, %v1364_v10  ;;  %v1369_v14 = vrot.slane %v953_v38, 4  ;;  %v6916_v10 = vld [vmem:[%s9701_s1 + $0xf0] sm:$0xff]   ;;  %v6919_v26 = vld [vmem:[%s9701_s1 + $0x138] sm:$0xff]  }
  0x55   : > { %v964_v57 = vrot.slane %v962_v0, 3  ;;  %v535_v63 = vsel %vm518_vm1, %v532_v16, %v534_v35  ;;  %v7537_v9 = vcombine.low %v7518_v53, %v378_v56  ;;  %v1372_v16 = vrot.slane %v959_v49, 3 }
  0x56   : > { %v7522_v47 = vsel %vm1311_vm3, %v1362_v44, %v1366_v51  ;;  %v537_v44 = vsel %vm518_vm1, %v534_v35, %v536_v59  ;;  %v6904_v35 = vld [vmem:[%s9701_s1 + $0xc0] sm:$0xff]  }
  0x57   : > { %5948 = vmatmul.mubr.bf16.gmra.mrb[20].mxu0 %v7321_v25  ;;  %5992 = vmatmul.mubr.bf16.gmra.mrb[20].mxu1 %v7326_v27  ;;  %v947_v25 = vor.u32 %v946_v6, %v943_v34  ;;  %v950_v27 = vshrl.u32 %v7193_v23, 16  ;;  %v555_v23 = vsel %vm518_vm1, %v552_v2, %v554_v19  ;;  %v961_v2 = vrot.slane %v959_v49, 2 }
  0x58   : > { %5951 = vmatprep.mubr.msk.bf16.mxu0 %vm7066_vm0, %v9707_v1  ;;  %5995 = vmatprep.mubr.msk.bf16.mxu1 %vm7066_vm0, %v9707_v1  ;;  %v558_v62 = vrot.slane %v7537_v9, 3 }
  0x59   : > { %v7501_v18 = vsel %vm832_vm2, %v938_v5, %v947_v25  ;;  %v952_v11 = vrot.slane %v950_v27, 2  ;;  %v1368_v61 = vrot.slane %v950_v27, 3  ;;  %v557_v5 = vsel %vm518_vm1, %v554_v19, %v556_v41 }
  0x5a   : > { %v7539_v32 = vor.u32 %v964_v57, %v961_v2  ;;  %v1373_v19 = vrot.slane %v962_v0, 4 }
  0x5b   : > { %v956_v48 = vor.u32 %v955_v24, %v952_v11  ;;  %v1370_v34 = vor.u32 %v1369_v14, %v1368_v61  ;;  %v6912_v11 = vld [vmem:[%s9701_s1 + $0xe0] sm:$0xff]   ;;  %v6911_v24 = vld [vmem:[%s9701_s1 + $0x118] sm:$0xff]   ;;  %v7022_v61 = vld [vmem:[%s7146_s10 + $0x90] sm:$0xff]  }
  0x5c   : > { %v7556_v27 = vor.u32 %v1373_v19, %v1372_v16  ;;  %v995_v14 = vshrl.u32 %v7022_v61, 16  ;;  %v1007_v16 = vshll.u32 %v7483_v20, 16 }
  0x5d   : > { %v7515_v52 = vsel %vm832_vm2, %v947_v25, %v956_v48  ;;  %v7543_v33 = vsel %vm832_vm2, %v956_v48, %v7539_v32  ;;  %v7546_v6 = vsel %vm1311_vm3, %v1366_v51, %v1370_v34  ;;  %v559_v25 = vsel %vm518_vm1, %v556_v41, %v558_v62  ;;  %v6915_v41 = vld [vmem:[%s9701_s1 + $0x128] sm:$0xff]  }
  0x5e   : > { %v7560_v38 = vsel %vm1311_vm3, %v1370_v34, %v7556_v27  ;;  %v997_v34 = vrot.slane %v995_v14, 2 }
  0x5f   : > { %5952 = vmatmul.mubr.bf16.gmra.mrb[24].mxu0 %v533_v21  ;;  %5996 = vmatmul.mubr.bf16.gmra.mrb[24].mxu1 %v555_v23 }
  0x60   : > { %5955 = vmatprep.mubr.msk.bf16.mxu0 %vm7066_vm0, %v9707_v1  ;;  %5999 = vmatprep.mubr.msk.bf16.mxu1 %vm7066_vm0, %v9707_v1 }
  0x67   : > { %5956 = vmatmul.mubr.bf16.gmra.mrb[28].mxu0 %v535_v63  ;;  %6000 = vmatmul.mubr.bf16.gmra.mrb[28].mxu1 %v557_v5  ;;  %v998_v63 = vshll.u32 %v7022_v61, 16 }
  0x68   : > { %5959 = vmatprep.mubr.msk.bf16.mxu0 %vm7066_vm0, %v9707_v1  ;;  %6003 = vmatprep.mubr.msk.bf16.mxu1 %vm7066_vm0, %v9707_v1 }
  0x6f   : > { %5960 = vmatmul.mubr.bf16.gmra.mrb[32].mxu0 %v537_v44  ;;  %6004 = vmatmul.mubr.bf16.gmra.mrb[32].mxu1 %v559_v25 }
  0x70   : > { %5963 = vmatprep.mubr.msk.bf16.mxu0 %vm7066_vm0, %v9707_v1  ;;  %6007 = vmatprep.mubr.msk.bf16.mxu1 %vm7066_vm0, %v9707_v1 }
  0x77   : > { %5964 = vmatmul.mubr.bf16.gmra.mrb[36].mxu0 %v539_v39  ;;  %6008 = vmatmul.mubr.bf16.gmra.mrb[36].mxu1 %v558_v62  ;;  %v1004_v62 = vshrl.u32 %v7483_v20, 16 }
  0x78   : > { %5967 = vmatprep.mubr.msk.bf16.mxu0 %vm7066_vm0, %v9707_v1  ;;  %6027 = vmatprep.mubr.msk.bf16.mxu1 %vm7066_vm0, %v9707_v1 }
  0x7f   : > { %5968 = vmatmul.mubr.bf16.gmra.mrb[40].mxu0 %v7336_v29  ;;  %6028 = vmatmul.mubr.bf16.vlgmr.msra.gmra.mrb[40].mxu1 %v7339_v30  ;;  %v6908_v29 = vld [vmem:[%s9701_s1 + $0xd0] sm:$0xff]   ;;  %v6907_v30 = vld [vmem:[%s9701_s1 + $0x108] sm:$0xff]  }
  0x80   : > { %6031 = vmatprep.mubr.msk.bf16.mxu1 %vm7066_vm0, %v9707_v1  ;;  %6127 = vmatprep.mubr.msk.bf16.mxu0 %vm7066_vm0, %v9707_v1 }
  0x81   : > { %6212 = vmatpush3.bf16.msra.mxu1 %v6904_v35  ;;  %v1006_v35 = vrot.slane %v1004_v62, 2 }
  0x82   : > { %6213 = vmatprep.subr.bf16.mxu1 %v9707_v1 }
  0x85   : > { %6214 = vmatpush3.bf16.msra.mxu1 %v6906_v3  ;;  %v1009_v3 = vrot.slane %v1007_v16, 3 }
  0x86   : > { %6215 = vmatprep.subr.bf16.mxu1 %v9707_v1 }
  0x87   : > { %6032 = vmatmul.mubr.bf16.gmra.mrb[44].mxu1 %v7343_v31  ;;  %6128 = vmatmul.mubr.bf16.vlgmr.msra.gmra.mrb[44].mxu0 %v7384_v60  ;;  %v6910_v31 = vld [vmem:[%s9701_s1 + $0xd8] sm:$0xff]   ;;  %v6909_v60 = vld [vmem:[%s9701_s1 + $0x110] sm:$0xff]  }
  0x88   : > { %6312 = vmatpush3.bf16.msra.mxu0 %v6905_v22  ;;  %6035 = vmatprep.mubr.msk.bf16.mxu1 %vm7066_vm0, %v9707_v1  ;;  %v1388_v22 = vrot.slane %v995_v14, 3 }
  0x89   : > { %6131 = vmatprep.mubr.msk.bf16.mxu0 %vm7066_vm0, %v9707_v1  ;;  %6313 = vmatprep.subr.bf16.mxu0 %v9707_v1 }
  0x8a   : > { %6216 = vmatpush3.bf16.msra.mxu1 %v6908_v29  ;;  %v1389_v29 = vrot.slane %v998_v63, 4 }
  0x8b   : > { %6217 = vmatprep.subr.bf16.mxu1 %v9707_v1 }
  0x8c   : > { %6314 = vmatpush3.bf16.msra.mxu0 %v6907_v30 }
  0x8d   : > { %6315 = vmatprep.subr.bf16.mxu0 %v9707_v1 }
  0x8e   : > { %6218 = vmatpush3.bf16.msra.mxu1 %v6910_v31 }
  0x8f   : > { %6036 = vmatmul.mubr.bf16.gmra.mrb[48].mxu1 %v7391_v7  ;;  %6132 = vmatmul.mubr.bf16.gmra.mrb[48].mxu0 %v7376_v55  ;;  %v6914_v55 = vld [vmem:[%s9701_s1 + $0xe8] sm:$0xff]   ;;  %v6913_v7 = vld [vmem:[%s9701_s1 + $0x120] sm:$0xff]  }
  0x90   : > { %6039 = vmatprep.mubr.msk.bf16.mxu1 %vm7066_vm0, %v9707_v1  ;;  %6135 = vmatprep.mubr.msk.bf16.mxu0 %vm7066_vm0, %v9707_v1 }
  0x91   : > { %6316 = vmatpush3.bf16.msra.mxu0 %v6909_v60  ;;  %6219 = vmatprep.subr.bf16.mxu1 %v9707_v1 }
  0x92   : > { %6317 = vmatprep.subr.bf16.mxu0 %v9707_v1  ;;  %6220 = vmatpush3.bf16.msra.mxu1 %v6912_v11 }
  0x93   : > { %6221 = vmatprep.subr.bf16.mxu1 %v9707_v1 }
  0x95   : > { %6318 = vmatpush3.bf16.msra.mxu0 %v6911_v24 }
  0x96   : > { %6319 = vmatprep.subr.bf16.mxu0 %v9707_v1  ;;  %6222 = vmatpush3.bf16.msra.mxu1 %v6914_v55  ;;  %v1010_v55 = vor.u32 %v1009_v3, %v1006_v35 }
  0x97   : > { %6040 = vmatmul.mubr.bf16.gmra.mrb[52].mxu1 %v7394_v13  ;;  %6136 = vmatmul.mubr.bf16.gmra.mrb[52].mxu0 %v7397_v28  ;;  %v6918_v13 = vld [vmem:[%s9701_s1 + $0xf8] sm:$0xff]   ;;  %v6917_v28 = vld [vmem:[%s9701_s1 + $0x130] sm:$0xff]  }
  0x98   : > { %6043 = vmatprep.mubr.msk.bf16.mxu1 %vm7066_vm0, %v9707_v1  ;;  %6139 = vmatprep.mubr.msk.bf16.mxu0 %vm7066_vm0, %v9707_v1 }
  0x99   : > { %6320 = vmatpush3.bf16.msra.mxu0 %v6913_v7  ;;  %6223 = vmatprep.subr.bf16.mxu1 %v9707_v1  ;;  %v1390_v7 = vor.u32 %v1389_v29, %v1388_v22 }
  0x9a   : > { %6321 = vmatprep.subr.bf16.mxu0 %v9707_v1  ;;  %6224 = vmatpush3.bf16.msra.mxu1 %v6916_v10  ;;  %v1013_v10 = vshrl.u32 %v7537_v9, 16 }
  0x9b   : > { %6225 = vmatprep.subr.bf16.mxu1 %v9707_v1 }
  0x9d   : > { %6322 = vmatpush3.bf16.msra.mxu0 %v6915_v41  ;;  %v1016_v41 = vshll.u32 %v7537_v9, 16  ;;  %v1015_v9 = vrot.slane %v1013_v10, 2 }
  0x9e   : > { %6323 = vmatprep.subr.bf16.mxu0 %v9707_v1  ;;  %6226 = vmatpush3.bf16.msra.mxu1 %v6918_v13  ;;  %v1290_v13 = vld [vmem:[%s7146_s10 + $0xa4] sm:$0x3] }
  0x9f   : > { %6044 = vmatmul.mubr.bf16.gmra.mrb[56].mxu1 %v7418_v17  ;;  %6140 = vmatmul.mubr.bf16.gmra.mrb[56].mxu0 %v7421_v46  ;;  %v7019_v17 = vld [vmem:[%s7146_s10 + $0x78] sm:$0xff]  }
  0xa0   : > { %6047 = vmatprep.mubr.msk.bf16.mxu1 %vm7066_vm0, %v9707_v1  ;;  %6143 = vmatprep.mubr.msk.bf16.mxu0 %vm7066_vm0, %v9707_v1  ;;  %v968_v46 = vshrl.u32 %v7019_v17, 16 }
  0xa1   : > { %6324 = vmatpush3.bf16.msra.mxu0 %v6917_v28  ;;  %6411 = vmatprep.subr.bf16.mxu1 %v9707_v1 }
  0xa2   : > { %6325 = vmatprep.subr.bf16.mxu0 %v9707_v1 }
  0xa5   : > { %6326 = vmatpush3.bf16.msra.mxu0 %v6919_v26 }
  0xa6   : > { %6511 = vmatprep.subr.bf16.mxu0 %v9707_v1 }
  0xa7   : > { %6048 = vmatmul.mubr.bf16.gmra.mrb[60].mxu1 %v7437_v54  ;;  %6144 = vmatmul.mubr.bf16.gmra.mrb[60].mxu0 %v7432_v50  ;;  %v971_v50 = vshll.u32 %v7019_v17, 16  ;;  %v970_v54 = vrot.slane %v968_v46, 2 }
  0xa8   : > { %6051 = vmatprep.mubr.msk.bf16.mxu1 %vm7066_vm0, %v9707_v1  ;;  %6147 = vmatprep.mubr.msk.bf16.mxu0 %vm7066_vm0, %v9707_v1 }
  0xaf   : > { %6052 = vmatmul.mubr.bf16.gmra.mrb[64].mxu1 %v7442_v8  ;;  %6148 = vmatmul.mubr.bf16.gmra.mrb[64].mxu0 %v7445_v42  ;;  %v973_v8 = vrot.slane %v971_v50, 3 }
  0xb0   : > { %6055 = vmatprep.mubr.msk.bf16.mxu1 %vm7066_vm0, %v9707_v1  ;;  %6151 = vmatprep.mubr.msk.bf16.mxu0 %vm7066_vm0, %v9707_v1 }
  0xb1   : > { %v974_v42 = vor.u32 %v973_v8, %v970_v54  ;;  %v5428_v8 = vcombine.low %v7518_v53, %v1290_v13 }
  0xb7   : > { %6056 = vmatmul.mubr.bf16.gmra.mrb[68].mxu1 %v7461_v37  ;;  %6152 = vmatmul.mubr.bf16.gmra.mrb[68].mxu0 %v7452_v36  ;;  %v7020_v36 = vld [vmem:[%s7146_s10 + $0x80] sm:$0xff]  }
  0xb8   : > { %6059 = vmatprep.mubr.msk.bf16.mxu1 %vm7066_vm0, %v9707_v1  ;;  %6155 = vmatprep.mubr.msk.bf16.mxu0 %vm7066_vm0, %v9707_v1  ;;  %v977_v37 = vshrl.u32 %v7020_v36, 16 }
  0xba   : > { %v1380_v56 = vrot.slane %v977_v37, 3 }
  0xbf   : > { %6060 = vmatmul.mubr.bf16.gmra.mrb[72].mxu1 %v7466_v43  ;;  %6156 = vmatmul.mubr.bf16.gmra.mrb[72].mxu0 %v7469_v45  ;;  %v980_v43 = vshll.u32 %v7020_v36, 16  ;;  %v975_v45 = vsel %vm832_vm2, %v7539_v32, %v974_v42 }
  0xc0   : > { %6063 = vmatprep.mubr.msk.bf16.mxu1 %vm7066_vm0, %v9707_v1  ;;  %6159 = vmatprep.mubr.msk.bf16.mxu0 %vm7066_vm0, %v9707_v1 }
  0xc7   : > { %6064 = vmatmul.mubr.bf16.gmra.mrb[76].mxu1 %v7477_v4  ;;  %6160 = vmatmul.mubr.bf16.gmra.mrb[76].mxu0 %v7472_v58  ;;  %v979_v58 = vrot.slane %v977_v37, 2  ;;  %v982_v4 = vrot.slane %v980_v43, 3  ;;  %v1018_v37 = vrot.slane %v1016_v41, 3 }
  0xc8   : > { %6067 = vmatprep.mubr.msk.bf16.mxu1 %vm7066_vm0, %v9707_v1  ;;  %6163 = vmatprep.mubr.msk.bf16.mxu0 %vm7066_vm0, %v9707_v1 }
  0xc9   : > { %v983_v23 = vor.u32 %v982_v4, %v979_v58  ;;  %v1019_v53 = vor.u32 %v1018_v37, %v1015_v9 }
  0xcb   : > { %v984_v49 = vsel %vm832_vm2, %v974_v42, %v983_v23  ;;  %v1020_v61 = vsel %vm832_vm2, %v1010_v55, %v1019_v53 }
  0xcf   : > { %6068 = vmatmul.mubr.bf16.gmra.mrb[80].mxu1 %v7486_v40  ;;  %6164 = vmatmul.mubr.bf16.gmra.mrb[80].mxu0 %v7489_v15  ;;  %v1376_v40 = vrot.slane %v968_v46, 3  ;;  %v1377_v15 = vrot.slane %v971_v50, 4 }
  0xd0   : > { %6071 = vmatprep.mubr.msk.bf16.mxu1 %vm7066_vm0, %v9707_v1  ;;  %6167 = vmatprep.mubr.msk.bf16.mxu0 %vm7066_vm0, %v9707_v1 }
  0xd1   : > { %v1378_v48 = vor.u32 %v1377_v15, %v1376_v40  ;;  %v1397_v40 = vshrl.u32 %v5428_v8, 16  ;;  %v1400_v15 = vshll.u32 %v5428_v8, 16  ;;  %v7831_v8 = vld [vmem:[%s7146_s10 + $0x24] sm:$0xf] }
  0xd3   : > { %v1379_v0 = vsel %vm1311_vm3, %v7556_v27, %v1378_v48 }
  0xd7   : > { %6072 = vmatmul.mubr.bf16.gmra.mrb[84].mxu1 %v7501_v18  ;;  %6168 = vmatmul.mubr.bf16.gmra.mrb[84].mxu0 %v7498_v12  ;;  %v7021_v12 = vld [vmem:[%s7146_s10 + $0x88] sm:$0xff]  }
  0xd8   : > { %6075 = vmatprep.mubr.msk.bf16.mxu1 %vm7066_vm0, %v9707_v1  ;;  %6171 = vmatprep.mubr.msk.bf16.mxu0 %vm7066_vm0, %v9707_v1  ;;  %v986_v18 = vshrl.u32 %v7021_v12, 16  ;;  %v989_v21 = vshll.u32 %v7021_v12, 16 }
  0xda   : > { %v988_v51 = vrot.slane %v986_v18, 2  ;;  %v1385_v59 = vrot.slane %v989_v21, 4 }
  0xdf   : > { %6076 = vmatmul.mubr.bf16.gmra.mrb[88].mxu1 %v7515_v52  ;;  %6172 = vmatmul.mubr.bf16.gmra.mrb[88].mxu0 %v7522_v47  ;;  %v991_v52 = vrot.slane %v989_v21, 3  ;;  %v1381_v47 = vrot.slane %v980_v43, 4  ;;  %v1392_v43 = vrot.slane %v1004_v62, 3  ;;  %v7781_v21 = vld [vmem:[%s7146_s10 + $0xc] sm:$0xf] }
  0xe0   : > { %6079 = vmatprep.mubr.msk.bf16.mxu1 %vm7066_vm0, %v9707_v1  ;;  %6175 = vmatprep.mubr.msk.bf16.mxu0 %vm7066_vm0, %v9707_v1 }
  0xe1   : > { %v992_v2 = vor.u32 %v991_v52, %v988_v51  ;;  %v1382_v57 = vor.u32 %v1381_v47, %v1380_v56 }
  0xe3   : > { %v993_v5 = vsel %vm832_vm2, %v983_v23, %v992_v2  ;;  %v1383_v32 = vsel %vm1311_vm3, %v1378_v48, %v1382_v57  ;;  %v7784_v23 = vld [vmem:[%s7146_s10 + $0x10] sm:$0xf]  ;;  %v7787_v48 = vld [vmem:[%s7146_s10 + $0x14] sm:$0xf] }
  0xe7   : > { %6080 = vmatmul.mubr.bf16.gmra.mrb[92].mxu1 %v7543_v33  ;;  %6176 = vmatmul.mubr.bf16.gmra.mrb[92].mxu0 %v7546_v6  ;;  %v1000_v33 = vrot.slane %v998_v63, 3  ;;  %v1384_v6 = vrot.slane %v986_v18, 3  ;;  %v1715_v18 = vld [vmem:[%s7146_s10 + $0x8] sm:$0x8] }
  0xe8   : > { %6083 = vmatprep.mubr.msk.bf16.mxu1 %vm7066_vm0, %v9707_v1  ;;  %6179 = vmatprep.mubr.msk.bf16.mxu0 %vm7066_vm0, %v9707_v1 }
  0xe9   : > { %v1001_v19 = vor.u32 %v1000_v33, %v997_v34  ;;  %v1386_v44 = vor.u32 %v1385_v59, %v1384_v6 }
  0xeb   : > { %v1002_v30 = vsel %vm832_vm2, %v992_v2, %v1001_v19  ;;  %v1387_v31 = vsel %vm1311_vm3, %v1382_v57, %v1386_v44  ;;  %v1011_v50 = vsel %vm832_vm2, %v1001_v19, %v1010_v55  ;;  %v1391_v54 = vsel %vm1311_vm3, %v1386_v44, %v1390_v7  ;;  %v7807_v19 = vld [vmem:[%s7146_s10 + $0x18] sm:$0xf]  ;;  %v7810_v44 = vld [vmem:[%s7146_s10 + $0x1c] sm:$0xf] }
  0xec   : > { %v5453_v2 = vcombine.low %v1715_v18, %v7781_v21 }
  0xee   : > { %v1880_v6 = vshrl.u32 %v5453_v2, 16  ;;  %v1883_v59 = vshll.u32 %v5453_v2, 16 }
  0xef   : > { %6084 = vmatmul.mubr.bf16.gmra.mrb[96].mxu1 %v975_v45  ;;  %6180 = vmatmul.mubr.bf16.gmra.mrb[96].mxu0 %v7560_v38  ;;  %v1393_v45 = vrot.slane %v1007_v16, 4 }
  0xf0   : > { %6087 = vmatprep.mubr.msk.bf16.mxu1 %vm7066_vm0, %v9707_v1  ;;  %6183 = vmatprep.mubr.msk.bf16.mxu0 %vm7066_vm0, %v9707_v1  ;;  %v1882_v29 = vrot.slane %v1880_v6, 3 }
  0xf1   : > { %v1394_v12 = vor.u32 %v1393_v45, %v1392_v43 }
  0xf3   : > { %v1395_v14 = vsel %vm1311_vm3, %v1390_v7, %v1394_v12  ;;  %v5455_v7 = vcombine.low %v7807_v19, %v7810_v44 }
  0xf7   : > { %6088 = vmatmul.mubr.bf16.gmra.mrb[100].mxu1 %v984_v49  ;;  %6184 = vmatmul.mubr.bf16.gmra.mrb[100].mxu0 %v1379_v0  ;;  %v1399_v49 = vrot.slane %v1397_v40, 3  ;;  %v1402_v0 = vrot.slane %v1400_v15, 4 }
  0xf8   : > { %6091 = vmatprep.mubr.msk.bf16.mxu1 %vm7066_vm0, %v9707_v1  ;;  %6187 = vmatprep.mubr.msk.bf16.mxu0 %vm7066_vm0, %v9707_v1 }
  0xf9   : > { %v1403_v33 = vor.u32 %v1402_v0, %v1399_v49 }
  0xfb   : > { %v1404_v22 = vsel %vm1311_vm3, %v1394_v12, %v1403_v33 }
  0xff   : > { %6092 = vmatmul.mubr.bf16.gmra.mrb[104].mxu1 %v993_v5  ;;  %6188 = vmatmul.mubr.bf16.gmra.mrb[104].mxu0 %v1383_v32  ;;  %v5454_v5 = vcombine.low %v7784_v23, %v7787_v48 }
 0x100   : > { %6095 = vmatprep.mubr.msk.bf16.mxu1 %vm7066_vm0, %v9707_v1  ;;  %6191 = vmatprep.mubr.msk.bf16.mxu0 %vm7066_vm0, %v9707_v1 }
 0x101   : > { %v1888_v62 = vshrl.u32 %v5454_v5, 16  ;;  %v1891_v16 = vshll.u32 %v5454_v5, 16  ;;  %v6931_v5 = vld [vmem:[%s9701_s1 + $0x148] sm:$0xff]  }
 0x102   : > { %v7747_v25 = vpop.f32.mrb[0].mxu0  ;;  %v7749_v27 = vpop.f32.mrb[0].mxu1 }
 0x103   : > { %v5929_v38 = vpop.f32.mrb[1].mxu0  ;;  %v5973_v39 = vpop.f32.mrb[1].mxu1  ;;  %v1893_v55 = vrot.slane %v1891_v16, 4 }
 0x104   : > { %v7751_v20 = vpop.f32.mrb[2].mxu0  ;;  %v7755_v60 = vpop.f32.mrb[2].mxu1 }
 0x105   : > { %v5930_v11 = vpop.f32.mrb[3].mxu0  ;;  %v5974_v24 = vpop.f32.mrb[3].mxu1 }
 0x106   : > { %v1885_v11 = vrot.slane %v1883_v59, 4  ;;  %v1890_v24 = vrot.slane %v1888_v62, 3  ;;  %v7867_v59 = vcombine.low %v7781_v21, %v7784_v23  ;;  %v6939_v23 = vld [vmem:[%s9701_s1 + $0x150] sm:$0xff]  }
 0x107   : > { %6096 = vmatmul.mubr.bf16.gmra.mrb[108].mxu1 %v1002_v30  ;;  %6192 = vmatmul.mubr.bf16.gmra.mrb[108].mxu0 %v1387_v31 }
 0x108   : > { %6099 = vmatprep.mubr.msk.bf16.mxu1 %vm7066_vm0, %v9707_v1  ;;  %6195 = vmatprep.mubr.msk.bf16.mxu0 %vm7066_vm0, %v9707_v1  ;;  %v1886_v13 = vor.u32 %v1885_v11, %v1882_v29  ;;  %9779 = vst [vmem:[#allocation8_spill] sm:$0xff] %v7867_v59 }
 0x10a   : > { %v7764_v28 = vpop.f32.mrb[4].mxu0  ;;  %v7766_v26 = vpop.f32.mrb[4].mxu1 }
 0x10b   : > { %v5933_v17 = vpop.f32.mrb[5].mxu0  ;;  %v5977_v46 = vpop.f32.mrb[5].mxu1 }
 0x10c   : > { %v7771_v42 = vpop.f32.mrb[6].mxu0  ;;  %v7773_v36 = vpop.f32.mrb[6].mxu1  ;;  %v1894_v17 = vor.u32 %v1893_v55, %v1890_v24  ;;  %v1897_v46 = vshrl.u32 %v5455_v7, 16 }
 0x10d   : > { %v5934_v58 = vpop.f32.mrb[7].mxu0  ;;  %v5978_v4 = vpop.f32.mrb[7].mxu1 }
 0x10e   : > { %v1895_v4 = vsel %vm1311_vm3, %v1886_v13, %v1894_v17  ;;  %v1899_v15 = vrot.slane %v1897_v46, 3  ;;  %v7893_v13 = vld [vmem:[%s7146_s10 + $0x30] sm:$0xf] }
 0x10f   : > { %6100 = vmatmul.mubr.bf16.gmra.mrb[112].mxu1 %v1011_v50  ;;  %6196 = vmatmul.mubr.bf16.gmra.mrb[112].mxu0 %v1391_v54  ;;  %v1900_v50 = vshll.u32 %v5455_v7, 16  ;;  %v7828_v54 = vld [vmem:[%s7146_s10 + $0x20] sm:$0xf] }
 0x110   : > { %6103 = vmatprep.mubr.msk.bf16.mxu1 %vm7066_vm0, %v9707_v1  ;;  %6199 = vmatprep.mubr.msk.bf16.mxu0 %vm7066_vm0, %v9707_v1  ;;  %v5456_v12 = vcombine.low %v7828_v54, %v7831_v8 }
 0x112   : > { %v7789_v51 = vpop.f32.mrb[8].mxu0  ;;  %v7791_v52 = vpop.f32.mrb[8].mxu1  ;;  %v1906_v0 = vshrl.u32 %v5456_v12, 16  ;;  %v1909_v2 = vshll.u32 %v5456_v12, 16 }
 0x113   : > { %v5937_v56 = vpop.f32.mrb[9].mxu0  ;;  %v5981_v47 = vpop.f32.mrb[9].mxu1 }
 0x114   : > { %v7794_v57 = vpop.f32.mrb[10].mxu0  ;;  %v7798_v63 = vpop.f32.mrb[10].mxu1  ;;  %v6923_v47 = vld [vmem:[%s9701_s1 + $0x140] sm:$0xff]   ;;  %v1911_v29 = vrot.slane %v1909_v2, 4 }
 0x115   : > { %9773 = vst [vmem:[#allocation2_spill] sm:$0xff] %v7798_v63  ;;  %v5938_v32 = vpop.f32.mrb[11].mxu0  ;;  %v5982_v34 = vpop.f32.mrb[11].mxu1 }
 0x117   : > { %6104 = vmatmul.mubr.bf16.gmra.mrb[116].mxu1 %v1020_v61  ;;  %6200 = vmatmul.mubr.bf16.gmra.mrb[116].mxu0 %v1395_v14  ;;  %v7852_v61 = vld [vmem:[%s7146_s10 + $0x28] sm:$0xf]  ;;  %v7855_v14 = vld [vmem:[%s7146_s10 + $0x2c] sm:$0xf] }
 0x118   : > { %6107 = vmatprep.mubr.msk.bf16.mxu1 %vm7066_vm0, %v9707_v1  ;;  %6203 = vmatprep.mubr.msk.bf16.mxu0 %vm7066_vm0, %v9707_v1  ;;  %v5457_v11 = vcombine.low %v7852_v61, %v7855_v14 }
 0x11a   : > { %v7812_v38 = vpop.f32.mrb[12].mxu0  ;;  %v7814_v39 = vpop.f32.mrb[12].mxu1  ;;  %v1915_v7 = vshrl.u32 %v5457_v11, 16 }
 0x11b   : > { %9774 = vst [vmem:[#allocation3_spill] sm:$0xff] %v7814_v39  ;;  %v5941_v35 = vpop.f32.mrb[13].mxu0  ;;  %v5985_v3 = vpop.f32.mrb[13].mxu1 }
 0x11c   : > { %v7817_v30 = vpop.f32.mrb[14].mxu0  ;;  %v7819_v31 = vpop.f32.mrb[14].mxu1  ;;  %v6926_v3 = vld [vmem:[%s9701_s1 + $0x180] sm:$0xff]  }
 0x11d   : > { %9775 = vst [vmem:[#allocation4_spill] sm:$0xff] %v7819_v31  ;;  %v5942_v10 = vpop.f32.mrb[15].mxu0  ;;  %v5986_v41 = vpop.f32.mrb[15].mxu1 }
 0x11e   : > { %v1918_v10 = vshll.u32 %v5457_v11, 16  ;;  %v6932_v41 = vld [vmem:[%s9701_s1 + $0x188] sm:$0xff]  }
 0x11f   : > { %6108 = vmatmul.mubr.bf16.gmra.mrb[120].mxu1 %v1019_v53  ;;  %6204 = vmatmul.mubr.bf16.gmra.mrb[120].mxu0 %v1404_v22  ;;  %v1902_v53 = vrot.slane %v1900_v50, 4  ;;  %v1908_v22 = vrot.slane %v1906_v0, 3 }
 0x120   : > { %6207 = vmatprep.mubr.msk.bf16.mxu0 %vm7066_vm0, %v9707_v1  ;;  %6227 = vmatprep.mubr.msk.bf16.mxu1 %vm7066_vm0, %v9707_v1 }
 0x121   : > { %v1903_v49 = vor.u32 %v1902_v53, %v1899_v15  ;;  %v1912_v55 = vor.u32 %v1911_v29, %v1908_v22  ;;  %v7907_v15 = vcombine.low %v7787_v48, %v7807_v19  ;;  %v6940_v48 = vld [vmem:[%s9701_s1 + $0x190] sm:$0xff]   ;;  %v6953_v19 = vld [vmem:[%s9701_s1 + $0x160] sm:$0xff]   ;;  %v6948_v22 = vld [vmem:[%s9701_s1 + $0x198] sm:$0xff]  }
 0x122   : > { %v7833_v9 = vpop.f32.mrb[16].mxu0  ;;  %v7835_v37 = vpop.f32.mrb[16].mxu1 }
 0x123   : > { %9776 = vst [vmem:[#allocation5_spill] sm:$0xff] %v7835_v37  ;;  %v5945_v43 = vpop.f32.mrb[17].mxu0  ;;  %v5989_v45 = vpop.f32.mrb[17].mxu1  ;;  %v1904_v16 = vsel %vm1311_vm3, %v1894_v17, %v1903_v49  ;;  %v7896_v17 = vld [vmem:[%s7146_s10 + $0x34] sm:$0xf]  ;;  %9782 = vst [vmem:[#allocation11_spill] sm:$0xff] %v7907_v15  ;;  %v1913_v12 = vsel %vm1311_vm3, %v1903_v49, %v1912_v55 }
 0x124   : > { %v7837_v58 = vpop.f32.mrb[18].mxu0  ;;  %v7840_v40 = vpop.f32.mrb[18].mxu1  ;;  %v6945_v43 = vld [vmem:[%s9701_s1 + $0x158] sm:$0xff]   ;;  %v5458_v0 = vcombine.low %v7893_v13, %v7896_v17 }
 0x125   : > { %9777 = vst [vmem:[#allocation6_spill] sm:$0xff] %v7840_v40  ;;  %v5946_v18 = vpop.f32.mrb[19].mxu0  ;;  %v5990_v56 = vpop.f32.mrb[19].mxu1 }
 0x126   : > { %v1917_v56 = vrot.slane %v1915_v7, 3  ;;  %v7949_v7 = vcombine.low %v7810_v44, %v7828_v54  ;;  %v6954_v44 = vld [vmem:[%s9701_s1 + $0x1a0] sm:$0xff]   ;;  %v6967_v54 = vld [vmem:[%s9701_s1 + $0x170] sm:$0xff]  }
 0x127   : > { %6208 = vmatmul.mubr.bf16.gmra.mrb[124].mxu0 %v1403_v33  ;;  %6228 = vmatmul.mubr.bf16.vlgmr.msra.gmra.mrb[124].mxu1 %v1895_v4 }
 0x128   : > { %6231 = vmatprep.mubr.msk.bf16.mxu1 %vm7066_vm0, %v9707_v1  ;;  %6327 = vmatprep.mubr.msk.bf16.mxu0 %vm7066_vm0, %v9707_v1  ;;  %v2767_v37 = vshrl.u32 %v7949_v7, 16 }
 0x129   : > { %6412 = vmatpush3.bf16.msra.mxu1 %v6923_v47  ;;  %v1920_v47 = vrot.slane %v1918_v10, 4 }
 0x12a   : > { %v7860_v32 = vpop.f32.mrb[20].mxu0  ;;  %v7862_v34 = vpop.f32.mrb[20].mxu1  ;;  %6413 = vmatprep.subr.bf16.mxu1 %v9707_v1 }
 0x12b   : > { %9778 = vst [vmem:[#allocation7_spill] sm:$0xff] %v7862_v34  ;;  %v5949_v33 = vpop.f32.mrb[21].mxu0  ;;  %v5993_v6 = vpop.f32.mrb[21].mxu1  ;;  %v1921_v49 = vor.u32 %v1920_v47, %v1917_v56 }
 0x12c   : > { %v7869_v62 = vpop.f32.mrb[22].mxu0  ;;  %v7872_v35 = vpop.f32.mrb[22].mxu1  ;;  %v1924_v33 = vshrl.u32 %v5458_v0, 16  ;;  %v1927_v6 = vshll.u32 %v5458_v0, 16 }
 0x12d   : > { %9780 = vst [vmem:[#allocation9_spill] sm:$0xff] %v7872_v35  ;;  %v5950_v24 = vpop.f32.mrb[23].mxu0  ;;  %v5994_v21 = vpop.f32.mrb[23].mxu1  ;;  %6414 = vmatpush3.bf16.msra.mxu1 %v6931_v5 }
 0x12e   : > { %6415 = vmatprep.subr.bf16.mxu1 %v9707_v1  ;;  %v6961_v24 = vld [vmem:[%s9701_s1 + $0x168] sm:$0xff]  }
 0x12f   : > { %6232 = vmatmul.mubr.bf16.gmra.mrb[128].mxu1 %v1904_v16  ;;  %6328 = vmatmul.mubr.bf16.vlgmr.msra.gmra.mrb[128].mxu0 %v7867_v59  ;;  %v7930_v16 = vld [vmem:[%s7146_s10 + $0x38] sm:$0xf] }
 0x130   : > { %6512 = vmatpush3.bf16.msra.mxu0 %v6926_v3  ;;  %6235 = vmatprep.mubr.msk.bf16.mxu1 %vm7066_vm0, %v9707_v1  ;;  %v7933_v3 = vld [vmem:[%s7146_s10 + $0x3c] sm:$0xf] }
 0x131   : > { %6331 = vmatprep.mubr.msk.bf16.mxu0 %vm7066_vm0, %v9707_v1  ;;  %6513 = vmatprep.subr.bf16.mxu0 %v9707_v1 }
 0x132   : > { %v7898_v46 = vpop.f32.mrb[24].mxu0  ;;  %v7900_v50 = vpop.f32.mrb[24].mxu1  ;;  %6416 = vmatpush3.bf16.msra.mxu1 %v6939_v23 }
 0x133   : > { %9781 = vst [vmem:[#allocation10_spill] sm:$0xff] %v7900_v50  ;;  %v5953_v45 = vpop.f32.mrb[25].mxu0  ;;  %v5997_v4 = vpop.f32.mrb[25].mxu1  ;;  %6417 = vmatprep.subr.bf16.mxu1 %v9707_v1 }
 0x134   : > { %v7910_v53 = vpop.f32.mrb[26].mxu0  ;;  %v7913_v18 = vpop.f32.mrb[26].mxu1  ;;  %6514 = vmatpush3.bf16.msra.mxu0 %v6932_v41  ;;  %v1922_v41 = vsel %vm1311_vm3, %v1912_v55, %v1921_v49  ;;  %v1926_v45 = vrot.slane %v1924_v33, 3  ;;  %v1929_v4 = vrot.slane %v1927_v6, 4 }
 0x135   : > { %9783 = vst [vmem:[#allocation12_spill] sm:$0xff] %v7913_v18  ;;  %v5954_v2 = vpop.f32.mrb[27].mxu0  ;;  %v5998_v5 = vpop.f32.mrb[27].mxu1  ;;  %6515 = vmatprep.subr.bf16.mxu0 %v9707_v1 }
 0x136   : > { %6418 = vmatpush3.bf16.msra.mxu1 %v6945_v43  ;;  %v1930_v55 = vor.u32 %v1929_v4, %v1926_v45  ;;  %v7972_v5 = vld [vmem:[%s7146_s10 + $0x40] sm:$0xf] }
 0x137   : > { %6236 = vmatmul.mubr.bf16.gmra.mrb[132].mxu1 %v1913_v12  ;;  %6332 = vmatmul.mubr.bf16.gmra.mrb[132].mxu0 %v7907_v15  ;;  %v5459_v12 = vcombine.low %v7930_v16, %v7933_v3 }
 0x138   : > { %6239 = vmatprep.mubr.msk.bf16.mxu1 %vm7066_vm0, %v9707_v1  ;;  %6335 = vmatprep.mubr.msk.bf16.mxu0 %vm7066_vm0, %v9707_v1  ;;  %v1931_v45 = vsel %vm1311_vm3, %v1921_v49, %v1930_v55 }
 0x139   : > { %6516 = vmatpush3.bf16.msra.mxu0 %v6940_v48  ;;  %6419 = vmatprep.subr.bf16.mxu1 %v9707_v1  ;;  %v1933_v0 = vshrl.u32 %v5459_v12, 16  ;;  %v1936_v2 = vshll.u32 %v5459_v12, 16  ;;  %v7975_v48 = vld [vmem:[%s7146_s10 + $0x44] sm:$0xf] }
 0x13a   : > { %v7939_v29 = vpop.f32.mrb[28].mxu0  ;;  %v7941_v11 = vpop.f32.mrb[28].mxu1  ;;  %6517 = vmatprep.subr.bf16.mxu0 %v9707_v1  ;;  %6420 = vmatpush3.bf16.msra.mxu1 %v6953_v19  ;;  %v6962_v19 = vld [vmem:[%s9701_s1 + $0x1a8] sm:$0xff]  }
 0x13b   : > { %9784 = vst [vmem:[#allocation13_spill] sm:$0xff] %v7941_v11  ;;  %v5957_v21 = vpop.f32.mrb[29].mxu0  ;;  %v6001_v23 = vpop.f32.mrb[29].mxu1  ;;  %6421 = vmatprep.subr.bf16.mxu1 %v9707_v1  ;;  %v1935_v12 = vrot.slane %v1933_v0, 3 }
 0x13c   : > { %v7952_v10 = vpop.f32.mrb[30].mxu0  ;;  %v7955_v43 = vpop.f32.mrb[30].mxu1  ;;  %v7991_v23 = vcombine.low %v7831_v8, %v7852_v61  ;;  %v6968_v8 = vld [vmem:[%s9701_s1 + $0x1b0] sm:$0xff]  }
 0x13d   : > { %9785 = vst [vmem:[#allocation14_spill] sm:$0xff] %v7955_v43  ;;  %v5958_v56 = vpop.f32.mrb[31].mxu0  ;;  %v6002_v47 = vpop.f32.mrb[31].mxu1  ;;  %6518 = vmatpush3.bf16.msra.mxu0 %v6948_v22  ;;  %v6975_v22 = vld [vmem:[%s9701_s1 + $0x178] sm:$0xff]  }
 0x13e   : > { %6519 = vmatprep.subr.bf16.mxu0 %v9707_v1  ;;  %6422 = vmatpush3.bf16.msra.mxu1 %v6961_v24  ;;  %v1938_v56 = vrot.slane %v1936_v2, 4  ;;  %v5460_v47 = vcombine.low %v7972_v5, %v7975_v48  ;;  %v8011_v2 = vld [vmem:[%s7146_s10 + $0x48] sm:$0xf] }
 0x13f   : > { %6240 = vmatmul.mubr.bf16.gmra.mrb[136].mxu1 %v1922_v41  ;;  %6336 = vmatmul.mubr.bf16.gmra.mrb[136].mxu0 %v7949_v7 }
 0x140   : > { %6243 = vmatprep.mubr.msk.bf16.mxu1 %vm7066_vm0, %v9707_v1  ;;  %6339 = vmatprep.mubr.msk.bf16.mxu0 %vm7066_vm0, %v9707_v1  ;;  %v1939_v61 = vor.u32 %v1938_v56, %v1935_v12  ;;  %v1942_v49 = vshrl.u32 %v5460_v47, 16  ;;  %v1945_v0 = vshll.u32 %v5460_v47, 16  ;;  %v8027_v56 = vcombine.low %v7855_v14, %v7893_v13 }
 0x141   : > { %6520 = vmatpush3.bf16.msra.mxu0 %v6954_v44  ;;  %6423 = vmatprep.subr.bf16.mxu1 %v9707_v1 }
 0x142   : > { %v7981_v33 = vpop.f32.mrb[32].mxu0  ;;  %v7983_v6 = vpop.f32.mrb[32].mxu1  ;;  %6521 = vmatprep.subr.bf16.mxu0 %v9707_v1  ;;  %6424 = vmatpush3.bf16.msra.mxu1 %v6967_v54 }
 0x143   : > { %9786 = vst [vmem:[#allocation15_spill] sm:$0xff] %v7983_v6  ;;  %v5961_v24 = vpop.f32.mrb[33].mxu0  ;;  %v6005_v21 = vpop.f32.mrb[33].mxu1  ;;  %6425 = vmatprep.subr.bf16.mxu1 %v9707_v1  ;;  %v1947_v6 = vrot.slane %v1945_v0, 4 }
 0x144   : > { %v7994_v41 = vpop.f32.mrb[34].mxu0  ;;  %v7997_v4 = vpop.f32.mrb[34].mxu1 }
 0x145   : > { %9787 = vst [vmem:[#allocation16_spill] sm:$0xff] %v7997_v4  ;;  %v5962_v44 = vpop.f32.mrb[35].mxu0  ;;  %v6006_v54 = vpop.f32.mrb[35].mxu1  ;;  %6522 = vmatpush3.bf16.msra.mxu0 %v6962_v19  ;;  %v8014_v19 = vld [vmem:[%s7146_s10 + $0x4c] sm:$0xf]  ;;  %v1944_v4 = vrot.slane %v1942_v49, 3 }
 0x146   : > { %6523 = vmatprep.subr.bf16.mxu0 %v9707_v1  ;;  %6426 = vmatpush3.bf16.msra.mxu1 %v6975_v22  ;;  %v6976_v22 = vld [vmem:[%s9701_s1 + $0x1b8] sm:$0xff]   ;;  %v5461_v47 = vcombine.low %v8011_v2, %v8014_v19  ;;  %v1940_v54 = vsel %vm1311_vm3, %v1930_v55, %v1939_v61 }
 0x147   : > { %6244 = vmatmul.mubr.bf16.gmra.mrb[140].mxu1 %v1931_v45  ;;  %6340 = vmatmul.mubr.bf16.gmra.mrb[140].mxu0 %v7991_v23 }
 0x148   : > { %6247 = vmatprep.mubr.msk.bf16.mxu1 %vm7066_vm0, %v9707_v1  ;;  %6343 = vmatprep.mubr.msk.bf16.mxu0 %vm7066_vm0, %v9707_v1  ;;  %v1951_v14 = vshrl.u32 %v5461_v47, 16  ;;  %v1954_v13 = vshll.u32 %v5461_v47, 16  ;;  %v8053_v47 = vcombine.low %v7896_v17, %v7930_v16  ;;  %v2763_v17 = vshll.u32 %v7949_v7, 16 }
 0x149   : > { %6524 = vmatpush3.bf16.msra.mxu0 %v6968_v8  ;;  %6611 = vmatprep.subr.bf16.mxu1 %v9707_v1 }
 0x14a   : > { %v8020_v24 = vpop.f32.mrb[36].mxu0  ;;  %v8022_v21 = vpop.f32.mrb[36].mxu1  ;;  %6525 = vmatprep.subr.bf16.mxu0 %v9707_v1  ;;  %v8035_v1 = vld [vmem:[%s7146_s10 + $0x50] sm:$0xf]  ;;  %v1956_v11 = vrot.slane %v1954_v13, 4  ;;  %v8085_v35 = vrot.slane %v2763_v17, 1 }
 0x14b   : > { %9788 = vst [vmem:[#allocation17_spill] sm:$0xff] %v8022_v21  ;;  %v5965_v45 = vpop.f32.mrb[37].mxu0  ;;  %v6009_v12 = vpop.f32.mrb[37].mxu1  ;;  %v3862_v13 = vld [vmem:[%s7146_s10 + $0x14] sm:$0xe] }
 0x14c   : > { %v8031_v44 = vpop.f32.mrb[38].mxu0  ;;  %v826_v8 = vpop.f32.mrb[38].mxu1  ;;  %v8038_v45 = vld [vmem:[%s7146_s10 + $0x54] sm:$0xf]  ;;  %v9789_v12 = vmov 0.0   ;;  %9792 = vst [vmem:[#allocation20_spill] sm:$0xff] %v8085_v35 }
 0x14d   : > { %v5966_v43 = vpop.f32.mrb[39].mxu0  ;;  %v6010_v21 = vpop.f32.mrb[39].mxu1  ;;  %6526 = vmatpush3.bf16.msra.mxu0 %v6976_v22  ;;  %v5462_v55 = vcombine.low %v8035_v1, %v8038_v45  ;;  %v1953_v8 = vrot.slane %v1951_v14, 3  ;;  %v8062_v14 = vld [vmem:[%s7146_s10 + $0x18] sm:$0xf] }
 0x14e   : > { %6711 = vmatprep.subr.bf16.mxu0 %v9789_v12  ;;  %v1948_v43 = vor.u32 %v1947_v6, %v1944_v4  ;;  %9790 = vst [vmem:[#allocation18_spill] sm:$0xff] %v8062_v14 }
 0x14f   : > { %6248 = vmatmul.mubr.bf16.gmra.mrb[144].mxu1 %v1940_v54  ;;  %6344 = vmatmul.mubr.bf16.gmra.mrb[144].mxu0 %v8027_v56  ;;  %v1957_v16 = vor.u32 %v1956_v11, %v1953_v8 }
 0x150   : > { %6251 = vmatprep.mubr.msk.bf16.mxu1 %vm7066_vm0, %v9789_v12  ;;  %6347 = vmatprep.mubr.msk.bf16.mxu0 %vm7066_vm0, %v9789_v12  ;;  %v1949_v4 = vsel %vm1311_vm3, %v1939_v61, %v1948_v43  ;;  %v8073_v61 = vld [vmem:[%s7146_s10 + $0x5c] sm:$0xf] }
 0x152   : > { %v8048_v49 = vpop.f32.mrb[40].mxu0  ;;  %v1124_v0 = vpop.f32.mrb[40].mxu1 }
 0x153   : > { %v1125_v22 = vadd.f32 %v1124_v0, %v7747_v25  ;;  %v5969_v21 = vpop.f32.mrb[41].mxu0  ;;  %v6029_v54 = vpop.f32.mrb[41].mxu1 }
 0x154   : > { %v8055_v18 = vpop.f32.mrb[42].mxu0  ;;  %v1127_v6 = vpop.f32.mrb[42].mxu1  ;;  %v1960_v21 = vshrl.u32 %v5462_v55, 16  ;;  %v1963_v54 = vshll.u32 %v5462_v55, 16  ;;  %v8076_v55 = vcombine.low %v3862_v13, %v8062_v14 }
 0x155   : > { %v1128_v50 = vadd.f32 %v1127_v6, %v7751_v20  ;;  %v5970_v25 = vpop.f32.mrb[43].mxu0  ;;  %v6030_v0 = vpop.f32.mrb[43].mxu1  ;;  %v8070_v20 = vld [vmem:[%s7146_s10 + $0x58] sm:$0xf]  ;;  %v8080_v6 = vcombine.low %v7933_v3, %v7972_v5  ;;  %v1958_v3 = vsel %vm1311_vm3, %v1948_v43, %v1957_v16 }
 0x156   : > { %9791 = vst [vmem:[#allocation19_spill] sm:$0xff] %v8076_v55  ;;  %v1962_v11 = vrot.slane %v1960_v21, 3  ;;  %v1965_v8 = vrot.slane %v1963_v54, 4  ;;  %v4258_v34 = vshrl.u32 %v8076_v55, 16  ;;  %v4261_v40 = vshll.u32 %v8076_v55, 16 }
 0x157   : > { %6252 = vmatmul.mubr.bf16.gmra.mrb[148].mxu1 %v1949_v4  ;;  %6348 = vmatmul.mubr.bf16.gmra.mrb[148].mxu0 %v8053_v47  ;;  %v8083_v4 = vld [vmem:[%s7146_s10 + $0x1c] sm:$0xff]   ;;  %v5463_v5 = vcombine.low %v8070_v20, %v8073_v61  ;;  %v2771_v21 = vshll.u32 %v7991_v23, 16  ;;  %v2769_v55 = vor.u32 %v2767_v37, %v8085_v35 }
 0x158   : > { %6255 = vmatprep.mubr.msk.bf16.mxu1 %vm7066_vm0, %v9789_v12  ;;  %6351 = vmatprep.mubr.msk.bf16.mxu0 %vm7066_vm0, %v9789_v12  ;;  %v4260_v15 = vrot.slane %v4258_v34, 1  ;;  %v4263_v39 = vrot.slane %v4261_v40, 2  ;;  %v9716_v59 = vshll.u32 %v8083_v4, 16  ;;  %v9715_v34 = vshrl.u32 %v8083_v4, 16  ;;  %v8107_v40 = vld [vmem:[%s7146_s10 + $0x60] sm:$0xf] }
 0x159   : > { %v1969_v37 = vshrl.u32 %v5463_v5, 16 }
 0x15a   : > { %v1132_v25 = vpop.f32.mrb[44].mxu1  ;;  %v1508_v0 = vpop.f32.mrb[44].mxu0 }
 0x15b   : > { %v1133_v13 = vadd.f32 %v1132_v25, %v7764_v28  ;;  %v6033_v31 = vpop.f32.mrb[45].mxu1  ;;  %v6129_v14 = vpop.f32.mrb[45].mxu0  ;;  %v8096_v7 = vadd.f32 %v1508_v0, %v1125_v22  ;;  %v2773_v25 = vrot.slane %v2771_v21, 1  ;;  %v8110_v22 = vld [vmem:[%s7146_s10 + $0x64] sm:$0xf]  ;;  %v4265_v0 = vrot.slane %v9715_v34, 1 }
 0x15c   : > { %v1135_v54 = vpop.f32.mrb[46].mxu1  ;;  %v1511_v17 = vpop.f32.mrb[46].mxu0  ;;  %v8099_v14 = vor.u32 %v1965_v8, %v1962_v11  ;;  %v8116_v11 = vld [vmem:[%s7146_s10 + $0x24] sm:$0xff]   ;;  %v4264_v8 = vor.u32 %v4263_v39, %v4260_v15  ;;  %v8130_v21 = vcombine.low %v7975_v48, %v8011_v2  ;;  %v2775_v15 = vshrl.u32 %v7991_v23, 16 }
 0x15d   : > { %9793 = vst [vmem:[#allocation21_spill] sm:$0xff] %v8096_v7  ;;  %v1136_v28 = vadd.f32 %v1135_v54, %v7771_v42  ;;  %v6130_v31 = vpop.f32.mrb[47].mxu0  ;;  %v6034_v43 = vpop.f32.mrb[47].mxu1  ;;  %v8103_v63 = vadd.f32 %v1511_v17, %v1128_v50  ;;  %v8113_v42 = vsel %vm2746_vm4, %v2769_v55, %v2773_v25  ;;  %v1972_v50 = vshll.u32 %v5463_v5, 16 }
 0x15e   : > { %9795 = vst [vmem:[#allocation23_spill] sm:$0xff] %v8113_v42  ;;  %v1967_v55 = vsel %vm1311_vm3, %v1957_v16, %v8099_v14  ;;  %v5464_v5 = vcombine.low %v8107_v40, %v8110_v22  ;;  %v2779_v31 = vshll.u32 %v8027_v56, 16  ;;  %v9719_v48 = vshll.u32 %v8116_v11, 16 }
 0x15f   : > { %9794 = vst [vmem:[#allocation22_spill] sm:$0xff] %v8103_v63  ;;  %6256 = vmatmul.mubr.bf16.gmra.mrb[152].mxu1 %v1958_v3  ;;  %6352 = vmatmul.mubr.bf16.gmra.mrb[152].mxu0 %v8080_v6  ;;  %v4266_v3 = vrot.slane %v9716_v59, 2  ;;  %v1971_v59 = vrot.slane %v1969_v37, 3  ;;  %v1974_v42 = vrot.slane %v1972_v50, 4  ;;  %v2777_v23 = vor.u32 %v2775_v15, %v2773_v25 }
 0x160   : > { %6259 = vmatprep.mubr.msk.bf16.mxu1 %vm7066_vm0, %v9789_v12  ;;  %6355 = vmatprep.mubr.msk.bf16.mxu0 %vm7066_vm0, %v9789_v12  ;;  %v9718_v37 = vshrl.u32 %v8116_v11, 16  ;;  %v1978_v50 = vshrl.u32 %v5464_v5, 16  ;;  %v1981_v25 = vshll.u32 %v5464_v5, 16 }
 0x161   : > { %v8134_v39 = vor.u32 %v4266_v3, %v4265_v0  ;;  %v2781_v3 = vrot.slane %v2779_v31, 1  ;;  %v8175_v31 = vcombine.low %v8014_v19, %v8035_v1 }
 0x162   : > { %v1140_v54 = vpop.f32.mrb[48].mxu1  ;;  %v1516_v17 = vpop.f32.mrb[48].mxu0 }
 0x163   : > { %9796 = vst [vmem:[#allocation24_spill] sm:$0xff] %v8134_v39  ;;  %v1141_v43 = vadd.f32 %v1140_v54, %v7789_v51  ;;  %v6037_v34 = vpop.f32.mrb[49].mxu1  ;;  %v6133_v16 = vpop.f32.mrb[49].mxu0  ;;  %v8140_v2 = vadd.f32 %v1516_v17, %v1133_v13  ;;  %v8144_v0 = vsel %vm4256_vm5, %v4264_v8, %v8134_v39  ;;  %v4270_v13 = vrot.slane %v9719_v48, 2  ;;  %v8169_v8 = vld [vmem:[%s7146_s10 + $0x6c] sm:$0xf] }
 0x164   : > { %v1143_v63 = vpop.f32.mrb[50].mxu1  ;;  %v1519_v7 = vpop.f32.mrb[50].mxu0  ;;  %9797 = vst [vmem:[#allocation25_spill] sm:$0xff] %v8144_v0  ;;  %v8153_v17 = vsel %vm2746_vm4, %v2777_v23, %v2781_v3  ;;  %v1980_v16 = vrot.slane %v1978_v50, 3  ;;  %v2783_v23 = vshrl.u32 %v8027_v56, 16 }
 0x165   : > { %v1144_v35 = vadd.f32 %v1143_v63, %v7794_v57  ;;  %v6134_v51 = vpop.f32.mrb[51].mxu0  ;;  %v6038_v34 = vpop.f32.mrb[51].mxu1  ;;  %v8150_v54 = vadd.f32 %v1519_v7, %v1136_v28  ;;  %v8157_v57 = vld [vmem:[%s7146_s10 + $0x2c] sm:$0xff]   ;;  %v4269_v63 = vrot.slane %v9718_v37, 1  ;;  %v1975_v7 = vor.u32 %v1974_v42, %v1971_v59  ;;  %v8166_v28 = vld [vmem:[%s7146_s10 + $0x68] sm:$0xf] }
 0x166   : > { %v2787_v51 = vshll.u32 %v8053_v47, 16  ;;  %v1983_v37 = vrot.slane %v1981_v25, 4  ;;  %v9721_v48 = vshll.u32 %v8157_v57, 16  ;;  %v5465_v19 = vcombine.low %v8166_v28, %v8169_v8 }
 0x167   : > { %9798 = vst [vmem:[#allocation26_spill] sm:$0xff] %v8150_v54  ;;  %6260 = vmatmul.mubr.bf16.gmra.mrb[156].mxu1 %v1967_v55  ;;  %6356 = vmatmul.mubr.bf16.gmra.mrb[156].mxu0 %v8130_v21  ;;  %v8171_v55 = vor.u32 %v4270_v13, %v4269_v63  ;;  %v1976_v1 = vsel %vm1311_vm3, %v8099_v14, %v1975_v7 }
 0x168   : > { %6263 = vmatprep.mubr.msk.bf16.mxu1 %vm7066_vm0, %v9789_v12  ;;  %6359 = vmatprep.mubr.msk.bf16.mxu0 %vm7066_vm0, %v9789_v12  ;;  %v2785_v56 = vor.u32 %v2783_v23, %v2781_v3  ;;  %v1984_v14 = vor.u32 %v1983_v37, %v1980_v16  ;;  %v8198_v3 = vld [vmem:[%s7146_s10 + $0x70] sm:$0xf]  ;;  %v8201_v23 = vld [vmem:[%s7146_s10 + $0x74] sm:$0xf] }
 0x169   : > { %9799 = vst [vmem:[#allocation27_spill] sm:$0xff] %v8171_v55 }
 0x16a   : > { %v1148_v15 = vpop.f32.mrb[52].mxu1  ;;  %v1524_v5 = vpop.f32.mrb[52].mxu0 }
 0x16b   : > { %v1149_v34 = vadd.f32 %v1148_v15, %v7812_v38  ;;  %v6041_v59 = vpop.f32.mrb[53].mxu1  ;;  %v6137_v42 = vpop.f32.mrb[53].mxu0  ;;  %v8181_v13 = vadd.f32 %v1524_v5, %v1141_v43  ;;  %v2789_v38 = vrot.slane %v2787_v51, 1  ;;  %v4274_v43 = vrot.slane %v9721_v48, 2 }
 0x16c   : > { %v1151_v63 = vpop.f32.mrb[54].mxu1  ;;  %v1527_v0 = vpop.f32.mrb[54].mxu0  ;;  %v9720_v5 = vshrl.u32 %v8157_v57, 16 }
 0x16d   : > { %9800 = vst [vmem:[#allocation28_spill] sm:$0xff] %v8181_v13  ;;  %v1152_v50 = vadd.f32 %v1151_v63, %v7817_v30  ;;  %v6138_v25 = vpop.f32.mrb[55].mxu0  ;;  %v6042_v15 = vpop.f32.mrb[55].mxu1  ;;  %v8191_v59 = vadd.f32 %v1527_v0, %v1144_v35  ;;  %v8194_v42 = vsel %vm2746_vm4, %v2785_v56, %v2789_v38  ;;  %v8204_v30 = vld [vmem:[%s7146_s10 + $0x34] sm:$0xff]   ;;  %v1987_v35 = vshrl.u32 %v5465_v19, 16 }
 0x16e   : > { %v4273_v51 = vrot.slane %v9720_v5, 1  ;;  %v1990_v0 = vshll.u32 %v5465_v19, 16  ;;  %v5466_v56 = vcombine.low %v8198_v3, %v8201_v23  ;;  %v2791_v25 = vshrl.u32 %v8053_v47, 16 }
 0x16f   : > { %9801 = vst [vmem:[#allocation29_spill] sm:$0xff] %v8191_v59  ;;  %6264 = vmatmul.mubr.bf16.gmra.mrb[160].mxu1 %v1976_v1  ;;  %6360 = vmatmul.mubr.bf16.gmra.mrb[160].mxu0 %v8175_v31  ;;  %v8216_v1 = vcombine.low %v8038_v45, %v8070_v20  ;;  %v2795_v15 = vshll.u32 %v8080_v6, 16  ;;  %v1985_v19 = vsel %vm1311_vm3, %v1975_v7, %v1984_v14  ;;  %v9725_v7 = vshrl.u32 %v8204_v30, 16 }
 0x170   : > { %6267 = vmatprep.mubr.msk.bf16.mxu1 %vm7066_vm0, %v9789_v12  ;;  %6363 = vmatprep.mubr.msk.bf16.mxu0 %vm7066_vm0, %v9789_v12  ;;  %v8212_v63 = vor.u32 %v4274_v43, %v4273_v51  ;;  %v9726_v43 = vshll.u32 %v8204_v30, 16  ;;  %v1992_v13 = vrot.slane %v1990_v0, 4  ;;  %v2793_v39 = vor.u32 %v2791_v25, %v2789_v38 }
 0x171   : > { %v2797_v55 = vrot.slane %v2795_v15, 1 }
 0x172   : > { %9802 = vst [vmem:[#allocation30_spill] sm:$0xff] %v8212_v63  ;;  %v1156_v37 = vpop.f32.mrb[56].mxu1  ;;  %v1532_v16 = vpop.f32.mrb[56].mxu0  ;;  %v1989_v63 = vrot.slane %v1987_v35, 3  ;;  %v8237_v35 = vld [vmem:[%s7146_s10 + $0x3c] sm:$0xff]  }
 0x173   : > { %v1157_v5 = vadd.f32 %v1156_v37, %v7833_v9  ;;  %v6045_v48 = vpop.f32.mrb[57].mxu1  ;;  %v6141_v59 = vpop.f32.mrb[57].mxu0  ;;  %v8225_v51 = vadd.f32 %v1532_v16, %v1149_v34  ;;  %v1996_v34 = vshrl.u32 %v5466_v56, 16  ;;  %v8234_v37 = vsel %vm2746_vm4, %v2793_v39, %v2797_v55  ;;  %v8250_v39 = vld [vmem:[%s7146_s10 + $0x7c] sm:$0xf] }
 0x174   : > { %v1159_v45 = vpop.f32.mrb[58].mxu1  ;;  %v1535_v20 = vpop.f32.mrb[58].mxu0  ;;  %v4278_v48 = vrot.slane %v9726_v43, 2  ;;  %v1993_v38 = vor.u32 %v1992_v13, %v1989_v63  ;;  %v2799_v63 = vshrl.u32 %v8080_v6, 16 }
 0x175   : > { %9803 = vst [vmem:[#allocation31_spill] sm:$0xff] %v8225_v51  ;;  %v1160_v47 = vadd.f32 %v1159_v45, %v7837_v58  ;;  %v6142_v54 = vpop.f32.mrb[59].mxu0  ;;  %v6046_v9 = vpop.f32.mrb[59].mxu1  ;;  %v8231_v59 = vadd.f32 %v1535_v20, %v1152_v50  ;;  %v1999_v58 = vshll.u32 %v5466_v56, 16  ;;  %v8247_v50 = vld [vmem:[%s7146_s10 + $0x78] sm:$0xf]  ;;  %v8256_v56 = vcombine.low %v8073_v61, %v8107_v40 }
 0x176   : > { %v4277_v54 = vrot.slane %v9725_v7, 1  ;;  %v1998_v15 = vrot.slane %v1996_v34, 3  ;;  %v1994_v43 = vsel %vm1311_vm3, %v1984_v14, %v1993_v38  ;;  %v5467_v61 = vcombine.low %v8247_v50, %v8250_v39  ;;  %v8278_v51 = vld [vmem:[%s7146_s10 + $0x80] sm:$0xf] }
 0x177   : > { %9804 = vst [vmem:[#allocation32_spill] sm:$0xff] %v8231_v59  ;;  %6268 = vmatmul.mubr.bf16.gmra.mrb[164].mxu1 %v1985_v19  ;;  %6364 = vmatmul.mubr.bf16.gmra.mrb[164].mxu0 %v8216_v1  ;;  %v9729_v19 = vshll.u32 %v8237_v35, 16  ;;  %v2001_v13 = vrot.slane %v1999_v58, 4 }
 0x178   : > { %6271 = vmatprep.mubr.msk.bf16.mxu1 %vm7066_vm0, %v9789_v12  ;;  %6367 = vmatprep.mubr.msk.bf16.mxu0 %vm7066_vm0, %v9789_v12  ;;  %v8252_v0 = vor.u32 %v4278_v48, %v4277_v54  ;;  %v2803_v48 = vshll.u32 %v8130_v21, 16 }
 0x179   : > { %v2002_v59 = vor.u32 %v2001_v13, %v1998_v15  ;;  %v8296_v13 = vcombine.low %v8110_v22, %v8166_v28 }
 0x17a   : > { %9805 = vst [vmem:[#allocation33_spill] sm:$0xff] %v8252_v0  ;;  %v1164_v16 = vpop.f32.mrb[60].mxu1  ;;  %v1540_v25 = vpop.f32.mrb[60].mxu0  ;;  %v8272_v0 = vld [vmem:[%s7146_s10 + $0x44] sm:$0xff]  }
 0x17b   : > { %v1165_v45 = vadd.f32 %v1164_v16, %v7860_v32  ;;  %v6049_v20 = vpop.f32.mrb[61].mxu1  ;;  %v6145_v9 = vpop.f32.mrb[61].mxu0  ;;  %v4282_v32 = vrot.slane %v9729_v19, 2  ;;  %v8267_v40 = vadd.f32 %v1540_v25, %v1157_v5  ;;  %v2801_v16 = vor.u32 %v2799_v63, %v2797_v55  ;;  %v8281_v5 = vld [vmem:[%s7146_s10 + $0x84] sm:$0xf] }
 0x17c   : > { %v1167_v54 = vpop.f32.mrb[62].mxu1  ;;  %v1543_v7 = vpop.f32.mrb[62].mxu0  ;;  %v2805_v20 = vrot.slane %v2803_v48, 1  ;;  %v9728_v9 = vshrl.u32 %v8237_v35, 16  ;;  %v5468_v63 = vcombine.low %v8278_v51, %v8281_v5  ;;  %v9732_v48 = vshll.u32 %v8272_v0, 16 }
 0x17d   : > { %9806 = vst [vmem:[#allocation34_spill] sm:$0xff] %v8267_v40  ;;  %v1168_v34 = vadd.f32 %v1167_v54, %v7869_v62  ;;  %v6146_v58 = vpop.f32.mrb[63].mxu0  ;;  %v6050_v6 = vpop.f32.mrb[63].mxu1  ;;  %v8274_v14 = vadd.f32 %v1543_v7, %v1160_v47  ;;  %v2008_v47 = vshll.u32 %v5467_v61, 16  ;;  %v8312_v40 = vld [vmem:[%s7146_s10 + $0x4c] sm:$0xff]  }
 0x17e   : > { %v8284_v62 = vsel %vm2746_vm4, %v2801_v16, %v2805_v20  ;;  %v4281_v55 = vrot.slane %v9728_v9, 1  ;;  %v2003_v16 = vsel %vm1311_vm3, %v1993_v38, %v2002_v59  ;;  %v4286_v19 = vrot.slane %v9732_v48, 2 }
 0x17f   : > { %9807 = vst [vmem:[#allocation35_spill] sm:$0xff] %v8274_v14  ;;  %6272 = vmatmul.mubr.bf16.gmra.mrb[168].mxu1 %v1994_v43  ;;  %6368 = vmatmul.mubr.bf16.gmra.mrb[168].mxu0 %v8256_v56  ;;  %v2005_v43 = vshrl.u32 %v5467_v61, 16  ;;  %v2807_v61 = vshrl.u32 %v8130_v21, 16  ;;  %v2010_v28 = vrot.slane %v2008_v47, 4  ;;  %v9731_v21 = vshrl.u32 %v8272_v0, 16 }
 0x180   : > { %6275 = vmatprep.mubr.msk.bf16.mxu1 %vm7066_vm0, %v9789_v12  ;;  %6371 = vmatprep.mubr.msk.bf16.mxu0 %vm7066_vm0, %v9789_v12  ;;  %v8292_v7 = vor.u32 %v4282_v32, %v4281_v55  ;;  %v2811_v32 = vshll.u32 %v8175_v31, 16  ;;  %v2014_v14 = vshrl.u32 %v5468_v63, 16 }
 0x181   : > { %v2007_v22 = vrot.slane %v2005_v43, 3  ;;  %v2809_v38 = vor.u32 %v2807_v61, %v2805_v20  ;;  %v8336_v61 = vcombine.low %v8169_v8, %v8198_v3 }
 0x182   : > { %9808 = vst [vmem:[#allocation36_spill] sm:$0xff] %v8292_v7  ;;  %v1172_v25 = vpop.f32.mrb[64].mxu1  ;;  %v1548_v15 = vpop.f32.mrb[64].mxu0 }
 0x183   : > { %v1173_v54 = vadd.f32 %v1172_v25, %v7898_v46  ;;  %v6053_v58 = vpop.f32.mrb[65].mxu1  ;;  %v6149_v6 = vpop.f32.mrb[65].mxu0  ;;  %v8307_v7 = vadd.f32 %v1548_v15, %v1165_v45  ;;  %v2017_v45 = vshll.u32 %v5468_v63, 16  ;;  %v2011_v20 = vor.u32 %v2010_v28, %v2007_v22  ;;  %v8327_v15 = vld [vmem:[%s7146_s10 + $0x88] sm:$0xf] }
 0x184   : > { %v1175_v55 = vpop.f32.mrb[66].mxu1  ;;  %v1551_v9 = vpop.f32.mrb[66].mxu0  ;;  %v2813_v6 = vrot.slane %v2811_v32, 1  ;;  %v2016_v32 = vrot.slane %v2014_v14, 3  ;;  %v2815_v28 = vshrl.u32 %v8175_v31, 16 }
 0x185   : > { %9809 = vst [vmem:[#allocation37_spill] sm:$0xff] %v8307_v7  ;;  %v1176_v46 = vadd.f32 %v1175_v55, %v7910_v53  ;;  %v6150_v25 = vpop.f32.mrb[67].mxu0  ;;  %v6054_v58 = vpop.f32.mrb[67].mxu1  ;;  %v8314_v43 = vadd.f32 %v1551_v9, %v1168_v34  ;;  %v4285_v53 = vrot.slane %v9731_v21, 1  ;;  %v8330_v34 = vld [vmem:[%s7146_s10 + $0x8c] sm:$0xf]  ;;  %v2012_v48 = vsel %vm1311_vm3, %v2002_v59, %v2011_v20 }
 0x186   : > { %v8318_v47 = vsel %vm2746_vm4, %v2809_v38, %v2813_v6  ;;  %v9735_v55 = vshll.u32 %v8312_v40, 16  ;;  %v2019_v22 = vrot.slane %v2017_v45, 4  ;;  %v5469_v8 = vcombine.low %v8327_v15, %v8330_v34  ;;  %v8358_v7 = vld [vmem:[%s7146_s10 + $0x90] sm:$0xf] }
 0x187   : > { %9810 = vst [vmem:[#allocation38_spill] sm:$0xff] %v8314_v43  ;;  %6276 = vmatmul.mubr.bf16.gmra.mrb[172].mxu1 %v2003_v16  ;;  %6372 = vmatmul.mubr.bf16.gmra.mrb[172].mxu0 %v8296_v13  ;;  %v8332_v9 = vor.u32 %v4286_v19, %v4285_v53  ;;  %v2819_v19 = vshll.u32 %v8216_v1, 16 }
 0x188   : > { %6279 = vmatprep.mubr.msk.bf16.mxu1 %vm7066_vm0, %v9789_v12  ;;  %6375 = vmatprep.mubr.msk.bf16.mxu0 %vm7066_vm0, %v9789_v12  ;;  %v2020_v43 = vor.u32 %v2019_v22, %v2016_v32  ;;  %v8376_v22 = vcombine.low %v8201_v23, %v8247_v50 }
 0x189   : > { %9811 = vst [vmem:[#allocation39_spill] sm:$0xff] %v8332_v9  ;;  %v8352_v9 = vld [vmem:[%s7146_s10 + $0x54] sm:$0xff]  }
 0x18a   : > { %v1180_v63 = vpop.f32.mrb[68].mxu1  ;;  %v1556_v16 = vpop.f32.mrb[68].mxu0 }
 0x18b   : > { %v1181_v25 = vadd.f32 %v1180_v63, %v7939_v29  ;;  %v6057_v58 = vpop.f32.mrb[69].mxu1  ;;  %v6153_v38 = vpop.f32.mrb[69].mxu0  ;;  %v4290_v29 = vrot.slane %v9735_v55, 2  ;;  %v8347_v3 = vadd.f32 %v1556_v16, %v1173_v54  ;;  %v2817_v63 = vor.u32 %v2815_v28, %v2813_v6  ;;  %v8361_v54 = vld [vmem:[%s7146_s10 + $0x94] sm:$0xf] }
 0x18c   : > { %v1183_v53 = vpop.f32.mrb[70].mxu1  ;;  %v1559_v21 = vpop.f32.mrb[70].mxu0  ;;  %v2821_v58 = vrot.slane %v2819_v19, 1  ;;  %v9734_v38 = vshrl.u32 %v8312_v40, 16  ;;  %v5470_v28 = vcombine.low %v8358_v7, %v8361_v54  ;;  %v9738_v19 = vshll.u32 %v8352_v9, 16 }
 0x18d   : > { %9812 = vst [vmem:[#allocation40_spill] sm:$0xff] %v8347_v3  ;;  %v1184_v14 = vadd.f32 %v1183_v53, %v7952_v10  ;;  %v6154_v45 = vpop.f32.mrb[71].mxu0  ;;  %v6058_v31 = vpop.f32.mrb[71].mxu1  ;;  %v8354_v59 = vadd.f32 %v1559_v21, %v1176_v46  ;;  %v2026_v46 = vshll.u32 %v5469_v8, 16  ;;  %v8392_v3 = vld [vmem:[%s7146_s10 + $0x5c] sm:$0xff]  }
 0x18e   : > { %v8364_v10 = vsel %vm2746_vm4, %v2817_v63, %v2821_v58  ;;  %v4289_v6 = vrot.slane %v9734_v38, 1  ;;  %v2021_v63 = vsel %vm1311_vm3, %v2011_v20, %v2020_v43  ;;  %v4294_v55 = vrot.slane %v9738_v19, 2 }
 0x18f   : > { %9813 = vst [vmem:[#allocation41_spill] sm:$0xff] %v8354_v59  ;;  %6280 = vmatmul.mubr.bf16.gmra.mrb[176].mxu1 %v2012_v48  ;;  %6376 = vmatmul.mubr.bf16.gmra.mrb[176].mxu0 %v8336_v61  ;;  %v2023_v48 = vshrl.u32 %v5469_v8, 16  ;;  %v2823_v8 = vshrl.u32 %v8216_v1, 16  ;;  %v2028_v50 = vrot.slane %v2026_v46, 4  ;;  %v9737_v1 = vshrl.u32 %v8352_v9, 16 }
 0x190   : > { %6283 = vmatprep.mubr.msk.bf16.mxu1 %vm7066_vm0, %v9789_v12  ;;  %6379 = vmatprep.mubr.msk.bf16.mxu0 %vm7066_vm0, %v9789_v12  ;;  %v8372_v21 = vor.u32 %v4290_v29, %v4289_v6  ;;  %v2827_v29 = vshll.u32 %v8256_v56, 16  ;;  %v2032_v59 = vshrl.u32 %v5470_v28, 16 }
 0x191   : > { %v2025_v23 = vrot.slane %v2023_v48, 3  ;;  %v2825_v20 = vor.u32 %v2823_v8, %v2821_v58  ;;  %v8416_v8 = vcombine.low %v8250_v39, %v8278_v51 }
 0x192   : > { %9814 = vst [vmem:[#allocation42_spill] sm:$0xff] %v8372_v21  ;;  %v1188_v16 = vpop.f32.mrb[72].mxu1  ;;  %v1564_v32 = vpop.f32.mrb[72].mxu0 }
 0x193   : > { %v1189_v53 = vadd.f32 %v1188_v16, %v7981_v33  ;;  %v6061_v45 = vpop.f32.mrb[73].mxu1  ;;  %v6157_v31 = vpop.f32.mrb[73].mxu0  ;;  %v8387_v21 = vadd.f32 %v1564_v32, %v1181_v25  ;;  %v2035_v25 = vshll.u32 %v5470_v28, 16  ;;  %v2029_v58 = vor.u32 %v2028_v50, %v2025_v23  ;;  %v8407_v32 = vld [vmem:[%s7146_s10 + $0x98] sm:$0xf] }
 0x194   : > { %v1191_v6 = vpop.f32.mrb[74].mxu1  ;;  %v1567_v38 = vpop.f32.mrb[74].mxu0  ;;  %v2829_v31 = vrot.slane %v2827_v29, 1  ;;  %v2034_v29 = vrot.slane %v2032_v59, 3  ;;  %v2831_v50 = vshrl.u32 %v8256_v56, 16 }
 0x195   : > { %v1192_v33 = vadd.f32 %v1191_v6, %v7994_v41  ;;  %v6158_v16 = vpop.f32.mrb[75].mxu0  ;;  %v6062_v45 = vpop.f32.mrb[75].mxu1  ;;  %v8394_v48 = vadd.f32 %v1567_v38, %v1184_v14  ;;  %v4293_v41 = vrot.slane %v9737_v1, 1  ;;  %v8410_v14 = vld [vmem:[%s7146_s10 + $0x9c] sm:$0xf]  ;;  %v9739_v6 = vshll.u32 %v8392_v3, 16 }
 0x196   : > { %v8398_v46 = vsel %vm2746_vm4, %v2825_v20, %v2829_v31  ;;  %v2037_v23 = vrot.slane %v2035_v25, 4  ;;  %v2835_v1 = vshll.u32 %v8296_v13, 16  ;;  %v2030_v19 = vsel %vm1311_vm3, %v2020_v43, %v2029_v58 }
 0x197   : > { %9815 = vst [vmem:[#allocation43_spill] sm:$0xff] %v8394_v48  ;;  %6284 = vmatmul.mubr.bf16.gmra.mrb[180].mxu1 %v2021_v63  ;;  %6380 = vmatmul.mubr.bf16.gmra.mrb[180].mxu0 %v8376_v22  ;;  %v8412_v38 = vor.u32 %v4294_v55, %v4293_v41  ;;  %v5471_v51 = vcombine.low %v8407_v32, %v8410_v14  ;;  %v4298_v39 = vrot.slane %v9739_v6, 2 }
 0x198   : > { %6287 = vmatprep.mubr.msk.bf16.mxu1 %vm7066_vm0, %v9789_v12  ;;  %6383 = vmatprep.mubr.msk.bf16.mxu0 %vm7066_vm0, %v9789_v12  ;;  %v2038_v6 = vor.u32 %v2037_v23, %v2034_v29 }
 0x199   : > { %9816 = vst [vmem:[#allocation44_spill] sm:$0xff] %v8412_v38 }
 0x19a   : > { %v1196_v28 = vpop.f32.mrb[76].mxu1  ;;  %v1572_v63 = vpop.f32.mrb[76].mxu0 }
 0x19b   : > { %v1197_v16 = vadd.f32 %v1196_v28, %v8020_v24  ;;  %v6065_v45 = vpop.f32.mrb[77].mxu1  ;;  %v6161_v20 = vpop.f32.mrb[77].mxu0  ;;  %v8427_v59 = vadd.f32 %v1572_v63, %v1189_v53  ;;  %v2833_v28 = vor.u32 %v2831_v50, %v2829_v31  ;;  %v8453_v63 = vld [vmem:[%s7146_s10 + $0xa4] sm:$0xf] }
 0x19c   : > { %v1199_v55 = vpop.f32.mrb[78].mxu1  ;;  %v1575_v41 = vpop.f32.mrb[78].mxu0  ;;  %v8430_v45 = vrot.slane %v2835_v1, 1  ;;  %v9740_v20 = vshrl.u32 %v8392_v3, 16  ;;  %v8450_v1 = vld [vmem:[%s7146_s10 + $0xa0] sm:$0xf] }
 0x19d   : > { %9817 = vst [vmem:[#allocation45_spill] sm:$0xff] %v8427_v59  ;;  %v1200_v24 = vadd.f32 %v1199_v55, %v8031_v44  ;;  %v6162_v25 = vpop.f32.mrb[79].mxu0  ;;  %v6066_v56 = vpop.f32.mrb[79].mxu1  ;;  %v8433_v43 = vadd.f32 %v1575_v41, %v1192_v33  ;;  %v8441_v44 = vld [vmem:[%s7146_s10 + $0x64] sm:$0xff]   ;;  %v2041_v33 = vshrl.u32 %v5471_v51, 16  ;;  %v8458_v55 = vld [vmem:[%s7146_s10 + $0x6c] sm:$0xff]  }
 0x19e   : > { %v8438_v53 = vsel %vm2746_vm4, %v2833_v28, %v8430_v45  ;;  %v4297_v31 = vrot.slane %v9740_v20, 1  ;;  %v2039_v28 = vsel %vm1311_vm3, %v2029_v58, %v2038_v6  ;;  %v8464_v20 = vcombine.low %v8281_v5, %v8327_v15 }
 0x19f   : > { %9818 = vst [vmem:[#allocation46_spill] sm:$0xff] %v8433_v43  ;;  %6288 = vmatmul.mubr.bf16.gmra.mrb[184].mxu1 %v2030_v19  ;;  %6384 = vmatmul.mubr.bf16.gmra.mrb[184].mxu0 %v8416_v8  ;;  %v2044_v19 = vshll.u32 %v5471_v51, 16  ;;  %v9744_v51 = vshll.u32 %v8441_v44, 16  ;;  %v9743_v15 = vshrl.u32 %v8441_v44, 16 }
 0x1a0   : > { %6291 = vmatprep.mubr.msk.bf16.mxu1 %vm7066_vm0, %v9789_v12  ;;  %6387 = vmatprep.mubr.msk.bf16.mxu0 %vm7066_vm0, %v9789_v12  ;;  %v8455_v29 = vor.u32 %v4298_v39, %v4297_v31  ;;  %v2043_v39 = vrot.slane %v2041_v33, 3 }
 0x1a1   : > { %v2046_v31 = vrot.slane %v2044_v19, 4  ;;  %v4302_v5 = vrot.slane %v9744_v51, 2 }
 0x1a2   : > { %9819 = vst [vmem:[#allocation47_spill] sm:$0xff] %v8455_v29  ;;  %v1204_v23 = vpop.f32.mrb[80].mxu1  ;;  %v1580_v50 = vpop.f32.mrb[80].mxu0  ;;  %v5472_v29 = vcombine.low %v8450_v1, %v8453_v63 }
 0x1a3   : > { %v1205_v41 = vadd.f32 %v1204_v23, %v8048_v49  ;;  %v6069_v25 = vpop.f32.mrb[81].mxu1  ;;  %v6165_v56 = vpop.f32.mrb[81].mxu0  ;;  %v8469_v38 = vadd.f32 %v1580_v50, %v1197_v16  ;;  %v9747_v16 = vshrl.u32 %v8458_v55, 16 }
 0x1a4   : > { %v1207_v43 = vpop.f32.mrb[82].mxu1  ;;  %v1583_v59 = vpop.f32.mrb[82].mxu0  ;;  %v9745_v25 = vshll.u32 %v8458_v55, 16  ;;  %v2050_v19 = vshrl.u32 %v5472_v29, 16  ;;  %v2053_v50 = vshll.u32 %v5472_v29, 16  ;;  %v8501_v29 = vcombine.low %v8330_v34, %v8358_v7 }
 0x1a5   : > { %9820 = vst [vmem:[#allocation48_spill] sm:$0xff] %v8469_v38  ;;  %v1208_v49 = vadd.f32 %v1207_v43, %v8055_v18  ;;  %v6166_v23 = vpop.f32.mrb[83].mxu0  ;;  %v6070_v58 = vpop.f32.mrb[83].mxu1  ;;  %v8476_v33 = vadd.f32 %v1583_v59, %v1200_v24  ;;  %v4301_v18 = vrot.slane %v9743_v15, 1  ;;  %v2047_v43 = vor.u32 %v2046_v31, %v2043_v39  ;;  %v8489_v24 = vld [vmem:[%s7146_s10 + $0xa8] sm:$0xf] }
 0x1a6   : > { %v4306_v59 = vrot.slane %v9745_v25, 2  ;;  %v8492_v56 = vld [vmem:[%s7146_s10 + $0xac] sm:$0x3]  ;;  %v4305_v23 = vrot.slane %v9747_v16, 1  ;;  %v2055_v16 = vrot.slane %v2053_v50, 4 }
 0x1a7   : > { %9821 = vst [vmem:[#allocation49_spill] sm:$0xff] %v8476_v33  ;;  %6292 = vmatmul.mubr.bf16.gmra.mrb[188].mxu1 %v2039_v28  ;;  %6388 = vmatmul.mubr.bf16.gmra.mrb[188].mxu0 %v8464_v20  ;;  %v8494_v28 = vor.u32 %v4302_v5, %v4301_v18  ;;  %v2048_v18 = vsel %vm1311_vm3, %v2038_v6, %v2047_v43 }
 0x1a8   : > { %6295 = vmatprep.mubr.msk.bf16.mxu1 %vm7066_vm0, %v9789_v12  ;;  %6391 = vmatprep.mubr.msk.bf16.mxu0 %vm7066_vm0, %v9789_v12  ;;  %v8503_v31 = vor.u32 %v4306_v59, %v4305_v23  ;;  %v5473_v48 = vcombine.low %v8489_v24, %v8492_v56 }
 0x1a9   : > { %9822 = vst [vmem:[#allocation50_spill] sm:$0xff] %v8494_v28  ;;  %v2052_v28 = vrot.slane %v2050_v19, 3 }
 0x1aa   : > { %v1212_v58 = vpop.f32.mrb[84].mxu1  ;;  %v1588_v15 = vpop.f32.mrb[84].mxu0  ;;  %v2059_v34 = vshrl.u32 %v5473_v48, 16  ;;  %v2062_v6 = vshll.u32 %v5473_v48, 16 }
 0x1ab   : > { %v1213_v51 = vadd.f32 %v1212_v58, %v7749_v27  ;;  %v6073_v33 = vpop.f32.mrb[85].mxu1  ;;  %v6169_v39 = vpop.f32.mrb[85].mxu0  ;;  %v8505_v25 = vadd.f32 %v1588_v15, %v1205_v41  ;;  %v2056_v7 = vor.u32 %v2055_v16, %v2052_v28 }
 0x1ac   : > { %v1215_v38 = vpop.f32.mrb[86].mxu1  ;;  %v1591_v5 = vpop.f32.mrb[86].mxu0  ;;  %v2064_v16 = vrot.slane %v2062_v6, 4 }
 0x1ad   : > { %v1216_v27 = vadd.f32 %v1215_v38, %v7755_v60  ;;  %v6170_v33 = vpop.f32.mrb[87].mxu0  ;;  %v6074_v58 = vpop.f32.mrb[87].mxu1  ;;  %v8511_v39 = vadd.f32 %v1591_v5, %v1208_v49  ;;  %v8521_v49 = vcombine.low %v8361_v54, %v8407_v32  ;;  %v2057_v5 = vsel %vm1311_vm3, %v2047_v43, %v2056_v7 }
 0x1af   : > { %6296 = vmatmul.mubr.bf16.gmra.mrb[192].mxu1 %v2048_v18  ;;  %6392 = vmatmul.mubr.bf16.gmra.mrb[192].mxu0 %v8501_v29  ;;  %v2061_v18 = vrot.slane %v2059_v34, 3 }
 0x1b0   : > { %6299 = vmatprep.mubr.msk.bf16.mxu1 %vm7066_vm0, %v9789_v12  ;;  %6395 = vmatprep.mubr.msk.bf16.mxu0 %vm7066_vm0, %v9789_v12 }
 0x1b2   : > { %v1220_v41 = vpop.f32.mrb[88].mxu1  ;;  %v1596_v15 = vpop.f32.mrb[88].mxu0 }
 0x1b3   : > { %v1221_v60 = vadd.f32 %v1220_v41, %v7766_v26  ;;  %v6077_v38 = vpop.f32.mrb[89].mxu1  ;;  %v6173_v19 = vpop.f32.mrb[89].mxu0  ;;  %v8523_v50 = vadd.f32 %v1596_v15, %v1213_v51  ;;  %v2065_v26 = vor.u32 %v2064_v16, %v2061_v18  ;;  %v9826_v18 = vld [vmem:[#allocation3_spill] sm:$0xff] }
 0x1b4   : > { %v1223_v59 = vpop.f32.mrb[90].mxu1  ;;  %v1599_v23 = vpop.f32.mrb[90].mxu0  ;;  %v9823_v38 = vld [vmem:[#allocation2_spill] sm:$0xff] }
 0x1b5   : > { %v1224_v48 = vadd.f32 %v1223_v59, %v7773_v36  ;;  %v6174_v28 = vpop.f32.mrb[91].mxu0  ;;  %v6078_v33 = vpop.f32.mrb[91].mxu1  ;;  %v8527_v58 = vadd.f32 %v1599_v23, %v1216_v27  ;;  %v8537_v27 = vcombine.low %v8410_v14, %v8450_v1  ;;  %v2066_v15 = vsel %vm1311_vm3, %v2056_v7, %v2065_v26  ;;  %v3224_v1 = vld [vmem:[%s7146_s10 + $0x14] sm:$0xf] }
 0x1b7   : > { %6300 = vmatmul.mubr.bf16.gmra.mrb[196].mxu1 %v2057_v5  ;;  %6396 = vmatmul.mubr.bf16.gmra.mrb[196].mxu0 %v8521_v49 }
 0x1b8   : > { %6303 = vmatprep.mubr.msk.bf16.mxu1 %vm7066_vm0, %v9789_v12  ;;  %6399 = vmatprep.mubr.msk.bf16.mxu0 %vm7066_vm0, %v9789_v12 }
 0x1ba   : > { %v1228_v54 = vpop.f32.mrb[92].mxu1  ;;  %v1604_v32 = vpop.f32.mrb[92].mxu0 }
 0x1bb   : > { %v1229_v51 = vadd.f32 %v1228_v54, %v7791_v52  ;;  %v6081_v43 = vpop.f32.mrb[93].mxu1  ;;  %v6177_v36 = vpop.f32.mrb[93].mxu0  ;;  %v8539_v34 = vadd.f32 %v1604_v32, %v1221_v60  ;;  %v9825_v52 = vld [vmem:[#allocation8_spill] sm:$0xff]  ;;  %v9828_v32 = vld [vmem:[#allocation11_spill] sm:$0xff] }
 0x1bc   : > { %v1231_v6 = vpop.f32.mrb[94].mxu1  ;;  %v1607_v41 = vpop.f32.mrb[94].mxu0  ;;  %v2750_v14 = vshll.u32 %v9825_v52, 16  ;;  %v2755_v43 = vshll.u32 %v9828_v32, 16 }
 0x1bd   : > { %v1232_v19 = vadd.f32 %v1231_v6, %v9823_v38  ;;  %v6178_v59 = vpop.f32.mrb[95].mxu0  ;;  %v6082_v23 = vpop.f32.mrb[95].mxu1  ;;  %v8543_v5 = vadd.f32 %v1607_v41, %v1224_v48  ;;  %v8555_v48 = vcombine.low %v8453_v63, %v8489_v24  ;;  %v2748_v41 = vshrl.u32 %v9825_v52, 16  ;;  %v9829_v38 = vld [vmem:[#allocation18_spill] sm:$0xff] }
 0x1be   : > { %v5568_v59 = vcombine.low %v3224_v1, %v9829_v38  ;;  %v9830_v23 = vld [vmem:[#allocation4_spill] sm:$0xff]  ;;  %v2757_v63 = vrot.slane %v2755_v43, 1  ;;  %v9832_v1 = vld [vmem:[#allocation5_spill] sm:$0xff] }
 0x1bf   : > { %9824 = vst [vmem:[#allocation2_spill] sm:$0xff] %v8543_v5  ;;  %6304 = vmatmul.mubr.bf16.gmra.mrb[200].mxu1 %v2066_v15  ;;  %6400 = vmatmul.mubr.bf16.gmra.mrb[200].mxu0 %v8537_v27  ;;  %v2752_v15 = vrot.slane %v2750_v14, 1 }
 0x1c0   : > { %6307 = vmatprep.mubr.msk.bf16.mxu1 %vm7066_vm0, %v9789_v12  ;;  %6403 = vmatprep.mubr.msk.bf16.mxu0 %vm7066_vm0, %v9789_v12 }
 0x1c1   : > { %v2753_v24 = vor.u32 %v2752_v15, %v2748_v41  ;;  %v9833_v15 = vld [vmem:[#allocation6_spill] sm:$0xff] }
 0x1c2   : > { %v1236_v60 = vpop.f32.mrb[96].mxu1  ;;  %v1612_v7 = vpop.f32.mrb[96].mxu0 }
 0x1c3   : > { %v1237_v16 = vadd.f32 %v1236_v60, %v9826_v18  ;;  %v6085_v28 = vpop.f32.mrb[97].mxu1  ;;  %v6181_v33 = vpop.f32.mrb[97].mxu0  ;;  %v8557_v54 = vadd.f32 %v1612_v7, %v1229_v51  ;;  %v3388_v51 = vshll.u32 %v5568_v59, 16  ;;  %v2758_v38 = vsel %vm2746_vm4, %v2753_v24, %v2757_v63  ;;  %v9835_v24 = vld [vmem:[#allocation7_spill] sm:$0xff] }
 0x1c4   : > { %v1239_v36 = vpop.f32.mrb[98].mxu1  ;;  %v1615_v6 = vpop.f32.mrb[98].mxu0 }
 0x1c5   : > { %9827 = vst [vmem:[#allocation8_spill] sm:$0xff] %v8557_v54  ;;  %v1240_v5 = vadd.f32 %v1239_v36, %v9830_v23  ;;  %v6182_v60 = vpop.f32.mrb[99].mxu0  ;;  %v6086_v18 = vpop.f32.mrb[99].mxu1  ;;  %v8563_v28 = vadd.f32 %v1615_v6, %v1232_v19  ;;  %v2759_v23 = vshrl.u32 %v9828_v32, 16  ;;  %v3390_v41 = vrot.slane %v3388_v51, 1 }
 0x1c6   : > { %v3386_v60 = vshrl.u32 %v5568_v59, 16  ;;  %v9834_v32 = vshll.u32 %v8083_v4, 16 }
 0x1c7   : > { %9831 = vst [vmem:[#allocation3_spill] sm:$0xff] %v8563_v28  ;;  %6308 = vmatmul.mubr.bf16.gmra.mrb[204].mxu1 %v2065_v26  ;;  %6404 = vmatmul.mubr.bf16.gmra.mrb[204].mxu0 %v8555_v48  ;;  %v5518_v26 = vcombine.low %v8492_v56, %v8492_v56  ;;  %v2761_v56 = vor.u32 %v2759_v23, %v2757_v63  ;;  %v6983_v23 = vld [vmem:[%s9701_s1 + $0x200] sm:$0xff]  }
 0x1c8   : > { %6407 = vmatprep.mubr.msk.bf16.mxu0 %vm7066_vm0, %v9789_v12  ;;  %6427 = vmatprep.mubr.msk.bf16.mxu1 %vm7066_vm0, %v9789_v12  ;;  %v3395_v59 = vrot.slane %v9834_v32, 1 }
 0x1ca   : > { %v1244_v52 = vpop.f32.mrb[100].mxu1  ;;  %v1620_v14 = vpop.f32.mrb[100].mxu0 }
 0x1cb   : > { %v1245_v7 = vadd.f32 %v1244_v52, %v9832_v1  ;;  %v6089_v33 = vpop.f32.mrb[101].mxu1  ;;  %v6185_v36 = vpop.f32.mrb[101].mxu0  ;;  %v8573_v19 = vadd.f32 %v1620_v14, %v1237_v16  ;;  %v6979_v52 = vld [vmem:[%s9701_s1 + $0x1c0] sm:$0xff]   ;;  %v3391_v16 = vor.u32 %v3390_v41, %v3386_v60  ;;  %v9837_v60 = vld [vmem:[#allocation9_spill] sm:$0xff] }
 0x1cc   : > { %v1247_v43 = vpop.f32.mrb[102].mxu1  ;;  %v1623_v6 = vpop.f32.mrb[102].mxu0 }
 0x1cd   : > { %v1248_v18 = vadd.f32 %v1247_v43, %v9833_v15  ;;  %v6186_v28 = vpop.f32.mrb[103].mxu0  ;;  %v6090_v54 = vpop.f32.mrb[103].mxu1  ;;  %v8581_v1 = vadd.f32 %v1623_v6, %v1240_v5  ;;  %v9836_v43 = vld [vmem:[#allocation20_spill] sm:$0xff] }
 0x1ce   : > { %v6986_v54 = vld [vmem:[%s9701_s1 + $0x1c8] sm:$0xff]   ;;  %v2766_v6 = vsel %vm2746_vm4, %v2761_v56, %v9836_v43  ;;  %v9838_v56 = vshrl.u32 %v8083_v4, 16  ;;  %v6995_v4 = vld [vmem:[%s9701_s1 + $0x1d8] sm:$0xff]  }
 0x1cf   : > { %6408 = vmatmul.mubr.bf16.gmra.mrb[208].mxu0 %v5518_v26  ;;  %6428 = vmatmul.mubr.bf16.vlgmr.msra.gmra.mrb[208].mxu1 %v2758_v38  ;;  %v3396_v38 = vsel %vm2746_vm4, %v3391_v16, %v3395_v59 }
 0x1d0   : > { %6431 = vmatprep.mubr.msk.bf16.mxu1 %vm7066_vm0, %v9789_v12  ;;  %6527 = vmatprep.mubr.msk.bf16.mxu0 %vm7066_vm0, %v9789_v12  ;;  %v3399_v16 = vor.u32 %v9838_v56, %v3395_v59  ;;  %v9840_v59 = vld [vmem:[#allocation10_spill] sm:$0xff] }
 0x1d1   : > { %6612 = vmatpush3.bf16.msra.mxu1 %v6979_v52 }
 0x1d2   : > { %v1252_v5 = vpop.f32.mrb[104].mxu1  ;;  %v1628_v28 = vpop.f32.mrb[104].mxu0  ;;  %6613 = vmatprep.subr.bf16.mxu1 %v9789_v12 }
 0x1d3   : > { %v1253_v51 = vadd.f32 %v1252_v5, %v9835_v24  ;;  %v6093_v14 = vpop.f32.mrb[105].mxu1  ;;  %v6189_v33 = vpop.f32.mrb[105].mxu0  ;;  %v8594_v36 = vadd.f32 %v1628_v28, %v1245_v7  ;;  %v6991_v7 = vld [vmem:[%s9701_s1 + $0x1d0] sm:$0xff]   ;;  %v9839_v5 = vshll.u32 %v8116_v11, 16  ;;  %v6987_v28 = vld [vmem:[%s9701_s1 + $0x208] sm:$0xff]  }
 0x1d4   : > { %v1255_v63 = vpop.f32.mrb[106].mxu1  ;;  %v1631_v26 = vpop.f32.mrb[106].mxu0 }
 0x1d5   : > { %v1256_v41 = vadd.f32 %v1255_v63, %v9837_v60  ;;  %v6190_v15 = vpop.f32.mrb[107].mxu0  ;;  %v6094_v52 = vpop.f32.mrb[107].mxu1  ;;  %6614 = vmatpush3.bf16.msra.mxu1 %v6986_v54  ;;  %v8607_v32 = vadd.f32 %v1631_v26, %v1248_v18  ;;  %v3403_v54 = vrot.slane %v9839_v5, 1  ;;  %v9842_v5 = vld [vmem:[#allocation23_spill] sm:$0xff] }
 0x1d6   : > { %6615 = vmatprep.subr.bf16.mxu1 %v9789_v12 }
 0x1d7   : > { %6432 = vmatmul.mubr.bf16.gmra.mrb[212].mxu1 %v2766_v6  ;;  %6528 = vmatmul.mubr.bf16.vlgmr.msra.gmra.mrb[212].mxu0 %v3396_v38  ;;  %v3404_v38 = vsel %vm2746_vm4, %v3399_v16, %v3403_v54  ;;  %v9843_v16 = vshrl.u32 %v8116_v11, 16  ;;  %v7005_v11 = vld [vmem:[%s9701_s1 + $0x1e8] sm:$0xff]  }
 0x1d8   : > { %6712 = vmatpush3.bf16.msra.mxu0 %v6983_v23  ;;  %6435 = vmatprep.mubr.msk.bf16.mxu1 %vm7066_vm0, %v9789_v12  ;;  %v9841_v23 = vld [vmem:[#allocation12_spill] sm:$0xff] }
 0x1d9   : > { %6531 = vmatprep.mubr.msk.bf16.mxu0 %vm7066_vm0, %v9789_v12  ;;  %6713 = vmatprep.subr.bf16.mxu0 %v9789_v12 }
 0x1da   : > { %v1260_v18 = vpop.f32.mrb[108].mxu1  ;;  %v1636_v24 = vpop.f32.mrb[108].mxu0  ;;  %6616 = vmatpush3.bf16.msra.mxu1 %v6991_v7  ;;  %v6992_v7 = vld [vmem:[%s9701_s1 + $0x210] sm:$0xff]  }
 0x1db   : > { %v1261_v14 = vadd.f32 %v1260_v18, %v9840_v59  ;;  %v6097_v33 = vpop.f32.mrb[109].mxu1  ;;  %v6193_v63 = vpop.f32.mrb[109].mxu0  ;;  %6617 = vmatprep.subr.bf16.mxu1 %v9789_v12  ;;  %v8626_v26 = vadd.f32 %v1636_v24, %v1253_v51  ;;  %v7000_v51 = vld [vmem:[%s9701_s1 + $0x1e0] sm:$0xff]   ;;  %v9844_v18 = vshll.u32 %v8157_v57, 16 }
 0x1dc   : > { %v1263_v43 = vpop.f32.mrb[110].mxu1  ;;  %v1639_v6 = vpop.f32.mrb[110].mxu0  ;;  %6714 = vmatpush3.bf16.msra.mxu0 %v6987_v28  ;;  %v3407_v28 = vor.u32 %v9843_v16, %v3403_v54  ;;  %v9845_v54 = vld [vmem:[#allocation13_spill] sm:$0xff]  ;;  %v7001_v16 = vld [vmem:[%s9701_s1 + $0x220] sm:$0xff]  }
 0x1dd   : > { %v1264_v60 = vadd.f32 %v1263_v43, %v9841_v23  ;;  %v6194_v15 = vpop.f32.mrb[111].mxu0  ;;  %v6098_v52 = vpop.f32.mrb[111].mxu1  ;;  %6715 = vmatprep.subr.bf16.mxu0 %v9789_v12  ;;  %v8637_v56 = vadd.f32 %v1639_v6, %v1256_v41  ;;  %v3411_v24 = vrot.slane %v9844_v18, 1  ;;  %v6997_v41 = vld [vmem:[%s9701_s1 + $0x218] sm:$0xff]   ;;  %v7009_v18 = vld [vmem:[%s9701_s1 + $0x1f0] sm:$0xff]  }
 0x1de   : > { %6618 = vmatpush3.bf16.msra.mxu1 %v6995_v4  ;;  %v9846_v52 = vld [vmem:[#allocation14_spill] sm:$0xff] }
 0x1df   : > { %6436 = vmatmul.mubr.bf16.gmra.mrb[216].mxu1 %v9842_v5  ;;  %6532 = vmatmul.mubr.bf16.gmra.mrb[216].mxu0 %v3404_v38  ;;  %v3412_v23 = vsel %vm2746_vm4, %v3407_v28, %v3411_v24 }
 0x1e0   : > { %6439 = vmatprep.mubr.msk.bf16.mxu1 %vm7066_vm0, %v9789_v12  ;;  %6535 = vmatprep.mubr.msk.bf16.mxu0 %vm7066_vm0, %v9789_v12 }
 0x1e1   : > { %6716 = vmatpush3.bf16.msra.mxu0 %v6992_v7  ;;  %6619 = vmatprep.subr.bf16.mxu1 %v9789_v12 }
 0x1e2   : > { %v1268_v4 = vpop.f32.mrb[112].mxu1  ;;  %v1644_v59 = vpop.f32.mrb[112].mxu0  ;;  %6717 = vmatprep.subr.bf16.mxu0 %v9789_v12  ;;  %6620 = vmatpush3.bf16.msra.mxu1 %v7000_v51 }
 0x1e3   : > { %v1269_v33 = vadd.f32 %v1268_v4, %v9845_v54  ;;  %v6101_v63 = vpop.f32.mrb[113].mxu1  ;;  %v6197_v43 = vpop.f32.mrb[113].mxu0  ;;  %6621 = vmatprep.subr.bf16.mxu1 %v9789_v12  ;;  %v8659_v15 = vadd.f32 %v1644_v59, %v1261_v14  ;;  %v9847_v14 = vshrl.u32 %v8157_v57, 16  ;;  %v7015_v57 = vld [vmem:[%s9701_s1 + $0x1f8] sm:$0xff]  }
 0x1e4   : > { %v1271_v6 = vpop.f32.mrb[114].mxu1  ;;  %v1647_v38 = vpop.f32.mrb[114].mxu0 }
 0x1e5   : > { %v1272_v7 = vadd.f32 %v1271_v6, %v9846_v52  ;;  %v6198_v5 = vpop.f32.mrb[115].mxu0  ;;  %v6102_v51 = vpop.f32.mrb[115].mxu1  ;;  %6718 = vmatpush3.bf16.msra.mxu0 %v6997_v41  ;;  %v8669_v4 = vadd.f32 %v1647_v38, %v1264_v60  ;;  %v3415_v28 = vor.u32 %v9847_v14, %v3411_v24  ;;  %v9848_v41 = vshll.u32 %v8204_v30, 16  ;;  %v7006_v60 = vld [vmem:[%s9701_s1 + $0x228] sm:$0xff]   ;;  %v7010_v14 = vld [vmem:[%s9701_s1 + $0x230] sm:$0xff]  }
 0x1e6   : > { %6719 = vmatprep.subr.bf16.mxu0 %v9789_v12  ;;  %6622 = vmatpush3.bf16.msra.mxu1 %v7005_v11  ;;  %v9849_v24 = vld [vmem:[#allocation15_spill] sm:$0xff]  ;;  %v9850_v5 = vld [vmem:[#allocation16_spill] sm:$0xff] }
 0x1e7   : > { %6440 = vmatmul.mubr.bf16.gmra.mrb[220].mxu1 %v8153_v17  ;;  %6536 = vmatmul.mubr.bf16.gmra.mrb[220].mxu0 %v3412_v23  ;;  %v3419_v59 = vrot.slane %v9848_v41, 1 }
 0x1e8   : > { %6443 = vmatprep.mubr.msk.bf16.mxu1 %vm7066_vm0, %v9789_v12  ;;  %6539 = vmatprep.mubr.msk.bf16.mxu0 %vm7066_vm0, %v9789_v12 }
 0x1e9   : > { %6720 = vmatpush3.bf16.msra.mxu0 %v7001_v16  ;;  %6623 = vmatprep.subr.bf16.mxu1 %v9789_v12  ;;  %v3420_v52 = vsel %vm2746_vm4, %v3415_v28, %v3419_v59 }
 0x1ea   : > { %v1276_v17 = vpop.f32.mrb[116].mxu1  ;;  %v1652_v11 = vpop.f32.mrb[116].mxu0  ;;  %6721 = vmatprep.subr.bf16.mxu0 %v9789_v12  ;;  %6624 = vmatpush3.bf16.msra.mxu1 %v7009_v18 }
 0x1eb   : > { %v1277_v54 = vadd.f32 %v1276_v17, %v9849_v24  ;;  %v6105_v63 = vpop.f32.mrb[117].mxu1  ;;  %v6201_v43 = vpop.f32.mrb[117].mxu0  ;;  %6625 = vmatprep.subr.bf16.mxu1 %v9789_v12  ;;  %v8690_v6 = vadd.f32 %v1652_v11, %v1269_v33  ;;  %v9851_v33 = vshrl.u32 %v8204_v30, 16  ;;  %v9854_v30 = vld [vmem:[#allocation17_spill] sm:$0xff] }
 0x1ec   : > { %v1279_v38 = vpop.f32.mrb[118].mxu1  ;;  %v1655_v23 = vpop.f32.mrb[118].mxu0  ;;  %v8715_v63 = vld [vmem:[%s7146_s10 + $0x1c] sm:$0xff]  }
 0x1ed   : > { %v1280_v51 = vadd.f32 %v1279_v38, %v9850_v5  ;;  %v6202_v16 = vpop.f32.mrb[119].mxu0  ;;  %v6106_v18 = vpop.f32.mrb[119].mxu1  ;;  %6722 = vmatpush3.bf16.msra.mxu0 %v7006_v60  ;;  %v8697_v41 = vadd.f32 %v1655_v23, %v1272_v7  ;;  %v3423_v28 = vor.u32 %v9851_v33, %v3419_v59  ;;  %v9852_v60 = vshll.u32 %v8237_v35, 16  ;;  %v7016_v7 = vld [vmem:[%s9701_s1 + $0x238] sm:$0xff]  }
 0x1ee   : > { %6723 = vmatprep.subr.bf16.mxu0 %v9789_v12  ;;  %6626 = vmatpush3.bf16.msra.mxu1 %v7015_v57  ;;  %v9853_v57 = vld [vmem:[#allocation19_spill] sm:$0xff]  ;;  %v9748_v43 = vrot.slane %v8715_v63, 1 }
 0x1ef   : > { %6444 = vmatmul.mubr.bf16.gmra.mrb[224].mxu1 %v8194_v42  ;;  %6540 = vmatmul.mubr.bf16.gmra.mrb[224].mxu0 %v3420_v52  ;;  %v3427_v17 = vrot.slane %v9852_v60, 1  ;;  %v3884_v24 = vrot.slane %v9853_v57, 1 }
 0x1f0   : > { %6447 = vmatprep.mubr.msk.bf16.mxu1 %vm7066_vm0, %v9789_v12  ;;  %6543 = vmatprep.mubr.msk.bf16.mxu0 %vm7066_vm0, %v9789_v12 }
 0x1f1   : > { %6724 = vmatpush3.bf16.msra.mxu0 %v7010_v14  ;;  %v3428_v16 = vsel %vm2746_vm4, %v3423_v28, %v3427_v17 }
 0x1f2   : > { %v1284_v11 = vpop.f32.mrb[120].mxu1  ;;  %v1660_v42 = vpop.f32.mrb[120].mxu0  ;;  %6725 = vmatprep.subr.bf16.mxu0 %v9789_v12 }
 0x1f3   : > { %v1285_v59 = vadd.f32 %v1284_v11, %v9854_v30  ;;  %v6205_v38 = vpop.f32.mrb[121].mxu0  ;;  %v6109_v23 = vpop.f32.mrb[121].mxu1  ;;  %v8719_v52 = vadd.f32 %v1660_v42, %v1277_v54  ;;  %v8728_v11 = vsel %vm3883_vm6, %v3884_v24, %v9748_v43  ;;  %v9855_v54 = vshrl.u32 %v8237_v35, 16  ;;  %v9857_v30 = vld [vmem:[#allocation21_spill] sm:$0xff] }
 0x1f4   : > { %v1663_v5 = vpop.f32.mrb[122].mxu0  ;;  %v1287_v18 = vpop.f32.mrb[122].mxu1 }
 0x1f5   : > { %v6206_v14 = vpop.f32.mrb[123].mxu0  ;;  %v6110_v33 = vpop.f32.mrb[123].mxu1  ;;  %6726 = vmatpush3.bf16.msra.mxu0 %v7016_v7  ;;  %v8722_v60 = vadd.f32 %v1663_v5, %v1280_v51  ;;  %v3431_v28 = vor.u32 %v9855_v54, %v3427_v17  ;;  %v9856_v51 = vshll.u32 %v8272_v0, 16  ;;  %v9859_v17 = vshrl.u32 %v8272_v0, 16 }
 0x1f6   : > { %v9858_v14 = vld [vmem:[#allocation22_spill] sm:$0xff]  ;;  %v9860_v54 = vshll.u32 %v8312_v40, 16 }
 0x1f7   : > { %6448 = vmatmul.mubr.bf16.gmra.mrb[228].mxu1 %v8234_v37  ;;  %6544 = vmatmul.mubr.bf16.gmra.mrb[228].mxu0 %v3428_v16  ;;  %v3435_v7 = vrot.slane %v9856_v51, 1 }
 0x1f8   : > { %6451 = vmatprep.mubr.msk.bf16.mxu1 %vm7066_vm0, %v9789_v12  ;;  %6547 = vmatprep.mubr.msk.bf16.mxu0 %vm7066_vm0, %v9789_v12  ;;  %v3443_v51 = vrot.slane %v9860_v54, 1 }
 0x1f9   : > { %v3436_v18 = vsel %vm2746_vm4, %v3431_v28, %v3435_v7 }
 0x1fa   : > { %v1668_v42 = vpop.f32.mrb[124].mxu0  ;;  %v2170_v37 = vpop.f32.mrb[124].mxu1 }
 0x1fb   : > { %v8738_v57 = vadd.f32 %v1668_v42, %v1285_v59  ;;  %v2336_v38 = vadd.f32 %v2170_v37, %v9857_v30  ;;  %v6209_v24 = vpop.f32.mrb[125].mxu0  ;;  %v6229_v23 = vpop.f32.mrb[125].mxu1  ;;  %v3439_v59 = vor.u32 %v9859_v17, %v3435_v7  ;;  %v9864_v17 = vld [vmem:[#allocation24_spill] sm:$0xff] }
 0x1fc   : > { %v1671_v5 = vpop.f32.mrb[126].mxu0  ;;  %v2173_v16 = vpop.f32.mrb[126].mxu1 }
 0x1fd   : > { %v2337_v33 = vadd.f32 %v2173_v16, %v9858_v14  ;;  %v6210_v43 = vpop.f32.mrb[127].mxu0  ;;  %v6230_v35 = vpop.f32.mrb[127].mxu1  ;;  %v3444_v5 = vsel %vm2746_vm4, %v3439_v59, %v3443_v51  ;;  %v9861_v16 = vld [vmem:[#allocation26_spill] sm:$0xff]  ;;  %v9866_v59 = vshll.u32 %v8352_v9, 16 }
 0x1fe   : > { %v9863_v35 = vld [vmem:[#allocation27_spill] sm:$0xff] }
 0x1ff   : > { %6452 = vmatmul.mubr.bf16.gmra.mrb[232].mxu1 %v8284_v62  ;;  %6548 = vmatmul.mubr.bf16.gmra.mrb[232].mxu0 %v3436_v18  ;;  %v3451_v54 = vrot.slane %v9866_v59, 1  ;;  %v9872_v59 = vshll.u32 %v8392_v3, 16 }
 0x200   : > { %6455 = vmatprep.mubr.msk.bf16.mxu1 %vm7066_vm0, %v9789_v12  ;;  %6551 = vmatprep.mubr.msk.bf16.mxu0 %vm7066_vm0, %v9789_v12 }
 0x202   : > { %v2178_v28 = vpop.f32.mrb[128].mxu1  ;;  %v2518_v42 = vpop.f32.mrb[128].mxu0 }
 0x203   : > { %v2338_v43 = vadd.f32 %v2178_v28, %v8140_v2  ;;  %v8753_v37 = vadd.f32 %v2518_v42, %v2336_v38  ;;  %v6233_v62 = vpop.f32.mrb[129].mxu1  ;;  %v6329_v30 = vpop.f32.mrb[129].mxu0  ;;  %v8763_v2 = vsel %vm4256_vm5, %v9864_v17, %v9863_v35  ;;  %v9865_v38 = vshrl.u32 %v8312_v40, 16  ;;  %v9867_v42 = vld [vmem:[#allocation28_spill] sm:$0xff] }
 0x204   : > { %v2181_v24 = vpop.f32.mrb[130].mxu1  ;;  %v2521_v23 = vpop.f32.mrb[130].mxu0 }
 0x205   : > { %v2339_v18 = vadd.f32 %v2181_v24, %v9861_v16  ;;  %v8757_v14 = vadd.f32 %v2521_v23, %v2337_v33  ;;  %v6330_v0 = vpop.f32.mrb[131].mxu0  ;;  %v6234_v7 = vpop.f32.mrb[131].mxu1  ;;  %v3447_v33 = vor.u32 %v9865_v38, %v3443_v51  ;;  %v9870_v38 = vld [vmem:[#allocation30_spill] sm:$0xff] }
 0x206   : > { %v9868_v7 = vld [vmem:[#allocation29_spill] sm:$0xff] }
 0x207   : > { %9862 = vst [vmem:[#allocation11_spill] sm:$0xff] %v8757_v14  ;;  %6456 = vmatmul.mubr.bf16.gmra.mrb[236].mxu1 %v8318_v47  ;;  %6552 = vmatmul.mubr.bf16.gmra.mrb[236].mxu0 %v3444_v5  ;;  %v3452_v0 = vsel %vm2746_vm4, %v3447_v33, %v3451_v54  ;;  %v9871_v33 = vshrl.u32 %v8352_v9, 16 }
 0x208   : > { %6459 = vmatprep.mubr.msk.bf16.mxu1 %vm7066_vm0, %v9789_v12  ;;  %6555 = vmatprep.mubr.msk.bf16.mxu0 %vm7066_vm0, %v9789_v12 }
 0x20a   : > { %v2186_v28 = vpop.f32.mrb[132].mxu1  ;;  %v2526_v47 = vpop.f32.mrb[132].mxu0 }
 0x20b   : > { %v2340_v62 = vadd.f32 %v2186_v28, %v9867_v42  ;;  %v8774_v30 = vadd.f32 %v2526_v47, %v2338_v43  ;;  %v6237_v24 = vpop.f32.mrb[133].mxu1  ;;  %v6333_v23 = vpop.f32.mrb[133].mxu0  ;;  %v8784_v43 = vsel %vm4256_vm5, %v9863_v35, %v9870_v38  ;;  %v3459_v28 = vrot.slane %v9872_v59, 1  ;;  %v9873_v42 = vld [vmem:[#allocation31_spill] sm:$0xff] }
 0x20c   : > { %v2189_v5 = vpop.f32.mrb[134].mxu1  ;;  %v2529_v16 = vpop.f32.mrb[134].mxu0  ;;  %v9878_v59 = vshll.u32 %v8441_v44, 16 }
 0x20d   : > { %v2341_v17 = vadd.f32 %v2189_v5, %v9868_v7  ;;  %v8778_v14 = vadd.f32 %v2529_v16, %v2339_v18  ;;  %v6334_v40 = vpop.f32.mrb[135].mxu0  ;;  %v6238_v51 = vpop.f32.mrb[135].mxu1  ;;  %v3455_v18 = vor.u32 %v9871_v33, %v3451_v54  ;;  %v9876_v33 = vld [vmem:[#allocation33_spill] sm:$0xff] }
 0x20e   : > { %v9874_v40 = vld [vmem:[#allocation32_spill] sm:$0xff] }
 0x20f   : > { %9869 = vst [vmem:[#allocation18_spill] sm:$0xff] %v8778_v14  ;;  %6460 = vmatmul.mubr.bf16.gmra.mrb[240].mxu1 %v8364_v10  ;;  %6556 = vmatmul.mubr.bf16.gmra.mrb[240].mxu0 %v3452_v0  ;;  %v3460_v7 = vsel %vm2746_vm4, %v3455_v18, %v3459_v28  ;;  %v9877_v18 = vshrl.u32 %v8392_v3, 16  ;;  %v2843_v3 = vshll.u32 %v8336_v61, 16 }
 0x210   : > { %6463 = vmatprep.mubr.msk.bf16.mxu1 %vm7066_vm0, %v9789_v12  ;;  %6559 = vmatprep.mubr.msk.bf16.mxu0 %vm7066_vm0, %v9789_v12 }
 0x212   : > { %v2194_v47 = vpop.f32.mrb[136].mxu1  ;;  %v2534_v10 = vpop.f32.mrb[136].mxu0 }
 0x213   : > { %v2342_v24 = vadd.f32 %v2194_v47, %v9873_v42  ;;  %v8795_v23 = vadd.f32 %v2534_v10, %v2340_v62  ;;  %v6241_v35 = vpop.f32.mrb[137].mxu1  ;;  %v6337_v5 = vpop.f32.mrb[137].mxu0  ;;  %v8805_v62 = vsel %vm4256_vm5, %v9870_v38, %v9876_v33  ;;  %v3467_v47 = vrot.slane %v9878_v59, 1  ;;  %v9879_v42 = vld [vmem:[#allocation34_spill] sm:$0xff] }
 0x214   : > { %v2197_v16 = vpop.f32.mrb[138].mxu1  ;;  %v2537_v0 = vpop.f32.mrb[138].mxu0 }
 0x215   : > { %v2343_v51 = vadd.f32 %v2197_v16, %v9874_v40  ;;  %v8799_v14 = vadd.f32 %v2537_v0, %v2341_v17  ;;  %v6338_v9 = vpop.f32.mrb[139].mxu0  ;;  %v6242_v54 = vpop.f32.mrb[139].mxu1  ;;  %v3463_v17 = vor.u32 %v9877_v18, %v3459_v28  ;;  %v9881_v28 = vld [vmem:[#allocation35_spill] sm:$0xff] }
 0x216   : > { %v2839_v9 = vshrl.u32 %v8296_v13, 16 }
 0x217   : > { %9875 = vst [vmem:[#allocation4_spill] sm:$0xff] %v8799_v14  ;;  %6464 = vmatmul.mubr.bf16.gmra.mrb[244].mxu1 %v8398_v46  ;;  %6560 = vmatmul.mubr.bf16.gmra.mrb[244].mxu0 %v3460_v7  ;;  %v3468_v40 = vsel %vm2746_vm4, %v3463_v17, %v3467_v47  ;;  %v9884_v17 = vshrl.u32 %v8441_v44, 16 }
 0x218   : > { %6467 = vmatprep.mubr.msk.bf16.mxu1 %vm7066_vm0, %v9789_v12  ;;  %6563 = vmatprep.mubr.msk.bf16.mxu0 %vm7066_vm0, %v9789_v12  ;;  %v2841_v13 = vor.u32 %v2839_v9, %v8430_v45  ;;  %v2851_v45 = vshll.u32 %v8376_v22, 16 }
 0x21a   : > { %v2202_v10 = vpop.f32.mrb[140].mxu1  ;;  %v2542_v46 = vpop.f32.mrb[140].mxu0 }
 0x21b   : > { %v2344_v35 = vadd.f32 %v2202_v10, %v9879_v42  ;;  %v8816_v5 = vadd.f32 %v2542_v46, %v2342_v24  ;;  %v6245_v38 = vpop.f32.mrb[141].mxu1  ;;  %v6341_v16 = vpop.f32.mrb[141].mxu0  ;;  %v9883_v24 = vld [vmem:[#allocation36_spill] sm:$0xff] }
 0x21c   : > { %v2205_v0 = vpop.f32.mrb[142].mxu1  ;;  %v2545_v7 = vpop.f32.mrb[142].mxu0  ;;  %v8828_v10 = vsel %vm4256_vm5, %v9876_v33, %v9883_v24  ;;  %v8840_v42 = vld [vmem:[%s7146_s10 + $0x74] sm:$0xff]   ;;  %v2847_v16 = vshrl.u32 %v8336_v61, 16 }
 0x21d   : > { %9880 = vst [vmem:[#allocation5_spill] sm:$0xff] %v8816_v5  ;;  %v2345_v54 = vadd.f32 %v2205_v0, %v9881_v28  ;;  %v8822_v18 = vadd.f32 %v2545_v7, %v2343_v51  ;;  %v6342_v59 = vpop.f32.mrb[143].mxu0  ;;  %v6246_v14 = vpop.f32.mrb[143].mxu1  ;;  %v2845_v51 = vrot.slane %v2843_v3, 1  ;;  %9886 = vst [vmem:[#allocation7_spill] sm:$0xff] %v8840_v42  ;;  %v9887_v0 = vld [vmem:[#allocation37_spill] sm:$0xff] }
 0x21e   : > { %v3471_v14 = vor.u32 %v9884_v17, %v3467_v47  ;;  %v9749_v17 = vshll.u32 %v8840_v42, 16 }
 0x21f   : > { %9882 = vst [vmem:[#allocation6_spill] sm:$0xff] %v8822_v18  ;;  %6468 = vmatmul.mubr.bf16.gmra.mrb[248].mxu1 %v8438_v53  ;;  %6564 = vmatmul.mubr.bf16.gmra.mrb[248].mxu0 %v3468_v40  ;;  %v9885_v53 = vshll.u32 %v8458_v55, 16  ;;  %v2846_v47 = vsel %vm2746_vm4, %v2841_v13, %v2845_v51  ;;  %v2849_v13 = vor.u32 %v2847_v16, %v2845_v51  ;;  %v2859_v51 = vshll.u32 %v8416_v8, 16  ;;  %v9894_v16 = vld [vmem:[#allocation40_spill] sm:$0xff] }
 0x220   : > { %6471 = vmatprep.mubr.msk.bf16.mxu1 %vm7066_vm0, %v9789_v12  ;;  %6567 = vmatprep.mubr.msk.bf16.mxu0 %vm7066_vm0, %v9789_v12 }
 0x221   : > { %v3475_v46 = vrot.slane %v9885_v53, 1  ;;  %v9889_v53 = vld [vmem:[#allocation38_spill] sm:$0xff] }
 0x222   : > { %v2210_v38 = vpop.f32.mrb[144].mxu1  ;;  %v2550_v33 = vpop.f32.mrb[144].mxu0 }
 0x223   : > { %v2346_v7 = vadd.f32 %v2210_v38, %v9887_v0  ;;  %v8844_v40 = vadd.f32 %v2550_v33, %v2344_v35  ;;  %v6249_v28 = vpop.f32.mrb[145].mxu1  ;;  %v6345_v59 = vpop.f32.mrb[145].mxu0  ;;  %v3476_v3 = vsel %vm2746_vm4, %v3471_v14, %v3475_v46  ;;  %v9891_v33 = vld [vmem:[#allocation39_spill] sm:$0xff] }
 0x224   : > { %v2213_v9 = vpop.f32.mrb[146].mxu1  ;;  %v2553_v44 = vpop.f32.mrb[146].mxu0  ;;  %v8856_v0 = vsel %vm4256_vm5, %v9883_v24, %v9891_v33  ;;  %v2853_v28 = vrot.slane %v2851_v45, 1  ;;  %v9892_v59 = vshrl.u32 %v8458_v55, 16  ;;  %v2855_v24 = vshrl.u32 %v8376_v22, 16  ;;  %v9895_v22 = vld [vmem:[#allocation41_spill] sm:$0xff] }
 0x225   : > { %9888 = vst [vmem:[#allocation20_spill] sm:$0xff] %v8844_v40  ;;  %v2347_v18 = vadd.f32 %v2213_v9, %v9889_v53  ;;  %v8851_v61 = vadd.f32 %v2553_v44, %v2345_v54  ;;  %v6346_v38 = vpop.f32.mrb[147].mxu0  ;;  %v6250_v35 = vpop.f32.mrb[147].mxu1  ;;  %v3483_v54 = vrot.slane %v9749_v17, 1  ;;  %v8867_v9 = vld [vmem:[%s7146_s10 + $0x7c] sm:$0xff]   ;;  %v9751_v17 = vshrl.u32 %v8840_v42, 16 }
 0x226   : > { %v3479_v14 = vor.u32 %v9892_v59, %v3475_v46  ;;  %9893 = vst [vmem:[#allocation10_spill] sm:$0xff] %v8867_v9  ;;  %v2854_v35 = vsel %vm2746_vm4, %v2849_v13, %v2853_v28  ;;  %v2857_v13 = vor.u32 %v2855_v24, %v2853_v28  ;;  %v2867_v28 = vshll.u32 %v8464_v20, 16 }
 0x227   : > { %9890 = vst [vmem:[#allocation9_spill] sm:$0xff] %v8851_v61  ;;  %6472 = vmatmul.mubr.bf16.gmra.mrb[252].mxu1 %v2846_v47  ;;  %6568 = vmatmul.mubr.bf16.gmra.mrb[252].mxu0 %v3476_v3  ;;  %v9750_v61 = vshll.u32 %v8867_v9, 16 }
 0x228   : > { %6475 = vmatprep.mubr.msk.bf16.mxu1 %vm7066_vm0, %v9789_v12  ;;  %6571 = vmatprep.mubr.msk.bf16.mxu0 %vm7066_vm0, %v9789_v12  ;;  %v3484_v59 = vsel %vm2746_vm4, %v3479_v14, %v3483_v54  ;;  %v2861_v14 = vrot.slane %v2859_v51, 1 }
 0x22a   : > { %v2218_v44 = vpop.f32.mrb[148].mxu1  ;;  %v2558_v47 = vpop.f32.mrb[148].mxu0 }
 0x22b   : > { %v2348_v55 = vadd.f32 %v2218_v44, %v9894_v16  ;;  %v8872_v46 = vadd.f32 %v2558_v47, %v2346_v7  ;;  %v6253_v45 = vpop.f32.mrb[149].mxu1  ;;  %v6349_v3 = vpop.f32.mrb[149].mxu0  ;;  %v9897_v47 = vld [vmem:[#allocation42_spill] sm:$0xff] }
 0x22c   : > { %v2221_v53 = vpop.f32.mrb[150].mxu1  ;;  %v2561_v38 = vpop.f32.mrb[150].mxu0  ;;  %v8884_v16 = vsel %vm4256_vm5, %v9891_v33, %v9897_v47  ;;  %v3491_v45 = vrot.slane %v9750_v61, 1  ;;  %v8895_v3 = vld [vmem:[%s7146_s10 + $0x84] sm:$0xff]   ;;  %v2863_v33 = vshrl.u32 %v8416_v8, 16  ;;  %v9755_v61 = vshrl.u32 %v8867_v9, 16 }
 0x22d   : > { %v2349_v40 = vadd.f32 %v2221_v53, %v9895_v22  ;;  %v8879_v5 = vadd.f32 %v2561_v38, %v2347_v18  ;;  %v6350_v44 = vpop.f32.mrb[151].mxu0  ;;  %v6254_v7 = vpop.f32.mrb[151].mxu1  ;;  %v3487_v18 = vor.u32 %v9751_v17, %v3483_v54  ;;  %9898 = vst [vmem:[#allocation23_spill] sm:$0xff] %v8895_v3  ;;  %v2862_v54 = vsel %vm2746_vm4, %v2857_v13, %v2861_v14  ;;  %v9900_v8 = vld [vmem:[#allocation43_spill] sm:$0xff] }
 0x22e   : > { %v9754_v17 = vshll.u32 %v8895_v3, 16  ;;  %v2865_v13 = vor.u32 %v2863_v33, %v2861_v14  ;;  %v2875_v14 = vshll.u32 %v8501_v29, 16  ;;  %v9903_v33 = vld [vmem:[#allocation45_spill] sm:$0xff] }
 0x22f   : > { %9896 = vst [vmem:[#allocation12_spill] sm:$0xff] %v8879_v5  ;;  %6476 = vmatmul.mubr.bf16.gmra.mrb[0].mxu1 %v2854_v35  ;;  %6572 = vmatmul.mubr.bf16.gmra.mrb[0].mxu0 %v3484_v59  ;;  %v3492_v7 = vsel %vm2746_vm4, %v3487_v18, %v3491_v45  ;;  %v2869_v18 = vrot.slane %v2867_v28, 1 }
 0x230   : > { %6479 = vmatprep.mubr.msk.bf16.mxu1 %vm7066_vm0, %v9789_v12  ;;  %6575 = vmatprep.mubr.msk.bf16.mxu0 %vm7066_vm0, %v9789_v12 }
 0x232   : > { %v2226_v53 = vpop.f32.mrb[152].mxu1  ;;  %v2566_v38 = vpop.f32.mrb[152].mxu0 }
 0x233   : > { %v2350_v24 = vadd.f32 %v2226_v53, %v8387_v21  ;;  %v8900_v51 = vadd.f32 %v2566_v38, %v2348_v55  ;;  %v6257_v35 = vpop.f32.mrb[153].mxu1  ;;  %v6353_v59 = vpop.f32.mrb[153].mxu0  ;;  %v9902_v53 = vld [vmem:[#allocation44_spill] sm:$0xff] }
 0x234   : > { %v2229_v22 = vpop.f32.mrb[154].mxu1  ;;  %v2569_v44 = vpop.f32.mrb[154].mxu0  ;;  %v8912_v38 = vsel %vm4256_vm5, %v9897_v47, %v9902_v53  ;;  %v3499_v35 = vrot.slane %v9754_v17, 1  ;;  %v8923_v59 = vld [vmem:[%s7146_s10 + $0x8c] sm:$0xff]   ;;  %v2871_v47 = vshrl.u32 %v8464_v20, 16  ;;  %v9905_v20 = vld [vmem:[#allocation46_spill] sm:$0xff] }
 0x235   : > { %9899 = vst [vmem:[#allocation13_spill] sm:$0xff] %v8900_v51  ;;  %v2351_v5 = vadd.f32 %v2229_v22, %v9900_v8  ;;  %v8907_v42 = vadd.f32 %v2569_v44, %v2349_v40  ;;  %v6354_v21 = vpop.f32.mrb[155].mxu0  ;;  %v6258_v55 = vpop.f32.mrb[155].mxu1  ;;  %v3495_v40 = vor.u32 %v9755_v61, %v3491_v45  ;;  %v2870_v45 = vsel %vm2746_vm4, %v2865_v13, %v2869_v18 }
 0x236   : > { %v9759_v61 = vshrl.u32 %v8895_v3, 16  ;;  %v2873_v13 = vor.u32 %v2871_v47, %v2869_v18  ;;  %v2883_v18 = vshll.u32 %v8521_v49, 16  ;;  %v9908_v47 = vld [vmem:[#allocation48_spill] sm:$0xff] }
 0x237   : > { %9901 = vst [vmem:[#allocation14_spill] sm:$0xff] %v8907_v42  ;;  %6480 = vmatmul.mubr.bf16.gmra.mrb[4].mxu1 %v2862_v54  ;;  %6576 = vmatmul.mubr.bf16.gmra.mrb[4].mxu0 %v3492_v7  ;;  %v3500_v17 = vsel %vm2746_vm4, %v3495_v40, %v3499_v35  ;;  %v9758_v42 = vshll.u32 %v8923_v59, 16  ;;  %v2877_v40 = vrot.slane %v2875_v14, 1 }
 0x238   : > { %6483 = vmatprep.mubr.msk.bf16.mxu1 %vm7066_vm0, %v9789_v12  ;;  %6579 = vmatprep.mubr.msk.bf16.mxu0 %vm7066_vm0, %v9789_v12 }
 0x23a   : > { %v2234_v22 = vpop.f32.mrb[156].mxu1  ;;  %v2574_v44 = vpop.f32.mrb[156].mxu0 }
 0x23b   : > { %v2352_v28 = vadd.f32 %v2234_v22, %v9903_v33  ;;  %v8928_v54 = vadd.f32 %v2574_v44, %v2350_v24  ;;  %v6261_v7 = vpop.f32.mrb[157].mxu1  ;;  %v6357_v8 = vpop.f32.mrb[157].mxu0  ;;  %v9907_v44 = vld [vmem:[#allocation47_spill] sm:$0xff] }
 0x23c   : > { %v2237_v21 = vpop.f32.mrb[158].mxu1  ;;  %v2577_v55 = vpop.f32.mrb[158].mxu0  ;;  %v8940_v33 = vsel %vm4256_vm5, %v9902_v53, %v9907_v44  ;;  %v3507_v7 = vrot.slane %v9758_v42, 1  ;;  %v2879_v53 = vshrl.u32 %v8501_v29, 16  ;;  %v9909_v29 = vld [vmem:[#allocation49_spill] sm:$0xff] }
 0x23d   : > { %9904 = vst [vmem:[#allocation15_spill] sm:$0xff] %v8928_v54  ;;  %v2353_v9 = vadd.f32 %v2237_v21, %v9905_v20  ;;  %v8935_v51 = vadd.f32 %v2577_v55, %v2351_v5  ;;  %v6358_v22 = vpop.f32.mrb[159].mxu0  ;;  %v6262_v24 = vpop.f32.mrb[159].mxu1  ;;  %v3503_v5 = vor.u32 %v9759_v61, %v3499_v35  ;;  %v2878_v35 = vsel %vm2746_vm4, %v2873_v13, %v2877_v40 }
 0x23e   : > { %v9763_v61 = vshrl.u32 %v8923_v59, 16  ;;  %v2881_v13 = vor.u32 %v2879_v53, %v2877_v40  ;;  %v2891_v40 = vshll.u32 %v8537_v27, 16 }
 0x23f   : > { %9906 = vst [vmem:[#allocation16_spill] sm:$0xff] %v8935_v51  ;;  %6484 = vmatmul.mubr.bf16.gmra.mrb[8].mxu1 %v2870_v45  ;;  %6580 = vmatmul.mubr.bf16.gmra.mrb[8].mxu0 %v3500_v17  ;;  %v8951_v17 = vld [vmem:[%s7146_s10 + $0x94] sm:$0xff]   ;;  %v3508_v42 = vsel %vm2746_vm4, %v3503_v5, %v3507_v7  ;;  %v2885_v5 = vrot.slane %v2883_v18, 1 }
 0x240   : > { %6487 = vmatprep.mubr.msk.bf16.mxu1 %vm7066_vm0, %v9789_v12  ;;  %6583 = vmatprep.mubr.msk.bf16.mxu0 %vm7066_vm0, %v9789_v12  ;;  %v9762_v51 = vshll.u32 %v8951_v17, 16 }
 0x242   : > { %v2242_v8 = vpop.f32.mrb[160].mxu1  ;;  %v2582_v21 = vpop.f32.mrb[160].mxu0 }
 0x243   : > { %v2354_v14 = vadd.f32 %v2242_v8, %v9908_v47  ;;  %v8956_v55 = vadd.f32 %v2582_v21, %v2352_v28  ;;  %v6265_v45 = vpop.f32.mrb[161].mxu1  ;;  %v6361_v20 = vpop.f32.mrb[161].mxu0  ;;  %v9911_v21 = vld [vmem:[#allocation50_spill] sm:$0xff] }
 0x244   : > { %v2245_v22 = vpop.f32.mrb[162].mxu1  ;;  %v2585_v24 = vpop.f32.mrb[162].mxu0  ;;  %v8968_v47 = vsel %vm4256_vm5, %v9907_v44, %v9911_v21  ;;  %v3515_v45 = vrot.slane %v9762_v51, 1  ;;  %v2887_v44 = vshrl.u32 %v8521_v49, 16  ;;  %v9767_v51 = vshrl.u32 %v8951_v17, 16 }
 0x245   : > { %v2355_v3 = vadd.f32 %v2245_v22, %v9909_v29  ;;  %v8963_v54 = vadd.f32 %v2585_v24, %v2353_v9  ;;  %v6362_v8 = vpop.f32.mrb[163].mxu0  ;;  %v6266_v28 = vpop.f32.mrb[163].mxu1  ;;  %v3511_v9 = vor.u32 %v9763_v61, %v3507_v7  ;;  %v2886_v7 = vsel %vm2746_vm4, %v2881_v13, %v2885_v5 }
 0x246   : > { %v2889_v13 = vor.u32 %v2887_v44, %v2885_v5  ;;  %v2899_v5 = vshll.u32 %v8555_v48, 16 }
 0x247   : > { %9910 = vst [vmem:[#allocation19_spill] sm:$0xff] %v8963_v54  ;;  %6488 = vmatmul.mubr.bf16.gmra.mrb[12].mxu1 %v2878_v35  ;;  %6584 = vmatmul.mubr.bf16.gmra.mrb[12].mxu0 %v3508_v42  ;;  %v8979_v42 = vld [vmem:[%s7146_s10 + $0x9c] sm:$0xff]   ;;  %v3516_v28 = vsel %vm2746_vm4, %v3511_v9, %v3515_v45  ;;  %v2893_v9 = vrot.slane %v2891_v40, 1 }
 0x248   : > { %6491 = vmatprep.mubr.msk.bf16.mxu1 %vm7066_vm0, %v9789_v12  ;;  %6587 = vmatprep.mubr.msk.bf16.mxu0 %vm7066_vm0, %v9789_v12  ;;  %9912 = vst [vmem:[#allocation17_spill] sm:$0xff] %v8979_v42  ;;  %v9764_v61 = vshll.u32 %v8979_v42, 16 }
 0x24a   : > { %v2250_v20 = vpop.f32.mrb[164].mxu1  ;;  %v2590_v22 = vpop.f32.mrb[164].mxu0 }
 0x24b   : > { %v2356_v53 = vadd.f32 %v2250_v20, %v8505_v25  ;;  %v8984_v18 = vadd.f32 %v2590_v22, %v2354_v14  ;;  %v6269_v24 = vpop.f32.mrb[165].mxu1  ;;  %v6365_v35 = vpop.f32.mrb[165].mxu0  ;;  %v8996_v20 = vsel %vm4256_vm5, %v9911_v21, %v8503_v31  ;;  %v9007_v22 = vld [vmem:[%s7146_s10 + $0xa4] sm:$0xff]  }
 0x24c   : > { %v2253_v29 = vpop.f32.mrb[166].mxu1  ;;  %v2593_v8 = vpop.f32.mrb[166].mxu0  ;;  %v2895_v24 = vshrl.u32 %v8537_v27, 16  ;;  %v9765_v27 = vshll.u32 %v9007_v22, 16 }
 0x24d   : > { %v2357_v49 = vadd.f32 %v2253_v29, %v8511_v39  ;;  %v8991_v54 = vadd.f32 %v2593_v8, %v2355_v3  ;;  %v6366_v25 = vpop.f32.mrb[167].mxu0  ;;  %v6270_v14 = vpop.f32.mrb[167].mxu1  ;;  %v3519_v39 = vor.u32 %v9767_v51, %v3515_v45  ;;  %v3523_v3 = vrot.slane %v9764_v61, 1 }
 0x24e   : > { %v2894_v45 = vsel %vm2746_vm4, %v2889_v13, %v2893_v9  ;;  %v9766_v14 = vshrl.u32 %v8979_v42, 16  ;;  %v7067_v61 = vmov 0   ;;  %v4749_v13 = vld [vmem:[%s9703_s3] sm:$0xff]  ;;  %v9771_v51 = vshrl.u32 %v9007_v22, 16 }
 0x24f   : > { %6492 = vmatmul.mubr.bf16.gmra.mrb[16].mxu1 %v2886_v7  ;;  %6588 = vmatmul.mubr.bf16.gmra.mrb[16].mxu0 %v3516_v28  ;;  %v3524_v25 = vsel %vm2746_vm4, %v3519_v39, %v3523_v3  ;;  %v2897_v39 = vor.u32 %v2895_v24, %v2893_v9  ;;  %v9036_v9 = vld [vmem:[%s7146_s10 + $0xac] ss:$0 sps:$4 sm:$0x77]  }
 0x250   : > { %6495 = vmatprep.mubr.msk.bf16.mxu1 %vm7066_vm0, %v9789_v12  ;;  %6591 = vmatprep.mubr.msk.bf16.mxu0 %vm7066_vm0, %v9789_v12  ;;  %v9039_v24 = vld [vmem:[%s7146_s10 + $0xac] sm:$0xff]  }
 0x251   : > { %6856 = vset.pattern.permute.xlu0 %v7067_v61  ;;  %6857 = vset.pattern.permute.xlu1 %v7067_v61  ;;  %v4750_v61 = vld [vmem:[%s9703_s3 + $0x8] sm:$0xff] }
 0x252   : > { %v2258_v21 = vpop.f32.mrb[168].mxu1  ;;  %v2598_v35 = vpop.f32.mrb[168].mxu0  ;;  %4792 = vperm.xlu0 %6856, %v4749_v13  }
 0x253   : > { %v2358_v44 = vadd.f32 %v2258_v21, %v8523_v50  ;;  %v9012_v40 = vadd.f32 %v2598_v35, %v2356_v53  ;;  %v6273_v29 = vpop.f32.mrb[169].mxu1  ;;  %v6369_v8 = vpop.f32.mrb[169].mxu0 }
 0x254   : > { %v2261_v7 = vpop.f32.mrb[170].mxu1  ;;  %v2601_v28 = vpop.f32.mrb[170].mxu0  ;;  %v2901_v29 = vrot.slane %v2899_v5, 1 }
 0x255   : > { %v2359_v50 = vadd.f32 %v2261_v7, %v8527_v58  ;;  %v9019_v53 = vadd.f32 %v2601_v28, %v2357_v49  ;;  %v6370_v21 = vpop.f32.mrb[171].mxu0  ;;  %v6274_v35 = vpop.f32.mrb[171].mxu1  ;;  %v3527_v58 = vor.u32 %v9766_v14, %v3523_v3  ;;  %v3531_v49 = vrot.slane %v9765_v27, 1 }
 0x256   : > { %4797 = vperm.xlu0 %6856, %v4750_v61   ;;  %v2903_v7 = vshrl.u32 %v8555_v48, 16  ;;  %v2902_v3 = vsel %vm2746_vm4, %v2897_v39, %v2901_v29  ;;  %v2907_v14 = vshll.u32 %v9036_v9, 16  ;;  %v9770_v61 = vshll.u32 %v9039_v24, 16  ;;  %v4751_v39 = vld [vmem:[%s9703_s3 + $0x10] sm:$0xff] }
 0x257   : > { %9913 = vst [vmem:[#allocation21_spill] sm:$0xff] %v9019_v53  ;;  %6496 = vmatmul.mubr.bf16.gmra.mrb[20].mxu1 %v2894_v45  ;;  %6592 = vmatmul.mubr.bf16.gmra.mrb[20].mxu0 %v3524_v25  ;;  %v3532_v27 = vsel %vm2746_vm4, %v3527_v58, %v3531_v49  ;;  %v9915_v53 = vld [vmem:[#allocation2_spill] sm:$0xff] }
 0x258   : > { %6499 = vmatprep.mubr.msk.bf16.mxu1 %vm7066_vm0, %v9789_v12  ;;  %6595 = vmatprep.mubr.msk.bf16.mxu0 %vm7066_vm0, %v9789_v12  ;;  %v4753_v58 = vld [vmem:[%s9703_s3 + $0x20] sm:$0xff] }
 0x259   : > { %4802 = vperm.xlu1 %6857, %v4751_v39  }
 0x25a   : > { %v2266_v5 = vpop.f32.mrb[172].mxu1  ;;  %v2606_v8 = vpop.f32.mrb[172].mxu0  ;;  %4812 = vperm.xlu0 %6856, %v4753_v58  }
 0x25b   : > { %v2360_v28 = vadd.f32 %v2266_v5, %v8539_v34  ;;  %v9043_v45 = vadd.f32 %v2606_v8, %v2358_v44  ;;  %v6277_v25 = vpop.f32.mrb[173].mxu1  ;;  %v6373_v21 = vpop.f32.mrb[173].mxu0  ;;  %v2909_v5 = vrot.slane %v2907_v14, 1  ;;  %v3535_v8 = vor.u32 %v9771_v51, %v3531_v49  ;;  %v9918_v51 = vld [vmem:[#allocation3_spill] sm:$0xff] }
 0x25c   : > { %v2269_v35 = vpop.f32.mrb[174].mxu1  ;;  %v2609_v13 = vpop.f32.mrb[174].mxu0  ;;  %v3539_v25 = vrot.slane %v9770_v61, 1  ;;  %v9071_v21 = vld [vmem:[%s7146_s10 + $0xb4] ss:$0 sps:$4 sm:$0x77]  }
 0x25d   : > { %9914 = vst [vmem:[#allocation22_spill] sm:$0xff] %v9043_v45  ;;  %v2361_v48 = vadd.f32 %v2269_v35, %v9915_v53  ;;  %v9051_v42 = vadd.f32 %v2609_v13, %v2359_v50  ;;  %v6374_v34 = vpop.f32.mrb[175].mxu0  ;;  %v6278_v44 = vpop.f32.mrb[175].mxu1  ;;  %v4752_v50 = vld [vmem:[%s9703_s3 + $0x18] sm:$0xff]  ;;  %v2905_v53 = vor.u32 %v2903_v7, %v2901_v29  ;;  %v4755_v29 = vld [vmem:[%s9703_s3 + $0x30] sm:$0xff]  ;;  %v9772_v61 = vshrl.u32 %v9039_v24, 16 }
 0x25e   : > { %4807 = vperm.xlu1 %6857, %v4752_v50   ;;  %v9917_v7 = vld [vmem:[#allocation8_spill] sm:$0xff]  ;;  %4822 = vperm.xlu0 %6856, %v4755_v29   ;;  %v3540_v58 = vsel %vm2746_vm4, %v3535_v8, %v3539_v25  ;;  %v3545_v50 = vshll.u32 %v9071_v21, 16  ;;  %v2911_v8 = vshrl.u32 %v9036_v9, 16 }
 0x25f   : > { %9916 = vst [vmem:[#allocation26_spill] sm:$0xff] %v9051_v42  ;;  %6500 = vmatmul.mubr.bf16.gmra.mrb[24].mxu1 %v2902_v3  ;;  %6596 = vmatmul.mubr.bf16.gmra.mrb[24].mxu0 %v3532_v27  ;;  %v2910_v39 = vsel %vm2746_vm4, %v2905_v53, %v2909_v5  ;;  %v4757_v53 = vld [vmem:[%s9703_s3 + $0x40] sm:$0xff]  ;;  %v4759_v9 = vld [vmem:[%s9703_s3 + $0x50] sm:$0xff] }
 0x260   : > { %6503 = vmatprep.mubr.msk.bf16.mxu1 %vm7066_vm0, %v9789_v12  ;;  %6599 = vmatprep.mubr.msk.bf16.mxu0 %vm7066_vm0, %v9789_v12 }
 0x262   : > { %v2274_v27 = vpop.f32.mrb[176].mxu1  ;;  %v2614_v3 = vpop.f32.mrb[176].mxu0  ;;  %4832 = vperm.xlu0 %6856, %v4757_v53  }
 0x263   : > { %v2362_v35 = vadd.f32 %v2274_v27, %v9917_v7  ;;  %v9077_v13 = vadd.f32 %v2614_v3, %v2360_v28  ;;  %v6281_v14 = vpop.f32.mrb[177].mxu1  ;;  %v6377_v34 = vpop.f32.mrb[177].mxu0  ;;  %v4754_v3 = vld [vmem:[%s9703_s3 + $0x28] sm:$0xff] }
 0x264   : > { %v2277_v49 = vpop.f32.mrb[178].mxu1  ;;  %v2617_v44 = vpop.f32.mrb[178].mxu0  ;;  %4817 = vperm.xlu1 %6857, %v4754_v3   ;;  %v4756_v14 = vld [vmem:[%s9703_s3 + $0x38] sm:$0xff]  ;;  %v2913_v34 = vor.u32 %v2911_v8, %v2909_v5  ;;  %v4761_v5 = vld [vmem:[%s9703_s3 + $0x60] sm:$0xff]  ;;  %v4763_v8 = vld [vmem:[%s9703_s3 + $0x70] sm:$0xff] }
 0x265   : > { %v2363_v42 = vadd.f32 %v2277_v49, %v9918_v51  ;;  %v9084_v45 = vadd.f32 %v2617_v44, %v2361_v48  ;;  %v6378_v27 = vpop.f32.mrb[179].mxu0  ;;  %v6282_v28 = vpop.f32.mrb[179].mxu1  ;;  %v3543_v51 = vor.u32 %v9772_v61, %v3539_v25  ;;  %v3547_v48 = vrot.slane %v3545_v50, 1 }
 0x266   : > { %4842 = vperm.xlu0 %6856, %v4759_v9  }
 0x267   : > { %6504 = vmatmul.mubr.bf16.gmra.mrb[28].mxu1 %v2910_v39  ;;  %6600 = vmatmul.mubr.bf16.gmra.mrb[28].mxu0 %v3540_v58  ;;  %v3548_v27 = vsel %vm2746_vm4, %v3543_v51, %v3547_v48 }
 0x268   : > { %6507 = vmatprep.mubr.msk.bf16.mxu1 %vm7066_vm0, %v9789_v12  ;;  %6603 = vmatprep.mubr.msk.bf16.mxu0 %vm7066_vm0, %v9789_v12 }
 0x269   : > { %4827 = vperm.xlu1 %6857, %v4756_v14  }
 0x26a   : > { %v2282_v29 = vpop.f32.mrb[180].mxu1  ;;  %v2622_v7 = vpop.f32.mrb[180].mxu0  ;;  %4852 = vperm.xlu0 %6856, %v4761_v5  }
 0x26b   : > { %v2364_v49 = vadd.f32 %v2282_v29, %v8573_v19  ;;  %v9106_v44 = vadd.f32 %v2622_v7, %v2362_v35  ;;  %v6285_v39 = vpop.f32.mrb[181].mxu1  ;;  %v6381_v58 = vpop.f32.mrb[181].mxu0  ;;  %v4758_v19 = vld [vmem:[%s9703_s3 + $0x48] sm:$0xff]  ;;  %v3549_v35 = vshrl.u32 %v9071_v21, 16 }
 0x26c   : > { %v2285_v25 = vpop.f32.mrb[182].mxu1  ;;  %v2625_v50 = vpop.f32.mrb[182].mxu0 }
 0x26d   : > { %v2365_v28 = vadd.f32 %v2285_v25, %v8581_v1  ;;  %v9110_v3 = vadd.f32 %v2625_v50, %v2363_v42  ;;  %v6382_v53 = vpop.f32.mrb[183].mxu0  ;;  %v6286_v61 = vpop.f32.mrb[183].mxu1  ;;  %4837 = vperm.xlu1 %6857, %v4758_v19   ;;  %v3551_v51 = vor.u32 %v3549_v35, %v3547_v48  ;;  %v4762_v48 = vld [vmem:[%s9703_s3 + $0x68] sm:$0xff]  ;;  %v4764_v19 = vld [vmem:[%s9703_s3 + $0x78] sm:$0xff] }
 0x26e   : > { %v4760_v61 = vld [vmem:[%s9703_s3 + $0x58] sm:$0xff]  ;;  %4862 = vperm.xlu0 %6856, %v4763_v8  }
 0x26f   : > { %6508 = vmatmul.mubr.bf16.gmra.mrb[32].mxu1 %v2913_v34  ;;  %6604 = vmatmul.mubr.bf16.gmra.mrb[32].mxu0 %v3548_v27 }
 0x270   : > { %6607 = vmatprep.mubr.msk.bf16.mxu0 %vm7066_vm0, %v9789_v12  ;;  %6627 = vmatprep.mubr.msk.bf16.mxu1 %vm7066_vm0, %v9789_v12 }
 0x271   : > { %4847 = vperm.xlu1 %6857, %v4760_v61  }
 0x272   : > { %v2290_v1 = vpop.f32.mrb[184].mxu1  ;;  %v2630_v42 = vpop.f32.mrb[184].mxu0 }
 0x273   : > { %v2366_v29 = vadd.f32 %v2290_v1, %v8594_v36  ;;  %v9130_v7 = vadd.f32 %v2630_v42, %v2364_v49  ;;  %v6289_v14 = vpop.f32.mrb[185].mxu1  ;;  %v6385_v9 = vpop.f32.mrb[185].mxu0  ;;  %v4765_v36 = vld [vmem:[%s9703_s3 + $0x80] sm:$0xff] }
 0x274   : > { %v2293_v34 = vpop.f32.mrb[186].mxu1  ;;  %v2633_v39 = vpop.f32.mrb[186].mxu0  ;;  %4872 = vperm.xlu0 %6856, %v4765_v36   ;;  %v4768_v36 = vld [vmem:[%s9703_s3 + $0x98] sm:$0xff] }
 0x275   : > { %v2367_v58 = vadd.f32 %v2293_v34, %v8607_v32  ;;  %v9133_v25 = vadd.f32 %v2633_v39, %v2365_v28  ;;  %v6386_v50 = vpop.f32.mrb[187].mxu0  ;;  %v6290_v27 = vpop.f32.mrb[187].mxu1  ;;  %v7024_v32 = vld [vmem:[%s7146_s10 + $0x24] sm:$0xff]   ;;  %4857 = vperm.xlu1 %6857, %v4762_v48  }
 0x276   : > { %v3887_v49 = vrot.slane %v7024_v32, 1  ;;  %v4771_v32 = vld [vmem:[%s9703_s3 + $0xb0] sm:$0xff] }
 0x277   : > { %6608 = vmatmul.mubr.bf16.gmra.mrb[36].mxu0 %v3551_v51  ;;  %6628 = vmatmul.mubr.bf16.vlgmr.msra.gmra.mrb[36].mxu1 %v8728_v11  ;;  %v4767_v11 = vld [vmem:[%s9703_s3 + $0x90] sm:$0xff]  ;;  %v9919_v51 = vrot.slane %v8715_v63, 1  ;;  %v9920_v63 = vld [vmem:[#allocation25_spill] sm:$0xff] }
 0x278   : > { %6631 = vmatprep.mubr.msk.bf16.mxu1 %vm7066_vm0, %v9789_v12  ;;  %6727 = vmatprep.mubr.msk.bf16.mxu0 %vm7066_vm0, %v9789_v12 }
 0x279   : > { %v3888_v14 = vsel %vm3883_vm6, %v9919_v51, %v3887_v49  ;;  %4867 = vperm.xlu1 %6857, %v4764_v19   ;;  %4882 = vperm.xlu0 %6856, %v4767_v11  }
 0x27a   : > { %v2298_v28 = vpop.f32.mrb[188].mxu1  ;;  %v2638_v53 = vpop.f32.mrb[188].mxu0 }
 0x27b   : > { %v2368_v5 = vadd.f32 %v2298_v28, %v8626_v26  ;;  %v9154_v35 = vadd.f32 %v2638_v53, %v2366_v29  ;;  %v6293_v1 = vpop.f32.mrb[189].mxu1  ;;  %v6389_v42 = vpop.f32.mrb[189].mxu0  ;;  %v4766_v26 = vld [vmem:[%s9703_s3 + $0x88] sm:$0xff]  ;;  %v4769_v29 = vld [vmem:[%s9703_s3 + $0xa0] sm:$0xff] }
 0x27c   : > { %v2301_v61 = vpop.f32.mrb[190].mxu1  ;;  %v2641_v8 = vpop.f32.mrb[190].mxu0 }
 0x27d   : > { %v2369_v9 = vadd.f32 %v2301_v61, %v8637_v56  ;;  %v9160_v34 = vadd.f32 %v2641_v8, %v2367_v58  ;;  %v6390_v39 = vpop.f32.mrb[191].mxu0  ;;  %v6294_v50 = vpop.f32.mrb[191].mxu1  ;;  %v7025_v56 = vld [vmem:[%s7146_s10 + $0x2c] sm:$0xff]   ;;  %4877 = vperm.xlu1 %6857, %v4766_v26   ;;  %4892 = vperm.xlu0 %6856, %v4769_v29   ;;  %v4772_v26 = vld [vmem:[%s9703_s3 + $0xb8] sm:$0xff] }
 0x27e   : > { %v3889_v58 = vrot.slane %v7025_v56, 1 }
 0x27f   : > { %6632 = vmatmul.mubr.bf16.gmra.mrb[40].mxu1 %v3888_v14  ;;  %6728 = vmatmul.mubr.bf16.vlgmr.msra.gmra.mrb[40].mxu0 %v9920_v63 }
 0x280   : > { %6635 = vmatprep.mubr.msk.bf16.mxu1 %vm7066_vm0, %v9789_v12  ;;  %6731 = vmatprep.mubr.msk.bf16.mxu0 %vm7066_vm0, %v9789_v12  ;;  %v3890_v61 = vsel %vm3883_vm6, %v3887_v49, %v3889_v58 }
 0x281   : > { %4887 = vperm.xlu1 %6857, %v4768_v36   ;;  %4902 = vperm.xlu0 %6856, %v4771_v32  }
 0x282   : > { %v2306_v27 = vpop.f32.mrb[192].mxu1  ;;  %v2646_v48 = vpop.f32.mrb[192].mxu0 }
 0x283   : > { %v2370_v28 = vadd.f32 %v2306_v27, %v8659_v15  ;;  %v9181_v53 = vadd.f32 %v2646_v48, %v2368_v5  ;;  %v6297_v19 = vpop.f32.mrb[193].mxu1  ;;  %v6393_v11 = vpop.f32.mrb[193].mxu0  ;;  %v4770_v15 = vld [vmem:[%s9703_s3 + $0xa8] sm:$0xff]  ;;  %v4773_v5 = vld [vmem:[%s9703_s3 + $0xc0] sm:$0xff] }
 0x284   : > { %v2309_v1 = vpop.f32.mrb[194].mxu1  ;;  %v2649_v42 = vpop.f32.mrb[194].mxu0 }
 0x285   : > { %v2371_v8 = vadd.f32 %v2309_v1, %v8669_v4  ;;  %v9185_v51 = vadd.f32 %v2649_v42, %v2369_v9  ;;  %v6394_v14 = vpop.f32.mrb[195].mxu0  ;;  %v6298_v39 = vpop.f32.mrb[195].mxu1  ;;  %v7026_v4 = vld [vmem:[%s7146_s10 + $0x34] sm:$0xff]   ;;  %4897 = vperm.xlu1 %6857, %v4770_v15   ;;  %4912 = vperm.xlu0 %6856, %v4773_v5  }
 0x286   : > { %v3891_v49 = vrot.slane %v7026_v4, 1  ;;  %v4776_v14 = vld [vmem:[%s9703_s3 + $0xd8] sm:$0xff] }
 0x287   : > { %6636 = vmatmul.mubr.bf16.gmra.mrb[44].mxu1 %v3890_v61  ;;  %6732 = vmatmul.mubr.bf16.gmra.mrb[44].mxu0 %v8763_v2  ;;  %v4775_v2 = vld [vmem:[%s9703_s3 + $0xd0] sm:$0xff] }
 0x288   : > { %6639 = vmatprep.mubr.msk.bf16.mxu1 %vm7066_vm0, %v9789_v12  ;;  %6735 = vmatprep.mubr.msk.bf16.mxu0 %vm7066_vm0, %v9789_v12  ;;  %v3892_v32 = vsel %vm3883_vm6, %v3889_v58, %v3891_v49 }
 0x289   : > { %4907 = vperm.xlu1 %6857, %v4772_v26   ;;  %4922 = vperm.xlu0 %6856, %v4775_v2  }
 0x28a   : > { %v2314_v9 = vpop.f32.mrb[196].mxu1  ;;  %v2654_v50 = vpop.f32.mrb[196].mxu0 }
 0x28b   : > { %v2372_v29 = vadd.f32 %v2314_v9, %v8690_v6  ;;  %v9206_v63 = vadd.f32 %v2654_v50, %v2370_v28  ;;  %v6301_v56 = vpop.f32.mrb[197].mxu1  ;;  %v6397_v27 = vpop.f32.mrb[197].mxu0  ;;  %v4774_v6 = vld [vmem:[%s9703_s3 + $0xc8] sm:$0xff]  ;;  %v4777_v28 = vld [vmem:[%s9703_s3 + $0xe0] sm:$0xff] }
 0x28c   : > { %v2317_v48 = vpop.f32.mrb[198].mxu1  ;;  %v2657_v36 = vpop.f32.mrb[198].mxu0 }
 0x28d   : > { %v2373_v19 = vadd.f32 %v2317_v48, %v8697_v41  ;;  %v9210_v11 = vadd.f32 %v2657_v36, %v2371_v8  ;;  %v6398_v1 = vpop.f32.mrb[199].mxu0  ;;  %v6302_v42 = vpop.f32.mrb[199].mxu1  ;;  %v7027_v41 = vld [vmem:[%s7146_s10 + $0x3c] sm:$0xff]   ;;  %4917 = vperm.xlu1 %6857, %v4774_v6   ;;  %4932 = vperm.xlu0 %6856, %v4777_v28  }
 0x28e   : > { %v3893_v58 = vrot.slane %v7027_v41, 1 }
 0x28f   : > { %6640 = vmatmul.mubr.bf16.gmra.mrb[48].mxu1 %v3892_v32  ;;  %6736 = vmatmul.mubr.bf16.gmra.mrb[48].mxu0 %v8784_v43  ;;  %v4779_v43 = vld [vmem:[%s9703_s3 + $0xf0] sm:$0xff] }
 0x290   : > { %6643 = vmatprep.mubr.msk.bf16.mxu1 %vm7066_vm0, %v9789_v12  ;;  %6739 = vmatprep.mubr.msk.bf16.mxu0 %vm7066_vm0, %v9789_v12  ;;  %v3894_v26 = vsel %vm3883_vm6, %v3891_v49, %v3893_v58 }
 0x291   : > { %4927 = vperm.xlu1 %6857, %v4776_v14   ;;  %4942 = vperm.xlu0 %6856, %v4779_v43  }
 0x292   : > { %v2322_v61 = vpop.f32.mrb[200].mxu1  ;;  %v2662_v8 = vpop.f32.mrb[200].mxu0 }
 0x293   : > { %v2374_v39 = vadd.f32 %v2322_v61, %v8719_v52  ;;  %v9231_v15 = vadd.f32 %v2662_v8, %v2372_v29  ;;  %v6305_v5 = vpop.f32.mrb[201].mxu1  ;;  %v6401_v4 = vpop.f32.mrb[201].mxu0  ;;  %v4778_v52 = vld [vmem:[%s9703_s3 + $0xe8] sm:$0xff]  ;;  %v4781_v29 = vld [vmem:[%s9703_s3 + $0x100] sm:$0xff] }
 0x294   : > { %v2325_v9 = vpop.f32.mrb[202].mxu1  ;;  %v2665_v50 = vpop.f32.mrb[202].mxu0  ;;  %v4782_v4 = vld [vmem:[%s9703_s3 + $0x108] sm:$0xff] }
 0x295   : > { %v2375_v2 = vadd.f32 %v2325_v9, %v8722_v60  ;;  %v9235_v56 = vadd.f32 %v2665_v50, %v2373_v19  ;;  %v6402_v27 = vpop.f32.mrb[203].mxu0  ;;  %v6306_v48 = vpop.f32.mrb[203].mxu1  ;;  %v7028_v60 = vld [vmem:[%s7146_s10 + $0x44] sm:$0xff]   ;;  %4937 = vperm.xlu1 %6857, %v4778_v52   ;;  %4952 = vperm.xlu0 %6856, %v4781_v29   ;;  %v4780_v19 = vld [vmem:[%s9703_s3 + $0xf8] sm:$0xff] }
 0x296   : > { %v3895_v49 = vrot.slane %v7028_v60, 1 }
 0x297   : > { %6644 = vmatmul.mubr.bf16.gmra.mrb[52].mxu1 %v3894_v26  ;;  %6740 = vmatmul.mubr.bf16.gmra.mrb[52].mxu0 %v8805_v62  ;;  %v4783_v62 = vld [vmem:[%s9703_s3 + $0x110] sm:$0xff]  ;;  %v4784_v26 = vld [vmem:[%s9703_s3 + $0x118] sm:$0xff] }
 0x298   : > { %6647 = vmatprep.mubr.msk.bf16.mxu1 %vm7066_vm0, %v9789_v12  ;;  %6743 = vmatprep.mubr.msk.bf16.mxu0 %vm7066_vm0, %v9789_v12  ;;  %v3896_v61 = vsel %vm3883_vm6, %v3893_v58, %v3895_v49  ;;  %v7029_v58 = vld [vmem:[%s7146_s10 + $0x4c] sm:$0xff]  }
 0x299   : > { %4947 = vperm.xlu1 %6857, %v4780_v19   ;;  %4962 = vperm.xlu0 %6856, %v4783_v62  }
 0x29a   : > { %v2330_v36 = vpop.f32.mrb[204].mxu1  ;;  %v2670_v32 = vpop.f32.mrb[204].mxu0 }
 0x29b   : > { %v2376_v1 = vadd.f32 %v2330_v36, %v8738_v57  ;;  %v9256_v42 = vadd.f32 %v2670_v32, %v2374_v39  ;;  %v6405_v6 = vpop.f32.mrb[205].mxu0  ;;  %v6309_v28 = vpop.f32.mrb[205].mxu1  ;;  %v4785_v57 = vld [vmem:[%s9703_s3 + $0x120] sm:$0xff]  ;;  %v3897_v39 = vrot.slane %v7029_v58, 1  ;;  %v9921_v32 = vld [vmem:[#allocation11_spill] sm:$0xff] }
 0x29c   : > { %v2673_v41 = vpop.f32.mrb[206].mxu0  ;;  %v2333_v8 = vpop.f32.mrb[206].mxu1 }
 0x29d   : > { %v9259_v14 = vadd.f32 %v2673_v41, %v2375_v2  ;;  %v6406_v43 = vpop.f32.mrb[207].mxu0  ;;  %v6310_v5 = vpop.f32.mrb[207].mxu1  ;;  %4957 = vperm.xlu1 %6857, %v4782_v4   ;;  %4972 = vperm.xlu0 %6856, %v4785_v57   ;;  %v3898_v36 = vsel %vm3883_vm6, %v3895_v49, %v3897_v39  ;;  %v7030_v49 = vld [vmem:[%s7146_s10 + $0x54] sm:$0xff]  }
 0x29e   : > { %v3899_v28 = vrot.slane %v7030_v49, 1  ;;  %v4788_v8 = vld [vmem:[%s9703_s3 + $0x138] sm:$0xff] }
 0x29f   : > { %6648 = vmatmul.mubr.bf16.gmra.mrb[56].mxu1 %v3896_v61  ;;  %6744 = vmatmul.mubr.bf16.gmra.mrb[56].mxu0 %v8828_v10  ;;  %v4787_v10 = vld [vmem:[%s9703_s3 + $0x130] sm:$0xff] }
 0x2a0   : > { %6651 = vmatprep.mubr.msk.bf16.mxu1 %vm7066_vm0, %v9789_v12  ;;  %6747 = vmatprep.mubr.msk.bf16.mxu0 %vm7066_vm0, %v9789_v12 }
 0x2a1   : > { %4967 = vperm.xlu1 %6857, %v4784_v26   ;;  %4982 = vperm.xlu0 %6856, %v4787_v10  }
 0x2a2   : > { %v2678_v9 = vpop.f32.mrb[208].mxu0  ;;  %v3017_v50 = vpop.f32.mrb[208].mxu1 }
 0x2a3   : > { %v9279_v2 = vadd.f32 %v2678_v9, %v2376_v1  ;;  %v3183_v27 = vadd.f32 %v3017_v50, %v8753_v37  ;;  %v6409_v48 = vpop.f32.mrb[209].mxu0  ;;  %v6429_v52 = vpop.f32.mrb[209].mxu1  ;;  %v4786_v1 = vld [vmem:[%s9703_s3 + $0x128] sm:$0xff]  ;;  %v4789_v37 = vld [vmem:[%s9703_s3 + $0x140] sm:$0xf]  ;;  %v3900_v9 = vsel %vm3883_vm6, %v3897_v39, %v3899_v28 }
 0x2a4   : > { %v2681_v29 = vpop.f32.mrb[210].mxu0  ;;  %v3020_v60 = vpop.f32.mrb[210].mxu1  ;;  %v9922_v50 = vld [vmem:[#allocation18_spill] sm:$0xff] }
 0x2a5   : > { %v3184_v19 = vadd.f32 %v3020_v60, %v9921_v32  ;;  %v6410_v62 = vpop.f32.mrb[211].mxu0  ;;  %v6430_v6 = vpop.f32.mrb[211].mxu1  ;;  %4977 = vperm.xlu1 %6857, %v4786_v1   ;;  %4992 = vperm.xlu0 %6856, %v4789_v37   ;;  %v9923_v1 = vld [vmem:[#allocation4_spill] sm:$0xff] }
 0x2a7   : > { %6652 = vmatmul.mubr.bf16.gmra.mrb[60].mxu1 %v3898_v36  ;;  %6748 = vmatmul.mubr.bf16.gmra.mrb[60].mxu0 %v8856_v0 }
 0x2a8   : > { %6655 = vmatprep.mubr.msk.bf16.mxu1 %vm7066_vm0, %v9789_v12  ;;  %6751 = vmatprep.mubr.msk.bf16.mxu0 %vm7066_vm0, %v9789_v12 }
 0x2a9   : > { %4987 = vperm.xlu1 %6857, %v4788_v8  }
 0x2aa   : > { %v3025_v41 = vpop.f32.mrb[212].mxu1  ;;  %v3655_v61 = vpop.f32.mrb[212].mxu0 }
 0x2ab   : > { %v3185_v43 = vadd.f32 %v3025_v41, %v8774_v30  ;;  %v9300_v0 = vadd.f32 %v3655_v61, %v3183_v27  ;;  %v6433_v5 = vpop.f32.mrb[213].mxu1  ;;  %v6529_v4 = vpop.f32.mrb[213].mxu0  ;;  %v7031_v30 = vld [vmem:[%s7146_s10 + $0x5c] sm:$0xff]  }
 0x2ac   : > { %v3028_v57 = vpop.f32.mrb[214].mxu1  ;;  %v3658_v58 = vpop.f32.mrb[214].mxu0  ;;  %v3901_v27 = vrot.slane %v7031_v30, 1 }
 0x2ad   : > { %v3186_v26 = vadd.f32 %v3028_v57, %v9922_v50  ;;  %v9304_v10 = vadd.f32 %v3658_v58, %v3184_v19  ;;  %v6530_v48 = vpop.f32.mrb[215].mxu0  ;;  %v6434_v52 = vpop.f32.mrb[215].mxu1 }
 0x2ae   : > { %v9925_v48 = vld [vmem:[#allocation6_spill] sm:$0xff] }
 0x2af   : > { %6656 = vmatmul.mubr.bf16.gmra.mrb[64].mxu1 %v3900_v9  ;;  %6752 = vmatmul.mubr.bf16.gmra.mrb[64].mxu0 %v8884_v16  ;;  %v3902_v16 = vsel %vm3883_vm6, %v3899_v28, %v3901_v27  ;;  %v9924_v28 = vld [vmem:[#allocation5_spill] sm:$0xff] }
 0x2b0   : > { %6659 = vmatprep.mubr.msk.bf16.mxu1 %vm7066_vm0, %v9789_v12  ;;  %6755 = vmatprep.mubr.msk.bf16.mxu0 %vm7066_vm0, %v9789_v12 }
 0x2b2   : > { %v3033_v29 = vpop.f32.mrb[216].mxu1  ;;  %v3663_v39 = vpop.f32.mrb[216].mxu0 }
 0x2b3   : > { %v3187_v60 = vadd.f32 %v3033_v29, %v8795_v23  ;;  %v9313_v36 = vadd.f32 %v3663_v39, %v3185_v43  ;;  %v6437_v32 = vpop.f32.mrb[217].mxu1  ;;  %v6533_v19 = vpop.f32.mrb[217].mxu0  ;;  %v7032_v23 = vld [vmem:[%s7146_s10 + $0x64] sm:$0xff]  }
 0x2b4   : > { %v3036_v62 = vpop.f32.mrb[218].mxu1  ;;  %v3666_v6 = vpop.f32.mrb[218].mxu0  ;;  %v3903_v8 = vrot.slane %v7032_v23, 1  ;;  %v9927_v23 = vld [vmem:[#allocation9_spill] sm:$0xff] }
 0x2b5   : > { %v3188_v37 = vadd.f32 %v3036_v62, %v9923_v1  ;;  %v9317_v49 = vadd.f32 %v3666_v6, %v3186_v26  ;;  %v6534_v41 = vpop.f32.mrb[219].mxu0  ;;  %v6438_v61 = vpop.f32.mrb[219].mxu1 }
 0x2b7   : > { %6660 = vmatmul.mubr.bf16.gmra.mrb[68].mxu1 %v3902_v16  ;;  %6756 = vmatmul.mubr.bf16.gmra.mrb[68].mxu0 %v8912_v38  ;;  %v3904_v38 = vsel %vm3883_vm6, %v3901_v27, %v3903_v8  ;;  %v9926_v27 = vld [vmem:[#allocation20_spill] sm:$0xff] }
 0x2b8   : > { %6663 = vmatprep.mubr.msk.bf16.mxu1 %vm7066_vm0, %v9789_v12  ;;  %6759 = vmatprep.mubr.msk.bf16.mxu0 %vm7066_vm0, %v9789_v12 }
 0x2ba   : > { %v3041_v43 = vpop.f32.mrb[220].mxu1  ;;  %v3671_v5 = vpop.f32.mrb[220].mxu0 }
 0x2bb   : > { %v3189_v4 = vadd.f32 %v3041_v43, %v9924_v28  ;;  %v9326_v57 = vadd.f32 %v3671_v5, %v3187_v60  ;;  %v6441_v58 = vpop.f32.mrb[221].mxu1  ;;  %v6537_v9 = vpop.f32.mrb[221].mxu0  ;;  %v7033_v60 = vld [vmem:[%s7146_s10 + $0x6c] sm:$0xff]  }
 0x2bc   : > { %v3044_v50 = vpop.f32.mrb[222].mxu1  ;;  %v3674_v26 = vpop.f32.mrb[222].mxu0  ;;  %v3905_v32 = vrot.slane %v7033_v60, 1  ;;  %v9928_v60 = vld [vmem:[#allocation7_spill] sm:$0xff] }
 0x2bd   : > { %v3190_v52 = vadd.f32 %v3044_v50, %v9925_v48  ;;  %v9330_v30 = vadd.f32 %v3674_v26, %v3188_v37  ;;  %v6538_v29 = vpop.f32.mrb[223].mxu0  ;;  %v6442_v39 = vpop.f32.mrb[223].mxu1 }
 0x2bf   : > { %6664 = vmatmul.mubr.bf16.gmra.mrb[72].mxu1 %v3904_v38  ;;  %6760 = vmatmul.mubr.bf16.gmra.mrb[72].mxu0 %v8940_v33  ;;  %v3906_v33 = vsel %vm3883_vm6, %v3903_v8, %v3905_v32 }
 0x2c0   : > { %6667 = vmatprep.mubr.msk.bf16.mxu1 %vm7066_vm0, %v9789_v12  ;;  %6763 = vmatprep.mubr.msk.bf16.mxu0 %vm7066_vm0, %v9789_v12 }
 0x2c2   : > { %v3049_v19 = vpop.f32.mrb[224].mxu1  ;;  %v3679_v62 = vpop.f32.mrb[224].mxu0 }
 0x2c3   : > { %v3191_v6 = vadd.f32 %v3049_v19, %v9926_v27  ;;  %v9339_v16 = vadd.f32 %v3679_v62, %v3189_v4  ;;  %v6445_v1 = vpop.f32.mrb[225].mxu1  ;;  %v6541_v37 = vpop.f32.mrb[225].mxu0  ;;  %v7034_v4 = vld [vmem:[%s7146_s10 + $0x74] sm:$0xff]   ;;  %v9929_v19 = vshrl.u32 %v9928_v60, 16  ;;  %v9930_v27 = vshll.u32 %v9928_v60, 16 }
 0x2c4   : > { %v3052_v41 = vpop.f32.mrb[226].mxu1  ;;  %v3682_v61 = vpop.f32.mrb[226].mxu0  ;;  %v3907_v9 = vrot.slane %v7034_v4, 1  ;;  %v9931_v37 = vld [vmem:[#allocation12_spill] sm:$0xff]  ;;  %v9932_v4 = vld [vmem:[#allocation13_spill] sm:$0xff] }
 0x2c5   : > { %v3192_v43 = vadd.f32 %v3052_v41, %v9927_v23  ;;  %v9343_v5 = vadd.f32 %v3682_v61, %v3190_v52  ;;  %v6542_v28 = vpop.f32.mrb[227].mxu0  ;;  %v6446_v58 = vpop.f32.mrb[227].mxu1  ;;  %v4309_v62 = vrot.slane %v9929_v19, 1  ;;  %v4310_v1 = vrot.slane %v9930_v27, 2 }
 0x2c7   : > { %6668 = vmatmul.mubr.bf16.gmra.mrb[76].mxu1 %v3906_v33  ;;  %6764 = vmatmul.mubr.bf16.gmra.mrb[76].mxu0 %v8968_v47  ;;  %v3908_v47 = vsel %vm3883_vm6, %v3905_v32, %v3907_v9  ;;  %v7035_v32 = vld [vmem:[%s7146_s10 + $0x7c] sm:$0xff]   ;;  %v4311_v23 = vor.u32 %v4310_v1, %v4309_v62 }
 0x2c8   : > { %6671 = vmatprep.mubr.msk.bf16.mxu1 %vm7066_vm0, %v9789_v12  ;;  %6767 = vmatprep.mubr.msk.bf16.mxu0 %vm7066_vm0, %v9789_v12  ;;  %v3909_v33 = vrot.slane %v7035_v32, 1  ;;  %v9936_v1 = vld [vmem:[#allocation14_spill] sm:$0xff] }
 0x2ca   : > { %v3057_v50 = vpop.f32.mrb[228].mxu1  ;;  %v3687_v26 = vpop.f32.mrb[228].mxu0 }
 0x2cb   : > { %v3193_v8 = vadd.f32 %v3057_v50, %v8872_v46  ;;  %v9352_v38 = vadd.f32 %v3687_v26, %v3191_v6  ;;  %v6449_v48 = vpop.f32.mrb[229].mxu1  ;;  %v6545_v52 = vpop.f32.mrb[229].mxu0 }
 0x2cc   : > { %v3060_v29 = vpop.f32.mrb[230].mxu1  ;;  %v3690_v39 = vpop.f32.mrb[230].mxu0 }
 0x2cd   : > { %v3194_v41 = vadd.f32 %v3060_v29, %v9931_v37  ;;  %v9360_v61 = vadd.f32 %v3690_v39, %v3192_v43  ;;  %v6546_v46 = vpop.f32.mrb[231].mxu0  ;;  %v6450_v6 = vpop.f32.mrb[231].mxu1  ;;  %v3910_v29 = vsel %vm3883_vm6, %v3907_v9, %v3909_v33  ;;  %v4312_v39 = vsel %vm4256_vm5, %v8503_v31, %v4311_v23  ;;  %v7036_v31 = vld [vmem:[%s7146_s10 + $0x84] sm:$0xff]  }
 0x2ce   : > { %v3911_v9 = vrot.slane %v7036_v31, 1 }
 0x2cf   : > { %6672 = vmatmul.mubr.bf16.gmra.mrb[80].mxu1 %v3908_v47  ;;  %6768 = vmatmul.mubr.bf16.gmra.mrb[80].mxu0 %v8996_v20  ;;  %v9933_v47 = vld [vmem:[#allocation10_spill] sm:$0xff] }
 0x2d0   : > { %6675 = vmatprep.mubr.msk.bf16.mxu1 %vm7066_vm0, %v9789_v12  ;;  %6771 = vmatprep.mubr.msk.bf16.mxu0 %vm7066_vm0, %v9789_v12  ;;  %v9934_v60 = vshrl.u32 %v9933_v47, 16  ;;  %v9935_v62 = vshll.u32 %v9933_v47, 16 }
 0x2d2   : > { %v3065_v28 = vpop.f32.mrb[232].mxu1  ;;  %v3695_v58 = vpop.f32.mrb[232].mxu0  ;;  %v4313_v19 = vrot.slane %v9934_v60, 1  ;;  %v4314_v27 = vrot.slane %v9935_v62, 2  ;;  %v9938_v60 = vld [vmem:[#allocation23_spill] sm:$0xff] }
 0x2d3   : > { %v3195_v50 = vadd.f32 %v3065_v28, %v9932_v4  ;;  %v9369_v43 = vadd.f32 %v3695_v58, %v3193_v8  ;;  %v6453_v26 = vpop.f32.mrb[233].mxu1  ;;  %v6549_v48 = vpop.f32.mrb[233].mxu0  ;;  %v9937_v4 = vld [vmem:[#allocation15_spill] sm:$0xff]  ;;  %v9939_v62 = vshrl.u32 %v9938_v60, 16 }
 0x2d4   : > { %v3068_v52 = vpop.f32.mrb[234].mxu1  ;;  %v3698_v20 = vpop.f32.mrb[234].mxu0  ;;  %v4315_v32 = vor.u32 %v4314_v27, %v4313_v19  ;;  %v9940_v19 = vshll.u32 %v9938_v60, 16 }
 0x2d5   : > { %v3196_v37 = vadd.f32 %v3068_v52, %v9936_v1  ;;  %v9379_v8 = vadd.f32 %v3698_v20, %v3194_v41  ;;  %v6550_v46 = vpop.f32.mrb[235].mxu0  ;;  %v6454_v6 = vpop.f32.mrb[235].mxu1  ;;  %v4317_v1 = vrot.slane %v9939_v62, 1 }
 0x2d6   : > { %v4316_v47 = vsel %vm4256_vm5, %v4311_v23, %v4315_v32  ;;  %v4318_v27 = vrot.slane %v9940_v19, 2  ;;  %v9941_v46 = vld [vmem:[#allocation16_spill] sm:$0xff]  ;;  %v9942_v19 = vshrl.u32 %v8923_v59, 16 }
 0x2d7   : > { %6676 = vmatmul.mubr.bf16.gmra.mrb[84].mxu1 %v3910_v29  ;;  %6772 = vmatmul.mubr.bf16.gmra.mrb[84].mxu0 %v4312_v39  ;;  %v3912_v39 = vsel %vm3883_vm6, %v3909_v33, %v3911_v9  ;;  %v7037_v33 = vld [vmem:[%s7146_s10 + $0x8c] sm:$0xff]  }
 0x2d8   : > { %6679 = vmatprep.mubr.msk.bf16.mxu1 %vm7066_vm0, %v9789_v12  ;;  %6775 = vmatprep.mubr.msk.bf16.mxu0 %vm7066_vm0, %v9789_v12  ;;  %v3913_v23 = vrot.slane %v7037_v33, 1 }
 0x2da   : > { %v3073_v28 = vpop.f32.mrb[236].mxu1  ;;  %v3703_v58 = vpop.f32.mrb[236].mxu0  ;;  %v3914_v60 = vsel %vm3883_vm6, %v3911_v9, %v3913_v23  ;;  %v7038_v9 = vld [vmem:[%s7146_s10 + $0x94] sm:$0xff]  }
 0x2db   : > { %v3197_v26 = vadd.f32 %v3073_v28, %v9937_v4  ;;  %v9387_v48 = vadd.f32 %v3703_v58, %v3195_v50  ;;  %v6457_v41 = vpop.f32.mrb[237].mxu1  ;;  %v6553_v52 = vpop.f32.mrb[237].mxu0  ;;  %v4319_v58 = vor.u32 %v4318_v27, %v4317_v1  ;;  %v9943_v1 = vshll.u32 %v8923_v59, 16 }
 0x2dc   : > { %v3076_v20 = vpop.f32.mrb[238].mxu1  ;;  %v3706_v29 = vpop.f32.mrb[238].mxu0 }
 0x2dd   : > { %v3198_v6 = vadd.f32 %v3076_v20, %v9941_v46  ;;  %v9396_v31 = vadd.f32 %v3706_v29, %v3196_v37  ;;  %v6554_v50 = vpop.f32.mrb[239].mxu0  ;;  %v6458_v28 = vpop.f32.mrb[239].mxu1  ;;  %v4320_v62 = vsel %vm4256_vm5, %v4315_v32, %v4319_v58  ;;  %v4321_v46 = vrot.slane %v9942_v19, 1 }
 0x2de   : > { %v4322_v27 = vrot.slane %v9943_v1, 2  ;;  %v9944_v50 = vld [vmem:[#allocation19_spill] sm:$0xff]  ;;  %v3915_v32 = vrot.slane %v7038_v9, 1  ;;  %v9945_v1 = vshrl.u32 %v8951_v17, 16 }
 0x2df   : > { %6680 = vmatmul.mubr.bf16.gmra.mrb[88].mxu1 %v3912_v39  ;;  %6776 = vmatmul.mubr.bf16.gmra.mrb[88].mxu0 %v4316_v47 }
 0x2e0   : > { %6683 = vmatprep.mubr.msk.bf16.mxu1 %vm7066_vm0, %v9789_v12  ;;  %6779 = vmatprep.mubr.msk.bf16.mxu0 %vm7066_vm0, %v9789_v12 }
 0x2e2   : > { %v3081_v4 = vpop.f32.mrb[240].mxu1  ;;  %v3711_v41 = vpop.f32.mrb[240].mxu0 }
 0x2e3   : > { %v3199_v52 = vadd.f32 %v3081_v4, %v8956_v55  ;;  %v9404_v20 = vadd.f32 %v3711_v41, %v3197_v26  ;;  %v6461_v37 = vpop.f32.mrb[241].mxu1  ;;  %v6557_v29 = vpop.f32.mrb[241].mxu0  ;;  %v4323_v4 = vor.u32 %v4322_v27, %v4321_v46  ;;  %v9946_v46 = vshll.u32 %v8951_v17, 16 }
 0x2e4   : > { %v3084_v39 = vpop.f32.mrb[242].mxu1  ;;  %v3714_v47 = vpop.f32.mrb[242].mxu0 }
 0x2e5   : > { %v3200_v28 = vadd.f32 %v3084_v39, %v9944_v50  ;;  %v9413_v55 = vadd.f32 %v3714_v47, %v3198_v6  ;;  %v6558_v26 = vpop.f32.mrb[243].mxu0  ;;  %v6462_v33 = vpop.f32.mrb[243].mxu1  ;;  %v4324_v19 = vsel %vm4256_vm5, %v4319_v58, %v4323_v4  ;;  %v4325_v50 = vrot.slane %v9945_v1, 1 }
 0x2e6   : > { %v4326_v27 = vrot.slane %v9946_v46, 2 }
 0x2e7   : > { %6684 = vmatmul.mubr.bf16.gmra.mrb[92].mxu1 %v3914_v60  ;;  %6780 = vmatmul.mubr.bf16.gmra.mrb[92].mxu0 %v4320_v62  ;;  %v3916_v62 = vsel %vm3883_vm6, %v3913_v23, %v3915_v32  ;;  %v7039_v23 = vld [vmem:[%s7146_s10 + $0x9c] sm:$0xff]  }
 0x2e8   : > { %6687 = vmatprep.mubr.msk.bf16.mxu1 %vm7066_vm0, %v9789_v12  ;;  %6783 = vmatprep.mubr.msk.bf16.mxu0 %vm7066_vm0, %v9789_v12  ;;  %v3917_v58 = vrot.slane %v7039_v23, 1  ;;  %v4327_v9 = vor.u32 %v4326_v27, %v4325_v50  ;;  %v9950_v27 = vld [vmem:[#allocation21_spill] sm:$0xff] }
 0x2ea   : > { %v3089_v41 = vpop.f32.mrb[244].mxu1  ;;  %v3719_v59 = vpop.f32.mrb[244].mxu0 }
 0x2eb   : > { %v3201_v37 = vadd.f32 %v3089_v41, %v8984_v18  ;;  %v9421_v29 = vadd.f32 %v3719_v59, %v3199_v52  ;;  %v6465_v6 = vpop.f32.mrb[245].mxu1  ;;  %v6561_v39 = vpop.f32.mrb[245].mxu0 }
 0x2ec   : > { %v3092_v47 = vpop.f32.mrb[246].mxu1  ;;  %v3722_v60 = vpop.f32.mrb[246].mxu0 }
 0x2ed   : > { %v3202_v26 = vadd.f32 %v3092_v47, %v8991_v54  ;;  %v9430_v18 = vadd.f32 %v3722_v60, %v3200_v28  ;;  %v6562_v52 = vpop.f32.mrb[247].mxu0  ;;  %v6466_v33 = vpop.f32.mrb[247].mxu1  ;;  %v3918_v60 = vsel %vm3883_vm6, %v3915_v32, %v3917_v58  ;;  %v3919_v32 = vrot.slane %v9007_v22, 1 }
 0x2ef   : > { %6688 = vmatmul.mubr.bf16.gmra.mrb[96].mxu1 %v3916_v62  ;;  %6784 = vmatmul.mubr.bf16.gmra.mrb[96].mxu0 %v4324_v19  ;;  %v4328_v62 = vsel %vm4256_vm5, %v4323_v4, %v4327_v9  ;;  %v9947_v19 = vld [vmem:[#allocation17_spill] sm:$0xff] }
 0x2f0   : > { %6691 = vmatprep.mubr.msk.bf16.mxu1 %vm7066_vm0, %v9789_v12  ;;  %6787 = vmatprep.mubr.msk.bf16.mxu0 %vm7066_vm0, %v9789_v12  ;;  %v9948_v1 = vshrl.u32 %v9947_v19, 16  ;;  %v9949_v52 = vshll.u32 %v9947_v19, 16 }
 0x2f2   : > { %v3097_v41 = vpop.f32.mrb[248].mxu1  ;;  %v3727_v17 = vpop.f32.mrb[248].mxu0  ;;  %v4329_v46 = vrot.slane %v9948_v1, 1  ;;  %v4330_v50 = vrot.slane %v9949_v52, 2  ;;  %v9953_v52 = vshrl.u32 %v9007_v22, 16 }
 0x2f3   : > { %v3203_v59 = vadd.f32 %v3097_v41, %v9012_v40  ;;  %v9438_v54 = vadd.f32 %v3727_v17, %v3201_v37  ;;  %v6469_v28 = vpop.f32.mrb[249].mxu1  ;;  %v6565_v6 = vpop.f32.mrb[249].mxu0 }
 0x2f4   : > { %v3100_v39 = vpop.f32.mrb[250].mxu1  ;;  %v3730_v47 = vpop.f32.mrb[250].mxu0  ;;  %v4331_v4 = vor.u32 %v4330_v50, %v4329_v46  ;;  %v9952_v28 = vld [vmem:[#allocation22_spill] sm:$0xff] }
 0x2f5   : > { %v3204_v33 = vadd.f32 %v3100_v39, %v9950_v27  ;;  %v9447_v23 = vadd.f32 %v3730_v47, %v3202_v26  ;;  %v6566_v40 = vpop.f32.mrb[251].mxu0  ;;  %v6470_v37 = vpop.f32.mrb[251].mxu1  ;;  %v4333_v27 = vrot.slane %v9953_v52, 1  ;;  %v9955_v50 = vld [vmem:[#allocation26_spill] sm:$0xff]  ;;  %v9956_v52 = vshrl.u32 %v9039_v24, 16 }
 0x2f6   : > { %v4332_v1 = vsel %vm4256_vm5, %v4327_v9, %v4331_v4  ;;  %v9954_v40 = vshll.u32 %v9007_v22, 16 }
 0x2f7   : > { %9951 = vst [vmem:[#allocation27_spill] sm:$0xff] %v9447_v23  ;;  %6692 = vmatmul.mubr.bf16.gmra.mrb[100].mxu1 %v3918_v60  ;;  %6788 = vmatmul.mubr.bf16.gmra.mrb[100].mxu0 %v4328_v62  ;;  %v3920_v62 = vsel %vm3883_vm6, %v3917_v58, %v3919_v32  ;;  %v3921_v58 = vrot.slane %v9039_v24, 1 }
 0x2f8   : > { %6695 = vmatprep.mubr.msk.bf16.mxu1 %vm7066_vm0, %v9789_v12  ;;  %6791 = vmatprep.mubr.msk.bf16.mxu0 %vm7066_vm0, %v9789_v12  ;;  %v4334_v46 = vrot.slane %v9954_v40, 2  ;;  %v4337_v40 = vrot.slane %v9956_v52, 1 }
 0x2fa   : > { %v3105_v41 = vpop.f32.mrb[252].mxu1  ;;  %v3735_v17 = vpop.f32.mrb[252].mxu0  ;;  %v4335_v9 = vor.u32 %v4334_v46, %v4333_v27  ;;  %v7018_v46 = vld [vmem:[%s7146_s10 + $0xb4] ss:$0 sps:$4 sm:$0xff]   ;;  %s6828_s10 = smul.u32 328, %s9964_s21 }
 0x2fb   : > { %v3205_v6 = vadd.f32 %v3105_v41, %v9952_v28  ;;  %v9455_v39 = vadd.f32 %v3735_v17, %v3203_v59  ;;  %v6473_v26 = vpop.f32.mrb[253].mxu1  ;;  %v6569_v47 = vpop.f32.mrb[253].mxu0 }
 0x2fc   : > { %v3108_v19 = vpop.f32.mrb[254].mxu1  ;;  %v3738_v60 = vpop.f32.mrb[254].mxu0  ;;  %s9559_s30 = scalar_lea.vmem %s9704_s4, %s6828_s10 }
 0x2fd   : > { %v3206_v37 = vadd.f32 %v3108_v19, %v9955_v50  ;;  %v9464_v23 = vadd.f32 %v3738_v60, %v3204_v33  ;;  %v6570_v59 = vpop.f32.mrb[255].mxu0  ;;  %v6474_v41 = vpop.f32.mrb[255].mxu1  ;;  %v9957_v50 = vshll.u32 %v9039_v24, 16  ;;  %v4342_v24 = vshrl.u32 %v7018_v46, 16 }
 0x2ff   : > { %6696 = vmatmul.mubr.bf16.gmra.mrb[104].mxu1 %v3920_v62  ;;  %6792 = vmatmul.mubr.bf16.gmra.mrb[104].mxu0 %v4332_v1  ;;  %v3922_v62 = vsel %vm3883_vm6, %v3919_v32, %v3921_v58  ;;  %v4336_v1 = vsel %vm4256_vm5, %v4331_v4, %v4335_v9  ;;  %v4338_v27 = vrot.slane %v9957_v50, 2  ;;  %v3923_v32 = vrot.slane %v9071_v21, 1 }
 0x300   : > { %6699 = vmatprep.mubr.msk.bf16.mxu1 %vm7066_vm0, %v9789_v12  ;;  %6795 = vmatprep.mubr.msk.bf16.mxu0 %vm7066_vm0, %v9789_v12  ;;  %v4344_v50 = vrot.slane %v4342_v24, 1 }
 0x301   : > { %v4339_v4 = vor.u32 %v4338_v27, %v4337_v40 }
 0x302   : > { %v3113_v22 = vpop.f32.mrb[0].mxu1  ;;  %v3743_v17 = vpop.f32.mrb[0].mxu0 }
 0x303   : > { %v3207_v28 = vadd.f32 %v3113_v22, %v9077_v13  ;;  %v9472_v33 = vadd.f32 %v3743_v17, %v3205_v6  ;;  %v6477_v26 = vpop.f32.mrb[1].mxu1  ;;  %v6573_v47 = vpop.f32.mrb[1].mxu0  ;;  %v4345_v22 = vshll.u32 %v7018_v46, 16  ;;  %v4340_v52 = vsel %vm4256_vm5, %v4335_v9, %v4339_v4 }
 0x304   : > { %v3116_v19 = vpop.f32.mrb[2].mxu1  ;;  %v3746_v60 = vpop.f32.mrb[2].mxu0 }
 0x305   : > { %v3208_v59 = vadd.f32 %v3116_v19, %v9084_v45  ;;  %v9482_v13 = vadd.f32 %v3746_v60, %v3206_v37  ;;  %v6574_v6 = vpop.f32.mrb[3].mxu0  ;;  %v6478_v41 = vpop.f32.mrb[3].mxu1 }
 0x306   : > { %v4347_v6 = vrot.slane %v4345_v22, 2 }
 0x307   : > { %6700 = vmatmul.mubr.bf16.gmra.mrb[108].mxu1 %v3922_v62  ;;  %6796 = vmatmul.mubr.bf16.gmra.mrb[108].mxu0 %v4336_v1  ;;  %v3924_v1 = vsel %vm3883_vm6, %v3921_v58, %v3923_v32 }
 0x308   : > { %6703 = vmatprep.mubr.msk.bf16.mxu1 %vm7066_vm0, %v9789_v12  ;;  %6799 = vmatprep.mubr.msk.bf16.mxu0 %vm7066_vm0, %v9789_v12 }
 0x30a   : > { %v3121_v17 = vpop.f32.mrb[4].mxu1  ;;  %v3751_v26 = vpop.f32.mrb[4].mxu0 }
 0x30b   : > { %v3209_v45 = vadd.f32 %v3121_v17, %v9106_v44  ;;  %v9490_v37 = vadd.f32 %v3751_v26, %v3207_v28  ;;  %v6481_v47 = vpop.f32.mrb[5].mxu1  ;;  %v6577_v19 = vpop.f32.mrb[5].mxu0  ;;  %v4348_v44 = vor.u32 %v4347_v6, %v4344_v50 }
 0x30c   : > { %v3124_v60 = vpop.f32.mrb[6].mxu1  ;;  %v3754_v62 = vpop.f32.mrb[6].mxu0 }
 0x30d   : > { %v3210_v21 = vadd.f32 %v3124_v60, %v9110_v3  ;;  %v9495_v40 = vadd.f32 %v3754_v62, %v3208_v59  ;;  %v6578_v27 = vpop.f32.mrb[7].mxu0  ;;  %v6482_v46 = vpop.f32.mrb[7].mxu1  ;;  %v4349_v17 = vsel %vm4256_vm5, %v4339_v4, %v4348_v44 }
 0x30f   : > { %6704 = vmatmul.mubr.bf16.gmra.mrb[112].mxu1 %v3924_v1  ;;  %6800 = vmatmul.mubr.bf16.gmra.mrb[112].mxu0 %v4340_v52 }
 0x310   : > { %6707 = vmatprep.mubr.msk.bf16.mxu1 %vm7066_vm0, %v9789_v12  ;;  %6803 = vmatprep.mubr.msk.bf16.mxu0 %vm7066_vm0, %v9789_v12 }
 0x312   : > { %v3129_v58 = vpop.f32.mrb[8].mxu1  ;;  %v3759_v28 = vpop.f32.mrb[8].mxu0 }
 0x313   : > { %v3211_v9 = vadd.f32 %v3129_v58, %v9130_v7  ;;  %v9502_v41 = vadd.f32 %v3759_v28, %v3209_v45  ;;  %v6485_v3 = vpop.f32.mrb[9].mxu1  ;;  %v6581_v59 = vpop.f32.mrb[9].mxu0 }
 0x314   : > { %v3132_v24 = vpop.f32.mrb[10].mxu1  ;;  %v3762_v22 = vpop.f32.mrb[10].mxu0 }
 0x315   : > { %v3212_v26 = vadd.f32 %v3132_v24, %v9133_v25  ;;  %v9506_v47 = vadd.f32 %v3762_v22, %v3210_v21  ;;  %v6582_v19 = vpop.f32.mrb[11].mxu0  ;;  %v6486_v60 = vpop.f32.mrb[11].mxu1 }
 0x317   : > { %6708 = vmatmul.mubr.bf16.gmra.mrb[116].mxu1 %v3923_v32  ;;  %6804 = vmatmul.mubr.bf16.gmra.mrb[116].mxu0 %v4349_v17 }
 0x318   : > { %6807 = vmatprep.mubr.msk.bf16.mxu0 %vm7066_vm0, %v9789_v12 }
 0x31a   : > { %v3137_v7 = vpop.f32.mrb[12].mxu1  ;;  %v3767_v45 = vpop.f32.mrb[12].mxu0 }
 0x31b   : > { %v3213_v62 = vadd.f32 %v3137_v7, %v9154_v35  ;;  %v9511_v1 = vadd.f32 %v3767_v45, %v3211_v9  ;;  %v6489_v52 = vpop.f32.mrb[13].mxu1  ;;  %v6585_v50 = vpop.f32.mrb[13].mxu0 }
 0x31c   : > { %v3140_v4 = vpop.f32.mrb[14].mxu1  ;;  %v3770_v6 = vpop.f32.mrb[14].mxu0 }
 0x31d   : > { %v3214_v25 = vadd.f32 %v3140_v4, %v9160_v34  ;;  %v9514_v21 = vadd.f32 %v3770_v6, %v3212_v26  ;;  %v6586_v27 = vpop.f32.mrb[15].mxu0  ;;  %v6490_v32 = vpop.f32.mrb[15].mxu1 }
 0x31f   : > { %6808 = vmatmul.mubr.bf16.gmra.mrb[120].mxu0 %v4348_v44 }
 0x322   : > { %v3145_v46 = vpop.f32.mrb[16].mxu1  ;;  %v3775_v58 = vpop.f32.mrb[16].mxu0 }
 0x323   : > { %v3215_v12 = vadd.f32 %v3145_v46, %v9181_v53  ;;  %v9517_v28 = vadd.f32 %v3775_v58, %v3213_v62  ;;  %v6493_v35 = vpop.f32.mrb[17].mxu1  ;;  %v6589_v9 = vpop.f32.mrb[17].mxu0 }
 0x324   : > { %v3148_v3 = vpop.f32.mrb[18].mxu1  ;;  %v3778_v59 = vpop.f32.mrb[18].mxu0 }
 0x325   : > { %v3216_v24 = vadd.f32 %v3148_v3, %v9185_v51  ;;  %v9520_v22 = vadd.f32 %v3778_v59, %v3214_v25  ;;  %v6590_v34 = vpop.f32.mrb[19].mxu0  ;;  %v6494_v17 = vpop.f32.mrb[19].mxu1 }
 0x32a   : > { %v3153_v26 = vpop.f32.mrb[20].mxu1  ;;  %v3783_v19 = vpop.f32.mrb[20].mxu0 }
 0x32b   : > { %v3217_v44 = vadd.f32 %v3153_v26, %v9206_v63  ;;  %v9523_v60 = vadd.f32 %v3783_v19, %v3215_v12  ;;  %v6497_v7 = vpop.f32.mrb[21].mxu1  ;;  %v6593_v53 = vpop.f32.mrb[21].mxu0 }
 0x32c   : > { %v3156_v45 = vpop.f32.mrb[22].mxu1  ;;  %v3786_v62 = vpop.f32.mrb[22].mxu0 }
 0x32d   : > { %v3218_v52 = vadd.f32 %v3156_v45, %v9210_v11  ;;  %v9526_v50 = vadd.f32 %v3786_v62, %v3216_v24  ;;  %v6594_v4 = vpop.f32.mrb[23].mxu0  ;;  %v6498_v51 = vpop.f32.mrb[23].mxu1 }
 0x332   : > { %v3161_v6 = vpop.f32.mrb[24].mxu1  ;;  %v3791_v25 = vpop.f32.mrb[24].mxu0 }
 0x333   : > { %v3219_v27 = vadd.f32 %v3161_v6, %v9231_v15  ;;  %v9529_v32 = vadd.f32 %v3791_v25, %v3217_v44  ;;  %v6501_v46 = vpop.f32.mrb[25].mxu1  ;;  %v6597_v63 = vpop.f32.mrb[25].mxu0 }
 0x334   : > { %v3164_v58 = vpop.f32.mrb[26].mxu1  ;;  %v3794_v12 = vpop.f32.mrb[26].mxu0 }
 0x335   : > { %v3220_v35 = vadd.f32 %v3164_v58, %v9235_v56  ;;  %v9532_v9 = vadd.f32 %v3794_v12, %v3218_v52  ;;  %v6598_v3 = vpop.f32.mrb[27].mxu0  ;;  %v6502_v11 = vpop.f32.mrb[27].mxu1 }
 0x33a   : > { %v3169_v59 = vpop.f32.mrb[28].mxu1  ;;  %v3799_v24 = vpop.f32.mrb[28].mxu0 }
 0x33b   : > { %v3221_v34 = vadd.f32 %v3169_v59, %v9256_v42  ;;  %v9535_v17 = vadd.f32 %v3799_v24, %v3219_v27  ;;  %v6505_v26 = vpop.f32.mrb[29].mxu1  ;;  %v6601_v15 = vpop.f32.mrb[29].mxu0 }
 0x33c   : > { %v3172_v19 = vpop.f32.mrb[30].mxu1  ;;  %v3802_v44 = vpop.f32.mrb[30].mxu0 }
 0x33d   : > { %v3222_v7 = vadd.f32 %v3172_v19, %v9259_v14  ;;  %v9538_v53 = vadd.f32 %v3802_v44, %v3220_v35  ;;  %v6602_v45 = vpop.f32.mrb[31].mxu0  ;;  %v6506_v56 = vpop.f32.mrb[31].mxu1 }
 0x33e   : > { %v4793_v19 = vpop.permute.xlu0 %4792  ;;  %v9553_v45 = vld [vmem:[%s9702_s2] ss:$0 sm:$0xff] }
 0x342   : > { %v3177_v62 = vpop.f32.mrb[32].mxu1  ;;  %v3807_v52 = vpop.f32.mrb[32].mxu0 }
 0x343   : > { %v3223_v4 = vadd.f32 %v3177_v62, %v9279_v2  ;;  %v9541_v51 = vadd.f32 %v3807_v52, %v3221_v34  ;;  %v6605_v6 = vpop.f32.mrb[33].mxu0  ;;  %v6509_v42 = vpop.f32.mrb[33].mxu1 }
 0x344   : > { %v3810_v25 = vpop.f32.mrb[34].mxu0  ;;  %v3180_v27 = vpop.f32.mrb[34].mxu1 }
 0x345   : > { %v9543_v46 = vadd.f32 %v3810_v25, %v3222_v7  ;;  %v6606_v63 = vpop.f32.mrb[35].mxu0  ;;  %v6510_v58 = vpop.f32.mrb[35].mxu1 }
 0x34a   : > { %v3815_v14 = vpop.f32.mrb[36].mxu0  ;;  %v4028_v12 = vpop.f32.mrb[36].mxu1 }
 0x34b   : > { %v9545_v35 = vadd.f32 %v3815_v14, %v3223_v4  ;;  %v4194_v3 = vadd.f32 %v4028_v12, %v9300_v0  ;;  %v6609_v11 = vpop.f32.mrb[37].mxu0  ;;  %v6629_v59 = vpop.f32.mrb[37].mxu1 }
 0x34c   : > { %v3818_v2 = vpop.f32.mrb[38].mxu0  ;;  %v4031_v24 = vpop.f32.mrb[38].mxu1 }
 0x34d   : > { %v4195_v34 = vadd.f32 %v4031_v24, %v9304_v10  ;;  %v6610_v26 = vpop.f32.mrb[39].mxu0  ;;  %v6630_v15 = vpop.f32.mrb[39].mxu1 }
 0x34e   : > { %v4803_v12 = vpop.permute.xlu1 %4802 }
 0x352   : > { %v4036_v44 = vpop.f32.mrb[40].mxu1  ;;  %v4453_v7 = vpop.f32.mrb[40].mxu0 }
 0x353   : > { %v4196_v56 = vadd.f32 %v4036_v44, %v9313_v36  ;;  %v4619_v0 = vadd.f32 %v4453_v7, %v4194_v3  ;;  %v6633_v62 = vpop.f32.mrb[41].mxu1  ;;  %v6729_v52 = vpop.f32.mrb[41].mxu0 }
 0x354   : > { %v4039_v10 = vpop.f32.mrb[42].mxu1  ;;  %v4456_v4 = vpop.f32.mrb[42].mxu0 }
 0x355   : > { %v4667_v6 = vadd.f32 %v9553_v45, %v4619_v0  ;;  %v4197_v42 = vadd.f32 %v4039_v10, %v9317_v49  ;;  %v4620_v25 = vadd.f32 %v4456_v4, %v4195_v34  ;;  %v6730_v27 = vpop.f32.mrb[43].mxu0  ;;  %v6634_v63 = vpop.f32.mrb[43].mxu1 }
 0x356   : > { %v4798_v36 = vpop.permute.xlu0 %4797 }
 0x357   : > { %4708 = vst [vmem:[%s9559_s30] sm:$0xff] %v4667_v6  ;;  %v4995_v58 = vmul.f32 %v4793_v19, %v4667_v6  ;;  %v4668_v14 = vadd.f32 %v9553_v45, %v4620_v25  ;;  %v4808_v25 = vpop.permute.xlu1 %4807 }
 0x359   : > { %4709 = vst [vmem:[%s9559_s30 + $0x8] sm:$0xff] %v4668_v14  ;;  %v4996_v3 = vmul.f32 %v4798_v36, %v4668_v14  ;;  %v5085_v11 = vmul.f32 %v4995_v58, %v4667_v6 }
 0x35a   : > { %v4044_v59 = vpop.f32.mrb[44].mxu1  ;;  %v4461_v2 = vpop.f32.mrb[44].mxu0 }
 0x35b   : > { %v5036_v24 = vadd.f32 %v4996_v3, %v4995_v58  ;;  %v5086_v26 = vmul.f32 %v4996_v3, %v4668_v14  ;;  %v4198_v15 = vadd.f32 %v4044_v59, %v9326_v57  ;;  %v4621_v49 = vadd.f32 %v4461_v2, %v4196_v56  ;;  %v6637_v34 = vpop.f32.mrb[45].mxu1  ;;  %v6733_v44 = vpop.f32.mrb[45].mxu0 }
 0x35c   : > { %v4047_v7 = vpop.f32.mrb[46].mxu1  ;;  %v4464_v0 = vpop.f32.mrb[46].mxu0 }
 0x35d   : > { %v5126_v19 = vadd.f32 %v5086_v26, %v5085_v11  ;;  %v4669_v62 = vadd.f32 %v9553_v45, %v4621_v49  ;;  %v4199_v52 = vadd.f32 %v4047_v7, %v9330_v30  ;;  %v4622_v10 = vadd.f32 %v4464_v0, %v4197_v42  ;;  %v6734_v4 = vpop.f32.mrb[47].mxu0  ;;  %v6638_v6 = vpop.f32.mrb[47].mxu1 }
 0x35e   : > { %v4818_v4 = vpop.permute.xlu1 %4817 }
 0x35f   : > { %4710 = vst [vmem:[%s9559_s30 + $0x10] sm:$0xff] %v4669_v62  ;;  %v4997_v27 = vmul.f32 %v4803_v12, %v4669_v62  ;;  %v4670_v63 = vadd.f32 %v9553_v45, %v4622_v10 }
 0x361   : > { %v5037_v57 = vadd.f32 %v5036_v24, %v4997_v27  ;;  %v5087_v56 = vmul.f32 %v4997_v27, %v4669_v62  ;;  %4711 = vst [vmem:[%s9559_s30 + $0x18] sm:$0xff] %v4670_v63  ;;  %v4998_v36 = vmul.f32 %v4808_v25, %v4670_v63 }
 0x362   : > { %v4052_v58 = vpop.f32.mrb[48].mxu1  ;;  %v4469_v14 = vpop.f32.mrb[48].mxu0 }
 0x363   : > { %v5127_v3 = vadd.f32 %v5126_v19, %v5087_v56  ;;  %v5038_v11 = vadd.f32 %v5037_v57, %v4998_v36  ;;  %v5088_v59 = vmul.f32 %v4998_v36, %v4670_v63  ;;  %v4200_v30 = vadd.f32 %v4052_v58, %v9339_v16  ;;  %v6641_v42 = vpop.f32.mrb[49].mxu1  ;;  %v6737_v2 = vpop.f32.mrb[49].mxu0 }
 0x364   : > { %v4623_v26 = vadd.f32 %v4469_v14, %v4198_v15  ;;  %v4055_v49 = vpop.f32.mrb[50].mxu1  ;;  %v4472_v12 = vpop.f32.mrb[50].mxu0 }
 0x365   : > { %v5128_v34 = vadd.f32 %v5127_v3, %v5088_v59  ;;  %v4201_v24 = vadd.f32 %v4055_v49, %v9343_v5  ;;  %v4624_v44 = vadd.f32 %v4472_v12, %v4199_v52  ;;  %v6738_v7 = vpop.f32.mrb[51].mxu0  ;;  %v6642_v0 = vpop.f32.mrb[51].mxu1 }
 0x366   : > { %v4671_v62 = vadd.f32 %v9553_v45, %v4623_v26  ;;  %v4813_v19 = vpop.permute.xlu0 %4812 }
 0x367   : > { %v4672_v10 = vadd.f32 %v9553_v45, %v4624_v44 }
 0x368   : > { %4712 = vst [vmem:[%s9559_s30 + $0x20] sm:$0xff] %v4671_v62  ;;  %v4999_v16 = vmul.f32 %v4813_v19, %v4671_v62 }
 0x369   : > { %4713 = vst [vmem:[%s9559_s30 + $0x28] sm:$0xff] %v4672_v10  ;;  %v5000_v6 = vmul.f32 %v4818_v4, %v4672_v10 }
 0x36a   : > { %v5039_v25 = vadd.f32 %v5038_v11, %v4999_v16  ;;  %v5089_v15 = vmul.f32 %v4999_v16, %v4671_v62  ;;  %v4060_v27 = vpop.f32.mrb[52].mxu1  ;;  %v4477_v63 = vpop.f32.mrb[52].mxu0 }
 0x36b   : > { %v5090_v57 = vmul.f32 %v5000_v6, %v4672_v10  ;;  %v4202_v5 = vadd.f32 %v4060_v27, %v9352_v38  ;;  %v4625_v52 = vadd.f32 %v4477_v63, %v4200_v30  ;;  %v6645_v56 = vpop.f32.mrb[53].mxu1  ;;  %v6741_v36 = vpop.f32.mrb[53].mxu0 }
 0x36c   : > { %v5040_v58 = vadd.f32 %v5039_v25, %v5000_v6  ;;  %v5129_v14 = vadd.f32 %v5128_v34, %v5089_v15  ;;  %v4063_v3 = vpop.f32.mrb[54].mxu1  ;;  %v4480_v59 = vpop.f32.mrb[54].mxu0 }
 0x36d   : > { %v4673_v42 = vadd.f32 %v9553_v45, %v4625_v52  ;;  %v4203_v2 = vadd.f32 %v4063_v3, %v9360_v61  ;;  %v4626_v11 = vadd.f32 %v4480_v59, %v4201_v24  ;;  %v6742_v26 = vpop.f32.mrb[55].mxu0  ;;  %v6646_v49 = vpop.f32.mrb[55].mxu1 }
 0x36e   : > { %v4823_v12 = vpop.permute.xlu0 %4822  ;;  %v5130_v44 = vadd.f32 %v5129_v14, %v5090_v57  ;;  %v4828_v30 = vpop.permute.xlu1 %4827 }
 0x36f   : > { %4714 = vst [vmem:[%s9559_s30 + $0x30] sm:$0xff] %v4673_v42  ;;  %v5001_v7 = vmul.f32 %v4823_v12, %v4673_v42  ;;  %v4674_v38 = vadd.f32 %v9553_v45, %v4626_v11 }
 0x371   : > { %v5041_v0 = vadd.f32 %v5040_v58, %v5001_v7  ;;  %v5091_v62 = vmul.f32 %v5001_v7, %v4673_v42  ;;  %4715 = vst [vmem:[%s9559_s30 + $0x38] sm:$0xff] %v4674_v38  ;;  %v5002_v34 = vmul.f32 %v4828_v30, %v4674_v38 }
 0x372   : > { %v4068_v19 = vpop.f32.mrb[56].mxu1  ;;  %v4485_v10 = vpop.f32.mrb[56].mxu0 }
 0x373   : > { %v5131_v4 = vadd.f32 %v5130_v44, %v5091_v62  ;;  %v5042_v16 = vadd.f32 %v5041_v0, %v5002_v34  ;;  %v5092_v6 = vmul.f32 %v5002_v34, %v4674_v38  ;;  %v4204_v61 = vadd.f32 %v4068_v19, %v9369_v43  ;;  %v6649_v24 = vpop.f32.mrb[57].mxu1  ;;  %v6745_v25 = vpop.f32.mrb[57].mxu0 }
 0x374   : > { %v4627_v15 = vadd.f32 %v4485_v10, %v4202_v5  ;;  %v4071_v27 = vpop.f32.mrb[58].mxu1  ;;  %v4488_v63 = vpop.f32.mrb[58].mxu0 }
 0x375   : > { %v5132_v57 = vadd.f32 %v5131_v4, %v5092_v6  ;;  %v4205_v52 = vadd.f32 %v4071_v27, %v9379_v8  ;;  %v4628_v56 = vadd.f32 %v4488_v63, %v4203_v2  ;;  %v6746_v36 = vpop.f32.mrb[59].mxu0  ;;  %v6650_v58 = vpop.f32.mrb[59].mxu1 }
 0x376   : > { %v4675_v14 = vadd.f32 %v9553_v45, %v4627_v15  ;;  %v4833_v3 = vpop.permute.xlu0 %4832  ;;  %v4838_v42 = vpop.permute.xlu1 %4837 }
 0x377   : > { %v4676_v59 = vadd.f32 %v9553_v45, %v4628_v56 }
 0x378   : > { %4716 = vst [vmem:[%s9559_s30 + $0x40] sm:$0xff] %v4675_v14  ;;  %v5003_v43 = vmul.f32 %v4833_v3, %v4675_v14 }
 0x379   : > { %4717 = vst [vmem:[%s9559_s30 + $0x48] sm:$0xff] %v4676_v59  ;;  %v5004_v11 = vmul.f32 %v4838_v42, %v4676_v59 }
 0x37a   : > { %v5043_v26 = vadd.f32 %v5042_v16, %v5003_v43  ;;  %v5093_v5 = vmul.f32 %v5003_v43, %v4675_v14  ;;  %v4076_v49 = vpop.f32.mrb[60].mxu1  ;;  %v4493_v12 = vpop.f32.mrb[60].mxu0 }
 0x37b   : > { %v5094_v44 = vmul.f32 %v5004_v11, %v4676_v59  ;;  %v4206_v8 = vadd.f32 %v4076_v49, %v9387_v48  ;;  %v4629_v2 = vadd.f32 %v4493_v12, %v4204_v61  ;;  %v6653_v7 = vpop.f32.mrb[61].mxu1  ;;  %v6749_v38 = vpop.f32.mrb[61].mxu0 }
 0x37c   : > { %v5133_v30 = vadd.f32 %v5132_v57, %v5093_v5  ;;  %v5044_v0 = vadd.f32 %v5043_v26, %v5004_v11  ;;  %v4079_v62 = vpop.f32.mrb[62].mxu1  ;;  %v4496_v34 = vpop.f32.mrb[62].mxu0 }
 0x37d   : > { %v4677_v19 = vadd.f32 %v9553_v45, %v4629_v2  ;;  %v4207_v10 = vadd.f32 %v4079_v62, %v9396_v31  ;;  %v4630_v4 = vadd.f32 %v4496_v34, %v4205_v52  ;;  %v6750_v16 = vpop.f32.mrb[63].mxu0  ;;  %v6654_v6 = vpop.f32.mrb[63].mxu1 }
 0x37e   : > { %v4843_v24 = vpop.permute.xlu0 %4842  ;;  %v5134_v25 = vadd.f32 %v5133_v30, %v5094_v44  ;;  %v4848_v61 = vpop.permute.xlu1 %4847 }
 0x37f   : > { %4718 = vst [vmem:[%s9559_s30 + $0x50] sm:$0xff] %v4677_v19  ;;  %v5005_v15 = vmul.f32 %v4843_v24, %v4677_v19  ;;  %v4678_v48 = vadd.f32 %v9553_v45, %v4630_v4 }
 0x381   : > { %v5045_v27 = vadd.f32 %v5044_v0, %v5005_v15  ;;  %v5095_v63 = vmul.f32 %v5005_v15, %v4677_v19  ;;  %4719 = vst [vmem:[%s9559_s30 + $0x58] sm:$0xff] %v4678_v48  ;;  %v5006_v57 = vmul.f32 %v4848_v61, %v4678_v48 }
 0x382   : > { %v4084_v56 = vpop.f32.mrb[64].mxu1  ;;  %v4501_v36 = vpop.f32.mrb[64].mxu0 }
 0x383   : > { %v5135_v58 = vadd.f32 %v5134_v25, %v5095_v63  ;;  %v5046_v14 = vadd.f32 %v5045_v27, %v5006_v57  ;;  %v5096_v3 = vmul.f32 %v5006_v57, %v4678_v48  ;;  %v4208_v31 = vadd.f32 %v4084_v56, %v9404_v20  ;;  %v6657_v52 = vpop.f32.mrb[65].mxu1  ;;  %v6753_v59 = vpop.f32.mrb[65].mxu0 }
 0x384   : > { %v4631_v42 = vadd.f32 %v4501_v36, %v4206_v8  ;;  %v4087_v43 = vpop.f32.mrb[66].mxu1  ;;  %v4504_v11 = vpop.f32.mrb[66].mxu0 }
 0x385   : > { %v5136_v26 = vadd.f32 %v5135_v58, %v5096_v3  ;;  %v4209_v5 = vadd.f32 %v4087_v43, %v9413_v55  ;;  %v4632_v49 = vadd.f32 %v4504_v11, %v4207_v10  ;;  %v6754_v12 = vpop.f32.mrb[67].mxu0  ;;  %v6658_v44 = vpop.f32.mrb[67].mxu1 }
 0x386   : > { %v4679_v2 = vadd.f32 %v9553_v45, %v4631_v42  ;;  %v4853_v7 = vpop.permute.xlu0 %4852  ;;  %v4858_v30 = vpop.permute.xlu1 %4857 }
 0x387   : > { %v4680_v38 = vadd.f32 %v9553_v45, %v4632_v49 }
 0x388   : > { %4720 = vst [vmem:[%s9559_s30 + $0x60] sm:$0xff] %v4679_v2  ;;  %v5007_v20 = vmul.f32 %v4853_v7, %v4679_v2 }
 0x389   : > { %4721 = vst [vmem:[%s9559_s30 + $0x68] sm:$0xff] %v4680_v38  ;;  %v5008_v0 = vmul.f32 %v4858_v30, %v4680_v38  ;;  %v9958_v30 = vld [vmem:[#allocation27_spill] sm:$0xff] }
 0x38a   : > { %v5047_v62 = vadd.f32 %v5046_v14, %v5007_v20  ;;  %v5097_v8 = vmul.f32 %v5007_v20, %v4679_v2  ;;  %v4092_v34 = vpop.f32.mrb[68].mxu1  ;;  %v4509_v19 = vpop.f32.mrb[68].mxu0 }
 0x38b   : > { %v5098_v4 = vmul.f32 %v5008_v0, %v4680_v38  ;;  %v4210_v55 = vadd.f32 %v4092_v34, %v9421_v29  ;;  %v4633_v10 = vadd.f32 %v4509_v19, %v4208_v31  ;;  %v6661_v16 = vpop.f32.mrb[69].mxu1  ;;  %v6757_v6 = vpop.f32.mrb[69].mxu0 }
 0x38c   : > { %v5137_v24 = vadd.f32 %v5136_v26, %v5097_v8  ;;  %v5048_v25 = vadd.f32 %v5047_v62, %v5008_v0  ;;  %v4095_v15 = vpop.f32.mrb[70].mxu1  ;;  %v4512_v48 = vpop.f32.mrb[70].mxu0 }
 0x38d   : > { %v4681_v61 = vadd.f32 %v9553_v45, %v4633_v10  ;;  %v4211_v27 = vadd.f32 %v4095_v15, %v9430_v18  ;;  %v4634_v63 = vadd.f32 %v4512_v48, %v4209_v5  ;;  %v6758_v57 = vpop.f32.mrb[71].mxu0  ;;  %v6662_v56 = vpop.f32.mrb[71].mxu1 }
 0x38e   : > { %v4863_v36 = vpop.permute.xlu0 %4862  ;;  %v5138_v58 = vadd.f32 %v5137_v24, %v5098_v4  ;;  %v4868_v3 = vpop.permute.xlu1 %4867 }
 0x38f   : > { %4722 = vst [vmem:[%s9559_s30 + $0x70] sm:$0xff] %v4681_v61  ;;  %v5009_v14 = vmul.f32 %v4863_v36, %v4681_v61  ;;  %v4682_v29 = vadd.f32 %v9553_v45, %v4634_v63 }
 0x391   : > { %v5049_v31 = vadd.f32 %v5048_v25, %v5009_v14  ;;  %v5099_v52 = vmul.f32 %v5009_v14, %v4681_v61  ;;  %4723 = vst [vmem:[%s9559_s30 + $0x78] sm:$0xff] %v4682_v29  ;;  %v5010_v59 = vmul.f32 %v4868_v3, %v4682_v29 }
 0x392   : > { %v4100_v42 = vpop.f32.mrb[72].mxu1  ;;  %v4517_v43 = vpop.f32.mrb[72].mxu0 }
 0x393   : > { %v5139_v11 = vadd.f32 %v5138_v58, %v5099_v52  ;;  %v5050_v26 = vadd.f32 %v5049_v31, %v5010_v59  ;;  %v5100_v49 = vmul.f32 %v5010_v59, %v4682_v29  ;;  %v4212_v18 = vadd.f32 %v4100_v42, %v9438_v54  ;;  %v6665_v5 = vpop.f32.mrb[73].mxu1  ;;  %v6761_v12 = vpop.f32.mrb[73].mxu0 }
 0x394   : > { %v4635_v44 = vadd.f32 %v4517_v43, %v4210_v55  ;;  %v4103_v2 = vpop.f32.mrb[74].mxu1  ;;  %v4520_v7 = vpop.f32.mrb[74].mxu0 }
 0x395   : > { %v5140_v38 = vadd.f32 %v5139_v11, %v5100_v49  ;;  %v4213_v20 = vadd.f32 %v4103_v2, %v9958_v30  ;;  %v4636_v0 = vadd.f32 %v4520_v7, %v4211_v27  ;;  %v6762_v62 = vpop.f32.mrb[75].mxu0  ;;  %v6666_v8 = vpop.f32.mrb[75].mxu1 }
 0x396   : > { %v4683_v34 = vadd.f32 %v9553_v45, %v4635_v44  ;;  %v4873_v19 = vpop.permute.xlu0 %4872  ;;  %v4878_v10 = vpop.permute.xlu1 %4877 }
 0x397   : > { %v4684_v4 = vadd.f32 %v9553_v45, %v4636_v0 }
 0x398   : > { %4724 = vst [vmem:[%s9559_s30 + $0x80] sm:$0xff] %v4683_v34  ;;  %v5011_v54 = vmul.f32 %v4873_v19, %v4683_v34 }
 0x399   : > { %4725 = vst [vmem:[%s9559_s30 + $0x88] sm:$0xff] %v4684_v4  ;;  %v5012_v16 = vmul.f32 %v4878_v10, %v4684_v4 }
 0x39a   : > { %v5051_v6 = vadd.f32 %v5050_v26, %v5011_v54  ;;  %v5101_v55 = vmul.f32 %v5011_v54, %v4683_v34  ;;  %v4108_v24 = vpop.f32.mrb[76].mxu1  ;;  %v4525_v25 = vpop.f32.mrb[76].mxu0 }
 0x39b   : > { %v5102_v15 = vmul.f32 %v5012_v16, %v4684_v4  ;;  %v4214_v48 = vadd.f32 %v4108_v24, %v9455_v39  ;;  %v4637_v61 = vadd.f32 %v4525_v25, %v4212_v18  ;;  %v6669_v27 = vpop.f32.mrb[77].mxu1  ;;  %v6765_v63 = vpop.f32.mrb[77].mxu0 }
 0x39c   : > { %v5141_v57 = vadd.f32 %v5140_v38, %v5101_v55  ;;  %v5052_v56 = vadd.f32 %v5051_v6, %v5012_v16  ;;  %v4111_v36 = vpop.f32.mrb[78].mxu1  ;;  %v4528_v58 = vpop.f32.mrb[78].mxu0 }
 0x39d   : > { %v4685_v14 = vadd.f32 %v9553_v45, %v4637_v61  ;;  %v4215_v29 = vadd.f32 %v4111_v36, %v9464_v23  ;;  %v4638_v3 = vadd.f32 %v4528_v58, %v4213_v20  ;;  %v6766_v31 = vpop.f32.mrb[79].mxu0  ;;  %v6670_v52 = vpop.f32.mrb[79].mxu1 }
 0x39e   : > { %v4883_v59 = vpop.permute.xlu0 %4882  ;;  %v5142_v42 = vadd.f32 %v5141_v57, %v5102_v15  ;;  %v4888_v11 = vpop.permute.xlu1 %4887 }
 0x39f   : > { %4726 = vst [vmem:[%s9559_s30 + $0x90] sm:$0xff] %v4685_v14  ;;  %v5013_v43 = vmul.f32 %v4883_v59, %v4685_v14  ;;  %v4686_v39 = vadd.f32 %v9553_v45, %v4638_v3 }
 0x3a1   : > { %v5053_v26 = vadd.f32 %v5052_v56, %v5013_v43  ;;  %v5103_v49 = vmul.f32 %v5013_v43, %v4685_v14  ;;  %4727 = vst [vmem:[%s9559_s30 + $0x98] sm:$0xff] %v4686_v39  ;;  %v5014_v18 = vmul.f32 %v4888_v11, %v4686_v39 }
 0x3a2   : > { %v4116_v5 = vpop.f32.mrb[80].mxu1  ;;  %v4533_v12 = vpop.f32.mrb[80].mxu0 }
 0x3a3   : > { %v5143_v44 = vadd.f32 %v5142_v42, %v5103_v49  ;;  %v5054_v2 = vadd.f32 %v5053_v26, %v5014_v18  ;;  %v5104_v7 = vmul.f32 %v5014_v18, %v4686_v39  ;;  %v4216_v23 = vadd.f32 %v4116_v5, %v9472_v33  ;;  %v6673_v38 = vpop.f32.mrb[81].mxu1  ;;  %v6769_v30 = vpop.f32.mrb[81].mxu0 }
 0x3a4   : > { %v4639_v20 = vadd.f32 %v4533_v12, %v4214_v48  ;;  %v4119_v0 = vpop.f32.mrb[82].mxu1  ;;  %v4536_v62 = vpop.f32.mrb[82].mxu0 }
 0x3a5   : > { %v5144_v8 = vadd.f32 %v5143_v44, %v5104_v7  ;;  %v4217_v34 = vadd.f32 %v4119_v0, %v9482_v13  ;;  %v4640_v19 = vadd.f32 %v4536_v62, %v4215_v29  ;;  %v6770_v4 = vpop.f32.mrb[83].mxu0  ;;  %v6674_v10 = vpop.f32.mrb[83].mxu1 }
 0x3a6   : > { %v4687_v54 = vadd.f32 %v9553_v45, %v4639_v20  ;;  %v4893_v16 = vpop.permute.xlu0 %4892  ;;  %v4898_v55 = vpop.permute.xlu1 %4897 }
 0x3a7   : > { %v4688_v6 = vadd.f32 %v9553_v45, %v4640_v19 }
 0x3a8   : > { %4728 = vst [vmem:[%s9559_s30 + $0xa0] sm:$0xff] %v4687_v54  ;;  %v5015_v33 = vmul.f32 %v4893_v16, %v4687_v54 }
 0x3a9   : > { %4729 = vst [vmem:[%s9559_s30 + $0xa8] sm:$0xff] %v4688_v6  ;;  %v5016_v24 = vmul.f32 %v4898_v55, %v4688_v6 }
 0x3aa   : > { %v5055_v25 = vadd.f32 %v5054_v2, %v5015_v33  ;;  %v5105_v15 = vmul.f32 %v5015_v33, %v4687_v54  ;;  %v4124_v48 = vpop.f32.mrb[84].mxu1  ;;  %v4541_v61 = vpop.f32.mrb[84].mxu0 }
 0x3ab   : > { %v5106_v27 = vmul.f32 %v5016_v24, %v4688_v6  ;;  %v4218_v13 = vadd.f32 %v4124_v48, %v9490_v37  ;;  %v4641_v63 = vadd.f32 %v4541_v61, %v4216_v23  ;;  %v6677_v57 = vpop.f32.mrb[85].mxu1  ;;  %v6773_v56 = vpop.f32.mrb[85].mxu0 }
 0x3ac   : > { %v5145_v36 = vadd.f32 %v5144_v8, %v5105_v15  ;;  %v5056_v58 = vadd.f32 %v5055_v25, %v5016_v24  ;;  %v4127_v14 = vpop.f32.mrb[86].mxu1  ;;  %v4544_v29 = vpop.f32.mrb[86].mxu0 }
 0x3ad   : > { %v4689_v3 = vadd.f32 %v9553_v45, %v4641_v63  ;;  %v4219_v31 = vadd.f32 %v4127_v14, %v9495_v40  ;;  %v4642_v52 = vadd.f32 %v4544_v29, %v4217_v34  ;;  %v6774_v59 = vpop.f32.mrb[87].mxu0  ;;  %v6678_v42 = vpop.f32.mrb[87].mxu1 }
 0x3ae   : > { %v4903_v43 = vpop.permute.xlu0 %4902  ;;  %v5146_v39 = vadd.f32 %v5145_v36, %v5106_v27  ;;  %v4908_v26 = vpop.permute.xlu1 %4907 }
 0x3af   : > { %4730 = vst [vmem:[%s9559_s30 + $0xb0] sm:$0xff] %v4689_v3  ;;  %v5017_v11 = vmul.f32 %v4903_v43, %v4689_v3  ;;  %v4690_v37 = vadd.f32 %v9553_v45, %v4642_v52 }
 0x3b1   : > { %v5057_v49 = vadd.f32 %v5056_v58, %v5017_v11  ;;  %v5107_v18 = vmul.f32 %v5017_v11, %v4689_v3  ;;  %4731 = vst [vmem:[%s9559_s30 + $0xb8] sm:$0xff] %v4690_v37  ;;  %v5018_v5 = vmul.f32 %v4908_v26, %v4690_v37 }
 0x3b2   : > { %v4132_v12 = vpop.f32.mrb[88].mxu1  ;;  %v4549_v44 = vpop.f32.mrb[88].mxu0 }
 0x3b3   : > { %v5147_v2 = vadd.f32 %v5146_v39, %v5107_v18  ;;  %v5058_v7 = vadd.f32 %v5057_v49, %v5018_v5  ;;  %v5108_v23 = vmul.f32 %v5018_v5, %v4690_v37  ;;  %v4220_v40 = vadd.f32 %v4132_v12, %v9502_v41  ;;  %v6681_v38 = vpop.f32.mrb[89].mxu1  ;;  %v6777_v30 = vpop.f32.mrb[89].mxu0 }
 0x3b4   : > { %v4643_v20 = vadd.f32 %v4549_v44, %v4218_v13  ;;  %v4135_v0 = vpop.f32.mrb[90].mxu1  ;;  %v4552_v62 = vpop.f32.mrb[90].mxu0 }
 0x3b5   : > { %v5148_v8 = vadd.f32 %v5147_v2, %v5108_v23  ;;  %v4221_v34 = vadd.f32 %v4135_v0, %v9506_v47  ;;  %v4644_v19 = vadd.f32 %v4552_v62, %v4219_v31  ;;  %v6778_v4 = vpop.f32.mrb[91].mxu0  ;;  %v6682_v10 = vpop.f32.mrb[91].mxu1 }
 0x3b6   : > { %v4691_v54 = vadd.f32 %v9553_v45, %v4643_v20  ;;  %v4913_v16 = vpop.permute.xlu0 %4912  ;;  %v4918_v55 = vpop.permute.xlu1 %4917 }
 0x3b7   : > { %v4692_v6 = vadd.f32 %v9553_v45, %v4644_v19 }
 0x3b8   : > { %4732 = vst [vmem:[%s9559_s30 + $0xc0] sm:$0xff] %v4691_v54  ;;  %v5019_v41 = vmul.f32 %v4913_v16, %v4691_v54 }
 0x3b9   : > { %4733 = vst [vmem:[%s9559_s30 + $0xc8] sm:$0xff] %v4692_v6  ;;  %v5020_v33 = vmul.f32 %v4918_v55, %v4692_v6 }
 0x3ba   : > { %v5059_v24 = vadd.f32 %v5058_v7, %v5019_v41  ;;  %v5109_v25 = vmul.f32 %v5019_v41, %v4691_v54  ;;  %v4140_v15 = vpop.f32.mrb[92].mxu1  ;;  %v4557_v48 = vpop.f32.mrb[92].mxu0 }
 0x3bb   : > { %v5110_v61 = vmul.f32 %v5020_v33, %v4692_v6  ;;  %v4222_v47 = vadd.f32 %v4140_v15, %v9511_v1  ;;  %v4645_v27 = vadd.f32 %v4557_v48, %v4220_v40  ;;  %v6685_v13 = vpop.f32.mrb[93].mxu1  ;;  %v6781_v63 = vpop.f32.mrb[93].mxu0 }
 0x3bc   : > { %v5149_v57 = vadd.f32 %v5148_v8, %v5109_v25  ;;  %v5060_v56 = vadd.f32 %v5059_v24, %v5020_v33  ;;  %v4143_v36 = vpop.f32.mrb[94].mxu1  ;;  %v4560_v58 = vpop.f32.mrb[94].mxu0 }
 0x3bd   : > { %v4693_v14 = vadd.f32 %v9553_v45, %v4645_v27  ;;  %v4223_v29 = vadd.f32 %v4143_v36, %v9514_v21  ;;  %v4646_v3 = vadd.f32 %v4560_v58, %v4221_v34  ;;  %v6782_v31 = vpop.f32.mrb[95].mxu0  ;;  %v6686_v52 = vpop.f32.mrb[95].mxu1 }
 0x3be   : > { %v4923_v59 = vpop.permute.xlu0 %4922  ;;  %v5150_v42 = vadd.f32 %v5149_v57, %v5110_v61  ;;  %v4928_v39 = vpop.permute.xlu1 %4927 }
 0x3bf   : > { %4734 = vst [vmem:[%s9559_s30 + $0xd0] sm:$0xff] %v4693_v14  ;;  %v5021_v43 = vmul.f32 %v4923_v59, %v4693_v14  ;;  %v4694_v1 = vadd.f32 %v9553_v45, %v4646_v3 }
 0x3c1   : > { %v5061_v11 = vadd.f32 %v5060_v56, %v5021_v43  ;;  %v5111_v37 = vmul.f32 %v5021_v43, %v4693_v14  ;;  %4735 = vst [vmem:[%s9559_s30 + $0xd8] sm:$0xff] %v4694_v1  ;;  %v5022_v26 = vmul.f32 %v4928_v39, %v4694_v1 }
 0x3c2   : > { %v4148_v49 = vpop.f32.mrb[96].mxu1  ;;  %v4565_v18 = vpop.f32.mrb[96].mxu0 }
 0x3c3   : > { %v5151_v5 = vadd.f32 %v5150_v42, %v5111_v37  ;;  %v5062_v12 = vadd.f32 %v5061_v11, %v5022_v26  ;;  %v5112_v44 = vmul.f32 %v5022_v26, %v4694_v1  ;;  %v4224_v21 = vadd.f32 %v4148_v49, %v9517_v28  ;;  %v6689_v2 = vpop.f32.mrb[97].mxu1  ;;  %v6785_v7 = vpop.f32.mrb[97].mxu0 }
 0x3c4   : > { %v4647_v23 = vadd.f32 %v4565_v18, %v4222_v47  ;;  %v4151_v40 = vpop.f32.mrb[98].mxu1  ;;  %v4568_v38 = vpop.f32.mrb[98].mxu0 }
 0x3c5   : > { %v5152_v30 = vadd.f32 %v5151_v5, %v5112_v44  ;;  %v4225_v20 = vadd.f32 %v4151_v40, %v9520_v22  ;;  %v4648_v0 = vadd.f32 %v4568_v38, %v4223_v29  ;;  %v6786_v62 = vpop.f32.mrb[99].mxu0  ;;  %v6690_v8 = vpop.f32.mrb[99].mxu1 }
 0x3c6   : > { %v4695_v34 = vadd.f32 %v9553_v45, %v4647_v23  ;;  %v4933_v19 = vpop.permute.xlu0 %4932  ;;  %v4938_v10 = vpop.permute.xlu1 %4937 }
 0x3c7   : > { %v4696_v4 = vadd.f32 %v9553_v45, %v4648_v0 }
 0x3c8   : > { %4736 = vst [vmem:[%s9559_s30 + $0xe0] sm:$0xff] %v4695_v34  ;;  %v5023_v28 = vmul.f32 %v4933_v19, %v4695_v34 }
 0x3c9   : > { %4737 = vst [vmem:[%s9559_s30 + $0xe8] sm:$0xff] %v4696_v4  ;;  %v5024_v54 = vmul.f32 %v4938_v10, %v4696_v4 }
 0x3ca   : > { %v5063_v16 = vadd.f32 %v5062_v12, %v5023_v28  ;;  %v5113_v6 = vmul.f32 %v5023_v28, %v4695_v34  ;;  %v4156_v55 = vpop.f32.mrb[100].mxu1  ;;  %v4573_v41 = vpop.f32.mrb[100].mxu0 }
 0x3cb   : > { %v5114_v33 = vmul.f32 %v5024_v54, %v4696_v4  ;;  %v4226_v22 = vadd.f32 %v4156_v55, %v9523_v60  ;;  %v4649_v24 = vadd.f32 %v4573_v41, %v4224_v21  ;;  %v6693_v25 = vpop.f32.mrb[101].mxu1  ;;  %v6789_v15 = vpop.f32.mrb[101].mxu0 }
 0x3cc   : > { %v5153_v48 = vadd.f32 %v5152_v30, %v5113_v6  ;;  %v5064_v61 = vadd.f32 %v5063_v16, %v5024_v54  ;;  %v4159_v47 = vpop.f32.mrb[102].mxu1  ;;  %v4576_v27 = vpop.f32.mrb[102].mxu0 }
 0x3cd   : > { %v4697_v13 = vadd.f32 %v9553_v45, %v4649_v24  ;;  %v4227_v63 = vadd.f32 %v4159_v47, %v9526_v50  ;;  %v4650_v57 = vadd.f32 %v4576_v27, %v4225_v20  ;;  %v6790_v56 = vpop.f32.mrb[103].mxu0  ;;  %v6694_v36 = vpop.f32.mrb[103].mxu1 }
 0x3ce   : > { %v4943_v58 = vpop.permute.xlu0 %4942  ;;  %v5154_v14 = vadd.f32 %v5153_v48, %v5114_v33  ;;  %v4948_v3 = vpop.permute.xlu1 %4947 }
 0x3cf   : > { %4738 = vst [vmem:[%s9559_s30 + $0xf0] sm:$0xff] %v4697_v13  ;;  %v5025_v29 = vmul.f32 %v4943_v58, %v4697_v13  ;;  %v4698_v60 = vadd.f32 %v9553_v45, %v4650_v57 }
 0x3d1   : > { %v5065_v31 = vadd.f32 %v5064_v61, %v5025_v29  ;;  %v5115_v52 = vmul.f32 %v5025_v29, %v4697_v13  ;;  %4739 = vst [vmem:[%s9559_s30 + $0xf8] sm:$0xff] %v4698_v60  ;;  %v5026_v59 = vmul.f32 %v4948_v3, %v4698_v60 }
 0x3d2   : > { %v4164_v42 = vpop.f32.mrb[104].mxu1  ;;  %v4581_v43 = vpop.f32.mrb[104].mxu0 }
 0x3d3   : > { %v5155_v1 = vadd.f32 %v5154_v14, %v5115_v52  ;;  %v5066_v39 = vadd.f32 %v5065_v31, %v5026_v59  ;;  %v5116_v11 = vmul.f32 %v5026_v59, %v4698_v60  ;;  %v4228_v50 = vadd.f32 %v4164_v42, %v9529_v32  ;;  %v6697_v37 = vpop.f32.mrb[105].mxu1  ;;  %v6793_v26 = vpop.f32.mrb[105].mxu0 }
 0x3d4   : > { %v4651_v49 = vadd.f32 %v4581_v43, %v4226_v22  ;;  %v4167_v18 = vpop.f32.mrb[106].mxu1  ;;  %v4584_v5 = vpop.f32.mrb[106].mxu0 }
 0x3d5   : > { %v5156_v12 = vadd.f32 %v5155_v1, %v5116_v11  ;;  %v4229_v44 = vadd.f32 %v4167_v18, %v9532_v9  ;;  %v4652_v21 = vadd.f32 %v4584_v5, %v4227_v63  ;;  %v6794_v2 = vpop.f32.mrb[107].mxu0  ;;  %v6698_v7 = vpop.f32.mrb[107].mxu1 }
 0x3d6   : > { %v4699_v23 = vadd.f32 %v9553_v45, %v4651_v49  ;;  %v4953_v40 = vpop.permute.xlu0 %4952  ;;  %v4958_v30 = vpop.permute.xlu1 %4957 }
 0x3d7   : > { %v4700_v38 = vadd.f32 %v9553_v45, %v4652_v21 }
 0x3d8   : > { %4740 = vst [vmem:[%s9559_s30 + $0x100] sm:$0xff] %v4699_v23  ;;  %v5027_v32 = vmul.f32 %v4953_v40, %v4699_v23 }
 0x3d9   : > { %4741 = vst [vmem:[%s9559_s30 + $0x108] sm:$0xff] %v4700_v38  ;;  %v5028_v20 = vmul.f32 %v4958_v30, %v4700_v38 }
 0x3da   : > { %v5067_v0 = vadd.f32 %v5066_v39, %v5027_v32  ;;  %v5117_v62 = vmul.f32 %v5027_v32, %v4699_v23  ;;  %v4172_v8 = vpop.f32.mrb[108].mxu1  ;;  %v4589_v34 = vpop.f32.mrb[108].mxu0 }
 0x3db   : > { %v5118_v19 = vmul.f32 %v5028_v20, %v4700_v38  ;;  %v4230_v9 = vadd.f32 %v4172_v8, %v9535_v17  ;;  %v4653_v4 = vadd.f32 %v4589_v34, %v4228_v50  ;;  %v6701_v10 = vpop.f32.mrb[109].mxu1  ;;  %v6797_v28 = vpop.f32.mrb[109].mxu0 }
 0x3dc   : > { %v5157_v54 = vadd.f32 %v5156_v12, %v5117_v62  ;;  %v5068_v16 = vadd.f32 %v5067_v0, %v5028_v20  ;;  %v4175_v6 = vpop.f32.mrb[110].mxu1  ;;  %v4592_v55 = vpop.f32.mrb[110].mxu0 }
 0x3dd   : > { %v4701_v41 = vadd.f32 %v9553_v45, %v4653_v4  ;;  %v4231_v33 = vadd.f32 %v4175_v6, %v9538_v53  ;;  %v4654_v22 = vadd.f32 %v4592_v55, %v4229_v44  ;;  %v6798_v24 = vpop.f32.mrb[111].mxu0  ;;  %v6702_v25 = vpop.f32.mrb[111].mxu1 }
 0x3de   : > { %v4963_v15 = vpop.permute.xlu0 %4962  ;;  %v5158_v48 = vadd.f32 %v5157_v54, %v5118_v19  ;;  %v4968_v47 = vpop.permute.xlu1 %4967 }
 0x3df   : > { %4742 = vst [vmem:[%s9559_s30 + $0x110] sm:$0xff] %v4701_v41  ;;  %v5029_v61 = vmul.f32 %v4963_v15, %v4701_v41  ;;  %v4702_v17 = vadd.f32 %v9553_v45, %v4654_v22  ;;  %v7040_v15 = vld [vmem:[%s9702_s2] ss:$0 sm:$0xff] }
 0x3e1   : > { %v5069_v27 = vadd.f32 %v5068_v16, %v5029_v61  ;;  %v5119_v13 = vmul.f32 %v5029_v61, %v4701_v41  ;;  %4743 = vst [vmem:[%s9559_s30 + $0x118] sm:$0xff] %v4702_v17  ;;  %v5030_v63 = vmul.f32 %v4968_v47, %v4702_v17 }
 0x3e2   : > { %v4180_v57 = vpop.f32.mrb[112].mxu1  ;;  %v4597_v56 = vpop.f32.mrb[112].mxu0 }
 0x3e3   : > { %v5159_v36 = vadd.f32 %v5158_v48, %v5119_v13  ;;  %v5070_v58 = vadd.f32 %v5069_v27, %v5030_v63  ;;  %v5120_v14 = vmul.f32 %v5030_v63, %v4702_v17  ;;  %v4232_v53 = vadd.f32 %v4180_v57, %v9541_v51  ;;  %v6705_v29 = vpop.f32.mrb[113].mxu1  ;;  %v6801_v60 = vpop.f32.mrb[113].mxu0 }
 0x3e4   : > { %v4655_v3 = vadd.f32 %v4597_v56, %v4230_v9  ;;  %v4183_v31 = vpop.f32.mrb[114].mxu1  ;;  %v4600_v52 = vpop.f32.mrb[114].mxu0 }
 0x3e5   : > { %v5160_v59 = vadd.f32 %v5159_v36, %v5120_v14  ;;  %v4233_v42 = vadd.f32 %v4183_v31, %v9543_v46  ;;  %v4656_v43 = vadd.f32 %v4600_v52, %v4231_v33  ;;  %v6802_v1 = vpop.f32.mrb[115].mxu0  ;;  %v6706_v39 = vpop.f32.mrb[115].mxu1 }
 0x3e6   : > { %v4703_v11 = vadd.f32 %v9553_v45, %v4655_v3  ;;  %v4973_v50 = vpop.permute.xlu0 %4972  ;;  %v4978_v26 = vpop.permute.xlu1 %4977 }
 0x3e7   : > { %v4704_v37 = vadd.f32 %v9553_v45, %v4656_v43 }
 0x3e8   : > { %4744 = vst [vmem:[%s9559_s30 + $0x120] sm:$0xff] %v4703_v11  ;;  %v5031_v51 = vmul.f32 %v4973_v50, %v4703_v11 }
 0x3e9   : > { %4745 = vst [vmem:[%s9559_s30 + $0x128] sm:$0xff] %v4704_v37  ;;  %v5032_v49 = vmul.f32 %v4978_v26, %v4704_v37 }
 0x3ea   : > { %v5071_v18 = vadd.f32 %v5070_v58, %v5031_v51  ;;  %v5121_v5 = vmul.f32 %v5031_v51, %v4703_v11  ;;  %v4188_v12 = vpop.f32.mrb[116].mxu1  ;;  %v4605_v44 = vpop.f32.mrb[116].mxu0 }
 0x3eb   : > { %v5122_v21 = vmul.f32 %v5032_v49, %v4704_v37  ;;  %v4234_v46 = vadd.f32 %v4188_v12, %v9545_v35  ;;  %v4657_v2 = vadd.f32 %v4605_v44, %v4232_v53  ;;  %v6805_v7 = vpop.f32.mrb[117].mxu0  ;;  %v6709_v23 = vpop.f32.mrb[117].mxu1 }
 0x3ec   : > { %v5161_v40 = vadd.f32 %v5160_v59, %v5121_v5  ;;  %v5072_v38 = vadd.f32 %v5071_v18, %v5032_v49  ;;  %v4608_v30 = vpop.f32.mrb[118].mxu0  ;;  %v4191_v32 = vpop.f32.mrb[118].mxu1 }
 0x3ed   : > { %v4705_v20 = vadd.f32 %v9553_v45, %v4657_v2  ;;  %v4658_v0 = vadd.f32 %v4608_v30, %v4233_v42  ;;  %v6806_v62 = vpop.f32.mrb[119].mxu0  ;;  %v6710_v8 = vpop.f32.mrb[119].mxu1 }
 0x3ee   : > { %v4983_v34 = vpop.permute.xlu0 %4982  ;;  %v5162_v19 = vadd.f32 %v5161_v40, %v5122_v21  ;;  %v4988_v35 = vpop.permute.xlu1 %4987 }
 0x3ef   : > { %4746 = vst [vmem:[%s9559_s30 + $0x130] sm:$0xff] %v4705_v20  ;;  %v5033_v9 = vmul.f32 %v4983_v34, %v4705_v20  ;;  %v4706_v4 = vadd.f32 %v9553_v45, %v4658_v0 }
 0x3f1   : > { %v5073_v10 = vadd.f32 %v5072_v38, %v5033_v9  ;;  %v5123_v28 = vmul.f32 %v5033_v9, %v4705_v20  ;;  %4747 = vst [vmem:[%s9559_s30 + $0x138] sm:$0xff] %v4706_v4  ;;  %v5034_v54 = vmul.f32 %v4988_v35, %v4706_v4 }
 0x3f2   : > { %v4613_v16 = vpop.f32.mrb[120].mxu0  ;;  %v4993_v61 = vpop.permute.xlu0 %4992 }
 0x3f3   : > { %v5163_v6 = vadd.f32 %v5162_v19, %v5123_v28  ;;  %v5074_v55 = vadd.f32 %v5073_v10, %v5034_v54  ;;  %v5124_v41 = vmul.f32 %v5034_v54, %v4706_v4  ;;  %v4659_v33 = vadd.f32 %v4613_v16, %v4234_v46  ;;  %v6809_v22 = vpop.f32.mrb[121].mxu0 }
 0x3f4   : > { %v4616_v24 = vpop.f32.mrb[122].mxu0 }
 0x3f5   : > { %v5164_v25 = vadd.f32 %v5163_v6, %v5124_v41  ;;  %v4707_v48 = vadd.f32 %v7040_v15, %v4659_v33  ;;  %v6810_v45 = vpop.f32.mrb[123].mxu0 }
 0x3f7   : > { %4748 = vst [vmem:[%s9559_s30 + $0x140] sm:$0xf] %v4707_v48  ;;  %v5035_v17 = vmul.f32 %v4993_v61, %v4707_v48 }
 0x3f9   : > { %v5076_v47 = vsel %vm5075_vm7, %v5035_v17, 0.0  ;;  %v5125_v27 = vmul.f32 %v5035_v17, %v4707_v48 }
 0x3fa   : > { %v5077_v13 = vadd.f32 %v5076_v47, %v5074_v55 }
 0x3fb   : > { %v5165_v63 = vsel %vm5075_vm7, %v5125_v27, 0.0 }
 0x3fc   : > { %v5078_v57 = vrot.slane %v5077_v13, 4  ;;  %v5166_v56 = vadd.f32 %v5165_v63, %v5164_v25 }
 0x3fe   : > { %v5079_v36 = vadd.f32 %v5078_v57, %v5077_v13  ;;  %v5167_v58 = vrot.slane %v5166_v56, 4 }
 0x400   : > { %v5080_v14 = vrot.slane %v5079_v36, 2  ;;  %v5168_v53 = vadd.f32 %v5167_v58, %v5166_v56 }
 0x402   : > { %v5081_v29 = vadd.f32 %v5080_v14, %v5079_v36  ;;  %v5169_v60 = vrot.slane %v5168_v53, 2 }
 0x404   : > { %v5082_v3 = vrot.slane %v5081_v29, 1  ;;  %v5170_v31 = vadd.f32 %v5169_v60, %v5168_v53 }
 0x406   : > { %v5083_v52 = vadd.f32 %v5082_v3, %v5081_v29  ;;  %v5171_v59 = vrot.slane %v5170_v31, 1 }
 0x408   : > { %5084 = vst [vmem:[%s329_s12] sm:$0x1] %v5083_v52  ;;  %v5172_v42 = vadd.f32 %v5171_v59, %v5170_v31 }
 0x40a   : > { %5173 = vst [vmem:[%s335_s15] sm:$0x1] %v5172_v42 }
 0x40b PF: > { %s17_s23 = sadd.s32 1, %s7063_s23   ;;  %s9959_s21 = smov %s7059_s22 }
 0x40c   : > { %p14_p5 = scmp.ge.s32.totalorder %s17_s23, 4   ;;  %s9960_s22 = smov %s9962_s24 }
 0x40e   :  { %16 = sbr.rel (!%p14_p5) target bundleno = 2 (0x2), region = 104 }

</bundles_post_ra>
